<compile_context>
chip_gen: v5e
topology: v5e:2x2
jax: 0.10.0
libtpu: 0.0.40
codegen_flags: <defaults>
</compile_context>

<pallas_src>
import functools

import jax
import jax.numpy as jnp
from jax.experimental import pallas as pl
from jax.experimental.pallas import tpu as pltpu


def _round_up(x, m):
    return (x + m - 1) // m * m


def _pick_tile(dim, cap, unit):
    """Largest multiple of `unit` that divides `dim` (itself a multiple of unit) and <= cap."""
    best = unit
    t = unit
    while t <= min(cap, dim):
        if dim % t == 0:
            best = t
        t += unit
    return best


# ------------------------------------------------------------------
# Tiled (grouped) matmul + bias + ReLU  -- conv1 / conv2 workhorse
# ------------------------------------------------------------------

def _gmm_bias_relu_kernel(a_ref, b_ref, bias_ref, o_ref, acc_ref):
    k = pl.program_id(3)

    @pl.when(k == 0)
    def _init():
        acc_ref[...] = jnp.zeros_like(acc_ref)

    acc_ref[...] += jnp.dot(a_ref[...], b_ref[...],
                            preferred_element_type=jnp.float32)

    @pl.when(k == pl.num_programs(3) - 1)
    def _done():
        o_ref[...] = jnp.maximum(acc_ref[...] + bias_ref[...], 0.0).astype(o_ref.dtype)


def grouped_matmul_bias_relu(a, b_packed, bias_packed):
    """relu(a[g] @ b[g] + bias[g]) per group; bf16 on the MXU with f32 accumulation.

    a:           (G, M, K)  f32 activations (padded/cast here).
    b_packed:    (G, Kp, Np) bf16 pre-packed weights (K ordering matches im2col).
    bias_packed: (G, 1, Np)  f32 pre-packed bias.
    Returns (G, M, Np) f32; padded output channels are exactly zero
    (zero weights + zero bias + ReLU), so they can be carried forward.
    """
    G, M, K = a.shape
    _, Kp, Np = b_packed.shape

    tm = min(512, _round_up(M, 8))
    Mp = _round_up(M, tm)
    # Collapse K and N to a single grid step whenever the blocks stay small
    # (per-step overhead exceeded MXU time at these sizes); fall back to tiling.
    tk = Kp if Kp <= 2304 else _pick_tile(Kp, 1024, 128)
    tn = Np if Np <= 512 else _pick_tile(Np, 512, 128)

    a_p = jnp.pad(a, ((0, 0), (0, Mp - M), (0, Kp - K))).astype(jnp.bfloat16)

    grid = (G, Mp // tm, Np // tn, Kp // tk)
    out = pl.pallas_call(
        _gmm_bias_relu_kernel,
        out_shape=jax.ShapeDtypeStruct((G, Mp, Np), jnp.float32),
        grid_spec=pltpu.PrefetchScalarGridSpec(
            num_scalar_prefetch=0,
            grid=grid,
            in_specs=[
                pl.BlockSpec((None, tm, tk), lambda g, i, j, k: (g, i, k)),
                pl.BlockSpec((None, tk, tn), lambda g, i, j, k: (g, k, j)),
                pl.BlockSpec((None, 1, tn), lambda g, i, j, k: (g, 0, j)),
            ],
            out_specs=pl.BlockSpec((None, tm, tn), lambda g, i, j, k: (g, i, j)),
            scratch_shapes=[pltpu.VMEM((tm, tn), jnp.float32)],
        ),
        compiler_params=pltpu.CompilerParams(
            dimension_semantics=("parallel", "parallel", "parallel", "arbitrary"),
            vmem_limit_bytes=32 * 1024 * 1024),
    )(a_p, b_packed, bias_packed)
    return out[:, :M, :]


# ------------------------------------------------------------------
# Conv2d (+ReLU) via im2col + the matmul kernel (pre-packed weights)
# ------------------------------------------------------------------

def _im2col(x, kh, kw, stride, pad):
    """x: (N, H, W, C) -> patches (N, oh, ow, kh*kw*C), column ordering (kh, kw, C)."""
    # TODO(synk): stream the (kh,kw) taps through the matmul K grid axis via index_map
    # so the patch tensor is never materialized in HBM (matters once batch grows).
    if pad > 0:
        x = jnp.pad(x, ((0, 0), (pad, pad), (pad, pad), (0, 0)))
    N, H, W, C = x.shape
    oh = (H - kh) // stride + 1
    ow = (W - kw) // stride + 1
    cols = []
    for i in range(kh):
        for j in range(kw):
            cols.append(x[:, i:i + stride * oh:stride, j:j + stride * ow:stride, :])
    return jnp.concatenate(cols, axis=-1), oh, ow


def conv2d_relu_packed(x, w_packed, b_packed, *, kh, kw, stride, pad, groups, cout):
    """NHWC conv with pre-packed (G, Kp, Np) bf16 weights and fused bias+ReLU.

    For groups == 1 the output channel axis stays lane-padded to a multiple of 128
    (padded channels exactly zero)."""
    N = x.shape[0]
    cin = x.shape[-1]
    cin_g = cin // groups
    patches, oh, ow = _im2col(x, kh, kw, stride, pad)
    M = N * oh * ow
    K = kh * kw * cin_g
    if groups == 1:
        a = patches.reshape(1, M, K)
        o = grouped_matmul_bias_relu(a, w_packed, b_packed)[0]
        return o.reshape(N, oh, ow, o.shape[-1])
    # grouped conv: fold the groups into one pallas_call via a leading grid axis
    p = patches.reshape(M, kh * kw, groups, cin_g)
    a = jnp.transpose(p, (2, 0, 1, 3)).reshape(groups, M, K)
    o = grouped_matmul_bias_relu(a, w_packed, b_packed)
    cout_g = cout // groups
    o = o[:, :, :cout_g]                                  # drop per-group lane padding
    o = jnp.transpose(o, (1, 0, 2)).reshape(M, cout)
    return o.reshape(N, oh, ow, cout)


# ------------------------------------------------------------------
# Fused MaxPool2d(3, 2) + CrossMapLRN2d: one kernel per stage
# ------------------------------------------------------------------

def _pool_lrn_kernel(x_ref, o_ref, *, oh, ow, c_true, size, alpha, beta, k):
    x = x_ref[...]                                         # (1, H, W, C), C on lanes

    # MaxPool over H (major axis): 3-tap window, stride 2.
    rows = []
    for i in range(oh):
        r0 = x[:, 2 * i:2 * i + 1]
        r1 = x[:, 2 * i + 1:2 * i + 2]
        r2 = x[:, 2 * i + 2:2 * i + 3]
        rows.append(jnp.maximum(jnp.maximum(r0, r1), r2))  # (1, 1, W, C)
    y1 = jnp.concatenate(rows, axis=1)                     # (1, oh, W, C)

    # MaxPool over W (sublane axis): 3-tap window, stride 2.
    cols = []
    for j in range(ow):
        c0 = y1[:, :, 2 * j:2 * j + 1, :]
        c1 = y1[:, :, 2 * j + 1:2 * j + 2, :]
        c2 = y1[:, :, 2 * j + 2:2 * j + 3, :]
        cols.append(jnp.maximum(jnp.maximum(c0, c1), c2))  # (1, oh, 1, C)
    y = jnp.concatenate(cols, axis=2)                      # (1, oh, ow, C)

    # CrossMapLRN2d across channels (lane axis), window built with XLU rolls.
    cp = y.shape[-1]
    half = (size - 1) // 2
    sq = y * y
    lane = jax.lax.broadcasted_iota(jnp.int32, y.shape, 3)
    s = sq
    for d in range(1, half + 1):
        up = pltpu.roll(sq, shift=cp - d, axis=3)          # position c reads sq[c + d]
        s = s + jnp.where(lane < c_true - d, up, 0.0)
        dn = pltpu.roll(sq, shift=d, axis=3)               # position c reads sq[c - d]
        s = s + jnp.where(lane >= d, dn, 0.0)
    base = k + (alpha / size) * s                          # CrossMapLRN2d: k + alpha/n * sum
    o_ref[...] = y * jnp.exp(-beta * jnp.log(base))        # base >= k = 1 > 0, log is safe


def pool_lrn(x, c_true, size=5, alpha=1e-4, beta=0.75, k=1.0):
    """nn.MaxPool2d(3,2) followed by nn.CrossMapLRN2d, fused, NHWC input whose channel
    axis may be lane-padded; `c_true` is the number of real channels (padding is zero)."""
    N, H, W, C = x.shape
    oh = (H - 3) // 2 + 1
    ow = (W - 3) // 2 + 1
    kern = functools.partial(_pool_lrn_kernel, oh=oh, ow=ow, c_true=c_true,
                             size=size, alpha=alpha, beta=beta, k=k)
    return pl.pallas_call(
        kern,
        out_shape=jax.ShapeDtypeStruct((N, oh, ow, C), jnp.float32),
        grid=(N,),
        in_specs=[pl.BlockSpec((1, H, W, C), lambda i: (i, 0, 0, 0))],
        out_specs=pl.BlockSpec((1, oh, ow, C), lambda i: (i, 0, 0, 0)),
        compiler_params=pltpu.CompilerParams(dimension_semantics=("parallel",)),
    )(x)


# ------------------------------------------------------------------
# Fused conv3 (3x3) + conv4 (1x1) + special_weight branch + x * x_sep
# ------------------------------------------------------------------

def _conv3_tail_kernel(a_ref, w3_ref, b3_ref, w4_ref, b4_ref, w5_ref, b5_ref,
                       w6_ref, b6_ref, w7_ref, b7_ref, o_ref):
    # conv3: im2col matmul 2304 -> 384 + ReLU (stays in VMEM)
    h3 = jnp.dot(a_ref[...], w3_ref[...], preferred_element_type=jnp.float32)
    h3 = jnp.maximum(h3 + b3_ref[...], 0.0)
    # conv4: 1x1, 384 -> 64 (lane-padded to 128) + ReLU
    h4 = jnp.dot(h3.astype(jnp.bfloat16), w4_ref[...], preferred_element_type=jnp.float32)
    h4 = jnp.maximum(h4 + b4_ref[...], 0.0)
    # special_weight: three 1x1 convs + ReLU, everything resident in VMEM
    s = jnp.dot(h4.astype(jnp.bfloat16), w5_ref[...], preferred_element_type=jnp.float32)
    s = jnp.maximum(s + b5_ref[...], 0.0)
    s = jnp.dot(s.astype(jnp.bfloat16), w6_ref[...], preferred_element_type=jnp.float32)
    s = jnp.maximum(s + b6_ref[...], 0.0)
    # last 1x1 conv's single output channel is replicated across all 128 lanes in
    # its pre-packed weight/bias, so the broadcast multiply is pure elementwise.
    s = jnp.dot(s.astype(jnp.bfloat16), w7_ref[...], preferred_element_type=jnp.float32)
    s = jnp.maximum(s + b7_ref[...], 0.0)
    o_ref[...] = h4 * s


def conv3_tail(x3, pk):
    """conv3+ReLU, conv4+ReLU, the whole special_weight branch and x*x_sep, one kernel."""
    N = x3.shape[0]
    patches, oh, ow = _im2col(x3, 3, 3, 1, 1)       # (N, 2, 2, 2304)
    M = N * oh * ow
    K = patches.shape[-1]                           # 2304 (multiple of 128)

    tm = min(256, _round_up(M, 8))
    Mp = _round_up(M, tm)
    a = patches.reshape(M, K)
    if Mp != M:
        a = jnp.pad(a, ((0, Mp - M), (0, 0)))
    a = a.astype(jnp.bfloat16)

    row = lambda i: (i, 0)
    fix = lambda i: (0, 0)
    out = pl.pallas_call(
        _conv3_tail_kernel,
        out_shape=jax.ShapeDtypeStruct((Mp, 128), jnp.float32),
        grid=(Mp // tm,),
        in_specs=[pl.BlockSpec((tm, K), row),
                  pl.BlockSpec((K, 384), fix), pl.BlockSpec((1, 384), fix),
                  pl.BlockSpec((384, 128), fix), pl.BlockSpec((1, 128), fix),
                  pl.BlockSpec((128, 128), fix), pl.BlockSpec((1, 128), fix),
                  pl.BlockSpec((128, 128), fix), pl.BlockSpec((1, 128), fix),
                  pl.BlockSpec((128, 128), fix), pl.BlockSpec((1, 128), fix)],
        out_specs=pl.BlockSpec((tm, 128), row),
        compiler_params=pltpu.CompilerParams(
            dimension_semantics=("parallel",),
            vmem_limit_bytes=32 * 1024 * 1024),
    )(a, pk["c3_w"], pk["c3_b"], pk["c4_w"], pk["c4_b"],
      pk["s1_w"], pk["s1_b"], pk["s2_w"], pk["s2_b"], pk["s3_w"], pk["s3_b"])
    return out[:M, :64].reshape(N, oh, ow, 64)


# ------------------------------------------------------------------
# Parameters: init (PyTorch-style) + one-time packing for the kernels
# ------------------------------------------------------------------

def _conv_params(key, cout, cin, kh, kw):
    k1, k2 = jax.random.split(key)
    fan_in = cin * kh * kw
    bound = 1.0 / jnp.sqrt(jnp.float32(fan_in))
    w = jax.random.uniform(k1, (cout, cin, kh, kw), jnp.float32, -bound, bound)
    b = jax.random.uniform(k2, (cout,), jnp.float32, -bound, bound)
    return w, b


def init_params(key):
    keys = jax.random.split(key, 7)
    p = {}
    p["c1_w"], p["c1_b"] = _conv_params(keys[0], 96, 3, 11, 11)
    p["c2_w"], p["c2_b"] = _conv_params(keys[1], 256, 48, 5, 5)    # groups=2
    p["c3_w"], p["c3_b"] = _conv_params(keys[2], 384, 256, 3, 3)
    p["c4_w"], p["c4_b"] = _conv_params(keys[3], 64, 384, 1, 1)
    p["s1_w"], p["s1_b"] = _conv_params(keys[4], 64, 64, 1, 1)
    p["s2_w"], p["s2_b"] = _conv_params(keys[5], 64, 64, 1, 1)
    p["s3_w"], p["s3_b"] = _conv_params(keys[6], 1, 64, 1, 1)
    return p


def pack_params(p):
    """One-time weight packing (transpose/pad/bf16 cast); run OUTSIDE the jitted forward."""
    def dense(w, kp=None, npad=None):
        # OIHW -> (K = kh*kw*cin, N = cout) with column ordering (kh, kw, cin).
        cout, cin, kh, kw = w.shape
        m = jnp.transpose(w, (2, 3, 1, 0)).reshape(kh * kw * cin, cout)
        K, N = m.shape
        kp = K if kp is None else kp
        npad = _round_up(N, 128) if npad is None else npad
        return jnp.pad(m, ((0, kp - K), (0, npad - N))).astype(jnp.bfloat16)

    def bias(b, npad):
        return jnp.pad(b, (0, npad - b.shape[0])).reshape(1, npad).astype(jnp.float32)

    pk = {}
    # conv1: (96,3,11,11): K=363 -> 384, N=96 -> 128; leading group axis of 1
    pk["c1_w"] = dense(p["c1_w"], kp=384)[None]                              # (1, 384, 128)
    pk["c1_b"] = bias(p["c1_b"], 128)[None]                                  # (1, 1, 128)
    # conv2: (256,48,5,5), groups=2: per-group K=1200 -> 1280, N=128
    wg = p["c2_w"].reshape(2, 128, 48, 5, 5)
    m2 = jnp.transpose(wg, (0, 3, 4, 2, 1)).reshape(2, 1200, 128)
    pk["c2_w"] = jnp.pad(m2, ((0, 0), (0, 80), (0, 0))).astype(jnp.bfloat16)  # (2, 1280, 128)
    pk["c2_b"] = p["c2_b"].reshape(2, 1, 128).astype(jnp.float32)
    # conv3: (384,256,3,3): K=2304, N=384 (no pad)
    pk["c3_w"] = dense(p["c3_w"])                                            # (2304, 384)
    pk["c3_b"] = bias(p["c3_b"], 384)
    # conv4: (64,384,1,1): 384 -> 64 (pad cout to 128)
    pk["c4_w"] = dense(p["c4_w"])                                            # (384, 128)
    pk["c4_b"] = bias(p["c4_b"], 128)
    # special_weight 1x1 convs: pad cin rows 64 -> 128 (zero rows) and cout to 128
    def dense_1x1(w, rows, cols):
        cout, cin = w.shape[0], w.shape[1]
        m = jnp.transpose(w.reshape(cout, cin), (1, 0))
        return jnp.pad(m, ((0, rows - cin), (0, cols - cout))).astype(jnp.bfloat16)
    pk["s1_w"] = dense_1x1(p["s1_w"], 128, 128)
    pk["s1_b"] = bias(p["s1_b"], 128)
    pk["s2_w"] = dense_1x1(p["s2_w"], 128, 128)
    pk["s2_b"] = bias(p["s2_b"], 128)
    # last 1x1 conv: replicate the single x_sep output channel across all 128 lanes
    w7 = jnp.transpose(p["s3_w"].reshape(1, 64), (1, 0))                     # (64, 1)
    w7 = jnp.pad(w7, ((0, 64), (0, 0)))                                      # (128, 1)
    pk["s3_w"] = jnp.tile(w7, (1, 128)).astype(jnp.bfloat16)                 # (128, 128)
    pk["s3_b"] = jnp.tile(p["s3_b"].reshape(1, 1), (1, 128)).astype(jnp.float32)
    return pk


# ------------------------------------------------------------------
# Forward
# ------------------------------------------------------------------

def forward(x_nchw, pk):
    # input is NCHW (PyTorch convention); convert to NHWC for the kernels
    x = jnp.transpose(x_nchw, (0, 2, 3, 1)).astype(jnp.float32)

    # features
    x = conv2d_relu_packed(x, pk["c1_w"], pk["c1_b"],
                           kh=11, kw=11, stride=4, pad=0, groups=1, cout=96)   # (N,14,14,128) [96 real]
    x = pool_lrn(x, c_true=96)                                                 # (N, 6, 6,128)
    x = x[..., :96]
    x = conv2d_relu_packed(x, pk["c2_w"], pk["c2_b"],
                           kh=5, kw=5, stride=1, pad=2, groups=2, cout=256)    # (N, 6, 6,256)
    x = pool_lrn(x, c_true=256)                                                # (N, 2, 2,256)

    # conv3 + conv4 + special_weight + x * x_sep, fused in one kernel
    y = conv3_tail(x, pk)                                                      # (N, 2, 2, 64)

    # flatten in PyTorch NCHW order: x.view(N, -1)
    y = jnp.transpose(y, (0, 3, 1, 2))
    return y.reshape(y.shape[0], -1)


if __name__ == "__main__":
    key = jax.random.PRNGKey(0)
    pkey, xkey = jax.random.split(key)
    params = init_params(pkey)
    packed = pack_params(params)      # one-time weight packing, outside the jitted forward

    # small input consistent with the module: 63x63 RGB -> final 64 x 2 x 2 features
    x = jax.random.normal(xkey, (2, 3, 63, 63), dtype=jnp.float32)

    out = jax.jit(forward)(x, packed)
    out = jax.block_until_ready(out)
    assert out.shape == (2, 64 * 2 * 2), out.shape
    assert bool(jnp.all(jnp.isfinite(out)))
    print("KERNEL_OK")
</pallas_src>

<mosaic_0001>
module attributes {stable_mosaic.version = 11 : i64} {
  func.func @_gmm_bias_relu_kernel(%arg0: i32, %arg1: i32, %arg2: i32, %arg3: i32, %arg4: memref<1x392x384xbf16, #tpu.memory_space<vmem>>, %arg5: memref<1x384x128xbf16, #tpu.memory_space<vmem>>, %arg6: memref<1x1x128xf32, #tpu.memory_space<vmem>>, %arg7: memref<1x392x128xf32, #tpu.memory_space<vmem>>, %arg8: memref<392x128xf32, #tpu.memory_space<vmem>>) attributes {dimension_semantics = [#tpu.dimension_semantics<parallel>, #tpu.dimension_semantics<parallel>, #tpu.dimension_semantics<parallel>, #tpu.dimension_semantics<arbitrary>], iteration_bounds = array<i64: 1, 1, 1, 1>, scalar_prefetch = 0 : i64, scratch_operands = 1 : i64, tpu.core_type = #tpu.core_type<tc>, window_params = [{transform_indices = @transform_0, window_bounds = array<i64: 1, 392, 384>}, {transform_indices = @transform_1, window_bounds = array<i64: 1, 384, 128>}, {transform_indices = @transform_2, window_bounds = array<i64: 1, 1, 128>}, {transform_indices = @transform_3, window_bounds = array<i64: 1, 392, 128>}]} {
    %c0_i32 = arith.constant 0 : i32
    %0 = arith.cmpi eq, %arg3, %c0_i32 : i32
    %1 = arith.extui %0 : i1 to i32
    %c0_i32_0 = arith.constant 0 : i32
    %2 = arith.cmpi ne, %1, %c0_i32_0 : i32
    scf.if %2 {
      %cst_12 = arith.constant 0.000000e+00 : f32
      %14 = vector.broadcast %cst_12 : f32 to vector<392x128xf32>
      %c0_13 = arith.constant 0 : index
      %c0_14 = arith.constant 0 : index
      %15 = vector.load %arg8[%c0_13, %c0_14] : memref<392x128xf32, #tpu.memory_space<vmem>>, vector<392x128xf32>
      tpu.vector_store %arg8[%c0_13, %c0_14], %14 {strides = array<i32>} : memref<392x128xf32, #tpu.memory_space<vmem>>, vector<392x128xf32>,
    } else {
    }
    %c0 = arith.constant 0 : index
    %c0_1 = arith.constant 0 : index
    %3 = vector.load %arg8[%c0, %c0_1] : memref<392x128xf32, #tpu.memory_space<vmem>>, vector<392x128xf32>
    %c0_2 = arith.constant 0 : index
    %c0_3 = arith.constant 0 : index
    %c0_4 = arith.constant 0 : index
    %4 = vector.load %arg4[%c0_2, %c0_3, %c0_4] : memref<1x392x384xbf16, #tpu.memory_space<vmem>>, vector<1x392x384xbf16>
    %5 = vector.shape_cast %4 : vector<1x392x384xbf16> to vector<392x384xbf16>
    %c0_5 = arith.constant 0 : index
    %c0_6 = arith.constant 0 : index
    %c0_7 = arith.constant 0 : index
    %6 = vector.load %arg5[%c0_5, %c0_6, %c0_7] : memref<1x384x128xbf16, #tpu.memory_space<vmem>>, vector<1x384x128xbf16>
    %7 = vector.shape_cast %6 : vector<1x384x128xbf16> to vector<384x128xbf16>
    %cst = arith.constant dense<0.000000e+00> : vector<392x128xf32>
    %8 = tpu.matmul %5, %7, %cst {dimension_numbers = #tpu.dot_dimension_numbers<[1], [0], [0], [1], [0, 0, 1, 1], [], []>} : vector<392x384xbf16>, vector<384x128xbf16>, vector<392x128xf32> -> vector<392x128xf32>
    %9 = arith.addf %3, %8 : vector<392x128xf32>
    %c0_8 = arith.constant 0 : index
    %c0_9 = arith.constant 0 : index
    %10 = vector.load %arg8[%c0_8, %c0_9] : memref<392x128xf32, #tpu.memory_space<vmem>>, vector<392x128xf32>
    tpu.vector_store %arg8[%c0_8, %c0_9], %9 {strides = array<i32>} : memref<392x128xf32, #tpu.memory_space<vmem>>, vector<392x128xf32>,
    %c0_i32_10 = arith.constant 0 : i32
    %11 = arith.cmpi eq, %arg3, %c0_i32_10 : i32
    %12 = arith.extui %11 : i1 to i32
    %c0_i32_11 = arith.constant 0 : i32
    %13 = arith.cmpi ne, %12, %c0_i32_11 : i32
    scf.if %13 {
      %c0_12 = arith.constant 0 : index
      %c0_13 = arith.constant 0 : index
      %14 = vector.load %arg8[%c0_12, %c0_13] : memref<392x128xf32, #tpu.memory_space<vmem>>, vector<392x128xf32>
      %c0_14 = arith.constant 0 : index
      %c0_15 = arith.constant 0 : index
      %c0_16 = arith.constant 0 : index
      %15 = vector.load %arg6[%c0_14, %c0_15, %c0_16] : memref<1x1x128xf32, #tpu.memory_space<vmem>>, vector<1x1x128xf32>
      %16 = vector.shape_cast %15 : vector<1x1x128xf32> to vector<1x128xf32>
      %17 = vector.broadcast %16 : vector<1x128xf32> to vector<392x128xf32>
      %18 = arith.addf %14, %17 : vector<392x128xf32>
      %cst_17 = arith.constant 0.000000e+00 : f32
      %19 = vector.broadcast %cst_17 : f32 to vector<392x128xf32>
      %20 = arith.maximumf %18, %19 : vector<392x128xf32>
      %c0_18 = arith.constant 0 : index
      %c0_19 = arith.constant 0 : index
      %c0_20 = arith.constant 0 : index
      %21 = vector.load %arg7[%c0_18, %c0_19, %c0_20] : memref<1x392x128xf32, #tpu.memory_space<vmem>>, vector<1x392x128xf32>
      %22 = vector.shape_cast %21 : vector<1x392x128xf32> to vector<392x128xf32>
      %23 = vector.shape_cast %20 : vector<392x128xf32> to vector<1x392x128xf32>
      tpu.vector_store %arg7[%c0_18, %c0_19, %c0_20], %23 {strides = array<i32>} : memref<1x392x128xf32, #tpu.memory_space<vmem>>, vector<1x392x128xf32>,
    } else {
    }
    return
  }
  func.func @transform_0(%arg0: i32, %arg1: i32, %arg2: i32, %arg3: i32) -> (i32, i32, i32) {
    %c0_i32 = arith.constant 0 : i32
    return %arg0, %arg1, %arg3 : i32, i32, i32
  }
  func.func @transform_1(%arg0: i32, %arg1: i32, %arg2: i32, %arg3: i32) -> (i32, i32, i32) {
    %c0_i32 = arith.constant 0 : i32
    return %arg0, %arg3, %arg2 : i32, i32, i32
  }
  func.func @transform_2(%arg0: i32, %arg1: i32, %arg2: i32, %arg3: i32) -> (i32, i32, i32) {
    %c0_i32 = arith.constant 0 : i32
    %c0_i32_0 = arith.constant 0 : i32
    return %arg0, %c0_i32, %arg2 : i32, i32, i32
  }
  func.func @transform_3(%arg0: i32, %arg1: i32, %arg2: i32, %arg3: i32) -> (i32, i32, i32) {
    %c0_i32 = arith.constant 0 : i32
    return %arg0, %arg1, %arg2 : i32, i32, i32
  }
}

module attributes {stable_mosaic.version = 11 : i64} {
  func.func @_pool_lrn_kernel(%arg0: i32, %arg1: memref<1x14x14x128xf32, #tpu.memory_space<vmem>>, %arg2: memref<1x6x6x128xf32, #tpu.memory_space<vmem>>) attributes {dimension_semantics = [#tpu.dimension_semantics<parallel>], iteration_bounds = array<i64: 2>, scalar_prefetch = 0 : i64, scratch_operands = 0 : i64, tpu.core_type = #tpu.core_type<tc>, window_params = [{transform_indices = @transform_0, window_bounds = array<i64: 1, 14, 14, 128>}, {transform_indices = @transform_1, window_bounds = array<i64: 1, 6, 6, 128>}]} {
    %c0 = arith.constant 0 : index
    %c0_0 = arith.constant 0 : index
    %c0_1 = arith.constant 0 : index
    %c0_2 = arith.constant 0 : index
    %0 = vector.load %arg1[%c0, %c0_0, %c0_1, %c0_2] : memref<1x14x14x128xf32, #tpu.memory_space<vmem>>, vector<1x14x14x128xf32>
    %1 = vector.extract_strided_slice %0 {offsets = [0, 0, 0, 0], sizes = [1, 1, 14, 128], strides = [1, 1, 1, 1]} : vector<1x14x14x128xf32> to vector<1x1x14x128xf32>
    %2 = vector.extract_strided_slice %0 {offsets = [0, 1, 0, 0], sizes = [1, 1, 14, 128], strides = [1, 1, 1, 1]} : vector<1x14x14x128xf32> to vector<1x1x14x128xf32>
    %3 = vector.extract_strided_slice %0 {offsets = [0, 2, 0, 0], sizes = [1, 1, 14, 128], strides = [1, 1, 1, 1]} : vector<1x14x14x128xf32> to vector<1x1x14x128xf32>
    %4 = arith.maximumf %1, %2 : vector<1x1x14x128xf32>
    %5 = arith.maximumf %4, %3 : vector<1x1x14x128xf32>
    %6 = vector.extract_strided_slice %0 {offsets = [0, 2, 0, 0], sizes = [1, 1, 14, 128], strides = [1, 1, 1, 1]} : vector<1x14x14x128xf32> to vector<1x1x14x128xf32>
    %7 = vector.extract_strided_slice %0 {offsets = [0, 3, 0, 0], sizes = [1, 1, 14, 128], strides = [1, 1, 1, 1]} : vector<1x14x14x128xf32> to vector<1x1x14x128xf32>
    %8 = vector.extract_strided_slice %0 {offsets = [0, 4, 0, 0], sizes = [1, 1, 14, 128], strides = [1, 1, 1, 1]} : vector<1x14x14x128xf32> to vector<1x1x14x128xf32>
    %9 = arith.maximumf %6, %7 : vector<1x1x14x128xf32>
    %10 = arith.maximumf %9, %8 : vector<1x1x14x128xf32>
    %11 = vector.extract_strided_slice %0 {offsets = [0, 4, 0, 0], sizes = [1, 1, 14, 128], strides = [1, 1, 1, 1]} : vector<1x14x14x128xf32> to vector<1x1x14x128xf32>
    %12 = vector.extract_strided_slice %0 {offsets = [0, 5, 0, 0], sizes = [1, 1, 14, 128], strides = [1, 1, 1, 1]} : vector<1x14x14x128xf32> to vector<1x1x14x128xf32>
    %13 = vector.extract_strided_slice %0 {offsets = [0, 6, 0, 0], sizes = [1, 1, 14, 128], strides = [1, 1, 1, 1]} : vector<1x14x14x128xf32> to vector<1x1x14x128xf32>
    %14 = arith.maximumf %11, %12 : vector<1x1x14x128xf32>
    %15 = arith.maximumf %14, %13 : vector<1x1x14x128xf32>
    %16 = vector.extract_strided_slice %0 {offsets = [0, 6, 0, 0], sizes = [1, 1, 14, 128], strides = [1, 1, 1, 1]} : vector<1x14x14x128xf32> to vector<1x1x14x128xf32>
    %17 = vector.extract_strided_slice %0 {offsets = [0, 7, 0, 0], sizes = [1, 1, 14, 128], strides = [1, 1, 1, 1]} : vector<1x14x14x128xf32> to vector<1x1x14x128xf32>
    %18 = vector.extract_strided_slice %0 {offsets = [0, 8, 0, 0], sizes = [1, 1, 14, 128], strides = [1, 1, 1, 1]} : vector<1x14x14x128xf32> to vector<1x1x14x128xf32>
    %19 = arith.maximumf %16, %17 : vector<1x1x14x128xf32>
    %20 = arith.maximumf %19, %18 : vector<1x1x14x128xf32>
    %21 = vector.extract_strided_slice %0 {offsets = [0, 8, 0, 0], sizes = [1, 1, 14, 128], strides = [1, 1, 1, 1]} : vector<1x14x14x128xf32> to vector<1x1x14x128xf32>
    %22 = vector.extract_strided_slice %0 {offsets = [0, 9, 0, 0], sizes = [1, 1, 14, 128], strides = [1, 1, 1, 1]} : vector<1x14x14x128xf32> to vector<1x1x14x128xf32>
    %23 = vector.extract_strided_slice %0 {offsets = [0, 10, 0, 0], sizes = [1, 1, 14, 128], strides = [1, 1, 1, 1]} : vector<1x14x14x128xf32> to vector<1x1x14x128xf32>
    %24 = arith.maximumf %21, %22 : vector<1x1x14x128xf32>
    %25 = arith.maximumf %24, %23 : vector<1x1x14x128xf32>
    %26 = vector.extract_strided_slice %0 {offsets = [0, 10, 0, 0], sizes = [1, 1, 14, 128], strides = [1, 1, 1, 1]} : vector<1x14x14x128xf32> to vector<1x1x14x128xf32>
    %27 = vector.extract_strided_slice %0 {offsets = [0, 11, 0, 0], sizes = [1, 1, 14, 128], strides = [1, 1, 1, 1]} : vector<1x14x14x128xf32> to vector<1x1x14x128xf32>
    %28 = vector.extract_strided_slice %0 {offsets = [0, 12, 0, 0], sizes = [1, 1, 14, 128], strides = [1, 1, 1, 1]} : vector<1x14x14x128xf32> to vector<1x1x14x128xf32>
    %29 = arith.maximumf %26, %27 : vector<1x1x14x128xf32>
    %30 = arith.maximumf %29, %28 : vector<1x1x14x128xf32>
    %31 = tpu.concatenate %5, %10, %15, %20, %25, %30 in 1 : vector<1x1x14x128xf32>, vector<1x1x14x128xf32>, vector<1x1x14x128xf32>, vector<1x1x14x128xf32>, vector<1x1x14x128xf32>, vector<1x1x14x128xf32> -> vector<1x6x14x128xf32>
    %32 = vector.extract_strided_slice %31 {offsets = [0, 0, 0, 0], sizes = [1, 6, 1, 128], strides = [1, 1, 1, 1]} : vector<1x6x14x128xf32> to vector<1x6x1x128xf32>
    %33 = vector.extract_strided_slice %31 {offsets = [0, 0, 1, 0], sizes = [1, 6, 1, 128], strides = [1, 1, 1, 1]} : vector<1x6x14x128xf32> to vector<1x6x1x128xf32>
    %34 = vector.extract_strided_slice %31 {offsets = [0, 0, 2, 0], sizes = [1, 6, 1, 128], strides = [1, 1, 1, 1]} : vector<1x6x14x128xf32> to vector<1x6x1x128xf32>
    %35 = arith.maximumf %32, %33 : vector<1x6x1x128xf32>
    %36 = arith.maximumf %35, %34 : vector<1x6x1x128xf32>
    %37 = vector.extract_strided_slice %31 {offsets = [0, 0, 2, 0], sizes = [1, 6, 1, 128], strides = [1, 1, 1, 1]} : vector<1x6x14x128xf32> to vector<1x6x1x128xf32>
    %38 = vector.extract_strided_slice %31 {offsets = [0, 0, 3, 0], sizes = [1, 6, 1, 128], strides = [1, 1, 1, 1]} : vector<1x6x14x128xf32> to vector<1x6x1x128xf32>
    %39 = vector.extract_strided_slice %31 {offsets = [0, 0, 4, 0], sizes = [1, 6, 1, 128], strides = [1, 1, 1, 1]} : vector<1x6x14x128xf32> to vector<1x6x1x128xf32>
    %40 = arith.maximumf %37, %38 : vector<1x6x1x128xf32>
    %41 = arith.maximumf %40, %39 : vector<1x6x1x128xf32>
    %42 = vector.extract_strided_slice %31 {offsets = [0, 0, 4, 0], sizes = [1, 6, 1, 128], strides = [1, 1, 1, 1]} : vector<1x6x14x128xf32> to vector<1x6x1x128xf32>
    %43 = vector.extract_strided_slice %31 {offsets = [0, 0, 5, 0], sizes = [1, 6, 1, 128], strides = [1, 1, 1, 1]} : vector<1x6x14x128xf32> to vector<1x6x1x128xf32>
    %44 = vector.extract_strided_slice %31 {offsets = [0, 0, 6, 0], sizes = [1, 6, 1, 128], strides = [1, 1, 1, 1]} : vector<1x6x14x128xf32> to vector<1x6x1x128xf32>
    %45 = arith.maximumf %42, %43 : vector<1x6x1x128xf32>
    %46 = arith.maximumf %45, %44 : vector<1x6x1x128xf32>
    %47 = vector.extract_strided_slice %31 {offsets = [0, 0, 6, 0], sizes = [1, 6, 1, 128], strides = [1, 1, 1, 1]} : vector<1x6x14x128xf32> to vector<1x6x1x128xf32>
    %48 = vector.extract_strided_slice %31 {offsets = [0, 0, 7, 0], sizes = [1, 6, 1, 128], strides = [1, 1, 1, 1]} : vector<1x6x14x128xf32> to vector<1x6x1x128xf32>
    %49 = vector.extract_strided_slice %31 {offsets = [0, 0, 8, 0], sizes = [1, 6, 1, 128], strides = [1, 1, 1, 1]} : vector<1x6x14x128xf32> to vector<1x6x1x128xf32>
    %50 = arith.maximumf %47, %48 : vector<1x6x1x128xf32>
    %51 = arith.maximumf %50, %49 : vector<1x6x1x128xf32>
    %52 = vector.extract_strided_slice %31 {offsets = [0, 0, 8, 0], sizes = [1, 6, 1, 128], strides = [1, 1, 1, 1]} : vector<1x6x14x128xf32> to vector<1x6x1x128xf32>
    %53 = vector.extract_strided_slice %31 {offsets = [0, 0, 9, 0], sizes = [1, 6, 1, 128], strides = [1, 1, 1, 1]} : vector<1x6x14x128xf32> to vector<1x6x1x128xf32>
    %54 = vector.extract_strided_slice %31 {offsets = [0, 0, 10, 0], sizes = [1, 6, 1, 128], strides = [1, 1, 1, 1]} : vector<1x6x14x128xf32> to vector<1x6x1x128xf32>
    %55 = arith.maximumf %52, %53 : vector<1x6x1x128xf32>
    %56 = arith.maximumf %55, %54 : vector<1x6x1x128xf32>
    %57 = vector.extract_strided_slice %31 {offsets = [0, 0, 10, 0], sizes = [1, 6, 1, 128], strides = [1, 1, 1, 1]} : vector<1x6x14x128xf32> to vector<1x6x1x128xf32>
    %58 = vector.extract_strided_slice %31 {offsets = [0, 0, 11, 0], sizes = [1, 6, 1, 128], strides = [1, 1, 1, 1]} : vector<1x6x14x128xf32> to vector<1x6x1x128xf32>
    %59 = vector.extract_strided_slice %31 {offsets = [0, 0, 12, 0], sizes = [1, 6, 1, 128], strides = [1, 1, 1, 1]} : vector<1x6x14x128xf32> to vector<1x6x1x128xf32>
    %60 = arith.maximumf %57, %58 : vector<1x6x1x128xf32>
    %61 = arith.maximumf %60, %59 : vector<1x6x1x128xf32>
    %62 = tpu.concatenate %36, %41, %46, %51, %56, %61 in 2 : vector<1x6x1x128xf32>, vector<1x6x1x128xf32>, vector<1x6x1x128xf32>, vector<1x6x1x128xf32>, vector<1x6x1x128xf32>, vector<1x6x1x128xf32> -> vector<1x6x6x128xf32>
    %63 = arith.mulf %62, %62 : vector<1x6x6x128xf32>
    %64 = tpu.iota {dimensions = array<i32: 3>} : vector<1x6x6x128xi32>
    %c127_i32 = arith.constant 127 : i32
    %65 = tpu.dynamic_rotate %63 by %c127_i32 dim 3 : vector<1x6x6x128xf32>, i32 -> vector<1x6x6x128xf32>
    %c95_i32 = arith.constant 95 : i32
    %66 = vector.broadcast %c95_i32 : i32 to vector<1x6x6x128xi32>
    %67 = arith.cmpi slt, %64, %66 : vector<1x6x6x128xi32>
    %cst = arith.constant 0.000000e+00 : f32
    %68 = vector.broadcast %cst : f32 to vector<1x6x6x128xf32>
    %69 = arith.select %67, %65, %68 : vector<1x6x6x128xi1>, vector<1x6x6x128xf32>
    %70 = arith.addf %63, %69 : vector<1x6x6x128xf32>
    %c1_i32 = arith.constant 1 : i32
    %71 = tpu.dynamic_rotate %63 by %c1_i32 dim 3 : vector<1x6x6x128xf32>, i32 -> vector<1x6x6x128xf32>
    %c1_i32_3 = arith.constant 1 : i32
    %72 = vector.broadcast %c1_i32_3 : i32 to vector<1x6x6x128xi32>
    %73 = arith.cmpi sge, %64, %72 : vector<1x6x6x128xi32>
    %cst_4 = arith.constant 0.000000e+00 : f32
    %74 = vector.broadcast %cst_4 : f32 to vector<1x6x6x128xf32>
    %75 = arith.select %73, %71, %74 : vector<1x6x6x128xi1>, vector<1x6x6x128xf32>
    %76 = arith.addf %70, %75 : vector<1x6x6x128xf32>
    %c126_i32 = arith.constant 126 : i32
    %77 = tpu.dynamic_rotate %63 by %c126_i32 dim 3 : vector<1x6x6x128xf32>, i32 -> vector<1x6x6x128xf32>
    %c94_i32 = arith.constant 94 : i32
    %78 = vector.broadcast %c94_i32 : i32 to vector<1x6x6x128xi32>
    %79 = arith.cmpi slt, %64, %78 : vector<1x6x6x128xi32>
    %cst_5 = arith.constant 0.000000e+00 : f32
    %80 = vector.broadcast %cst_5 : f32 to vector<1x6x6x128xf32>
    %81 = arith.select %79, %77, %80 : vector<1x6x6x128xi1>, vector<1x6x6x128xf32>
    %82 = arith.addf %76, %81 : vector<1x6x6x128xf32>
    %c2_i32 = arith.constant 2 : i32
    %83 = tpu.dynamic_rotate %63 by %c2_i32 dim 3 : vector<1x6x6x128xf32>, i32 -> vector<1x6x6x128xf32>
    %c2_i32_6 = arith.constant 2 : i32
    %84 = vector.broadcast %c2_i32_6 : i32 to vector<1x6x6x128xi32>
    %85 = arith.cmpi sge, %64, %84 : vector<1x6x6x128xi32>
    %cst_7 = arith.constant 0.000000e+00 : f32
    %86 = vector.broadcast %cst_7 : f32 to vector<1x6x6x128xf32>
    %87 = arith.select %85, %83, %86 : vector<1x6x6x128xi1>, vector<1x6x6x128xf32>
    %88 = arith.addf %82, %87 : vector<1x6x6x128xf32>
    %cst_8 = arith.constant 2.000000e-05 : f32
    %89 = vector.broadcast %cst_8 : f32 to vector<1x6x6x128xf32>
    %90 = arith.mulf %89, %88 : vector<1x6x6x128xf32>
    %cst_9 = arith.constant 1.000000e+00 : f32
    %91 = vector.broadcast %cst_9 : f32 to vector<1x6x6x128xf32>
    %92 = arith.addf %91, %90 : vector<1x6x6x128xf32>
    %93 = math.log %92 : vector<1x6x6x128xf32>
    %cst_10 = arith.constant -7.500000e-01 : f32
    %94 = vector.broadcast %cst_10 : f32 to vector<1x6x6x128xf32>
    %95 = arith.mulf %94, %93 : vector<1x6x6x128xf32>
    %96 = math.exp %95 : vector<1x6x6x128xf32>
    %97 = arith.mulf %62, %96 : vector<1x6x6x128xf32>
    %c0_11 = arith.constant 0 : index
    %c0_12 = arith.constant 0 : index
    %c0_13 = arith.constant 0 : index
    %c0_14 = arith.constant 0 : index
    %98 = vector.load %arg2[%c0_11, %c0_12, %c0_13, %c0_14] : memref<1x6x6x128xf32, #tpu.memory_space<vmem>>, vector<1x6x6x128xf32>
    tpu.vector_store %arg2[%c0_11, %c0_12, %c0_13, %c0_14], %97 {strides = array<i32>} : memref<1x6x6x128xf32, #tpu.memory_space<vmem>>, vector<1x6x6x128xf32>,
    return
  }
  func.func @transform_0(%arg0: i32) -> (i32, i32, i32, i32) {
    %c0_i32 = arith.constant 0 : i32
    %c0_i32_0 = arith.constant 0 : i32
    %c0_i32_1 = arith.constant 0 : i32
    %c0_i32_2 = arith.constant 0 : i32
    return %arg0, %c0_i32, %c0_i32_0, %c0_i32_1 : i32, i32, i32, i32
  }
  func.func @transform_1(%arg0: i32) -> (i32, i32, i32, i32) {
    %c0_i32 = arith.constant 0 : i32
    %c0_i32_0 = arith.constant 0 : i32
    %c0_i32_1 = arith.constant 0 : i32
    %c0_i32_2 = arith.constant 0 : i32
    return %arg0, %c0_i32, %c0_i32_0, %c0_i32_1 : i32, i32, i32, i32
  }
}

module attributes {stable_mosaic.version = 11 : i64} {
  func.func @_gmm_bias_relu_kernel(%arg0: i32, %arg1: i32, %arg2: i32, %arg3: i32, %arg4: memref<1x72x1280xbf16, #tpu.memory_space<vmem>>, %arg5: memref<1x1280x128xbf16, #tpu.memory_space<vmem>>, %arg6: memref<1x1x128xf32, #tpu.memory_space<vmem>>, %arg7: memref<1x72x128xf32, #tpu.memory_space<vmem>>, %arg8: memref<72x128xf32, #tpu.memory_space<vmem>>) attributes {dimension_semantics = [#tpu.dimension_semantics<parallel>, #tpu.dimension_semantics<parallel>, #tpu.dimension_semantics<parallel>, #tpu.dimension_semantics<arbitrary>], iteration_bounds = array<i64: 2, 1, 1, 1>, scalar_prefetch = 0 : i64, scratch_operands = 1 : i64, tpu.core_type = #tpu.core_type<tc>, window_params = [{transform_indices = @transform_0, window_bounds = array<i64: 1, 72, 1280>}, {transform_indices = @transform_1, window_bounds = array<i64: 1, 1280, 128>}, {transform_indices = @transform_2, window_bounds = array<i64: 1, 1, 128>}, {transform_indices = @transform_3, window_bounds = array<i64: 1, 72, 128>}]} {
    %c0_i32 = arith.constant 0 : i32
    %0 = arith.cmpi eq, %arg3, %c0_i32 : i32
    %1 = arith.extui %0 : i1 to i32
    %c0_i32_0 = arith.constant 0 : i32
    %2 = arith.cmpi ne, %1, %c0_i32_0 : i32
    scf.if %2 {
      %cst_12 = arith.constant 0.000000e+00 : f32
      %14 = vector.broadcast %cst_12 : f32 to vector<72x128xf32>
      %c0_13 = arith.constant 0 : index
      %c0_14 = arith.constant 0 : index
      %15 = vector.load %arg8[%c0_13, %c0_14] : memref<72x128xf32, #tpu.memory_space<vmem>>, vector<72x128xf32>
      tpu.vector_store %arg8[%c0_13, %c0_14], %14 {strides = array<i32>} : memref<72x128xf32, #tpu.memory_space<vmem>>, vector<72x128xf32>,
    } else {
    }
    %c0 = arith.constant 0 : index
    %c0_1 = arith.constant 0 : index
    %3 = vector.load %arg8[%c0, %c0_1] : memref<72x128xf32, #tpu.memory_space<vmem>>, vector<72x128xf32>
    %c0_2 = arith.constant 0 : index
    %c0_3 = arith.constant 0 : index
    %c0_4 = arith.constant 0 : index
    %4 = vector.load %arg4[%c0_2, %c0_3, %c0_4] : memref<1x72x1280xbf16, #tpu.memory_space<vmem>>, vector<1x72x1280xbf16>
    %5 = vector.shape_cast %4 : vector<1x72x1280xbf16> to vector<72x1280xbf16>
    %c0_5 = arith.constant 0 : index
    %c0_6 = arith.constant 0 : index
    %c0_7 = arith.constant 0 : index
    %6 = vector.load %arg5[%c0_5, %c0_6, %c0_7] : memref<1x1280x128xbf16, #tpu.memory_space<vmem>>, vector<1x1280x128xbf16>
    %7 = vector.shape_cast %6 : vector<1x1280x128xbf16> to vector<1280x128xbf16>
    %cst = arith.constant dense<0.000000e+00> : vector<72x128xf32>
    %8 = tpu.matmul %5, %7, %cst {dimension_numbers = #tpu.dot_dimension_numbers<[1], [0], [0], [1], [0, 0, 1, 1], [], []>} : vector<72x1280xbf16>, vector<1280x128xbf16>, vector<72x128xf32> -> vector<72x128xf32>
    %9 = arith.addf %3, %8 : vector<72x128xf32>
    %c0_8 = arith.constant 0 : index
    %c0_9 = arith.constant 0 : index
    %10 = vector.load %arg8[%c0_8, %c0_9] : memref<72x128xf32, #tpu.memory_space<vmem>>, vector<72x128xf32>
    tpu.vector_store %arg8[%c0_8, %c0_9], %9 {strides = array<i32>} : memref<72x128xf32, #tpu.memory_space<vmem>>, vector<72x128xf32>,
    %c0_i32_10 = arith.constant 0 : i32
    %11 = arith.cmpi eq, %arg3, %c0_i32_10 : i32
    %12 = arith.extui %11 : i1 to i32
    %c0_i32_11 = arith.constant 0 : i32
    %13 = arith.cmpi ne, %12, %c0_i32_11 : i32
    scf.if %13 {
      %c0_12 = arith.constant 0 : index
      %c0_13 = arith.constant 0 : index
      %14 = vector.load %arg8[%c0_12, %c0_13] : memref<72x128xf32, #tpu.memory_space<vmem>>, vector<72x128xf32>
      %c0_14 = arith.constant 0 : index
      %c0_15 = arith.constant 0 : index
      %c0_16 = arith.constant 0 : index
      %15 = vector.load %arg6[%c0_14, %c0_15, %c0_16] : memref<1x1x128xf32, #tpu.memory_space<vmem>>, vector<1x1x128xf32>
      %16 = vector.shape_cast %15 : vector<1x1x128xf32> to vector<1x128xf32>
      %17 = vector.broadcast %16 : vector<1x128xf32> to vector<72x128xf32>
      %18 = arith.addf %14, %17 : vector<72x128xf32>
      %cst_17 = arith.constant 0.000000e+00 : f32
      %19 = vector.broadcast %cst_17 : f32 to vector<72x128xf32>
      %20 = arith.maximumf %18, %19 : vector<72x128xf32>
      %c0_18 = arith.constant 0 : index
      %c0_19 = arith.constant 0 : index
      %c0_20 = arith.constant 0 : index
      %21 = vector.load %arg7[%c0_18, %c0_19, %c0_20] : memref<1x72x128xf32, #tpu.memory_space<vmem>>, vector<1x72x128xf32>
      %22 = vector.shape_cast %21 : vector<1x72x128xf32> to vector<72x128xf32>
      %23 = vector.shape_cast %20 : vector<72x128xf32> to vector<1x72x128xf32>
      tpu.vector_store %arg7[%c0_18, %c0_19, %c0_20], %23 {strides = array<i32>} : memref<1x72x128xf32, #tpu.memory_space<vmem>>, vector<1x72x128xf32>,
    } else {
    }
    return
  }
  func.func @transform_0(%arg0: i32, %arg1: i32, %arg2: i32, %arg3: i32) -> (i32, i32, i32) {
    %c0_i32 = arith.constant 0 : i32
    return %arg0, %arg1, %arg3 : i32, i32, i32
  }
  func.func @transform_1(%arg0: i32, %arg1: i32, %arg2: i32, %arg3: i32) -> (i32, i32, i32) {
    %c0_i32 = arith.constant 0 : i32
    return %arg0, %arg3, %arg2 : i32, i32, i32
  }
  func.func @transform_2(%arg0: i32, %arg1: i32, %arg2: i32, %arg3: i32) -> (i32, i32, i32) {
    %c0_i32 = arith.constant 0 : i32
    %c0_i32_0 = arith.constant 0 : i32
    return %arg0, %c0_i32, %arg2 : i32, i32, i32
  }
  func.func @transform_3(%arg0: i32, %arg1: i32, %arg2: i32, %arg3: i32) -> (i32, i32, i32) {
    %c0_i32 = arith.constant 0 : i32
    return %arg0, %arg1, %arg2 : i32, i32, i32
  }
}

module attributes {stable_mosaic.version = 11 : i64} {
  func.func @_pool_lrn_kernel(%arg0: i32, %arg1: memref<1x6x6x256xf32, #tpu.memory_space<vmem>>, %arg2: memref<1x2x2x256xf32, #tpu.memory_space<vmem>>) attributes {dimension_semantics = [#tpu.dimension_semantics<parallel>], iteration_bounds = array<i64: 2>, scalar_prefetch = 0 : i64, scratch_operands = 0 : i64, tpu.core_type = #tpu.core_type<tc>, window_params = [{transform_indices = @transform_0, window_bounds = array<i64: 1, 6, 6, 256>}, {transform_indices = @transform_1, window_bounds = array<i64: 1, 2, 2, 256>}]} {
    %c0 = arith.constant 0 : index
    %c0_0 = arith.constant 0 : index
    %c0_1 = arith.constant 0 : index
    %c0_2 = arith.constant 0 : index
    %0 = vector.load %arg1[%c0, %c0_0, %c0_1, %c0_2] : memref<1x6x6x256xf32, #tpu.memory_space<vmem>>, vector<1x6x6x256xf32>
    %1 = vector.extract_strided_slice %0 {offsets = [0, 0, 0, 0], sizes = [1, 1, 6, 256], strides = [1, 1, 1, 1]} : vector<1x6x6x256xf32> to vector<1x1x6x256xf32>
    %2 = vector.extract_strided_slice %0 {offsets = [0, 1, 0, 0], sizes = [1, 1, 6, 256], strides = [1, 1, 1, 1]} : vector<1x6x6x256xf32> to vector<1x1x6x256xf32>
    %3 = vector.extract_strided_slice %0 {offsets = [0, 2, 0, 0], sizes = [1, 1, 6, 256], strides = [1, 1, 1, 1]} : vector<1x6x6x256xf32> to vector<1x1x6x256xf32>
    %4 = arith.maximumf %1, %2 : vector<1x1x6x256xf32>
    %5 = arith.maximumf %4, %3 : vector<1x1x6x256xf32>
    %6 = vector.extract_strided_slice %0 {offsets = [0, 2, 0, 0], sizes = [1, 1, 6, 256], strides = [1, 1, 1, 1]} : vector<1x6x6x256xf32> to vector<1x1x6x256xf32>
    %7 = vector.extract_strided_slice %0 {offsets = [0, 3, 0, 0], sizes = [1, 1, 6, 256], strides = [1, 1, 1, 1]} : vector<1x6x6x256xf32> to vector<1x1x6x256xf32>
    %8 = vector.extract_strided_slice %0 {offsets = [0, 4, 0, 0], sizes = [1, 1, 6, 256], strides = [1, 1, 1, 1]} : vector<1x6x6x256xf32> to vector<1x1x6x256xf32>
    %9 = arith.maximumf %6, %7 : vector<1x1x6x256xf32>
    %10 = arith.maximumf %9, %8 : vector<1x1x6x256xf32>
    %11 = tpu.concatenate %5, %10 in 1 : vector<1x1x6x256xf32>, vector<1x1x6x256xf32> -> vector<1x2x6x256xf32>
    %12 = vector.extract_strided_slice %11 {offsets = [0, 0, 0, 0], sizes = [1, 2, 1, 256], strides = [1, 1, 1, 1]} : vector<1x2x6x256xf32> to vector<1x2x1x256xf32>
    %13 = vector.extract_strided_slice %11 {offsets = [0, 0, 1, 0], sizes = [1, 2, 1, 256], strides = [1, 1, 1, 1]} : vector<1x2x6x256xf32> to vector<1x2x1x256xf32>
    %14 = vector.extract_strided_slice %11 {offsets = [0, 0, 2, 0], sizes = [1, 2, 1, 256], strides = [1, 1, 1, 1]} : vector<1x2x6x256xf32> to vector<1x2x1x256xf32>
    %15 = arith.maximumf %12, %13 : vector<1x2x1x256xf32>
    %16 = arith.maximumf %15, %14 : vector<1x2x1x256xf32>
    %17 = vector.extract_strided_slice %11 {offsets = [0, 0, 2, 0], sizes = [1, 2, 1, 256], strides = [1, 1, 1, 1]} : vector<1x2x6x256xf32> to vector<1x2x1x256xf32>
    %18 = vector.extract_strided_slice %11 {offsets = [0, 0, 3, 0], sizes = [1, 2, 1, 256], strides = [1, 1, 1, 1]} : vector<1x2x6x256xf32> to vector<1x2x1x256xf32>
    %19 = vector.extract_strided_slice %11 {offsets = [0, 0, 4, 0], sizes = [1, 2, 1, 256], strides = [1, 1, 1, 1]} : vector<1x2x6x256xf32> to vector<1x2x1x256xf32>
    %20 = arith.maximumf %17, %18 : vector<1x2x1x256xf32>
    %21 = arith.maximumf %20, %19 : vector<1x2x1x256xf32>
    %22 = tpu.concatenate %16, %21 in 2 : vector<1x2x1x256xf32>, vector<1x2x1x256xf32> -> vector<1x2x2x256xf32>
    %23 = arith.mulf %22, %22 : vector<1x2x2x256xf32>
    %24 = tpu.iota {dimensions = array<i32: 3>} : vector<1x2x2x256xi32>
    %c255_i32 = arith.constant 255 : i32
    %25 = tpu.dynamic_rotate %23 by %c255_i32 dim 3 : vector<1x2x2x256xf32>, i32 -> vector<1x2x2x256xf32>
    %c255_i32_3 = arith.constant 255 : i32
    %26 = vector.broadcast %c255_i32_3 : i32 to vector<1x2x2x256xi32>
    %27 = arith.cmpi slt, %24, %26 : vector<1x2x2x256xi32>
    %cst = arith.constant 0.000000e+00 : f32
    %28 = vector.broadcast %cst : f32 to vector<1x2x2x256xf32>
    %29 = arith.select %27, %25, %28 : vector<1x2x2x256xi1>, vector<1x2x2x256xf32>
    %30 = arith.addf %23, %29 : vector<1x2x2x256xf32>
    %c1_i32 = arith.constant 1 : i32
    %31 = tpu.dynamic_rotate %23 by %c1_i32 dim 3 : vector<1x2x2x256xf32>, i32 -> vector<1x2x2x256xf32>
    %c1_i32_4 = arith.constant 1 : i32
    %32 = vector.broadcast %c1_i32_4 : i32 to vector<1x2x2x256xi32>
    %33 = arith.cmpi sge, %24, %32 : vector<1x2x2x256xi32>
    %cst_5 = arith.constant 0.000000e+00 : f32
    %34 = vector.broadcast %cst_5 : f32 to vector<1x2x2x256xf32>
    %35 = arith.select %33, %31, %34 : vector<1x2x2x256xi1>, vector<1x2x2x256xf32>
    %36 = arith.addf %30, %35 : vector<1x2x2x256xf32>
    %c254_i32 = arith.constant 254 : i32
    %37 = tpu.dynamic_rotate %23 by %c254_i32 dim 3 : vector<1x2x2x256xf32>, i32 -> vector<1x2x2x256xf32>
    %c254_i32_6 = arith.constant 254 : i32
    %38 = vector.broadcast %c254_i32_6 : i32 to vector<1x2x2x256xi32>
    %39 = arith.cmpi slt, %24, %38 : vector<1x2x2x256xi32>
    %cst_7 = arith.constant 0.000000e+00 : f32
    %40 = vector.broadcast %cst_7 : f32 to vector<1x2x2x256xf32>
    %41 = arith.select %39, %37, %40 : vector<1x2x2x256xi1>, vector<1x2x2x256xf32>
    %42 = arith.addf %36, %41 : vector<1x2x2x256xf32>
    %c2_i32 = arith.constant 2 : i32
    %43 = tpu.dynamic_rotate %23 by %c2_i32 dim 3 : vector<1x2x2x256xf32>, i32 -> vector<1x2x2x256xf32>
    %c2_i32_8 = arith.constant 2 : i32
    %44 = vector.broadcast %c2_i32_8 : i32 to vector<1x2x2x256xi32>
    %45 = arith.cmpi sge, %24, %44 : vector<1x2x2x256xi32>
    %cst_9 = arith.constant 0.000000e+00 : f32
    %46 = vector.broadcast %cst_9 : f32 to vector<1x2x2x256xf32>
    %47 = arith.select %45, %43, %46 : vector<1x2x2x256xi1>, vector<1x2x2x256xf32>
    %48 = arith.addf %42, %47 : vector<1x2x2x256xf32>
    %cst_10 = arith.constant 2.000000e-05 : f32
    %49 = vector.broadcast %cst_10 : f32 to vector<1x2x2x256xf32>
    %50 = arith.mulf %49, %48 : vector<1x2x2x256xf32>
    %cst_11 = arith.constant 1.000000e+00 : f32
    %51 = vector.broadcast %cst_11 : f32 to vector<1x2x2x256xf32>
    %52 = arith.addf %51, %50 : vector<1x2x2x256xf32>
    %53 = math.log %52 : vector<1x2x2x256xf32>
    %cst_12 = arith.constant -7.500000e-01 : f32
    %54 = vector.broadcast %cst_12 : f32 to vector<1x2x2x256xf32>
    %55 = arith.mulf %54, %53 : vector<1x2x2x256xf32>
    %56 = math.exp %55 : vector<1x2x2x256xf32>
    %57 = arith.mulf %22, %56 : vector<1x2x2x256xf32>
    %c0_13 = arith.constant 0 : index
    %c0_14 = arith.constant 0 : index
    %c0_15 = arith.constant 0 : index
    %c0_16 = arith.constant 0 : index
    %58 = vector.load %arg2[%c0_13, %c0_14, %c0_15, %c0_16] : memref<1x2x2x256xf32, #tpu.memory_space<vmem>>, vector<1x2x2x256xf32>
    tpu.vector_store %arg2[%c0_13, %c0_14, %c0_15, %c0_16], %57 {strides = array<i32>} : memref<1x2x2x256xf32, #tpu.memory_space<vmem>>, vector<1x2x2x256xf32>,
    return
  }
  func.func @transform_0(%arg0: i32) -> (i32, i32, i32, i32) {
    %c0_i32 = arith.constant 0 : i32
    %c0_i32_0 = arith.constant 0 : i32
    %c0_i32_1 = arith.constant 0 : i32
    %c0_i32_2 = arith.constant 0 : i32
    return %arg0, %c0_i32, %c0_i32_0, %c0_i32_1 : i32, i32, i32, i32
  }
  func.func @transform_1(%arg0: i32) -> (i32, i32, i32, i32) {
    %c0_i32 = arith.constant 0 : i32
    %c0_i32_0 = arith.constant 0 : i32
    %c0_i32_1 = arith.constant 0 : i32
    %c0_i32_2 = arith.constant 0 : i32
    return %arg0, %c0_i32, %c0_i32_0, %c0_i32_1 : i32, i32, i32, i32
  }
}

module attributes {stable_mosaic.version = 11 : i64} {
  func.func @_conv3_tail_kernel(%arg0: i32, %arg1: memref<8x2304xbf16, #tpu.memory_space<vmem>>, %arg2: memref<2304x384xbf16, #tpu.memory_space<vmem>>, %arg3: memref<1x384xf32, #tpu.memory_space<vmem>>, %arg4: memref<384x128xbf16, #tpu.memory_space<vmem>>, %arg5: memref<1x128xf32, #tpu.memory_space<vmem>>, %arg6: memref<128x128xbf16, #tpu.memory_space<vmem>>, %arg7: memref<1x128xf32, #tpu.memory_space<vmem>>, %arg8: memref<128x128xbf16, #tpu.memory_space<vmem>>, %arg9: memref<1x128xf32, #tpu.memory_space<vmem>>, %arg10: memref<128x128xbf16, #tpu.memory_space<vmem>>, %arg11: memref<1x128xf32, #tpu.memory_space<vmem>>, %arg12: memref<8x128xf32, #tpu.memory_space<vmem>>) attributes {dimension_semantics = [#tpu.dimension_semantics<parallel>], iteration_bounds = array<i64: 1>, scalar_prefetch = 0 : i64, scratch_operands = 0 : i64, tpu.core_type = #tpu.core_type<tc>, window_params = [{transform_indices = @transform_0, window_bounds = array<i64: 8, 2304>}, {pipeline_mode = #tpu.pipeline_mode<synchronous>, transform_indices = @transform_1, window_bounds = array<i64: 2304, 384>}, {pipeline_mode = #tpu.pipeline_mode<synchronous>, transform_indices = @transform_2, window_bounds = array<i64: 1, 384>}, {pipeline_mode = #tpu.pipeline_mode<synchronous>, transform_indices = @transform_3, window_bounds = array<i64: 384, 128>}, {pipeline_mode = #tpu.pipeline_mode<synchronous>, transform_indices = @transform_4, window_bounds = array<i64: 1, 128>}, {pipeline_mode = #tpu.pipeline_mode<synchronous>, transform_indices = @transform_5, window_bounds = array<i64: 128, 128>}, {pipeline_mode = #tpu.pipeline_mode<synchronous>, transform_indices = @transform_6, window_bounds = array<i64: 1, 128>}, {pipeline_mode = #tpu.pipeline_mode<synchronous>, transform_indices = @transform_7, window_bounds = array<i64: 128, 128>}, {pipeline_mode = #tpu.pipeline_mode<synchronous>, transform_indices = @transform_8, window_bounds = array<i64: 1, 128>}, {pipeline_mode = #tpu.pipeline_mode<synchronous>, transform_indices = @transform_9, window_bounds = array<i64: 128, 128>}, {pipeline_mode = #tpu.pipeline_mode<synchronous>, transform_indices = @transform_10, window_bounds = array<i64: 1, 128>}, {transform_indices = @transform_11, window_bounds = array<i64: 8, 128>}]} {
    %c0 = arith.constant 0 : index
    %c0_0 = arith.constant 0 : index
    %0 = vector.load %arg1[%c0, %c0_0] : memref<8x2304xbf16, #tpu.memory_space<vmem>>, vector<8x2304xbf16>
    %c0_1 = arith.constant 0 : index
    %c0_2 = arith.constant 0 : index
    %1 = vector.load %arg2[%c0_1, %c0_2] : memref<2304x384xbf16, #tpu.memory_space<vmem>>, vector<2304x384xbf16>
    %cst = arith.constant dense<0.000000e+00> : vector<8x384xf32>
    %2 = tpu.matmul %0, %1, %cst {dimension_numbers = #tpu.dot_dimension_numbers<[1], [0], [0], [1], [0, 0, 1, 1], [], []>} : vector<8x2304xbf16>, vector<2304x384xbf16>, vector<8x384xf32> -> vector<8x384xf32>
    %c0_3 = arith.constant 0 : index
    %c0_4 = arith.constant 0 : index
    %3 = vector.load %arg3[%c0_3, %c0_4] : memref<1x384xf32, #tpu.memory_space<vmem>>, vector<1x384xf32>
    %4 = vector.broadcast %3 : vector<1x384xf32> to vector<8x384xf32>
    %5 = arith.addf %2, %4 : vector<8x384xf32>
    %cst_5 = arith.constant 0.000000e+00 : f32
    %6 = vector.broadcast %cst_5 : f32 to vector<8x384xf32>
    %7 = arith.maximumf %5, %6 : vector<8x384xf32>
    %8 = arith.truncf %7 : vector<8x384xf32> to vector<8x384xbf16>
    %c0_6 = arith.constant 0 : index
    %c0_7 = arith.constant 0 : index
    %9 = vector.load %arg4[%c0_6, %c0_7] : memref<384x128xbf16, #tpu.memory_space<vmem>>, vector<384x128xbf16>
    %cst_8 = arith.constant dense<0.000000e+00> : vector<8x128xf32>
    %10 = tpu.matmul %8, %9, %cst_8 {dimension_numbers = #tpu.dot_dimension_numbers<[1], [0], [0], [1], [0, 0, 1, 1], [], []>} : vector<8x384xbf16>, vector<384x128xbf16>, vector<8x128xf32> -> vector<8x128xf32>
    %c0_9 = arith.constant 0 : index
    %c0_10 = arith.constant 0 : index
    %11 = vector.load %arg5[%c0_9, %c0_10] : memref<1x128xf32, #tpu.memory_space<vmem>>, vector<1x128xf32>
    %12 = vector.broadcast %11 : vector<1x128xf32> to vector<8x128xf32>
    %13 = arith.addf %10, %12 : vector<8x128xf32>
    %cst_11 = arith.constant 0.000000e+00 : f32
    %14 = vector.broadcast %cst_11 : f32 to vector<8x128xf32>
    %15 = arith.maximumf %13, %14 : vector<8x128xf32>
    %16 = arith.truncf %15 : vector<8x128xf32> to vector<8x128xbf16>
    %c0_12 = arith.constant 0 : index
    %c0_13 = arith.constant 0 : index
    %17 = vector.load %arg6[%c0_12, %c0_13] : memref<128x128xbf16, #tpu.memory_space<vmem>>, vector<128x128xbf16>
    %cst_14 = arith.constant dense<0.000000e+00> : vector<8x128xf32>
    %18 = tpu.matmul %16, %17, %cst_14 {dimension_numbers = #tpu.dot_dimension_numbers<[1], [0], [0], [1], [0, 0, 1, 1], [], []>} : vector<8x128xbf16>, vector<128x128xbf16>, vector<8x128xf32> -> vector<8x128xf32>
    %c0_15 = arith.constant 0 : index
    %c0_16 = arith.constant 0 : index
    %19 = vector.load %arg7[%c0_15, %c0_16] : memref<1x128xf32, #tpu.memory_space<vmem>>, vector<1x128xf32>
    %20 = vector.broadcast %19 : vector<1x128xf32> to vector<8x128xf32>
    %21 = arith.addf %18, %20 : vector<8x128xf32>
    %cst_17 = arith.constant 0.000000e+00 : f32
    %22 = vector.broadcast %cst_17 : f32 to vector<8x128xf32>
    %23 = arith.maximumf %21, %22 : vector<8x128xf32>
    %24 = arith.truncf %23 : vector<8x128xf32> to vector<8x128xbf16>
    %c0_18 = arith.constant 0 : index
    %c0_19 = arith.constant 0 : index
    %25 = vector.load %arg8[%c0_18, %c0_19] : memref<128x128xbf16, #tpu.memory_space<vmem>>, vector<128x128xbf16>
    %cst_20 = arith.constant dense<0.000000e+00> : vector<8x128xf32>
    %26 = tpu.matmul %24, %25, %cst_20 {dimension_numbers = #tpu.dot_dimension_numbers<[1], [0], [0], [1], [0, 0, 1, 1], [], []>} : vector<8x128xbf16>, vector<128x128xbf16>, vector<8x128xf32> -> vector<8x128xf32>
    %c0_21 = arith.constant 0 : index
    %c0_22 = arith.constant 0 : index
    %27 = vector.load %arg9[%c0_21, %c0_22] : memref<1x128xf32, #tpu.memory_space<vmem>>, vector<1x128xf32>
    %28 = vector.broadcast %27 : vector<1x128xf32> to vector<8x128xf32>
    %29 = arith.addf %26, %28 : vector<8x128xf32>
    %cst_23 = arith.constant 0.000000e+00 : f32
    %30 = vector.broadcast %cst_23 : f32 to vector<8x128xf32>
    %31 = arith.maximumf %29, %30 : vector<8x128xf32>
    %32 = arith.truncf %31 : vector<8x128xf32> to vector<8x128xbf16>
    %c0_24 = arith.constant 0 : index
    %c0_25 = arith.constant 0 : index
    %33 = vector.load %arg10[%c0_24, %c0_25] : memref<128x128xbf16, #tpu.memory_space<vmem>>, vector<128x128xbf16>
    %cst_26 = arith.constant dense<0.000000e+00> : vector<8x128xf32>
    %34 = tpu.matmul %32, %33, %cst_26 {dimension_numbers = #tpu.dot_dimension_numbers<[1], [0], [0], [1], [0, 0, 1, 1], [], []>} : vector<8x128xbf16>, vector<128x128xbf16>, vector<8x128xf32> -> vector<8x128xf32>
    %c0_27 = arith.constant 0 : index
    %c0_28 = arith.constant 0 : index
    %35 = vector.load %arg11[%c0_27, %c0_28] : memref<1x128xf32, #tpu.memory_space<vmem>>, vector<1x128xf32>
    %36 = vector.broadcast %35 : vector<1x128xf32> to vector<8x128xf32>
    %37 = arith.addf %34, %36 : vector<8x128xf32>
    %cst_29 = arith.constant 0.000000e+00 : f32
    %38 = vector.broadcast %cst_29 : f32 to vector<8x128xf32>
    %39 = arith.maximumf %37, %38 : vector<8x128xf32>
    %40 = arith.mulf %15, %39 : vector<8x128xf32>
    %c0_30 = arith.constant 0 : index
    %c0_31 = arith.constant 0 : index
    %41 = vector.load %arg12[%c0_30, %c0_31] : memref<8x128xf32, #tpu.memory_space<vmem>>, vector<8x128xf32>
    tpu.vector_store %arg12[%c0_30, %c0_31], %40 {strides = array<i32>} : memref<8x128xf32, #tpu.memory_space<vmem>>, vector<8x128xf32>,
    return
  }
  func.func @transform_0(%arg0: i32) -> (i32, i32) {
    %c0_i32 = arith.constant 0 : i32
    %c0_i32_0 = arith.constant 0 : i32
    return %arg0, %c0_i32 : i32, i32
  }
  func.func @transform_1(%arg0: i32) -> (i32, i32) {
    %c0_i32 = arith.constant 0 : i32
    %c0_i32_0 = arith.constant 0 : i32
    %c0_i32_1 = arith.constant 0 : i32
    return %c0_i32, %c0_i32_0 : i32, i32
  }
  func.func @transform_2(%arg0: i32) -> (i32, i32) {
    %c0_i32 = arith.constant 0 : i32
    %c0_i32_0 = arith.constant 0 : i32
    %c0_i32_1 = arith.constant 0 : i32
    return %c0_i32, %c0_i32_0 : i32, i32
  }
  func.func @transform_3(%arg0: i32) -> (i32, i32) {
    %c0_i32 = arith.constant 0 : i32
    %c0_i32_0 = arith.constant 0 : i32
    %c0_i32_1 = arith.constant 0 : i32
    return %c0_i32, %c0_i32_0 : i32, i32
  }
  func.func @transform_4(%arg0: i32) -> (i32, i32) {
    %c0_i32 = arith.constant 0 : i32
    %c0_i32_0 = arith.constant 0 : i32
    %c0_i32_1 = arith.constant 0 : i32
    return %c0_i32, %c0_i32_0 : i32, i32
  }
  func.func @transform_5(%arg0: i32) -> (i32, i32) {
    %c0_i32 = arith.constant 0 : i32
    %c0_i32_0 = arith.constant 0 : i32
    %c0_i32_1 = arith.constant 0 : i32
    return %c0_i32, %c0_i32_0 : i32, i32
  }
  func.func @transform_6(%arg0: i32) -> (i32, i32) {
    %c0_i32 = arith.constant 0 : i32
    %c0_i32_0 = arith.constant 0 : i32
    %c0_i32_1 = arith.constant 0 : i32
    return %c0_i32, %c0_i32_0 : i32, i32
  }
  func.func @transform_7(%arg0: i32) -> (i32, i32) {
    %c0_i32 = arith.constant 0 : i32
    %c0_i32_0 = arith.constant 0 : i32
    %c0_i32_1 = arith.constant 0 : i32
    return %c0_i32, %c0_i32_0 : i32, i32
  }
  func.func @transform_8(%arg0: i32) -> (i32, i32) {
    %c0_i32 = arith.constant 0 : i32
    %c0_i32_0 = arith.constant 0 : i32
    %c0_i32_1 = arith.constant 0 : i32
    return %c0_i32, %c0_i32_0 : i32, i32
  }
  func.func @transform_9(%arg0: i32) -> (i32, i32) {
    %c0_i32 = arith.constant 0 : i32
    %c0_i32_0 = arith.constant 0 : i32
    %c0_i32_1 = arith.constant 0 : i32
    return %c0_i32, %c0_i32_0 : i32, i32
  }
  func.func @transform_10(%arg0: i32) -> (i32, i32) {
    %c0_i32 = arith.constant 0 : i32
    %c0_i32_0 = arith.constant 0 : i32
    %c0_i32_1 = arith.constant 0 : i32
    return %c0_i32, %c0_i32_0 : i32, i32
  }
  func.func @transform_11(%arg0: i32) -> (i32, i32) {
    %c0_i32 = arith.constant 0 : i32
    %c0_i32_0 = arith.constant 0 : i32
    return %arg0, %c0_i32 : i32, i32
  }
}

</mosaic_0001>

<bundles_post_ra>
// kernel: squeeze.1
= control target key start
LH: loop header
LB: loop body
LE: loop exit
PB: predicated region body
PF: predicated region fallthrough
CT: control target
= control target key end

     0   :  { %s722_s0 = inlined_call_operand.vmem [shape: f32[1,392,128], index: 0, kind: input, shape index: {}]   ;;  %s723_s1 = inlined_call_operand.vmem [shape: f32[2,14,14,128], index: 1, kind: output, shape index: {}]  }
   0x1   :  { %v2_v0 = vld [vmem:[%s722_s0] sm:$0xff]   ;;  %v238_v1 = vld [vmem:[%s722_s0 + $0x8] sm:$0xff]   ;;  %v241_v2 = vld [vmem:[%s722_s0 + $0x10] sm:$0xff]  }
   0x2   :  { %3 = vst [vmem:[%s723_s1] sm:$0xff] %v2_v0   ;;  %v243_v3 = vld [vmem:[%s722_s0 + $0x18] sm:$0xff]   ;;  %v246_v4 = vld [vmem:[%s722_s0 + $0x20] sm:$0xff]   ;;  %v248_v5 = vld [vmem:[%s722_s0 + $0x28] sm:$0xff]  }
   0x3   :  { %239 = vst [vmem:[%s723_s1 + $0x8] sm:$0x3f] %v238_v1   ;;  %v251_v6 = vld [vmem:[%s722_s0 + $0x30] sm:$0xff]   ;;  %v253_v7 = vld [vmem:[%s722_s0 + $0x38] sm:$0xff]   ;;  %v255_v8 = vld [vmem:[%s722_s0 + $0x40] sm:$0xff]  }
   0x4   :  { %240 = vst [vmem:[%s723_s1 + $0xa] sm:$0xc0] %v238_v1   ;;  %v258_v9 = vld [vmem:[%s722_s0 + $0x48] sm:$0xff]   ;;  %v260_v10 = vld [vmem:[%s722_s0 + $0x50] sm:$0xff]   ;;  %v263_v11 = vld [vmem:[%s722_s0 + $0x58] sm:$0xff]  }
   0x5   :  { %242 = vst [vmem:[%s723_s1 + $0x12] sm:$0xff] %v241_v2   ;;  %v265_v12 = vld [vmem:[%s722_s0 + $0x60] sm:$0xff]   ;;  %v268_v13 = vld [vmem:[%s722_s0 + $0x68] sm:$0xff]   ;;  %v270_v14 = vld [vmem:[%s722_s0 + $0x70] sm:$0xff]  }
   0x6   :  { %244 = vst [vmem:[%s723_s1 + $0x1a] sm:$0xf] %v243_v3   ;;  %v272_v15 = vld [vmem:[%s722_s0 + $0x78] sm:$0xff]   ;;  %v275_v16 = vld [vmem:[%s722_s0 + $0x80] sm:$0xff]   ;;  %v277_v17 = vld [vmem:[%s722_s0 + $0x88] sm:$0xff]  }
   0x7   :  { %245 = vst [vmem:[%s723_s1 + $0x1c] sm:$0xf0] %v243_v3   ;;  %v280_v18 = vld [vmem:[%s722_s0 + $0x90] sm:$0xff]   ;;  %v282_v19 = vld [vmem:[%s722_s0 + $0x98] sm:$0xff]   ;;  %v285_v20 = vld [vmem:[%s722_s0 + $0xa0] sm:$0xff]  }
   0x8   :  { %247 = vst [vmem:[%s723_s1 + $0x24] sm:$0xff] %v246_v4   ;;  %v287_v21 = vld [vmem:[%s722_s0 + $0xa8] sm:$0xff]   ;;  %v289_v22 = vld [vmem:[%s722_s0 + $0xb0] sm:$0xff]   ;;  %v292_v23 = vld [vmem:[%s722_s0 + $0xb8] sm:$0xff]  }
   0x9   :  { %249 = vst [vmem:[%s723_s1 + $0x2c] sm:$0x3] %v248_v5   ;;  %v294_v24 = vld [vmem:[%s722_s0 + $0xc0] sm:$0xff]   ;;  %v297_v25 = vld [vmem:[%s722_s0 + $0xc8] sm:$0xff]   ;;  %v299_v26 = vld [vmem:[%s722_s0 + $0xd0] sm:$0xff]  }
   0xa   :  { %250 = vst [vmem:[%s723_s1 + $0x2e] sm:$0xfc] %v248_v5   ;;  %v302_v27 = vld [vmem:[%s722_s0 + $0xd8] sm:$0xff]   ;;  %v304_v28 = vld [vmem:[%s722_s0 + $0xe0] sm:$0xff]   ;;  %v306_v29 = vld [vmem:[%s722_s0 + $0xe8] sm:$0xff]  }
   0xb   :  { %252 = vst [vmem:[%s723_s1 + $0x36] sm:$0xff] %v251_v6   ;;  %v309_v30 = vld [vmem:[%s722_s0 + $0xf0] sm:$0xff]   ;;  %v311_v31 = vld [vmem:[%s722_s0 + $0xf8] sm:$0xff]   ;;  %v314_v32 = vld [vmem:[%s722_s0 + $0x100] sm:$0xff]  }
   0xc   :  { %254 = vst [vmem:[%s723_s1 + $0x40] sm:$0xff] %v253_v7   ;;  %v316_v33 = vld [vmem:[%s722_s0 + $0x108] sm:$0xff]   ;;  %v319_v34 = vld [vmem:[%s722_s0 + $0x110] sm:$0xff]   ;;  %v321_v35 = vld [vmem:[%s722_s0 + $0x118] sm:$0xff]  }
   0xd   :  { %256 = vst [vmem:[%s723_s1 + $0x48] sm:$0x3f] %v255_v8   ;;  %v323_v36 = vld [vmem:[%s722_s0 + $0x120] sm:$0xff]   ;;  %v326_v37 = vld [vmem:[%s722_s0 + $0x128] sm:$0xff]   ;;  %v328_v38 = vld [vmem:[%s722_s0 + $0x130] sm:$0xff]  }
   0xe   :  { %257 = vst [vmem:[%s723_s1 + $0x4a] sm:$0xc0] %v255_v8   ;;  %v331_v39 = vld [vmem:[%s722_s0 + $0x138] sm:$0xff]   ;;  %v333_v40 = vld [vmem:[%s722_s0 + $0x140] sm:$0xff]   ;;  %v336_v41 = vld [vmem:[%s722_s0 + $0x148] sm:$0xff]  }
   0xf   :  { %259 = vst [vmem:[%s723_s1 + $0x52] sm:$0xff] %v258_v9   ;;  %v338_v42 = vld [vmem:[%s722_s0 + $0x150] sm:$0xff]   ;;  %v340_v43 = vld [vmem:[%s722_s0 + $0x158] sm:$0xff]   ;;  %v343_v44 = vld [vmem:[%s722_s0 + $0x160] sm:$0xff]  }
  0x10   :  { %261 = vst [vmem:[%s723_s1 + $0x5a] sm:$0xf] %v260_v10   ;;  %v345_v45 = vld [vmem:[%s722_s0 + $0x168] sm:$0xff]   ;;  %v348_v46 = vld [vmem:[%s722_s0 + $0x170] sm:$0xff]   ;;  %v350_v47 = vld [vmem:[%s722_s0 + $0x178] sm:$0xff]  }
  0x11   :  { %262 = vst [vmem:[%s723_s1 + $0x5c] sm:$0xf0] %v260_v10   ;;  %v353_v48 = vld [vmem:[%s722_s0 + $0x180] sm:$0xff]  }
  0x12   :  { %264 = vst [vmem:[%s723_s1 + $0x64] sm:$0xff] %v263_v11  }
  0x13   :  { %266 = vst [vmem:[%s723_s1 + $0x6c] sm:$0x3] %v265_v12  }
  0x14   :  { %267 = vst [vmem:[%s723_s1 + $0x6e] sm:$0xfc] %v265_v12  }
  0x15   :  { %269 = vst [vmem:[%s723_s1 + $0x76] sm:$0xff] %v268_v13  }
  0x16   :  { %271 = vst [vmem:[%s723_s1 + $0x80] sm:$0xff] %v270_v14  }
  0x17   :  { %273 = vst [vmem:[%s723_s1 + $0x88] sm:$0x3f] %v272_v15  }
  0x18   :  { %274 = vst [vmem:[%s723_s1 + $0x8a] sm:$0xc0] %v272_v15  }
  0x19   :  { %276 = vst [vmem:[%s723_s1 + $0x92] sm:$0xff] %v275_v16  }
  0x1a   :  { %278 = vst [vmem:[%s723_s1 + $0x9a] sm:$0xf] %v277_v17  }
  0x1b   :  { %279 = vst [vmem:[%s723_s1 + $0x9c] sm:$0xf0] %v277_v17  }
  0x1c   :  { %281 = vst [vmem:[%s723_s1 + $0xa4] sm:$0xff] %v280_v18  }
  0x1d   :  { %283 = vst [vmem:[%s723_s1 + $0xac] sm:$0x3] %v282_v19  }
  0x1e   :  { %284 = vst [vmem:[%s723_s1 + $0xae] sm:$0xfc] %v282_v19  }
  0x1f   :  { %286 = vst [vmem:[%s723_s1 + $0xb6] sm:$0xff] %v285_v20  }
  0x20   :  { %288 = vst [vmem:[%s723_s1 + $0xc0] sm:$0xff] %v287_v21  }
  0x21   :  { %290 = vst [vmem:[%s723_s1 + $0xc8] sm:$0x3f] %v289_v22  }
  0x22   :  { %291 = vst [vmem:[%s723_s1 + $0xca] sm:$0xc0] %v289_v22  }
  0x23   :  { %293 = vst [vmem:[%s723_s1 + $0xd2] sm:$0xff] %v292_v23  }
  0x24   :  { %295 = vst [vmem:[%s723_s1 + $0xda] sm:$0xf] %v294_v24  }
  0x25   :  { %296 = vst [vmem:[%s723_s1 + $0xdc] sm:$0xf0] %v294_v24  }
  0x26   :  { %298 = vst [vmem:[%s723_s1 + $0xe4] sm:$0xff] %v297_v25  }
  0x27   :  { %300 = vst [vmem:[%s723_s1 + $0xec] sm:$0x3] %v299_v26  }
  0x28   :  { %301 = vst [vmem:[%s723_s1 + $0xee] sm:$0xfc] %v299_v26  }
  0x29   :  { %303 = vst [vmem:[%s723_s1 + $0xf6] sm:$0xff] %v302_v27  }
  0x2a   :  { %305 = vst [vmem:[%s723_s1 + $0x100] sm:$0xff] %v304_v28  }
  0x2b   :  { %307 = vst [vmem:[%s723_s1 + $0x108] sm:$0x3f] %v306_v29  }
  0x2c   :  { %308 = vst [vmem:[%s723_s1 + $0x10a] sm:$0xc0] %v306_v29  }
  0x2d   :  { %310 = vst [vmem:[%s723_s1 + $0x112] sm:$0xff] %v309_v30  }
  0x2e   :  { %312 = vst [vmem:[%s723_s1 + $0x11a] sm:$0xf] %v311_v31  }
  0x2f   :  { %313 = vst [vmem:[%s723_s1 + $0x11c] sm:$0xf0] %v311_v31  }
  0x30   :  { %315 = vst [vmem:[%s723_s1 + $0x124] sm:$0xff] %v314_v32  }
  0x31   :  { %317 = vst [vmem:[%s723_s1 + $0x12c] sm:$0x3] %v316_v33  }
  0x32   :  { %318 = vst [vmem:[%s723_s1 + $0x12e] sm:$0xfc] %v316_v33  }
  0x33   :  { %320 = vst [vmem:[%s723_s1 + $0x136] sm:$0xff] %v319_v34  }
  0x34   :  { %322 = vst [vmem:[%s723_s1 + $0x140] sm:$0xff] %v321_v35  }
  0x35   :  { %324 = vst [vmem:[%s723_s1 + $0x148] sm:$0x3f] %v323_v36  }
  0x36   :  { %325 = vst [vmem:[%s723_s1 + $0x14a] sm:$0xc0] %v323_v36  }
  0x37   :  { %327 = vst [vmem:[%s723_s1 + $0x152] sm:$0xff] %v326_v37  }
  0x38   :  { %329 = vst [vmem:[%s723_s1 + $0x15a] sm:$0xf] %v328_v38  }
  0x39   :  { %330 = vst [vmem:[%s723_s1 + $0x15c] sm:$0xf0] %v328_v38  }
  0x3a   :  { %332 = vst [vmem:[%s723_s1 + $0x164] sm:$0xff] %v331_v39  }
  0x3b   :  { %334 = vst [vmem:[%s723_s1 + $0x16c] sm:$0x3] %v333_v40  }
  0x3c   :  { %335 = vst [vmem:[%s723_s1 + $0x16e] sm:$0xfc] %v333_v40  }
  0x3d   :  { %337 = vst [vmem:[%s723_s1 + $0x176] sm:$0xff] %v336_v41  }
  0x3e   :  { %339 = vst [vmem:[%s723_s1 + $0x180] sm:$0xff] %v338_v42  }
  0x3f   :  { %341 = vst [vmem:[%s723_s1 + $0x188] sm:$0x3f] %v340_v43  }
  0x40   :  { %342 = vst [vmem:[%s723_s1 + $0x18a] sm:$0xc0] %v340_v43  }
  0x41   :  { %344 = vst [vmem:[%s723_s1 + $0x192] sm:$0xff] %v343_v44  }
  0x42   :  { %346 = vst [vmem:[%s723_s1 + $0x19a] sm:$0xf] %v345_v45  }
  0x43   :  { %347 = vst [vmem:[%s723_s1 + $0x19c] sm:$0xf0] %v345_v45  }
  0x44   :  { %349 = vst [vmem:[%s723_s1 + $0x1a4] sm:$0xff] %v348_v46  }
  0x45   :  { %351 = vst [vmem:[%s723_s1 + $0x1ac] sm:$0x3] %v350_v47  }
  0x46   :  { %352 = vst [vmem:[%s723_s1 + $0x1ae] sm:$0xfc] %v350_v47  }
  0x47   :  { %354 = vst [vmem:[%s723_s1 + $0x1b6] sm:$0xff] %v353_v48  }

// kernel: forward.6
= control target key start
LH: loop header
LB: loop body
LE: loop exit
PB: predicated region body
PF: predicated region fallthrough
CT: control target
= control target key end

     0   :  { %s656_s6 = smov 0   ;;  %s921_s0 = inlined_call_operand.vmem [shape: f32[2,14,14,128], index: 0, kind: input, shape index: {}]   ;;  %s922_s1 = inlined_call_operand.vmem [shape: f32[2,6,6,128], index: 1, kind: output, shape index: {}]  }
   0x1 LB: > { %s587_s7 = sadd.s32 4294967295, %s640_s6   ;;  %p591_p0 = scmp.ge.s32.totalorder %s640_s6, 1  ;;  %s640_s6 = sphi %s656_s6, %s11_s6  }
   0x2   : > { %p87_p1 = scmp.lt.s32.totalorder %s640_s6, 3 }
   0x4   : > { %p88_p2 = pnand %p591_p0, %p87_p1 }
   0x5   : > { %p107_p3 = scmp.lt.s32.totalorder (!%p88_p2), %s587_s7, 1  ;;  %s642_s12 = smov (!%p88_p2), 127  }
   0x6   : > { %91 = sbr.rel (%p88_p2) target bundleno = 254 (0xfe), region = 24  ;;  %s643_s13 = smov (!%p88_p2), 1  }
   0x7   : > { %s644_s14 = smov (!%p88_p2), 126   ;;  %s645_s15 = smov (!%p88_p2), 2  }
   0xb   : > { %s924_s7 = smov (!%p107_p3, %s587_s7), 1  ;;  %vm335_vm0 = vcmask 1040384   ;;  %vm342_vm1 = vcmask 1041408   ;;  %vm349_vm2 = vcmask 1042432   ;;  %vm356_vm3 = vcmask 1043456  }
   0xc   : > { %s596_s8 = smul.u32 224, %s924_s7  ;;  %vm363_vm4 = vcmask 1044480  }
   0xd   : > { %s597_s16 = smul.u32 48, %s924_s7 }
   0xe   : > { %s670_s11 = scalar_lea.vmem %s921_s0, %s596_s8 }
   0xf   : > { %v673_v0 = vld [vmem:[%s670_s11 + $0x80] sm:$0xff]  ;;  %v676_v1 = vld [vmem:[%s670_s11 + $0x88] sm:$0x3f]  ;;  %v135_v2 = vld [vmem:[%s670_s11 + $0x90] sm:$0xff]  ;;  %s875_s19 = scalar_lea.vmem %s922_s1, %s597_s16 }
  0x10   : > { %v136_v3 = vld [vmem:[%s670_s11 + $0x98] sm:$0x3f]  ;;  %v681_v4 = vld [vmem:[%s670_s11 + $0xa0] sm:$0xff]  ;;  %v684_v5 = vld [vmem:[%s670_s11 + $0xa8] sm:$0x3f]  ;;  %v159_v6 = vmax.f32 %v673_v0, %v135_v2 }
  0x11   : > { %v160_v7 = vmax.f32 %v676_v1, %v136_v3  ;;  %v689_v8 = vld [vmem:[%s670_s11 + $0x40] sm:$0xff]  ;;  %v692_v9 = vld [vmem:[%s670_s11 + $0x48] sm:$0x3f]  ;;  %v127_v10 = vld [vmem:[%s670_s11 + $0x50] sm:$0xff] }
  0x12   : > { %v161_v11 = vmax.f32 %v159_v6, %v681_v4  ;;  %v128_v12 = vld [vmem:[%s670_s11 + $0x58] sm:$0x3f]  ;;  %v698_v13 = vld [vmem:[%s670_s11 + $0x60] sm:$0xff]  ;;  %v701_v14 = vld [vmem:[%s670_s11 + $0x68] sm:$0x3f]  ;;  %v151_v15 = vmax.f32 %v689_v8, %v127_v10 }
  0x13   : > { %v162_v16 = vmax.f32 %v160_v7, %v684_v5  ;;  %v152_v17 = vmax.f32 %v692_v9, %v128_v12  ;;  %v117_v18 = vld [vmem:[%s670_s11] sm:$0xff]  ;;  %v118_v19 = vld [vmem:[%s670_s11 + $0x8] sm:$0x3f]  ;;  %v119_v20 = vld [vmem:[%s670_s11 + $0x10] sm:$0xff] }
  0x14   : > { %v177_v21 = vrot.slane %v161_v11, 1  ;;  %v195_v22 = vrot.slane %v161_v11, 2  ;;  %v153_v23 = vmax.f32 %v151_v15, %v698_v13  ;;  %v120_v24 = vld [vmem:[%s670_s11 + $0x18] sm:$0x3f]  ;;  %v712_v25 = vld [vmem:[%s670_s11 + $0x20] sm:$0xff]  ;;  %v143_v26 = vmax.f32 %v117_v18, %v119_v20  ;;  %v139_v60 = vld [vmem:[%s670_s11 + $0xb0] sm:$0xff] }
  0x15   : > { %v219_v27 = vrot.slane %v162_v16, 2  ;;  %v237_v28 = vrot.slane %v162_v16, 1  ;;  %v154_v29 = vmax.f32 %v152_v17, %v701_v14  ;;  %v716_v30 = vld [vmem:[%s670_s11 + $0x28] sm:$0x3f]  ;;  %v144_v31 = vmax.f32 %v118_v19, %v120_v24  ;;  %v141_v17 = vld [vmem:[%s670_s11 + $0xc0] sm:$0xff] }
  0x16   : > { %v189_v32 = vmax.f32 %v161_v11, %v177_v21  ;;  %v175_v33 = vrot.slane %v153_v23, 1  ;;  %v193_v34 = vrot.slane %v153_v23, 2  ;;  %v145_v35 = vmax.f32 %v143_v26, %v712_v25 }
  0x17   : > { %v249_v36 = vmax.f32 %v162_v16, %v237_v28  ;;  %v217_v37 = vrot.slane %v154_v29, 2  ;;  %v235_v38 = vrot.slane %v154_v29, 1  ;;  %v146_v39 = vmax.f32 %v144_v31, %v716_v30  ;;  %v140_v16 = vld [vmem:[%s670_s11 + $0xb8] sm:$0x3f] }
  0x18   : > { %v207_v40 = vmax.f32 %v189_v32, %v195_v22  ;;  %v231_v41 = vmax.f32 %v189_v32, %v219_v27  ;;  %v187_v42 = vmax.f32 %v153_v23, %v175_v33  ;;  %v173_v43 = vrot.slane %v145_v35, 1  ;;  %v131_v23 = vld [vmem:[%s670_s11 + $0x70] sm:$0xff] }
  0x19   : > { %v255_v44 = vmax.f32 %v249_v36, %v219_v27  ;;  %v247_v45 = vmax.f32 %v154_v29, %v235_v38  ;;  %v191_v46 = vrot.slane %v145_v35, 2  ;;  %v215_v47 = vrot.slane %v146_v39, 2  ;;  %v142_v29 = vld [vmem:[%s670_s11 + $0xc8] sm:$0x3f] }
  0x1a   : > { %v267_v48 = vrot.slane %v207_v40, 1  ;;  %v279_v49 = vrot.slane %v207_v40, 2  ;;  %v297_v50 = vrot.slane %v231_v41, 3  ;;  %v205_v51 = vmax.f32 %v187_v42, %v193_v34  ;;  %v132_v34 = vld [vmem:[%s670_s11 + $0x78] sm:$0x3f] }
  0x1b   : > { %v315_v52 = vrot.slane %v255_v44, 4  ;;  %v327_v53 = vrot.slane %v255_v44, 5  ;;  %v229_v54 = vmax.f32 %v187_v42, %v217_v37  ;;  %v253_v55 = vmax.f32 %v247_v45, %v217_v37 }
  0x1c   : > { %v340_v56 = vsel %vm335_vm0, %v207_v40, %v267_v48  ;;  %v265_v57 = vrot.slane %v205_v51, 1  ;;  %v277_v58 = vrot.slane %v205_v51, 2  ;;  %v185_v59 = vmax.f32 %v145_v35, %v173_v43 }
  0x1d   : > { %v347_v61 = vsel %vm342_vm1, %v340_v56, %v279_v49  ;;  %v295_v62 = vrot.slane %v229_v54, 3  ;;  %v313_v63 = vrot.slane %v253_v55, 4  ;;  %v325_v2 = vrot.slane %v253_v55, 5 }
  0x1e   : > { %v354_v3 = vsel %vm349_vm2, %v347_v61, %v297_v50  ;;  %v338_v6 = vsel %vm335_vm0, %v205_v51, %v265_v57  ;;  %v203_v7 = vmax.f32 %v185_v59, %v191_v46  ;;  %v227_v10 = vmax.f32 %v185_v59, %v215_v47 }
  0x1f   : > { %v361_v11 = vsel %vm356_vm3, %v354_v3, %v315_v52  ;;  %v345_v12 = vsel %vm342_vm1, %v338_v6, %v277_v58  ;;  %v233_v15 = vrot.slane %v146_v39, 1  ;;  %v163_v18 = vmax.f32 %v681_v4, %v139_v60 }
  0x20   : > { %v731_v19 = vsel %vm363_vm4, %v361_v11, %v327_v53  ;;  %v352_v20 = vsel %vm349_vm2, %v345_v12, %v295_v62  ;;  %v263_v21 = vrot.slane %v203_v7, 1  ;;  %v275_v22 = vrot.slane %v203_v7, 2 }
  0x21   : > { %v737_v24 = vmul.f32 %v731_v19, %v731_v19  ;;  %v359_v26 = vsel %vm356_vm3, %v352_v20, %v313_v63  ;;  %v245_v27 = vmax.f32 %v146_v39, %v233_v15  ;;  %v293_v28 = vrot.slane %v227_v10, 3  ;;  %v123_v39 = vld [vmem:[%s670_s11 + $0x30] sm:$0xff] }
  0x22   : > { %v742_v4 = vsel %vm363_vm4, %v359_v26, %v325_v2  ;;  %v336_v31 = vsel %vm335_vm0, %v203_v7, %v263_v21  ;;  %v164_v32 = vmax.f32 %v684_v5, %v140_v16  ;;  %v165_v33 = vmax.f32 %v163_v18, %v141_v17 }
  0x23   : > { %386 = vrot.lane.b32.xlu2 %v737_v24, %s642_s12  ;;  %v751_v35 = vmul.f32 %v742_v4, %v742_v4  ;;  %v251_v36 = vmax.f32 %v245_v27, %v215_v47  ;;  %v343_v37 = vsel %vm342_vm1, %v336_v31, %v275_v22  ;;  %v155_v38 = vmax.f32 %v698_v13, %v131_v23 }
  0x24   : > { %v350_v40 = vsel %vm349_vm2, %v343_v37, %v293_v28  ;;  %v166_v41 = vmax.f32 %v164_v32, %v142_v29  ;;  %v178_v5 = vrot.slane %v165_v33, 1  ;;  %v196_v42 = vrot.slane %v165_v33, 2 }
  0x25   : > { %382 = vrot.lane.b32.xlu1 %v751_v35, %s642_s12  ;;  %v311_v43 = vrot.slane %v251_v36, 4  ;;  %v323_v44 = vrot.slane %v251_v36, 5  ;;  %v156_v45 = vmax.f32 %v701_v14, %v132_v34  ;;  %v157_v46 = vmax.f32 %v155_v38, %v673_v0  ;;  %v124_v14 = vld [vmem:[%s670_s11 + $0x38] sm:$0x3f] }
  0x26   : > { %v190_v47 = vmax.f32 %v165_v33, %v178_v5  ;;  %v220_v48 = vrot.slane %v166_v41, 2  ;;  %v238_v49 = vrot.slane %v166_v41, 1  ;;  %v147_v13 = vmax.f32 %v712_v25, %v123_v39 }
  0x27   : > { %v357_v50 = vsel %vm356_vm3, %v350_v40, %v311_v43  ;;  %v158_v51 = vmax.f32 %v156_v45, %v676_v1  ;;  %v176_v52 = vrot.slane %v157_v46, 1  ;;  %v194_v53 = vrot.slane %v157_v46, 2 }
  0x28   : > { %v765_v54 = vsel %vm363_vm4, %v357_v50, %v323_v44  ;;  %v208_v55 = vmax.f32 %v190_v47, %v196_v42  ;;  %v232_v56 = vmax.f32 %v190_v47, %v220_v48  ;;  %v250_v57 = vmax.f32 %v166_v41, %v238_v49 }
  0x29   : > { %v770_v0 = vmul.f32 %v765_v54, %v765_v54  ;;  %v188_v58 = vmax.f32 %v157_v46, %v176_v52  ;;  %v218_v59 = vrot.slane %v158_v51, 2  ;;  %v236_v25 = vrot.slane %v158_v51, 1 }
  0x2a   : > { %v256_v60 = vmax.f32 %v250_v57, %v220_v48  ;;  %v268_v61 = vrot.slane %v208_v55, 1  ;;  %v280_v62 = vrot.slane %v208_v55, 2  ;;  %v298_v1 = vrot.slane %v232_v56, 3 }
  0x2b   : > { %378 = vrot.lane.b32.xlu0 %v770_v0, %s642_s12  ;;  %v206_v63 = vmax.f32 %v188_v58, %v194_v53  ;;  %v230_v2 = vmax.f32 %v188_v58, %v218_v59  ;;  %v248_v3 = vmax.f32 %v158_v51, %v236_v25  ;;  %v148_v6 = vmax.f32 %v716_v30, %v124_v14 }
  0x2c   : > { %v316_v7 = vrot.slane %v256_v60, 4  ;;  %v328_v10 = vrot.slane %v256_v60, 5  ;;  %v341_v11 = vsel %vm335_vm0, %v208_v55, %v268_v61  ;;  %v149_v12 = vmax.f32 %v147_v13, %v689_v8 }
  0x2d   : > { %v348_v15 = vsel %vm342_vm1, %v341_v11, %v280_v62  ;;  %v254_v16 = vmax.f32 %v248_v3, %v218_v59  ;;  %v266_v17 = vrot.slane %v206_v63, 1  ;;  %v278_v18 = vrot.slane %v206_v63, 2 }
  0x2e   : > { %v355_v20 = vsel %vm349_vm2, %v348_v15, %v298_v1  ;;  %v296_v21 = vrot.slane %v230_v2, 3  ;;  %v150_v22 = vmax.f32 %v148_v6, %v692_v9  ;;  %v174_v23 = vrot.slane %v149_v12, 1 }
  0x2f   : > { %v362_v26 = vsel %vm356_vm3, %v355_v20, %v316_v7  ;;  %v314_v30 = vrot.slane %v254_v16, 4  ;;  %v326_v27 = vrot.slane %v254_v16, 5  ;;  %v339_v28 = vsel %vm335_vm0, %v206_v63, %v266_v17 }
  0x30   : > { %v783_v29 = vsel %vm363_vm4, %v362_v26, %v328_v10  ;;  %v346_v8 = vsel %vm342_vm1, %v339_v28, %v278_v18  ;;  %v186_v31 = vmax.f32 %v149_v12, %v174_v23  ;;  %v192_v32 = vrot.slane %v149_v12, 2 }
  0x31   : > { %v788_v33 = vmul.f32 %v783_v29, %v783_v29  ;;  %v353_v9 = vsel %vm349_vm2, %v346_v8, %v296_v21  ;;  %v216_v34 = vrot.slane %v150_v22, 2  ;;  %v234_v36 = vrot.slane %v150_v22, 1 }
  0x32   : > { %v360_v37 = vsel %vm356_vm3, %v353_v9, %v314_v30  ;;  %v204_v38 = vmax.f32 %v186_v31, %v192_v32  ;;  %v376_v58 = vlaneseq }
  0x33   : > { %388 = vrot.lane.b32.xlu2 %v788_v33, %s642_s12  ;;  %v795_v39 = vsel %vm363_vm4, %v360_v37, %v326_v27  ;;  %v228_v40 = vmax.f32 %v186_v31, %v216_v34  ;;  %v246_v41 = vmax.f32 %v150_v22, %v234_v36 }
  0x34   : > { %v799_v5 = vmul.f32 %v795_v39, %v795_v39  ;;  %v264_v42 = vrot.slane %v204_v38, 1  ;;  %v276_v43 = vrot.slane %v204_v38, 2  ;;  %v836_v59 = vand.u32 127, %v376_v58 }
  0x35   : > { %v252_v44 = vmax.f32 %v246_v41, %v216_v34  ;;  %v294_v45 = vrot.slane %v228_v40, 3 }
  0x36   : > { %384 = vrot.lane.b32.xlu1 %v799_v5, %s642_s12  ;;  %v337_v46 = vsel %vm335_vm0, %v204_v38, %v264_v42  ;;  %vm390_vm5 = vcmp.lt.s32.totalorder %v836_v59, 95  ;;  %vm415_vm6 = vcmp.ge.s32.totalorder %v836_v59, 1  ;;  %vm440_vm7 = vcmp.lt.s32.totalorder %v836_v59, 94 }
  0x37   : > { %v312_v47 = vrot.slane %v252_v44, 4  ;;  %v324_v48 = vrot.slane %v252_v44, 5  ;;  %v344_v49 = vsel %vm342_vm1, %v337_v46, %v276_v43  ;;  %vm465_vm8 = vcmp.ge.s32.totalorder %v836_v59, 2 }
  0x38   : > { %v351_v13 = vsel %vm349_vm2, %v344_v49, %v294_v45 }
  0x39   : > { %v358_v50 = vsel %vm356_vm3, %v351_v13, %v312_v47 }
  0x3a   : > { %v808_v51 = vsel %vm363_vm4, %v358_v50, %v324_v48 }
  0x3b   : > { %v812_v52 = vmul.f32 %v808_v51, %v808_v51  ;;  %407 = vrot.lane.b32.xlu2 %v751_v35, %s643_s13 }
  0x3d   : > { %380 = vrot.lane.b32.xlu0 %v812_v52, %s642_s12 }
  0x3e   : > { %405 = vrot.lane.b32.xlu1 %v812_v52, %s643_s13 }
  0x43   : > { %413 = vrot.lane.b32.xlu2 %v788_v33, %s643_s13 }
  0x45   : > { %403 = vrot.lane.b32.xlu0 %v770_v0, %s643_s13 }
  0x46   : > { %411 = vrot.lane.b32.xlu1 %v737_v24, %s643_s13 }
  0x4b   : > { %432 = vrot.lane.b32.xlu2 %v751_v35, %s644_s14 }
  0x4d   : > { %409 = vrot.lane.b32.xlu0 %v799_v5, %s643_s13 }
  0x4e   : > { %430 = vrot.lane.b32.xlu1 %v812_v52, %s644_s14 }
  0x53   : > { %438 = vrot.lane.b32.xlu2 %v788_v33, %s644_s14 }
  0x55   : > { %428 = vrot.lane.b32.xlu0 %v770_v0, %s644_s14 }
  0x56   : > { %436 = vrot.lane.b32.xlu1 %v737_v24, %s644_s14 }
  0x5b   : > { %457 = vrot.lane.b32.xlu2 %v751_v35, %s645_s15 }
  0x5d   : > { %434 = vrot.lane.b32.xlu0 %v799_v5, %s644_s14 }
  0x5e   : > { %455 = vrot.lane.b32.xlu1 %v812_v52, %s645_s15 }
  0x63   : > { %463 = vrot.lane.b32.xlu2 %v788_v33, %s645_s15 }
  0x65   : > { %453 = vrot.lane.b32.xlu0 %v770_v0, %s645_s15 }
  0x66   : > { %461 = vrot.lane.b32.xlu1 %v737_v24, %s645_s15 }
  0x6d   : > { %459 = vrot.lane.b32.xlu0 %v799_v5, %s645_s15 }
  0x7d   : > { %v834_v53 = vpop.permute.xlu2 %386 }
  0x7e   : > { %v395_v58 = vsel %vm390_vm5, %v834_v53, 0.0 }
  0x8d   : > { %v389_v55 = vpop.permute.xlu2 %388 }
  0x8e   : > { %v396_v11 = vsel %vm390_vm5, %v389_v55, 0.0 }
  0x8f   : > { %v402_v16 = vadd.f32 %v396_v11, %v788_v33 }
  0x95   : > { %v408_v56 = vpop.permute.xlu2 %407 }
  0x96   : > { %v418_v3 = vsel %vm415_vm6, %v408_v56, 0.0 }
  0x97   : > { %v383_v14 = vpop.permute.xlu1 %382 }
  0x98   : > { %v393_v62 = vsel %vm390_vm5, %v383_v14, 0.0 }
  0x99   : > { %v399_v63 = vadd.f32 %v393_v62, %v751_v35 }
  0x9b   : > { %v424_v10 = vadd.f32 %v418_v3, %v399_v63  ;;  %v401_v3 = vadd.f32 %v395_v58, %v737_v24 }
  0x9d   : > { %v414_v57 = vpop.permute.xlu2 %413  ;;  %v379_v25 = vpop.permute.xlu0 %378 }
  0x9e   : > { %v421_v20 = vsel %vm415_vm6, %v414_v57, 0.0  ;;  %v391_v56 = vsel %vm390_vm5, %v379_v25, 0.0 }
  0x9f   : > { %v427_v26 = vadd.f32 %v421_v20, %v402_v16  ;;  %v397_v63 = vadd.f32 %v391_v56, %v770_v0 }
  0xa5   : > { %v433_v60 = vpop.permute.xlu2 %432 }
  0xa6   : > { %v443_v7 = vsel %vm440_vm7, %v433_v60, 0.0 }
  0xa7   : > { %v449_v12 = vadd.f32 %v443_v7, %v424_v10 }
  0xa8   : > { %v838_v61 = vpop.permute.xlu1 %384 }
  0xad   : > { %v439_v1 = vpop.permute.xlu2 %438 }
  0xae   : > { %v446_v23 = vsel %vm440_vm7, %v439_v1, 0.0 }
  0xaf   : > { %v381_v2 = vpop.permute.xlu0 %380  ;;  %v452_v27 = vadd.f32 %v446_v23, %v427_v26 }
  0xb0   : > { %v406_v6 = vpop.permute.xlu1 %405  ;;  %v392_v43 = vsel %vm390_vm5, %v381_v2, 0.0 }
  0xb1   : > { %v417_v45 = vsel %vm415_vm6, %v406_v6, 0.0  ;;  %v398_v46 = vadd.f32 %v392_v43, %v812_v52 }
  0xb3   : > { %v423_v49 = vadd.f32 %v417_v45, %v398_v46 }
  0xb5   : > { %v458_v15 = vpop.permute.xlu2 %457 }
  0xb6   : > { %v468_v35 = vsel %vm465_vm8, %v458_v15, 0.0 }
  0xb7   : > { %v404_v17 = vpop.permute.xlu0 %403  ;;  %v474_v18 = vadd.f32 %v468_v35, %v449_v12  ;;  %v394_v35 = vsel %vm390_vm5, %v838_v61, 0.0 }
  0xb8   : > { %v412_v21 = vpop.permute.xlu1 %411  ;;  %v416_v25 = vsel %vm415_vm6, %v404_v17, 0.0  ;;  %v400_v26 = vadd.f32 %v394_v35, %v799_v5 }
  0xb9   : > { %v480_v22 = vmul.f32 2e-05, %v474_v18  ;;  %v420_v2 = vsel %vm415_vm6, %v412_v21, 0.0  ;;  %v422_v6 = vadd.f32 %v416_v25, %v397_v63 }
  0xba   : > { %v426_v10 = vadd.f32 %v420_v2, %v401_v3 }
  0xbb   : > { %v486_v30 = vadd.f32 1.0, %v480_v22 }
  0xbd   : > { %610 = vlog2.f32 %v486_v30  ;;  %v464_v28 = vpop.permute.xlu2 %463 }
  0xbe   : > { %v471_v8 = vsel %vm465_vm8, %v464_v28, 0.0 }
  0xbf   : > { %v410_v31 = vpop.permute.xlu0 %409  ;;  %v477_v32 = vadd.f32 %v471_v8, %v452_v27 }
  0xc0   : > { %v431_v33 = vpop.permute.xlu1 %430  ;;  %v419_v22 = vsel %vm415_vm6, %v410_v31, 0.0 }
  0xc1   : > { %v483_v9 = vmul.f32 2e-05, %v477_v32  ;;  %v442_v48 = vsel %vm440_vm7, %v431_v33, 0.0  ;;  %v425_v28 = vadd.f32 %v419_v22, %v400_v26 }
  0xc2   : > { %v448_v52 = vadd.f32 %v442_v48, %v423_v49 }
  0xc3   : > { %v611_v34 = vpop.eup %610  ;;  %v489_v36 = vadd.f32 1.0, %v483_v9 }
  0xc4   : > { %v495_v37 = vmul.f32 0.6931472, %v611_v34 }
  0xc5   : > { %612 = vlog2.f32 %v489_v36 }
  0xc6   : > { %v504_v38 = vmul.f32 -0.75, %v495_v37 }
  0xc7   : > { %v429_v40 = vpop.permute.xlu0 %428 }
  0xc8   : > { %v512_v41 = vmul.f32 1.442695, %v504_v38  ;;  %v437_v42 = vpop.permute.xlu1 %436  ;;  %v441_v53 = vsel %vm440_vm7, %v429_v40, 0.0 }
  0xc9   : > { %v445_v7 = vsel %vm440_vm7, %v437_v42, 0.0  ;;  %v447_v12 = vadd.f32 %v441_v53, %v422_v6 }
  0xca   : > { %614 = vpow2.f32 %v512_v41  ;;  %v451_v16 = vadd.f32 %v445_v7, %v426_v10 }
  0xcb   : > { %v613_v44 = vpop.eup %612 }
  0xcc   : > { %v501_v47 = vmul.f32 0.6931472, %v613_v44 }
  0xce   : > { %v507_v13 = vmul.f32 -0.75, %v501_v47 }
  0xcf   : > { %v435_v50 = vpop.permute.xlu0 %434 }
  0xd0   : > { %v615_v55 = vpop.eup %614  ;;  %v518_v57 = vmul.f32 1.442695, %v507_v13  ;;  %v456_v14 = vpop.permute.xlu1 %455  ;;  %v444_v30 = vsel %vm440_vm7, %v435_v50, 0.0 }
  0xd1   : > { %v522_v60 = vmul.f32 %v615_v55, %v742_v4  ;;  %v467_v62 = vsel %vm465_vm8, %v456_v14, 0.0  ;;  %v450_v33 = vadd.f32 %v444_v30, %v425_v28 }
  0xd2   : > { %616 = vpow2.f32 %v518_v57  ;;  %v473_v1 = vadd.f32 %v467_v62, %v448_v52 }
  0xd3   : > { %528 = vst [vmem:[%s875_s19 + $0x10] sm:$0x3f] %v522_v60 }
  0xd4   : > { %v479_v4 = vmul.f32 2e-05, %v473_v1 }
  0xd6   : > { %v485_v11 = vadd.f32 1.0, %v479_v4 }
  0xd7   : > { %v454_v15 = vpop.permute.xlu0 %453 }
  0xd8   : > { %v617_v0 = vpop.eup %616  ;;  %618 = vlog2.f32 %v485_v11  ;;  %v466_v24 = vsel %vm465_vm8, %v454_v15, 0.0  ;;  %v462_v17 = vpop.permute.xlu1 %461 }
  0xd9   : > { %v525_v18 = vmul.f32 %v617_v0, %v783_v29  ;;  %v472_v20 = vadd.f32 %v466_v24, %v447_v12  ;;  %v470_v21 = vsel %vm465_vm8, %v462_v17, 0.0 }
  0xda   : > { %v476_v23 = vadd.f32 %v470_v21, %v451_v16 }
  0xdb   : > { %531 = vst [vmem:[%s875_s19 + $0x28] sm:$0x3f] %v525_v18  ;;  %v478_v61 = vmul.f32 2e-05, %v472_v20 }
  0xdc   : > { %v482_v27 = vmul.f32 2e-05, %v476_v23 }
  0xdd   : > { %v484_v8 = vadd.f32 1.0, %v478_v61 }
  0xde   : > { %v619_v32 = vpop.eup %618  ;;  %v488_v29 = vadd.f32 1.0, %v482_v27 }
  0xdf   : > { %v493_v9 = vmul.f32 0.6931472, %v619_v32  ;;  %620 = vlog2.f32 %v484_v8  ;;  %v460_v34 = vpop.permute.xlu0 %459 }
  0xe0   : > { %622 = vlog2.f32 %v488_v29  ;;  %v469_v31 = vsel %vm465_vm8, %v460_v34, 0.0 }
  0xe1   : > { %v503_v36 = vmul.f32 -0.75, %v493_v9  ;;  %v475_v5 = vadd.f32 %v469_v31, %v450_v33 }
  0xe3   : > { %v510_v37 = vmul.f32 1.442695, %v503_v36  ;;  %v481_v38 = vmul.f32 2e-05, %v475_v5 }
  0xe5   : > { %v621_v40 = vpop.eup %620  ;;  %624 = vpow2.f32 %v510_v37  ;;  %v487_v41 = vadd.f32 1.0, %v481_v38 }
  0xe6   : > { %v623_v42 = vpop.eup %622  ;;  %v491_v43 = vmul.f32 0.6931472, %v621_v40 }
  0xe7   : > { %v499_v44 = vmul.f32 0.6931472, %v623_v42  ;;  %626 = vlog2.f32 %v487_v41 }
  0xe8   : > { %v502_v45 = vmul.f32 -0.75, %v491_v43 }
  0xe9   : > { %v506_v46 = vmul.f32 -0.75, %v499_v44 }
  0xea   : > { %v508_v47 = vmul.f32 1.442695, %v502_v45 }
  0xeb   : > { %v625_v48 = vpop.eup %624  ;;  %v516_v59 = vmul.f32 1.442695, %v506_v46 }
  0xec   : > { %v521_v49 = vmul.f32 %v625_v48, %v808_v51  ;;  %628 = vpow2.f32 %v508_v47 }
  0xed   : > { %v627_v13 = vpop.eup %626  ;;  %630 = vpow2.f32 %v516_v59 }
  0xee   : > { %527 = vst [vmem:[%s875_s19 + $0x8] sm:$0x3f] %v521_v49  ;;  %v497_v50 = vmul.f32 0.6931472, %v627_v13 }
  0xf0   : > { %v505_v55 = vmul.f32 -0.75, %v497_v50 }
  0xf2   : > { %v629_v56 = vpop.eup %628  ;;  %v514_v57 = vmul.f32 1.442695, %v505_v55 }
  0xf3   : > { %v631_v52 = vpop.eup %630  ;;  %v520_v14 = vmul.f32 %v629_v56, %v765_v54 }
  0xf4   : > { %v524_v58 = vmul.f32 %v631_v52, %v731_v19  ;;  %632 = vpow2.f32 %v514_v57 }
  0xf5   : > { %526 = vst [vmem:[%s875_s19] sm:$0x3f] %v520_v14 }
  0xf6   : > { %530 = vst [vmem:[%s875_s19 + $0x20] sm:$0x3f] %v524_v58 }
  0xfa   : > { %v633_v60 = vpop.eup %632 }
  0xfb   : > { %v523_v51 = vmul.f32 %v633_v60, %v795_v39 }
  0xfd   : > { %529 = vst [vmem:[%s875_s19 + $0x18] sm:$0x3f] %v523_v51 }
  0xfe PF: > { %s11_s6 = sadd.s32 1, %s640_s6  }
  0xff   : > { %p8_p4 = scmp.ge.s32.totalorder %s11_s6, 4  }
 0x101   :  { %10 = sbr.rel (!%p8_p4) target bundleno = 1 (0x1), region = 54 }

// kernel: forward.5
= control target key start
LH: loop header
LB: loop body
LE: loop exit
PB: predicated region body
PF: predicated region fallthrough
CT: control target
= control target key end

     0   :  { %s2850_s1 = inlined_call_operand.vmem [shape: bf16[1,384,128], index: 1, kind: input, shape index: {}]   ;;  %s2851_s0 = inlined_call_operand.vmem [shape: bf16[1,392,384], index: 0, kind: input, shape index: {}]   ;;  %s2852_s2 = inlined_call_operand.vmem [shape: f32[1,1,128], index: 2, kind: input, shape index: {}]   ;;  %s2853_s3 = inlined_call_operand.vmem [shape: f32[1,392,128], index: 3, kind: output, shape index: {}]  }
   0x1   :  { %v1968_v0 = vld [vmem:[%s2850_s1 + $0x38] sm:$0xff]  ;;  %v1967_v3 = vld [vmem:[%s2850_s1 + $0x30] sm:$0xff]  ;;  %v1966_v6 = vld [vmem:[%s2850_s1 + $0x28] sm:$0xff] }
   0x2   :  { %v2037_v1 = vld [vmem:[%s2850_s1 + $0x78] sm:$0xff]  ;;  %801 = vmatpush.bf16.msra.mxu0 %v1968_v0  ;;  %1985 = vmatpush.bf16.msra.mxu3 %v1968_v0  ;;  %v2052_v4 = vld [vmem:[%s2850_s1 + $0x70] sm:$0xff]  ;;  %v1974_v7 = vld [vmem:[%s2850_s1 + $0x68] sm:$0xff] }
   0x3   :  { %v2042_v2 = vld [vmem:[%s2850_s1 + $0xb8] sm:$0xff]  ;;  %934 = vmatpush.bf16.msra.mxu1 %v2037_v1  ;;  %v2057_v5 = vld [vmem:[%s2850_s1 + $0xb0] sm:$0xff]  ;;  %v2070_v8 = vld [vmem:[%s2850_s1 + $0xa8] sm:$0xff] }
   0x4   :  { %1067 = vmatpush.bf16.msra.mxu2 %v2042_v2  ;;  %v1965_v9 = vld [vmem:[%s2850_s1 + $0x20] sm:$0xff]  ;;  %v1964_v12 = vld [vmem:[%s2850_s1 + $0x18] sm:$0xff]  ;;  %v1963_v15 = vld [vmem:[%s2850_s1 + $0x10] sm:$0xff] }
   0x5   :  { %v1973_v10 = vld [vmem:[%s2850_s1 + $0x60] sm:$0xff]  ;;  %v1972_v13 = vld [vmem:[%s2850_s1 + $0x58] sm:$0xff]  ;;  %v1971_v16 = vld [vmem:[%s2850_s1 + $0x50] sm:$0xff] }
   0x6   :  { %802 = vmatpush.bf16.msra.mxu0 %v1967_v3  ;;  %1986 = vmatpush.bf16.msra.mxu3 %v1967_v3  ;;  %v2082_v11 = vld [vmem:[%s2850_s1 + $0xa0] sm:$0xff]  ;;  %v2094_v14 = vld [vmem:[%s2850_s1 + $0x98] sm:$0xff]  ;;  %v2106_v17 = vld [vmem:[%s2850_s1 + $0x90] sm:$0xff] }
   0x7   :  { %935 = vmatpush.bf16.msra.mxu1 %v2052_v4  ;;  %v1962_v18 = vld [vmem:[%s2850_s1 + $0x8] sm:$0xff]  ;;  %v1961_v21 = vld [vmem:[%s2850_s1] sm:$0xff]  ;;  %v1947_v27 = vld [vmem:[%s2851_s0 + $0x1d0] sm:$0xf0] }
   0x8   :  { %1068 = vmatpush.bf16.msra.mxu2 %v2057_v5  ;;  %v1970_v19 = vld [vmem:[%s2850_s1 + $0x48] sm:$0xff]  ;;  %v1969_v22 = vld [vmem:[%s2850_s1 + $0x40] sm:$0xff]  ;;  %v1509_v29 = vld [vmem:[%s2851_s0 + $0xc] sm:$0xf0] }
   0x9   :  { %v2118_v20 = vld [vmem:[%s2850_s1 + $0x88] sm:$0xff]  ;;  %v2129_v23 = vld [vmem:[%s2850_s1 + $0x80] sm:$0xff]  ;;  %v1891_v31 = vld [vmem:[%s2851_s0 + $0x10] sm:$0xf0] }
   0xa   :  { %803 = vmatpush.bf16.msra.mxu0 %v1966_v6  ;;  %1987 = vmatpush.bf16.msra.mxu3 %v1966_v6  ;;  %v1507_v24 = vld [vmem:[%s2851_s0] sm:$0xf]  ;;  %v1890_v25 = vld [vmem:[%s2851_s0 + $0x8] sm:$0xf0]  ;;  %v1735_v26 = vld [vmem:[%s2851_s0 + $0x1c8] sm:$0xf] }
   0xb   :  { %936 = vmatpush.bf16.msra.mxu1 %v1974_v7  ;;  %v1889_v28 = vld [vmem:[%s2851_s0 + $0x4] sm:$0xf]  ;;  %v1515_v30 = vld [vmem:[%s2851_s0 + $0x8] sm:$0xf]  ;;  %v1508_v32 = vor.u32 %v1890_v25, %v1507_v24  ;;  %v1736_v33 = vor.u32 %v1947_v27, %v1735_v26  ;;  %v1519_v36 = vld [vmem:[%s2851_s0 + $0x18] sm:$0xf] }
   0xc   :  { %1069 = vmatpush.bf16.msra.mxu2 %v2070_v8  ;;  %v1512_v34 = vor.u32 %v1889_v28, %v1509_v29  ;;  %v1516_v35 = vor.u32 %v1891_v31, %v1515_v30  ;;  %v1893_v37 = vld [vmem:[%s2851_s0 + $0x20] sm:$0xf0]  ;;  %v1747_v38 = vld [vmem:[%s2851_s0 + $0x1e0] sm:$0xf]  ;;  %v1950_v39 = vld [vmem:[%s2851_s0 + $0x1e8] sm:$0xf0] }
   0xd   :  { %v1892_v40 = vld [vmem:[%s2851_s0 + $0x1c] sm:$0xf]  ;;  %v1521_v41 = vld [vmem:[%s2851_s0 + $0x24] sm:$0xf0]  ;;  %v1527_v42 = vld [vmem:[%s2851_s0 + $0x20] sm:$0xf]  ;;  %v1520_v44 = vor.u32 %v1893_v37, %v1519_v36  ;;  %v1748_v45 = vor.u32 %v1950_v39, %v1747_v38 }
   0xe   :  { %804 = vmatpush.bf16.msra.mxu0 %v1965_v9  ;;  %1988 = vmatpush.bf16.msra.mxu3 %v1965_v9  ;;  %v1894_v43 = vld [vmem:[%s2851_s0 + $0x28] sm:$0xf0]  ;;  %v1524_v46 = vor.u32 %v1892_v40, %v1521_v41  ;;  %v1531_v48 = vld [vmem:[%s2851_s0 + $0x30] sm:$0xf]  ;;  %v1896_v49 = vld [vmem:[%s2851_s0 + $0x38] sm:$0xf0] }
   0xf   :  { %937 = vmatpush.bf16.msra.mxu1 %v1973_v10  ;;  %v1528_v47 = vor.u32 %v1894_v43, %v1527_v42  ;;  %v1759_v50 = vld [vmem:[%s2851_s0 + $0x1f8] sm:$0xf]  ;;  %v1953_v51 = vld [vmem:[%s2851_s0 + $0x200] sm:$0xf0]  ;;  %v1895_v52 = vld [vmem:[%s2851_s0 + $0x34] sm:$0xf]  ;;  %v1532_v56 = vor.u32 %v1896_v49, %v1531_v48 }
  0x10   :  { %1070 = vmatpush.bf16.msra.mxu2 %v2082_v11  ;;  %v1533_v53 = vld [vmem:[%s2851_s0 + $0x3c] sm:$0xf0]  ;;  %v1539_v54 = vld [vmem:[%s2851_s0 + $0x38] sm:$0xf]  ;;  %v1897_v55 = vld [vmem:[%s2851_s0 + $0x40] sm:$0xf0]  ;;  %v1760_v57 = vor.u32 %v1953_v51, %v1759_v50 }
  0x11   :  { %v1536_v58 = vor.u32 %v1895_v52, %v1533_v53  ;;  %v1540_v59 = vor.u32 %v1897_v55, %v1539_v54  ;;  %v1543_v60 = vld [vmem:[%s2851_s0 + $0x48] sm:$0xf]  ;;  %v1899_v61 = vld [vmem:[%s2851_s0 + $0x50] sm:$0xf0]  ;;  %v1771_v62 = vld [vmem:[%s2851_s0 + $0x210] sm:$0xf] }
  0x12   :  { %805 = vmatpush.bf16.msra.mxu0 %v1964_v12  ;;  %1989 = vmatpush.bf16.msra.mxu3 %v1964_v12  ;;  %v1956_v63 = vld [vmem:[%s2851_s0 + $0x218] sm:$0xf0]  ;;  %v1898_v0 = vld [vmem:[%s2851_s0 + $0x4c] sm:$0xf]  ;;  %v1901_v12 = vld [vmem:[%s2851_s0 + $0x64] sm:$0xf] }
  0x13   :  { %938 = vmatpush.bf16.msra.mxu1 %v1972_v13  ;;  %v1900_v3 = vld [vmem:[%s2851_s0 + $0x58] sm:$0xf0]  ;;  %v1902_v9 = vld [vmem:[%s2851_s0 + $0x68] sm:$0xf0]  ;;  %v1569_v25 = vld [vmem:[%s2851_s0 + $0x84] sm:$0xf0] }
  0x14   :  { %1071 = vmatpush.bf16.msra.mxu2 %v2094_v14  ;;  %v1904_v24 = vld [vmem:[%s2851_s0 + $0x7c] sm:$0xf]  ;;  %v1575_v26 = vld [vmem:[%s2851_s0 + $0x80] sm:$0xf]  ;;  %v1906_v27 = vld [vmem:[%s2851_s0 + $0x88] sm:$0xf0] }
  0x15   :  { %v1572_v30 = vor.u32 %v1904_v24, %v1569_v25  ;;  %v1576_v31 = vor.u32 %v1906_v27, %v1575_v26  ;;  %v1737_v36 = vld [vmem:[%s2851_s0 + $0x1d4] sm:$0xf0]  ;;  %v1581_v37 = vld [vmem:[%s2851_s0 + $0x9c] sm:$0xf0]  ;;  %v1909_v39 = vld [vmem:[%s2851_s0 + $0xa0] sm:$0xf0] }
  0x16   :  { %806 = vmatpush.bf16.msra.mxu0 %v1963_v15  ;;  %1990 = vmatpush.bf16.msra.mxu3 %v1963_v15  ;;  %v1903_v15 = vld [vmem:[%s2851_s0 + $0x70] sm:$0xf0]  ;;  %v1587_v38 = vld [vmem:[%s2851_s0 + $0x98] sm:$0xf]  ;;  %v1749_v48 = vld [vmem:[%s2851_s0 + $0x1ec] sm:$0xf0] }
  0x17   :  { %939 = vmatpush.bf16.msra.mxu1 %v1971_v16  ;;  %v1588_v43 = vor.u32 %v1909_v39, %v1587_v38  ;;  %v1593_v49 = vld [vmem:[%s2851_s0 + $0xb4] sm:$0xf0]  ;;  %v1599_v50 = vld [vmem:[%s2851_s0 + $0xb0] sm:$0xf]  ;;  %v1912_v51 = vld [vmem:[%s2851_s0 + $0xb8] sm:$0xf0] }
  0x18   :  { %1072 = vmatpush.bf16.msra.mxu2 %v2106_v17  ;;  %v1600_v55 = vor.u32 %v1912_v51, %v1599_v50  ;;  %v1635_v50 = vld [vmem:[%s2851_s0 + $0xf8] sm:$0xf]  ;;  %v1921_v51 = vld [vmem:[%s2851_s0 + $0x100] sm:$0xf0] }
  0x1a   :  { %807 = vmatpush.bf16.msra.mxu0 %v1962_v18  ;;  %1991 = vmatpush.bf16.msra.mxu3 %v1962_v18 }
  0x1b   :  { %940 = vmatpush.bf16.msra.mxu1 %v1970_v19 }
  0x1c   :  { %1073 = vmatpush.bf16.msra.mxu2 %v2118_v20 }
  0x1e   :  { %808 = vmatpush.bf16.msra.mxu0 %v1961_v21  ;;  %1992 = vmatpush.bf16.msra.mxu3 %v1961_v21 }
  0x1f   :  { %941 = vmatpush.bf16.msra.mxu1 %v1969_v22 }
  0x20   :  { %1074 = vmatpush.bf16.msra.mxu2 %v2129_v23 }
  0x21   :  { %809 = vmatmul.bf16.vlgmr.msra.gmra.mxu0 %v1508_v32  ;;  %904 = vmatmul.bf16.vlgmr.msra.gmra.mxu3 %v1736_v33  ;;  %v1579_v32 = vld [vmem:[%s2851_s0 + $0x90] sm:$0xf]  ;;  %v1908_v33 = vld [vmem:[%s2851_s0 + $0x98] sm:$0xf0] }
  0x22   :  { %1993 = vmatpush.bf16.msrb.mxu3 %v2037_v1  ;;  %942 = vmatmul.bf16.vlgmr.msra.gmra.mxu1 %v1512_v34  ;;  %v1545_v1 = vld [vmem:[%s2851_s0 + $0x54] sm:$0xf0]  ;;  %v1907_v34 = vld [vmem:[%s2851_s0 + $0x94] sm:$0xf]  ;;  %v1580_v40 = vor.u32 %v1908_v33, %v1579_v32 }
  0x23   :  { %1075 = vmatmul.bf16.vlgmr.msra.gmra.mxu2 %v1516_v35  ;;  %v1548_v6 = vor.u32 %v1898_v0, %v1545_v1  ;;  %v1946_v35 = vld [vmem:[%s2851_s0 + $0x1cc] sm:$0xf]  ;;  %v1584_v42 = vor.u32 %v1907_v34, %v1581_v37 }
  0x24   :  { %v1740_v41 = vor.u32 %v1946_v35, %v1737_v36 }
  0x26   :  { %1994 = vmatpush.bf16.msrb.mxu3 %v2052_v4  ;;  %v1544_v4 = vor.u32 %v1899_v61, %v1543_v60  ;;  %v1761_v60 = vld [vmem:[%s2851_s0 + $0x204] sm:$0xf0]  ;;  %v1605_v61 = vld [vmem:[%s2851_s0 + $0xcc] sm:$0xf0] }
  0x2a   :  { %1995 = vmatpush.bf16.msrb.mxu3 %v1974_v7 }
  0x2e   :  { %1996 = vmatpush.bf16.msrb.mxu3 %v1973_v10  ;;  %v1783_v10 = vld [vmem:[%s2851_s0 + $0x228] sm:$0xf] }
  0x31   :  { %814 = vmatmul.bf16.gmra.mxu0 %v1520_v44  ;;  %909 = vmatmul.bf16.gmra.mxu3 %v1748_v45  ;;  %v1591_v44 = vld [vmem:[%s2851_s0 + $0xa8] sm:$0xf]  ;;  %v1911_v45 = vld [vmem:[%s2851_s0 + $0xb0] sm:$0xf0] }
  0x32   :  { %1997 = vmatpush.bf16.msrb.mxu3 %v1972_v13  ;;  %947 = vmatmul.bf16.gmra.mxu1 %v1524_v46  ;;  %v1557_v13 = vld [vmem:[%s2851_s0 + $0x6c] sm:$0xf0]  ;;  %v1910_v46 = vld [vmem:[%s2851_s0 + $0xac] sm:$0xf]  ;;  %v1592_v52 = vor.u32 %v1911_v45, %v1591_v44  ;;  %v1920_v44 = vld [vmem:[%s2851_s0 + $0xf8] sm:$0xf0] }
  0x33   :  { %1080 = vmatmul.bf16.gmra.mxu2 %v1528_v47  ;;  %v1560_v18 = vor.u32 %v1901_v12, %v1557_v13  ;;  %v1949_v47 = vld [vmem:[%s2851_s0 + $0x1e4] sm:$0xf]  ;;  %v1596_v54 = vor.u32 %v1910_v46, %v1593_v49  ;;  %v1919_v45 = vld [vmem:[%s2851_s0 + $0xf4] sm:$0xf]  ;;  %v1629_v49 = vld [vmem:[%s2851_s0 + $0xfc] sm:$0xf0] }
  0x34   :  { %v1752_v53 = vor.u32 %v1949_v47, %v1749_v48  ;;  %v1958_v47 = vld [vmem:[%s2851_s0 + $0x22c] sm:$0xf]  ;;  %v1785_v48 = vld [vmem:[%s2851_s0 + $0x234] sm:$0xf0] }
  0x36   :  { %1998 = vmatpush.bf16.msrb.mxu3 %v1971_v16 }
  0x3a   :  { %1999 = vmatpush.bf16.msrb.mxu3 %v1970_v19 }
  0x3e   :  { %2000 = vmatpush.bf16.msrb.mxu3 %v1969_v22  ;;  %v1567_v22 = vld [vmem:[%s2851_s0 + $0x78] sm:$0xf] }
  0x41   :  { %819 = vmatmul.bf16.gmra.mxu0 %v1532_v56  ;;  %914 = vmatmul.bf16.gmra.mxu3 %v1760_v57  ;;  %v1603_v56 = vld [vmem:[%s2851_s0 + $0xc0] sm:$0xf]  ;;  %v1914_v57 = vld [vmem:[%s2851_s0 + $0xc8] sm:$0xf0] }
  0x42   :  { %2001 = vmatpush.bf16.msra.mxu3 %v2042_v2  ;;  %952 = vmatmul.bf16.gmra.mxu1 %v1536_v58  ;;  %v1551_v2 = vld [vmem:[%s2851_s0 + $0x50] sm:$0xf]  ;;  %v1913_v58 = vld [vmem:[%s2851_s0 + $0xc4] sm:$0xf]  ;;  %v1604_v0 = vor.u32 %v1914_v57, %v1603_v56  ;;  %v1788_v56 = vor.u32 %v1958_v47, %v1785_v48 }
  0x43   :  { %1085 = vmatmul.bf16.gmra.mxu2 %v1540_v59  ;;  %v1552_v7 = vor.u32 %v1900_v3, %v1551_v2  ;;  %v1952_v59 = vld [vmem:[%s2851_s0 + $0x1fc] sm:$0xf]  ;;  %v1608_v3 = vor.u32 %v1913_v58, %v1605_v61 }
  0x44   :  { %v1764_v1 = vor.u32 %v1952_v59, %v1761_v60  ;;  %v1632_v59 = vor.u32 %v1919_v45, %v1629_v49  ;;  %v1636_v60 = vor.u32 %v1921_v51, %v1635_v50  ;;  %v1659_v45 = vld [vmem:[%s2851_s0 + $0x128] sm:$0xf] }
  0x46   :  { %2002 = vmatpush.bf16.msra.mxu3 %v2057_v5  ;;  %v1772_v5 = vor.u32 %v1956_v63, %v1771_v62  ;;  %v1611_v62 = vld [vmem:[%s2851_s0 + $0xc8] sm:$0xf]  ;;  %v1915_v63 = vld [vmem:[%s2851_s0 + $0xd0] sm:$0xf0] }
  0x4a   :  { %2003 = vmatpush.bf16.msra.mxu3 %v2070_v8  ;;  %v1555_v8 = vld [vmem:[%s2851_s0 + $0x60] sm:$0xf] }
  0x4b   :  { %v1556_v16 = vor.u32 %v1902_v9, %v1555_v8  ;;  %v2364_v8 = vld [vmem:[%s2852_s2] ss:$0 sm:$0xff] }
  0x4e   :  { %2004 = vmatpush.bf16.msra.mxu3 %v2082_v11  ;;  %v1959_v11 = vld [vmem:[%s2851_s0 + $0x230] sm:$0xf0] }
  0x51   :  { %824 = vmatmul.bf16.gmra.mxu0 %v1544_v4  ;;  %919 = vmatmul.bf16.gmra.mxu3 %v1772_v5  ;;  %v1612_v4 = vor.u32 %v1915_v63, %v1611_v62 }
  0x52   :  { %2005 = vmatpush.bf16.msra.mxu3 %v2094_v14  ;;  %957 = vmatmul.bf16.gmra.mxu1 %v1548_v6  ;;  %v1563_v14 = vld [vmem:[%s2851_s0 + $0x68] sm:$0xf] }
  0x53   :  { %1090 = vmatmul.bf16.gmra.mxu2 %v1552_v7  ;;  %v1564_v19 = vor.u32 %v1903_v15, %v1563_v14  ;;  %v1615_v14 = vld [vmem:[%s2851_s0 + $0xd8] sm:$0xf]  ;;  %v1917_v15 = vld [vmem:[%s2851_s0 + $0xe0] sm:$0xf0] }
  0x54   :  { %v1616_v27 = vor.u32 %v1917_v15, %v1615_v14  ;;  %v1641_v14 = vld [vmem:[%s2851_s0 + $0x114] sm:$0xf0]  ;;  %v1647_v15 = vld [vmem:[%s2851_s0 + $0x110] sm:$0xf] }
  0x56   :  { %2006 = vmatpush.bf16.msra.mxu3 %v2106_v17  ;;  %v1784_v17 = vor.u32 %v1959_v11, %v1783_v10 }
  0x5a   :  { %2007 = vmatpush.bf16.msra.mxu3 %v2118_v20  ;;  %v2266_v20 = vld [vmem:[%s2851_s0 + $0x240] sm:$0xff] }
  0x5b   :  { %v504_v21 = vunpack.c.l.b16 %v2266_v20 }
  0x5d   :  { %v579_v29 = vpack.c.b16 %v504_v21, %v504_v21  ;;  %v1617_v21 = vld [vmem:[%s2851_s0 + $0xe4] sm:$0xf0] }
  0x5e   :  { %2008 = vmatpush.bf16.msra.mxu3 %v2129_v23  ;;  %v1905_v23 = vld [vmem:[%s2851_s0 + $0x80] sm:$0xf0] }
  0x5f   :  { %v1568_v28 = vor.u32 %v1905_v23, %v1567_v22  ;;  %v1623_v22 = vld [vmem:[%s2851_s0 + $0xe0] sm:$0xf]  ;;  %v1918_v23 = vld [vmem:[%s2851_s0 + $0xe8] sm:$0xf0] }
  0x60   :  { %v1624_v32 = vor.u32 %v1918_v23, %v1623_v22 }
  0x61   :  { %829 = vmatmul.bf16.gmra.mxu0 %v1556_v16  ;;  %924 = vmatmul.bf16.gmra.mxu3 %v1784_v17  ;;  %v1916_v16 = vld [vmem:[%s2851_s0 + $0xdc] sm:$0xf] }
  0x62   :  { %962 = vmatmul.bf16.gmra.mxu1 %v1560_v18  ;;  %v1955_v18 = vld [vmem:[%s2851_s0 + $0x214] sm:$0xf] }
  0x63   :  { %1095 = vmatmul.bf16.gmra.mxu2 %v1564_v19  ;;  %v1773_v19 = vld [vmem:[%s2851_s0 + $0x21c] sm:$0xf0] }
  0x71   :  { %834 = vmatmul.bf16.gmra.mxu0 %v1568_v28  ;;  %929 = vmatmul.bf16.gmra.mxu3 %v579_v29  ;;  %v1776_v28 = vor.u32 %v1955_v18, %v1773_v19 }
  0x72   :  { %967 = vmatmul.bf16.gmra.mxu1 %v1572_v30 }
  0x73   :  { %1100 = vmatmul.bf16.gmra.mxu2 %v1576_v31  ;;  %v1620_v31 = vor.u32 %v1916_v16, %v1617_v21 }
  0x81   :  { %839 = vmatmul.bf16.gmra.mxu0 %v1580_v40  ;;  %1037 = vmatmul.bf16.vlgmr.msrb.gmra.mxu3 %v1740_v41 }
  0x82   :  { %972 = vmatmul.bf16.gmra.mxu1 %v1584_v42 }
  0x83   :  { %1105 = vmatmul.bf16.gmra.mxu2 %v1588_v43  ;;  %v1627_v43 = vld [vmem:[%s2851_s0 + $0xf0] sm:$0xf] }
  0x91   :  { %844 = vmatmul.bf16.gmra.mxu0 %v1592_v52  ;;  %1042 = vmatmul.bf16.gmra.mxu3 %v1752_v53 }
  0x92   :  { %977 = vmatmul.bf16.gmra.mxu1 %v1596_v54 }
  0x93   :  { %1110 = vmatmul.bf16.gmra.mxu2 %v1600_v55  ;;  %v1628_v55 = vor.u32 %v1920_v44, %v1627_v43  ;;  %v1948_v43 = vld [vmem:[%s2851_s0 + $0x1d8] sm:$0xf0]  ;;  %v1653_v44 = vld [vmem:[%s2851_s0 + $0x12c] sm:$0xf0] }
  0x9e   :  { %v810_v2 = vpop.f32.mrf.mxu0 }
  0x9f   :  { %v943_v5 = vpop.f32.mrf.mxu1 }
  0xa0   :  { %v944_v6 = vadd.f32 %v943_v5, %v810_v2 }
  0xa1   :  { %849 = vmatmul.bf16.gmra.mxu0 %v1604_v0  ;;  %1047 = vmatmul.bf16.gmra.mxu3 %v1764_v1 }
  0xa2   :  { %982 = vmatmul.bf16.gmra.mxu1 %v1608_v3 }
  0xa3   :  { %1115 = vmatmul.bf16.gmra.mxu2 %v1612_v4 }
  0xa4   :  { %v2359_v7 = vpop.f32.mrf.mxu3 }
  0xa6   :  { %v1076_v9 = vpop.f32.mrf.mxu2  ;;  %v812_v11 = vpop.f32.mrf.mxu0 }
  0xa7   :  { %v1077_v10 = vadd.f32 %v1076_v9, %v944_v6  ;;  %v945_v12 = vpop.f32.mrf.mxu1  ;;  %v1639_v9 = vld [vmem:[%s2851_s0 + $0x108] sm:$0xf] }
  0xa8   :  { %v946_v24 = vadd.f32 %v945_v12, %v812_v11  ;;  %v1923_v12 = vld [vmem:[%s2851_s0 + $0x110] sm:$0xf0] }
  0xa9   :  { %v1354_v13 = vadd.f32 %v2364_v8, %v1077_v10  ;;  %v505_v10 = vunpack.c.h.b16 %v2266_v20  ;;  %v1924_v20 = vld [vmem:[%s2851_s0 + $0x118] sm:$0xf0]  ;;  %v1640_v19 = vor.u32 %v1923_v12, %v1639_v9  ;;  %v1665_v12 = vld [vmem:[%s2851_s0 + $0x144] sm:$0xf0] }
  0xab   :  { %v1403_v17 = vmax.f32 %v1354_v13, 0.0  ;;  %v1922_v13 = vld [vmem:[%s2851_s0 + $0x10c] sm:$0xf]  ;;  %v580_v21 = vpack.c.b16 %v505_v10, %v505_v10  ;;  %v1755_v10 = vld [vmem:[%s2851_s0 + $0x1e8] sm:$0xf] }
  0xac   :  { %v2394_v25 = vpop.f32.mrf.mxu3 }
  0xad   :  { %1452 = vst [vmem:[%s2853_s3] sm:$0xff] %v1403_v17 }
  0xae   :  { %v1078_v26 = vpop.f32.mrf.mxu2  ;;  %v815_v30 = vpop.f32.mrf.mxu0 }
  0xaf   :  { %v1079_v29 = vadd.f32 %v1078_v26, %v946_v24  ;;  %v948_v33 = vpop.f32.mrf.mxu1  ;;  %v1644_v24 = vor.u32 %v1922_v13, %v1641_v14  ;;  %v1648_v26 = vor.u32 %v1924_v20, %v1647_v15  ;;  %v1671_v13 = vld [vmem:[%s2851_s0 + $0x140] sm:$0xf]  ;;  %v1930_v14 = vld [vmem:[%s2851_s0 + $0x148] sm:$0xf0] }
  0xb0   :  { %v949_v36 = vadd.f32 %v948_v33, %v815_v30 }
  0xb1   :  { %v1355_v34 = vadd.f32 %v2364_v8, %v1079_v29  ;;  %854 = vmatmul.bf16.gmra.mxu0 %v1616_v27  ;;  %1052 = vmatmul.bf16.gmra.mxu3 %v1776_v28 }
  0xb2   :  { %987 = vmatmul.bf16.gmra.mxu1 %v1620_v31 }
  0xb3   :  { %v1404_v35 = vmax.f32 %v1355_v34, 0.0  ;;  %1120 = vmatmul.bf16.gmra.mxu2 %v1624_v32 }
  0xb4   :  { %v2400_v37 = vpop.f32.mrf.mxu3 }
  0xb5   :  { %1453 = vst [vmem:[%s2853_s3 + $0x8] sm:$0xff] %v1404_v35 }
  0xb6   :  { %v1081_v38 = vpop.f32.mrf.mxu2  ;;  %v817_v40 = vpop.f32.mrf.mxu0 }
  0xb7   :  { %v1082_v39 = vadd.f32 %v1081_v38, %v949_v36  ;;  %v950_v41 = vpop.f32.mrf.mxu1  ;;  %v1651_v38 = vld [vmem:[%s2851_s0 + $0x120] sm:$0xf] }
  0xb8   :  { %v951_v52 = vadd.f32 %v950_v41, %v817_v40  ;;  %v1925_v40 = vld [vmem:[%s2851_s0 + $0x124] sm:$0xf] }
  0xb9   :  { %v1356_v42 = vadd.f32 %v2364_v8, %v1082_v39  ;;  %v1926_v39 = vld [vmem:[%s2851_s0 + $0x128] sm:$0xf0] }
  0xba   :  { %v1652_v50 = vor.u32 %v1926_v39, %v1651_v38  ;;  %v1675_v38 = vld [vmem:[%s2851_s0 + $0x150] sm:$0xf]  ;;  %v1932_v39 = vld [vmem:[%s2851_s0 + $0x158] sm:$0xf0] }
  0xbb   :  { %v1405_v46 = vmax.f32 %v1356_v42, 0.0  ;;  %v1743_v42 = vld [vmem:[%s2851_s0 + $0x1d0] sm:$0xf] }
  0xbc   :  { %v2430_v53 = vpop.f32.mrf.mxu3  ;;  %v1744_v51 = vor.u32 %v1948_v43, %v1743_v42  ;;  %v1767_v42 = vld [vmem:[%s2851_s0 + $0x200] sm:$0xf]  ;;  %v1954_v43 = vld [vmem:[%s2851_s0 + $0x208] sm:$0xf0] }
  0xbd   :  { %1454 = vst [vmem:[%s2853_s3 + $0x10] sm:$0xff] %v1405_v46  ;;  %v1927_v46 = vld [vmem:[%s2851_s0 + $0x130] sm:$0xf0] }
  0xbe   :  { %v1083_v54 = vpop.f32.mrf.mxu2  ;;  %v820_v58 = vpop.f32.mrf.mxu0 }
  0xbf   :  { %v1084_v57 = vadd.f32 %v1083_v54, %v951_v52  ;;  %v953_v61 = vpop.f32.mrf.mxu1 }
  0xc0   :  { %v954_v0 = vadd.f32 %v953_v61, %v820_v58 }
  0xc1   :  { %v1357_v62 = vadd.f32 %v2364_v8, %v1084_v57  ;;  %859 = vmatmul.bf16.gmra.mxu0 %v1628_v55  ;;  %1057 = vmatmul.bf16.gmra.mxu3 %v1788_v56  ;;  %v1656_v55 = vor.u32 %v1925_v40, %v1653_v44  ;;  %v1660_v56 = vor.u32 %v1927_v46, %v1659_v45  ;;  %v1931_v40 = vld [vmem:[%s2851_s0 + $0x154] sm:$0xf]  ;;  %v1677_v44 = vld [vmem:[%s2851_s0 + $0x15c] sm:$0xf0]  ;;  %v1683_v45 = vld [vmem:[%s2851_s0 + $0x158] sm:$0xf] }
  0xc2   :  { %992 = vmatmul.bf16.gmra.mxu1 %v1632_v59  ;;  %v1933_v46 = vld [vmem:[%s2851_s0 + $0x160] sm:$0xf0] }
  0xc3   :  { %v1406_v63 = vmax.f32 %v1357_v62, 0.0  ;;  %1125 = vmatmul.bf16.gmra.mxu2 %v1636_v60 }
  0xc4   :  { %v2436_v1 = vpop.f32.mrf.mxu3 }
  0xc5   :  { %1455 = vst [vmem:[%s2853_s3 + $0x18] sm:$0xff] %v1406_v63 }
  0xc6   :  { %v1086_v2 = vpop.f32.mrf.mxu2  ;;  %v822_v4 = vpop.f32.mrf.mxu0 }
  0xc7   :  { %v1087_v3 = vadd.f32 %v1086_v2, %v954_v0  ;;  %v955_v5 = vpop.f32.mrf.mxu1 }
  0xc8   :  { %v956_v16 = vadd.f32 %v955_v5, %v822_v4  ;;  %v1663_v4 = vld [vmem:[%s2851_s0 + $0x138] sm:$0xf]  ;;  %v1929_v5 = vld [vmem:[%s2851_s0 + $0x140] sm:$0xf0] }
  0xc9   :  { %v1358_v6 = vadd.f32 %v2364_v8, %v1087_v3 }
  0xcb   :  { %v1407_v11 = vmax.f32 %v1358_v6, 0.0  ;;  %v1928_v6 = vld [vmem:[%s2851_s0 + $0x13c] sm:$0xf] }
  0xcc   :  { %v2461_v17 = vpop.f32.mrf.mxu3 }
  0xcd   :  { %1456 = vst [vmem:[%s2853_s3 + $0x20] sm:$0xff] %v1407_v11  ;;  %v1951_v11 = vld [vmem:[%s2851_s0 + $0x1f0] sm:$0xf0] }
  0xce   :  { %v1088_v18 = vpop.f32.mrf.mxu2  ;;  %v825_v23 = vpop.f32.mrf.mxu0 }
  0xcf   :  { %v1089_v22 = vadd.f32 %v1088_v18, %v956_v16  ;;  %v958_v27 = vpop.f32.mrf.mxu1  ;;  %v1664_v18 = vor.u32 %v1929_v5, %v1663_v4 }
  0xd0   :  { %v959_v30 = vadd.f32 %v958_v27, %v825_v23  ;;  %v1668_v23 = vor.u32 %v1928_v6, %v1665_v12  ;;  %v1687_v6 = vld [vmem:[%s2851_s0 + $0x168] sm:$0xf]  ;;  %v1779_v12 = vld [vmem:[%s2851_s0 + $0x218] sm:$0xf] }
  0xd1   :  { %v1359_v28 = vadd.f32 %v2364_v8, %v1089_v22  ;;  %864 = vmatmul.bf16.gmra.mxu0 %v1640_v19  ;;  %1062 = vmatmul.bf16.gmra.mxu3 %v580_v21  ;;  %v1756_v19 = vor.u32 %v1951_v11, %v1755_v10  ;;  %v1934_v10 = vld [vmem:[%s2851_s0 + $0x16c] sm:$0xf] }
  0xd2   :  { %997 = vmatmul.bf16.gmra.mxu1 %v1644_v24  ;;  %v1672_v24 = vor.u32 %v1930_v14, %v1671_v13  ;;  %v1957_v13 = vld [vmem:[%s2851_s0 + $0x220] sm:$0xf0]  ;;  %v1689_v14 = vld [vmem:[%s2851_s0 + $0x174] sm:$0xf0] }
  0xd3   :  { %v1408_v29 = vmax.f32 %v1359_v28, 0.0  ;;  %1130 = vmatmul.bf16.gmra.mxu2 %v1648_v26 }
  0xd4   :  { %v2467_v31 = vpop.f32.mrf.mxu3 }
  0xd5   :  { %1457 = vst [vmem:[%s2853_s3 + $0x28] sm:$0xff] %v1408_v29 }
  0xd6   :  { %v1091_v32 = vpop.f32.mrf.mxu2  ;;  %v827_v34 = vpop.f32.mrf.mxu0 }
  0xd7   :  { %v1092_v33 = vadd.f32 %v1091_v32, %v959_v30  ;;  %v960_v35 = vpop.f32.mrf.mxu1 }
  0xd8   :  { %v961_v47 = vadd.f32 %v960_v35, %v827_v34 }
  0xd9   :  { %v1360_v36 = vadd.f32 %v2364_v8, %v1092_v33 }
  0xdb   :  { %v1409_v41 = vmax.f32 %v1360_v36, 0.0 }
  0xdc   :  { %v2497_v48 = vpop.f32.mrf.mxu3 }
  0xdd   :  { %1458 = vst [vmem:[%s2853_s3 + $0x30] sm:$0xff] %v1409_v41 }
  0xde   :  { %v1093_v49 = vpop.f32.mrf.mxu2  ;;  %v830_v54 = vpop.f32.mrf.mxu0 }
  0xdf   :  { %v1094_v52 = vadd.f32 %v1093_v49, %v961_v47  ;;  %v963_v57 = vpop.f32.mrf.mxu1 }
  0xe0   :  { %v964_v60 = vadd.f32 %v963_v57, %v830_v54  ;;  %v1684_v57 = vor.u32 %v1933_v46, %v1683_v45  ;;  %v1791_v46 = vld [vmem:[%s2851_s0 + $0x230] sm:$0xf] }
  0xe1   :  { %v1361_v58 = vadd.f32 %v2364_v8, %v1094_v52  ;;  %869 = vmatmul.bf16.gmra.mxu0 %v1652_v50  ;;  %1170 = vmatmul.bf16.vlgmr.msra.gmra.mxu3 %v1744_v51  ;;  %v1676_v51 = vor.u32 %v1932_v39, %v1675_v38  ;;  %v1768_v52 = vor.u32 %v1954_v43, %v1767_v42  ;;  %v1699_v42 = vld [vmem:[%s2851_s0 + $0x180] sm:$0xf]  ;;  %v1938_v43 = vld [vmem:[%s2851_s0 + $0x188] sm:$0xf0] }
  0xe2   :  { %1002 = vmatmul.bf16.gmra.mxu1 %v1656_v55 }
  0xe3   :  { %v1410_v59 = vmax.f32 %v1361_v58, 0.0  ;;  %1135 = vmatmul.bf16.gmra.mxu2 %v1660_v56  ;;  %v1680_v56 = vor.u32 %v1931_v40, %v1677_v44  ;;  %v1937_v44 = vld [vmem:[%s2851_s0 + $0x184] sm:$0xf] }
  0xe4   :  { %v2503_v61 = vpop.f32.mrf.mxu3 }
  0xe5   :  { %1459 = vst [vmem:[%s2853_s3 + $0x38] sm:$0xff] %v1410_v59 }
  0xe6   :  { %v1096_v62 = vpop.f32.mrf.mxu2  ;;  %v832_v0 = vpop.f32.mrf.mxu0 }
  0xe7   :  { %v1097_v63 = vadd.f32 %v1096_v62, %v964_v60  ;;  %v965_v2 = vpop.f32.mrf.mxu1 }
  0xe8   :  { %v966_v15 = vadd.f32 %v965_v2, %v832_v0 }
  0xe9   :  { %v1362_v3 = vadd.f32 %v2364_v8, %v1097_v63 }
  0xeb   :  { %v1411_v9 = vmax.f32 %v1362_v3, 0.0 }
  0xec   :  { %v2533_v20 = vpop.f32.mrf.mxu3 }
  0xed   :  { %1460 = vst [vmem:[%s2853_s3 + $0x40] sm:$0xff] %v1411_v9  ;;  %v1935_v9 = vld [vmem:[%s2851_s0 + $0x170] sm:$0xf0] }
  0xee   :  { %v1098_v16 = vpop.f32.mrf.mxu2  ;;  %v835_v22 = vpop.f32.mrf.mxu0 }
  0xef   :  { %v1099_v21 = vadd.f32 %v1098_v16, %v966_v15  ;;  %v968_v26 = vpop.f32.mrf.mxu1  ;;  %v1695_v15 = vld [vmem:[%s2851_s0 + $0x170] sm:$0xf]  ;;  %v1936_v16 = vld [vmem:[%s2851_s0 + $0x178] sm:$0xf0] }
  0xf0   :  { %v969_v29 = vadd.f32 %v968_v26, %v835_v22  ;;  %v1688_v22 = vor.u32 %v1935_v9, %v1687_v6 }
  0xf1   :  { %v1363_v27 = vadd.f32 %v2364_v8, %v1099_v21  ;;  %874 = vmatmul.bf16.gmra.mxu0 %v1664_v18  ;;  %1175 = vmatmul.bf16.gmra.mxu3 %v1756_v19 }
  0xf2   :  { %1007 = vmatmul.bf16.gmra.mxu1 %v1668_v23  ;;  %v1780_v23 = vor.u32 %v1957_v13, %v1779_v12 }
  0xf3   :  { %v1412_v28 = vmax.f32 %v1363_v27, 0.0  ;;  %1140 = vmatmul.bf16.gmra.mxu2 %v1672_v24  ;;  %v1692_v27 = vor.u32 %v1934_v10, %v1689_v14  ;;  %v1711_v14 = vld [vmem:[%s2851_s0 + $0x198] sm:$0xf] }
  0xf4   :  { %v2539_v30 = vpop.f32.mrf.mxu3 }
  0xf5   :  { %1461 = vst [vmem:[%s2853_s3 + $0x48] sm:$0xff] %v1412_v28  ;;  %v1696_v28 = vor.u32 %v1936_v16, %v1695_v15 }
  0xf6   :  { %v1101_v32 = vpop.f32.mrf.mxu2  ;;  %v837_v34 = vpop.f32.mrf.mxu0 }
  0xf7   :  { %v1102_v33 = vadd.f32 %v1101_v32, %v969_v29  ;;  %v970_v35 = vpop.f32.mrf.mxu1 }
  0xf8   :  { %v971_v47 = vadd.f32 %v970_v35, %v837_v34 }
  0xf9   :  { %v1364_v36 = vadd.f32 %v2364_v8, %v1102_v33 }
  0xfb   :  { %v1413_v41 = vmax.f32 %v1364_v36, 0.0 }
  0xfc   :  { %v932_v49 = vpop.f32.mrf.mxu3 }
  0xfd   :  { %1462 = vst [vmem:[%s2853_s3 + $0x50] sm:$0xff] %v1413_v41  ;;  %v1701_v49 = vld [vmem:[%s2851_s0 + $0x18c] sm:$0xf0] }
  0xfe   :  { %v1103_v50 = vpop.f32.mrf.mxu2  ;;  %v840_v55 = vpop.f32.mrf.mxu0 }
  0xff   :  { %v1104_v54 = vadd.f32 %v1103_v50, %v971_v47  ;;  %v973_v58 = vpop.f32.mrf.mxu1  ;;  %v1960_v47 = vld [vmem:[%s2851_s0 + $0x238] sm:$0xf0]  ;;  %v1707_v50 = vld [vmem:[%s2851_s0 + $0x188] sm:$0xf] }
 0x100   :  { %v974_v62 = vadd.f32 %v973_v58, %v840_v55 }
 0x101   :  { %v1365_v59 = vadd.f32 %v2364_v8, %v1104_v54  ;;  %879 = vmatmul.bf16.gmra.mxu0 %v1676_v51  ;;  %1180 = vmatmul.bf16.gmra.mxu3 %v1768_v52  ;;  %v1939_v51 = vld [vmem:[%s2851_s0 + $0x190] sm:$0xf0] }
 0x102   :  { %1012 = vmatmul.bf16.gmra.mxu1 %v1680_v56  ;;  %v1700_v56 = vor.u32 %v1938_v43, %v1699_v42 }
 0x103   :  { %v1414_v60 = vmax.f32 %v1365_v59, 0.0  ;;  %1145 = vmatmul.bf16.gmra.mxu2 %v1684_v57  ;;  %v1792_v57 = vor.u32 %v1960_v47, %v1791_v46 }
 0x104   :  { %v2573_v63 = vpop.f32.mrf.mxu3 }
 0x105   :  { %1463 = vst [vmem:[%s2853_s3 + $0x58] sm:$0xff] %v1414_v60  ;;  %v1704_v60 = vor.u32 %v1937_v44, %v1701_v49 }
 0x106   :  { %v1106_v0 = vpop.f32.mrf.mxu2  ;;  %v842_v3 = vpop.f32.mrf.mxu0 }
 0x107   :  { %v1107_v2 = vadd.f32 %v1106_v0, %v974_v62  ;;  %v975_v4 = vpop.f32.mrf.mxu1  ;;  %v1708_v62 = vor.u32 %v1939_v51, %v1707_v50  ;;  %v1723_v50 = vld [vmem:[%s2851_s0 + $0x1b0] sm:$0xf] }
 0x108   :  { %v976_v18 = vadd.f32 %v975_v4, %v842_v3 }
 0x109   :  { %v1366_v5 = vadd.f32 %v2364_v8, %v1107_v2 }
 0x10b   :  { %v1415_v11 = vmax.f32 %v1366_v5, 0.0 }
 0x10c   :  { %v2603_v19 = vpop.f32.mrf.mxu3 }
 0x10d   :  { %1464 = vst [vmem:[%s2853_s3 + $0x60] sm:$0xff] %v1415_v11  ;;  %v213_v11 = vld [vmem:[%s2851_s0 + $0x248] sm:$0xf] }
 0x10e   :  { %v1108_v21 = vpop.f32.mrf.mxu2  ;;  %v845_v26 = vpop.f32.mrf.mxu0  ;;  %v506_v15 = vunpack.c.l.b16 %v213_v11 }
 0x10f   :  { %v1109_v24 = vadd.f32 %v1108_v21, %v976_v18  ;;  %v978_v29 = vpop.f32.mrf.mxu1  ;;  %v1941_v18 = vld [vmem:[%s2851_s0 + $0x1a0] sm:$0xf0]  ;;  %v1940_v21 = vld [vmem:[%s2851_s0 + $0x19c] sm:$0xf] }
 0x110   :  { %v979_v34 = vadd.f32 %v978_v29, %v845_v26  ;;  %v1712_v29 = vor.u32 %v1941_v18, %v1711_v14 }
 0x111   :  { %v1367_v32 = vadd.f32 %v2364_v8, %v1109_v24  ;;  %884 = vmatmul.bf16.gmra.mxu0 %v1688_v22  ;;  %1185 = vmatmul.bf16.gmra.mxu3 %v1780_v23  ;;  %v1713_v22 = vld [vmem:[%s2851_s0 + $0x1a4] sm:$0xf0]  ;;  %v1719_v23 = vld [vmem:[%s2851_s0 + $0x1a0] sm:$0xf]  ;;  %v1942_v24 = vld [vmem:[%s2851_s0 + $0x1a8] sm:$0xf0] }
 0x112   :  { %1017 = vmatmul.bf16.gmra.mxu1 %v1692_v27 }
 0x113   :  { %v1416_v33 = vmax.f32 %v1367_v32, 0.0  ;;  %1150 = vmatmul.bf16.gmra.mxu2 %v1696_v28  ;;  %v581_v32 = vpack.c.b16 %v506_v15, %v506_v15 }
 0x114   :  { %v2609_v35 = vpop.f32.mrf.mxu3 }
 0x115   :  { %1465 = vst [vmem:[%s2853_s3 + $0x68] sm:$0xff] %v1416_v33 }
 0x116   :  { %v1111_v36 = vpop.f32.mrf.mxu2  ;;  %v847_v39 = vpop.f32.mrf.mxu0 }
 0x117   :  { %v1112_v38 = vadd.f32 %v1111_v36, %v979_v34  ;;  %v980_v40 = vpop.f32.mrf.mxu1  ;;  %v1716_v36 = vor.u32 %v1940_v21, %v1713_v22 }
 0x118   :  { %v981_v52 = vadd.f32 %v980_v40, %v847_v39 }
 0x119   :  { %v1368_v41 = vadd.f32 %v2364_v8, %v1112_v38  ;;  %v1720_v38 = vor.u32 %v1942_v24, %v1719_v23 }
 0x11b   :  { %v1417_v45 = vmax.f32 %v1368_v41, 0.0 }
 0x11c   :  { %v2639_v54 = vpop.f32.mrf.mxu3 }
 0x11d   :  { %1466 = vst [vmem:[%s2853_s3 + $0x70] sm:$0xff] %v1417_v45 }
 0x11e   :  { %v1113_v55 = vpop.f32.mrf.mxu2  ;;  %v850_v59 = vpop.f32.mrf.mxu0 }
 0x11f   :  { %v1114_v58 = vadd.f32 %v1113_v55, %v981_v52  ;;  %v983_v0 = vpop.f32.mrf.mxu1  ;;  %v1944_v52 = vld [vmem:[%s2851_s0 + $0x1b8] sm:$0xf0]  ;;  %v1943_v55 = vld [vmem:[%s2851_s0 + $0x1b4] sm:$0xf] }
 0x120   :  { %v984_v4 = vadd.f32 %v983_v0, %v850_v59  ;;  %v1724_v0 = vor.u32 %v1944_v52, %v1723_v50 }
 0x121   :  { %v1369_v2 = vadd.f32 %v2364_v8, %v1114_v58  ;;  %889 = vmatmul.bf16.gmra.mxu0 %v1700_v56  ;;  %1190 = vmatmul.bf16.gmra.mxu3 %v1792_v57  ;;  %v1725_v56 = vld [vmem:[%s2851_s0 + $0x1bc] sm:$0xf0]  ;;  %v1731_v57 = vld [vmem:[%s2851_s0 + $0x1b8] sm:$0xf]  ;;  %v1945_v58 = vld [vmem:[%s2851_s0 + $0x1c0] sm:$0xf0] }
 0x122   :  { %1022 = vmatmul.bf16.gmra.mxu1 %v1704_v60 }
 0x123   :  { %v1418_v3 = vmax.f32 %v1369_v2, 0.0  ;;  %1155 = vmatmul.bf16.gmra.mxu2 %v1708_v62 }
 0x124   :  { %v2645_v5 = vpop.f32.mrf.mxu3 }
 0x125   :  { %1467 = vst [vmem:[%s2853_s3 + $0x78] sm:$0xff] %v1418_v3 }
 0x126   :  { %v1116_v6 = vpop.f32.mrf.mxu2  ;;  %v852_v10 = vpop.f32.mrf.mxu0 }
 0x127   :  { %v1117_v9 = vadd.f32 %v1116_v6, %v984_v4  ;;  %v985_v12 = vpop.f32.mrf.mxu1  ;;  %v1728_v4 = vor.u32 %v1943_v55, %v1725_v56  ;;  %v1732_v6 = vor.u32 %v1945_v58, %v1731_v57  ;;  %v1039_v58 = vadd.f32 %v2573_v63, %v2359_v7 }
 0x128   :  { %v986_v26 = vadd.f32 %v985_v12, %v852_v10 }
 0x129   :  { %v1370_v13 = vadd.f32 %v2364_v8, %v1117_v9 }
 0x12b   :  { %v1419_v16 = vmax.f32 %v1370_v13, 0.0 }
 0x12c   :  { %v2672_v27 = vpop.f32.mrf.mxu3 }
 0x12d   :  { %1468 = vst [vmem:[%s2853_s3 + $0x80] sm:$0xff] %v1419_v16 }
 0x12e   :  { %v1118_v28 = vpop.f32.mrf.mxu2  ;;  %v855_v34 = vpop.f32.mrf.mxu0 }
 0x12f   :  { %v1119_v33 = vadd.f32 %v1118_v28, %v986_v26  ;;  %v988_v39 = vpop.f32.mrf.mxu1 }
 0x130   :  { %v989_v42 = vadd.f32 %v988_v39, %v855_v34 }
 0x131   :  { %v1371_v40 = vadd.f32 %v2364_v8, %v1119_v33  ;;  %894 = vmatmul.bf16.gmra.mxu0 %v1712_v29  ;;  %1195 = vmatmul.bf16.gmra.mxu3 %v581_v32 }
 0x132   :  { %1027 = vmatmul.bf16.gmra.mxu1 %v1716_v36 }
 0x133   :  { %v1420_v41 = vmax.f32 %v1371_v40, 0.0  ;;  %1160 = vmatmul.bf16.gmra.mxu2 %v1720_v38 }
 0x134   :  { %v2678_v43 = vpop.f32.mrf.mxu3 }
 0x135   :  { %1469 = vst [vmem:[%s2853_s3 + $0x88] sm:$0xff] %v1420_v41 }
 0x136   :  { %v1121_v44 = vpop.f32.mrf.mxu2  ;;  %v857_v46 = vpop.f32.mrf.mxu0 }
 0x137   :  { %v1122_v45 = vadd.f32 %v1121_v44, %v989_v42  ;;  %v990_v47 = vpop.f32.mrf.mxu1 }
 0x138   :  { %v991_v59 = vadd.f32 %v990_v47, %v857_v46 }
 0x139   :  { %v1372_v49 = vadd.f32 %v2364_v8, %v1122_v45 }
 0x13b   :  { %v1421_v51 = vmax.f32 %v1372_v49, 0.0 }
 0x13c   :  { %v2702_v60 = vpop.f32.mrf.mxu3 }
 0x13d   :  { %1470 = vst [vmem:[%s2853_s3 + $0x90] sm:$0xff] %v1421_v51 }
 0x13e   :  { %v1123_v62 = vpop.f32.mrf.mxu2  ;;  %v860_v3 = vpop.f32.mrf.mxu0 }
 0x13f   :  { %v1124_v2 = vadd.f32 %v1123_v62, %v991_v59  ;;  %v993_v9 = vpop.f32.mrf.mxu1 }
 0x140   :  { %v994_v12 = vadd.f32 %v993_v9, %v860_v3 }
 0x141   :  { %v1373_v10 = vadd.f32 %v2364_v8, %v1124_v2  ;;  %899 = vmatmul.bf16.gmra.mxu0 %v1724_v0 }
 0x142   :  { %1032 = vmatmul.bf16.gmra.mxu1 %v1728_v4 }
 0x143   :  { %v1422_v11 = vmax.f32 %v1373_v10, 0.0  ;;  %1165 = vmatmul.bf16.gmra.mxu2 %v1732_v6 }
 0x144   :  { %v2708_v13 = vpop.f32.mrf.mxu3 }
 0x145   :  { %1471 = vst [vmem:[%s2853_s3 + $0x98] sm:$0xff] %v1422_v11 }
 0x146   :  { %v1126_v14 = vpop.f32.mrf.mxu2  ;;  %v862_v16 = vpop.f32.mrf.mxu0 }
 0x147   :  { %v1127_v15 = vadd.f32 %v1126_v14, %v994_v12  ;;  %v995_v18 = vpop.f32.mrf.mxu1  ;;  %v1041_v12 = vadd.f32 %v2603_v19, %v2394_v25 }
 0x148   :  { %v996_v23 = vadd.f32 %v995_v18, %v862_v16 }
 0x149   :  { %v1374_v21 = vadd.f32 %v2364_v8, %v1127_v15 }
 0x14b   :  { %v1423_v22 = vmax.f32 %v1374_v21, 0.0 }
 0x14c   :  { %v2714_v24 = vpop.f32.mrf.mxu3 }
 0x14d   :  { %1472 = vst [vmem:[%s2853_s3 + $0xa0] sm:$0xff] %v1423_v22 }
 0x14e   :  { %v1128_v26 = vpop.f32.mrf.mxu2  ;;  %v865_v29 = vpop.f32.mrf.mxu0 }
 0x14f   :  { %v1129_v28 = vadd.f32 %v1128_v26, %v996_v23  ;;  %v998_v32 = vpop.f32.mrf.mxu1 }
 0x150   :  { %v999_v36 = vadd.f32 %v998_v32, %v865_v29 }
 0x151   :  { %v1375_v33 = vadd.f32 %v2364_v8, %v1129_v28  ;;  %v1044_v28 = vadd.f32 %v2609_v35, %v2400_v37  ;;  %v1046_v35 = vadd.f32 %v2639_v54, %v2430_v53 }
 0x153   :  { %v1424_v34 = vmax.f32 %v1375_v33, 0.0 }
 0x154   :  { %v2720_v38 = vpop.f32.mrf.mxu3 }
 0x155   :  { %1473 = vst [vmem:[%s2853_s3 + $0xa8] sm:$0xff] %v1424_v34 }
 0x156   :  { %v1131_v39 = vpop.f32.mrf.mxu2  ;;  %v867_v41 = vpop.f32.mrf.mxu0 }
 0x157   :  { %v1132_v40 = vadd.f32 %v1131_v39, %v999_v36  ;;  %v1000_v42 = vpop.f32.mrf.mxu1 }
 0x158   :  { %v1001_v46 = vadd.f32 %v1000_v42, %v867_v41 }
 0x159   :  { %v1376_v44 = vadd.f32 %v2364_v8, %v1132_v40 }
 0x15b   :  { %v1425_v45 = vmax.f32 %v1376_v44, 0.0 }
 0x15c   :  { %v1065_v47 = vpop.f32.mrf.mxu3 }
 0x15d   :  { %1474 = vst [vmem:[%s2853_s3 + $0xb0] sm:$0xff] %v1425_v45 }
 0x15e   :  { %v1133_v49 = vpop.f32.mrf.mxu2  ;;  %v870_v51 = vpop.f32.mrf.mxu0 }
 0x15f   :  { %v1134_v50 = vadd.f32 %v1133_v49, %v1001_v46  ;;  %v1003_v52 = vpop.f32.mrf.mxu1 }
 0x160   :  { %v1004_v57 = vadd.f32 %v1003_v52, %v870_v51 }
 0x161   :  { %v1377_v55 = vadd.f32 %v2364_v8, %v1134_v50 }
 0x163   :  { %v1426_v56 = vmax.f32 %v1377_v55, 0.0 }
 0x164   :  { %v1171_v59 = vpop.f32.mrf.mxu3 }
 0x165   :  { %1475 = vst [vmem:[%s2853_s3 + $0xb8] sm:$0xff] %v1426_v56  ;;  %v1172_v0 = vadd.f32 %v1171_v59, %v1039_v58 }
 0x166   :  { %v1136_v62 = vpop.f32.mrf.mxu2  ;;  %v872_v3 = vpop.f32.mrf.mxu0 }
 0x167   :  { %v1137_v2 = vadd.f32 %v1136_v62, %v1004_v57  ;;  %v1392_v4 = vadd.f32 %v2364_v8, %v1172_v0  ;;  %v1005_v6 = vpop.f32.mrf.mxu1  ;;  %v1049_v57 = vadd.f32 %v2645_v5, %v2436_v1  ;;  %v1051_v5 = vadd.f32 %v2672_v27, %v2461_v17 }
 0x168   :  { %v1006_v7 = vadd.f32 %v1005_v6, %v872_v3 }
 0x169   :  { %v1378_v9 = vadd.f32 %v2364_v8, %v1137_v2  ;;  %v1441_v10 = vmax.f32 %v1392_v4, 0.0 }
 0x16b   :  { %v1427_v11 = vmax.f32 %v1378_v9, 0.0  ;;  %1490 = vst [vmem:[%s2853_s3 + $0x130] sm:$0xff] %v1441_v10 }
 0x16c   :  { %v1173_v63 = vpop.f32.mrf.mxu3 }
 0x16d   :  { %1476 = vst [vmem:[%s2853_s3 + $0xc0] sm:$0xff] %v1427_v11  ;;  %v1174_v15 = vadd.f32 %v1173_v63, %v1041_v12 }
 0x16e   :  { %v1138_v14 = vpop.f32.mrf.mxu2  ;;  %v875_v18 = vpop.f32.mrf.mxu0 }
 0x16f   :  { %v1139_v16 = vadd.f32 %v1138_v14, %v1006_v7  ;;  %v1393_v21 = vadd.f32 %v2364_v8, %v1174_v15  ;;  %v1008_v22 = vpop.f32.mrf.mxu1 }
 0x170   :  { %v1009_v26 = vadd.f32 %v1008_v22, %v875_v18  ;;  %v1054_v22 = vadd.f32 %v2678_v43, %v2467_v31  ;;  %v1056_v43 = vadd.f32 %v2702_v60, %v2497_v48 }
 0x171   :  { %v1379_v23 = vadd.f32 %v2364_v8, %v1139_v16  ;;  %v1442_v25 = vmax.f32 %v1393_v21, 0.0 }
 0x173   :  { %v1428_v19 = vmax.f32 %v1379_v23, 0.0  ;;  %1491 = vst [vmem:[%s2853_s3 + $0x138] sm:$0xff] %v1442_v25 }
 0x174   :  { %v1176_v29 = vpop.f32.mrf.mxu3 }
 0x175   :  { %1477 = vst [vmem:[%s2853_s3 + $0xc8] sm:$0xff] %v1428_v19  ;;  %v1177_v33 = vadd.f32 %v1176_v29, %v1044_v28 }
 0x176   :  { %v1141_v32 = vpop.f32.mrf.mxu2  ;;  %v877_v36 = vpop.f32.mrf.mxu0 }
 0x177   :  { %v1142_v34 = vadd.f32 %v1141_v32, %v1009_v26  ;;  %v1394_v39 = vadd.f32 %v2364_v8, %v1177_v33  ;;  %v1010_v40 = vpop.f32.mrf.mxu1 }
 0x178   :  { %v1011_v44 = vadd.f32 %v1010_v40, %v877_v36 }
 0x179   :  { %v1380_v41 = vadd.f32 %v2364_v8, %v1142_v34  ;;  %v1443_v42 = vmax.f32 %v1394_v39, 0.0 }
 0x17b   :  { %v1429_v37 = vmax.f32 %v1380_v41, 0.0  ;;  %1492 = vst [vmem:[%s2853_s3 + $0x140] sm:$0xff] %v1443_v42 }
 0x17c   :  { %v1178_v45 = vpop.f32.mrf.mxu3 }
 0x17d   :  { %1478 = vst [vmem:[%s2853_s3 + $0xd0] sm:$0xff] %v1429_v37  ;;  %v1179_v47 = vadd.f32 %v1178_v45, %v1046_v35 }
 0x17e   :  { %v1143_v46 = vpop.f32.mrf.mxu2  ;;  %v880_v50 = vpop.f32.mrf.mxu0 }
 0x17f   :  { %v1144_v49 = vadd.f32 %v1143_v46, %v1011_v44  ;;  %v1395_v51 = vadd.f32 %v2364_v8, %v1179_v47  ;;  %v1013_v52 = vpop.f32.mrf.mxu1  ;;  %v1059_v47 = vadd.f32 %v2708_v13, %v2503_v61  ;;  %v1061_v13 = vadd.f32 %v2714_v24, %v2533_v20 }
 0x180   :  { %v1014_v56 = vadd.f32 %v1013_v52, %v880_v50 }
 0x181   :  { %v1381_v55 = vadd.f32 %v2364_v8, %v1144_v49  ;;  %v1444_v53 = vmax.f32 %v1395_v51, 0.0 }
 0x183   :  { %v1430_v54 = vmax.f32 %v1381_v55, 0.0  ;;  %1493 = vst [vmem:[%s2853_s3 + $0x148] sm:$0xff] %v1444_v53 }
 0x184   :  { %v1181_v58 = vpop.f32.mrf.mxu3 }
 0x185   :  { %1479 = vst [vmem:[%s2853_s3 + $0xd8] sm:$0xff] %v1430_v54  ;;  %v1182_v62 = vadd.f32 %v1181_v58, %v1049_v57 }
 0x186   :  { %v1146_v59 = vpop.f32.mrf.mxu2  ;;  %v882_v2 = vpop.f32.mrf.mxu0 }
 0x187   :  { %v1147_v0 = vadd.f32 %v1146_v59, %v1014_v56  ;;  %v1396_v3 = vadd.f32 %v2364_v8, %v1182_v62  ;;  %v1015_v4 = vpop.f32.mrf.mxu1 }
 0x188   :  { %v1016_v10 = vadd.f32 %v1015_v4, %v882_v2 }
 0x189   :  { %v1382_v6 = vadd.f32 %v2364_v8, %v1147_v0  ;;  %v1445_v9 = vmax.f32 %v1396_v3, 0.0 }
 0x18b   :  { %v1431_v1 = vmax.f32 %v1382_v6, 0.0  ;;  %1494 = vst [vmem:[%s2853_s3 + $0x150] sm:$0xff] %v1445_v9 }
 0x18c   :  { %v1183_v11 = vpop.f32.mrf.mxu3 }
 0x18d   :  { %1480 = vst [vmem:[%s2853_s3 + $0xe0] sm:$0xff] %v1431_v1  ;;  %v1184_v7 = vadd.f32 %v1183_v11, %v1051_v5  ;;  %v1064_v5 = vadd.f32 %v2720_v38, %v2539_v30 }
 0x18e   :  { %v1148_v12 = vpop.f32.mrf.mxu2  ;;  %v885_v14 = vpop.f32.mrf.mxu0 }
 0x18f   :  { %v1149_v63 = vadd.f32 %v1148_v12, %v1016_v10  ;;  %v1397_v15 = vadd.f32 %v2364_v8, %v1184_v7  ;;  %v1018_v16 = vpop.f32.mrf.mxu1 }
 0x190   :  { %v1019_v21 = vadd.f32 %v1018_v16, %v885_v14 }
 0x191   :  { %v1383_v18 = vadd.f32 %v2364_v8, %v1149_v63  ;;  %v1446_v17 = vmax.f32 %v1397_v15, 0.0 }
 0x193   :  { %v1432_v27 = vmax.f32 %v1383_v18, 0.0  ;;  %1495 = vst [vmem:[%s2853_s3 + $0x158] sm:$0xff] %v1446_v17 }
 0x194   :  { %v1186_v23 = vpop.f32.mrf.mxu3 }
 0x195   :  { %1481 = vst [vmem:[%s2853_s3 + $0xe8] sm:$0xff] %v1432_v27  ;;  %v1187_v19 = vadd.f32 %v1186_v23, %v1054_v22 }
 0x196   :  { %v1151_v25 = vpop.f32.mrf.mxu2  ;;  %v887_v28 = vpop.f32.mrf.mxu0 }
 0x197   :  { %v1152_v26 = vadd.f32 %v1151_v25, %v1019_v21  ;;  %v1398_v29 = vadd.f32 %v2364_v8, %v1187_v19  ;;  %v1020_v32 = vpop.f32.mrf.mxu1 }
 0x198   :  { %v1021_v36 = vadd.f32 %v1020_v32, %v887_v28 }
 0x199   :  { %v1384_v33 = vadd.f32 %v2364_v8, %v1152_v26  ;;  %v1447_v34 = vmax.f32 %v1398_v29, 0.0 }
 0x19b   :  { %v1433_v31 = vmax.f32 %v1384_v33, 0.0  ;;  %1496 = vst [vmem:[%s2853_s3 + $0x160] sm:$0xff] %v1447_v34 }
 0x19c   :  { %v1188_v39 = vpop.f32.mrf.mxu3 }
 0x19d   :  { %1482 = vst [vmem:[%s2853_s3 + $0xf0] sm:$0xff] %v1433_v31  ;;  %v1189_v41 = vadd.f32 %v1188_v39, %v1056_v43 }
 0x19e   :  { %v1153_v40 = vpop.f32.mrf.mxu2  ;;  %v890_v37 = vpop.f32.mrf.mxu0 }
 0x19f   :  { %v1154_v42 = vadd.f32 %v1153_v40, %v1021_v36  ;;  %v1399_v35 = vadd.f32 %v2364_v8, %v1189_v41  ;;  %v1023_v44 = vpop.f32.mrf.mxu1 }
 0x1a0   :  { %v1024_v46 = vadd.f32 %v1023_v44, %v890_v37 }
 0x1a1   :  { %v1385_v45 = vadd.f32 %v2364_v8, %v1154_v42  ;;  %v1448_v48 = vmax.f32 %v1399_v35, 0.0 }
 0x1a3   :  { %v1434_v60 = vmax.f32 %v1385_v45, 0.0  ;;  %1497 = vst [vmem:[%s2853_s3 + $0x168] sm:$0xff] %v1448_v48 }
 0x1a4   :  { %v1191_v49 = vpop.f32.mrf.mxu3 }
 0x1a5   :  { %1483 = vst [vmem:[%s2853_s3 + $0xf8] sm:$0xff] %v1434_v60  ;;  %v1192_v51 = vadd.f32 %v1191_v49, %v1059_v47 }
 0x1a6   :  { %v1156_v50 = vpop.f32.mrf.mxu2  ;;  %v892_v55 = vpop.f32.mrf.mxu0 }
 0x1a7   :  { %v1157_v52 = vadd.f32 %v1156_v50, %v1024_v46  ;;  %v1400_v53 = vadd.f32 %v2364_v8, %v1192_v51  ;;  %v1025_v54 = vpop.f32.mrf.mxu1 }
 0x1a8   :  { %v1026_v58 = vadd.f32 %v1025_v54, %v892_v55 }
 0x1a9   :  { %v1386_v56 = vadd.f32 %v2364_v8, %v1157_v52  ;;  %v1449_v57 = vmax.f32 %v1400_v53, 0.0 }
 0x1ab   :  { %v1435_v61 = vmax.f32 %v1386_v56, 0.0  ;;  %1498 = vst [vmem:[%s2853_s3 + $0x170] sm:$0xff] %v1449_v57 }
 0x1ac   :  { %v1193_v59 = vpop.f32.mrf.mxu3 }
 0x1ad   :  { %1484 = vst [vmem:[%s2853_s3 + $0x100] sm:$0xff] %v1435_v61  ;;  %v1194_v0 = vadd.f32 %v1193_v59, %v1061_v13 }
 0x1ae   :  { %v1158_v62 = vpop.f32.mrf.mxu2  ;;  %v895_v3 = vpop.f32.mrf.mxu0 }
 0x1af   :  { %v1159_v2 = vadd.f32 %v1158_v62, %v1026_v58  ;;  %v1401_v4 = vadd.f32 %v2364_v8, %v1194_v0  ;;  %v1028_v6 = vpop.f32.mrf.mxu1 }
 0x1b0   :  { %v1029_v1 = vadd.f32 %v1028_v6, %v895_v3 }
 0x1b1   :  { %v1387_v9 = vadd.f32 %v2364_v8, %v1159_v2  ;;  %v1450_v20 = vmax.f32 %v1401_v4, 0.0  ;;  %v2010_v8 = vld [vmem:[%s2852_s2] ss:$0 sm:$0xff] }
 0x1b3   :  { %v1436_v24 = vmax.f32 %v1387_v9, 0.0  ;;  %1499 = vst [vmem:[%s2853_s3 + $0x178] sm:$0xff] %v1450_v20 }
 0x1b4   :  { %v1196_v10 = vpop.f32.mrf.mxu3 }
 0x1b5   :  { %1485 = vst [vmem:[%s2853_s3 + $0x108] sm:$0xff] %v1436_v24  ;;  %v1197_v12 = vadd.f32 %v1196_v10, %v1064_v5 }
 0x1b6   :  { %v1161_v11 = vpop.f32.mrf.mxu2  ;;  %v897_v63 = vpop.f32.mrf.mxu0 }
 0x1b7   :  { %v1162_v7 = vadd.f32 %v1161_v11, %v1029_v1  ;;  %v1402_v14 = vadd.f32 %v2010_v8, %v1197_v12  ;;  %v1030_v15 = vpop.f32.mrf.mxu1 }
 0x1b8   :  { %v1031_v18 = vadd.f32 %v1030_v15, %v897_v63 }
 0x1b9   :  { %v1388_v30 = vadd.f32 %v2010_v8, %v1162_v7  ;;  %v1451_v38 = vmax.f32 %v1402_v14, 0.0 }
 0x1bb   :  { %v1437_v16 = vmax.f32 %v1388_v30, 0.0  ;;  %1500 = vst [vmem:[%s2853_s3 + $0x180] sm:$0xff] %v1451_v38 }
 0x1bc   :  { %v1198_v17 = vpop.f32.mrf.mxu3 }
 0x1bd   :  { %1486 = vst [vmem:[%s2853_s3 + $0x110] sm:$0xff] %v1437_v16 }
 0x1be   :  { %v1163_v27 = vpop.f32.mrf.mxu2  ;;  %v900_v22 = vpop.f32.mrf.mxu0 }
 0x1bf   :  { %v1164_v21 = vadd.f32 %v1163_v27, %v1031_v18  ;;  %v1033_v23 = vpop.f32.mrf.mxu1 }
 0x1c0   :  { %v1034_v26 = vadd.f32 %v1033_v23, %v900_v22 }
 0x1c1   :  { %v1389_v25 = vadd.f32 %v2010_v8, %v1164_v21 }
 0x1c3   :  { %v1438_v19 = vmax.f32 %v1389_v25, 0.0 }
 0x1c5   :  { %1487 = vst [vmem:[%s2853_s3 + $0x118] sm:$0xff] %v1438_v19 }
 0x1c6   :  { %v1166_v28 = vpop.f32.mrf.mxu2  ;;  %v902_v33 = vpop.f32.mrf.mxu0 }
 0x1c7   :  { %v1167_v29 = vadd.f32 %v1166_v28, %v1034_v26  ;;  %v1035_v34 = vpop.f32.mrf.mxu1 }
 0x1c8   :  { %v1036_v43 = vadd.f32 %v1035_v34, %v902_v33 }
 0x1c9   :  { %v1390_v32 = vadd.f32 %v2010_v8, %v1167_v29 }
 0x1cb   :  { %v1439_v31 = vmax.f32 %v1390_v32, 0.0 }
 0x1cd   :  { %1488 = vst [vmem:[%s2853_s3 + $0x120] sm:$0xff] %v1439_v31 }
 0x1ce   :  { %v1168_v36 = vpop.f32.mrf.mxu2 }
 0x1cf   :  { %v1169_v39 = vadd.f32 %v1168_v36, %v1036_v43 }
 0x1d1   :  { %v1391_v40 = vadd.f32 %v2010_v8, %v1169_v39 }
 0x1d3   :  { %v1440_v41 = vmax.f32 %v1391_v40, 0.0 }
 0x1d5   :  { %1489 = vst [vmem:[%s2853_s3 + $0x128] sm:$0xff] %v1440_v41 }

// kernel: forward.8
= control target key start
LH: loop header
LB: loop body
LE: loop exit
PB: predicated region body
PF: predicated region fallthrough
CT: control target
= control target key end

     0   :  { %s441_s6 = smov 0   ;;  %s553_s0 = inlined_call_operand.vmem [shape: f32[2,6,6,256], index: 0, kind: input, shape index: {}]   ;;  %s554_s1 = inlined_call_operand.vmem [shape: f32[2,2,2,256], index: 1, kind: output, shape index: {}]  }
   0x1 LB: > { %s379_s7 = sadd.s32 4294967295, %s425_s6   ;;  %p383_p0 = scmp.ge.s32.totalorder %s425_s6, 1  ;;  %s425_s6 = sphi %s441_s6, %s11_s6  }
   0x2   : > { %p87_p1 = scmp.lt.s32.totalorder %s425_s6, 3 }
   0x4   : > { %p88_p2 = pnand %p383_p0, %p87_p1 }
   0x5   : > { %p107_p3 = scmp.lt.s32.totalorder (!%p88_p2), %s379_s7, 1  ;;  %s427_s12 = smov (!%p88_p2), 127  }
   0x6   : > { %91 = sbr.rel (%p88_p2) target bundleno = 220 (0xdc), region = 24  ;;  %s428_s13 = smov (!%p88_p2), 1  }
   0x7   : > { %s429_s14 = smov (!%p88_p2), 126   ;;  %s430_s15 = smov (!%p88_p2), 2  }
   0xb   : > { %s556_s7 = smov (!%p107_p3, %s379_s7), 1  ;;  %vm175_vm0 = vcmask 1040384   ;;  %v184_v52 = vlaneseq  ;;  %vm317_vm9 = vcmask 1041408  }
   0xc   : > { %s390_s8 = smul.u32 96, %s556_s7  ;;  %s389_s16 = sshll.u32 %s556_s7, 3 }
   0xd   : > { %v487_v54 = vand.u32 127, %v184_v52  ;;  %s116_s19 = scalar_lea.vmem %s554_s1, %s389_s16 }
   0xe   : > { %s111_s11 = scalar_lea.vmem %s553_s0, %s390_s8 }
   0xf   : > { %v118_v0 = vld [vmem:[%s111_s11 + $0x8] sm:$0x3f]  ;;  %v120_v1 = vld [vmem:[%s111_s11 + $0x18] sm:$0x3f]  ;;  %v117_v4 = vld [vmem:[%s111_s11] sm:$0x3f] }
  0x10   : > { %v122_v2 = vld [vmem:[%s111_s11 + $0x28] sm:$0x3f]  ;;  %v128_v3 = vmax.f32 %v118_v0, %v120_v1  ;;  %v119_v5 = vld [vmem:[%s111_s11 + $0x10] sm:$0x3f]  ;;  %v121_v6 = vld [vmem:[%s111_s11 + $0x20] sm:$0x3f] }
  0x11   : > { %v127_v7 = vmax.f32 %v117_v4, %v119_v5  ;;  %v124_v8 = vld [vmem:[%s111_s11 + $0x38] sm:$0x3f]  ;;  %v126_v9 = vld [vmem:[%s111_s11 + $0x48] sm:$0x3f]  ;;  %v123_v10 = vld [vmem:[%s111_s11 + $0x30] sm:$0x3f] }
  0x12   : > { %v130_v11 = vmax.f32 %v128_v3, %v122_v2  ;;  %v132_v12 = vmax.f32 %v122_v2, %v124_v8  ;;  %v125_v13 = vld [vmem:[%s111_s11 + $0x40] sm:$0x3f]  ;;  %v131_v14 = vmax.f32 %v121_v6, %v123_v10  ;;  %v186_v57 = vadd.s32 128, %v487_v54 }
  0x13   : > { %v129_v15 = vmax.f32 %v127_v7, %v121_v6  ;;  %vm195_vm1 = vcmp.lt.s32.totalorder %v487_v54, 127  ;;  %vm218_vm3 = vcmp.lt.s32.totalorder %v487_v54, 1  ;;  %vm241_vm4 = vcmp.lt.s32.totalorder %v487_v54, 126 }
  0x14   : > { %v140_v16 = vrot.slane %v130_v11, 1  ;;  %v152_v17 = vrot.slane %v130_v11, 2  ;;  %v134_v18 = vmax.f32 %v132_v12, %v126_v9  ;;  %v133_v19 = vmax.f32 %v131_v14, %v125_v13 }
  0x15   : > { %v139_v20 = vrot.slane %v129_v15, 1  ;;  %v151_v21 = vrot.slane %v129_v15, 2  ;;  %vm201_vm2 = vcmp.lt.s32.totalorder %v186_v57, 255  ;;  %vm223_vm5 = vcmp.ge.s32.totalorder %v487_v54, 1 }
  0x16   : > { %v148_v22 = vmax.f32 %v130_v11, %v140_v16  ;;  %v142_v23 = vrot.slane %v134_v18, 1  ;;  %v154_v24 = vrot.slane %v134_v18, 2  ;;  %v141_v25 = vrot.slane %v133_v19, 1 }
  0x17   : > { %v147_v26 = vmax.f32 %v129_v15, %v139_v20  ;;  %v153_v27 = vrot.slane %v133_v19, 2  ;;  %vm247_vm6 = vcmp.lt.s32.totalorder %v186_v57, 254  ;;  %vm264_vm7 = vcmp.lt.s32.totalorder %v487_v54, 2 }
  0x18   : > { %v160_v28 = vmax.f32 %v148_v22, %v152_v17  ;;  %v150_v29 = vmax.f32 %v134_v18, %v142_v23  ;;  %v149_v30 = vmax.f32 %v133_v19, %v141_v25  ;;  %vm269_vm8 = vcmp.ge.s32.totalorder %v487_v54, 2 }
  0x19   : > { %v159_v31 = vmax.f32 %v147_v26, %v151_v21 }
  0x1a   : > { %v168_v32 = vrot.slane %v160_v28, 1  ;;  %v162_v33 = vmax.f32 %v150_v29, %v154_v24  ;;  %v161_v34 = vmax.f32 %v149_v30, %v153_v27 }
  0x1b   : > { %v167_v35 = vrot.slane %v159_v31, 1 }
  0x1c   : > { %v456_v36 = vsel %vm175_vm0, %v160_v28, %v168_v32  ;;  %v170_v37 = vrot.slane %v162_v33, 1  ;;  %v169_v40 = vrot.slane %v161_v34, 1 }
  0x1d   : > { %v181_v38 = vmul.f32 %v456_v36, %v456_v36  ;;  %v461_v39 = vsel %vm175_vm0, %v159_v31, %v167_v35 }
  0x1e   : > { %v180_v41 = vmul.f32 %v461_v39, %v461_v39  ;;  %v466_v42 = vsel %vm175_vm0, %v162_v33, %v170_v37  ;;  %v469_v43 = vsel %vm175_vm0, %v161_v34, %v169_v40 }
  0x1f   : > { %191 = vrot.lane.b32.xlu1 %v181_v38, %s427_s12  ;;  %v473_v44 = vmul.f32 %v466_v42, %v466_v42  ;;  %v477_v45 = vmul.f32 %v469_v43, %v469_v43 }
  0x20   : > { %187 = vrot.lane.b32.xlu0 %v180_v41, %s427_s12  ;;  %210 = vrot.lane.b32.xlu2 %v180_v41, %s428_s13 }
  0x27   : > { %193 = vrot.lane.b32.xlu1 %v473_v44, %s427_s12 }
  0x28   : > { %189 = vrot.lane.b32.xlu0 %v477_v45, %s427_s12  ;;  %212 = vrot.lane.b32.xlu2 %v477_v45, %s428_s13 }
  0x2f   : > { %216 = vrot.lane.b32.xlu1 %v473_v44, %s428_s13 }
  0x30   : > { %214 = vrot.lane.b32.xlu0 %v181_v38, %s428_s13  ;;  %233 = vrot.lane.b32.xlu2 %v180_v41, %s429_s14 }
  0x37   : > { %237 = vrot.lane.b32.xlu1 %v181_v38, %s429_s14 }
  0x38   : > { %235 = vrot.lane.b32.xlu0 %v477_v45, %s429_s14  ;;  %239 = vrot.lane.b32.xlu2 %v473_v44, %s429_s14 }
  0x3f   : > { %258 = vrot.lane.b32.xlu1 %v477_v45, %s430_s15 }
  0x40   : > { %256 = vrot.lane.b32.xlu0 %v180_v41, %s430_s15  ;;  %260 = vrot.lane.b32.xlu2 %v181_v38, %s430_s15 }
  0x48   : > { %262 = vrot.lane.b32.xlu0 %v473_v44, %s430_s15 }
  0x7a   : > { %v211_v46 = vpop.permute.xlu2 %210 }
  0x82   : > { %v213_v49 = vpop.permute.xlu2 %212 }
  0x8a   : > { %v234_v53 = vpop.permute.xlu2 %233 }
  0x91   : > { %v192_v47 = vpop.permute.xlu1 %191 }
  0x92   : > { %v188_v48 = vpop.permute.xlu0 %187  ;;  %v240_v58 = vpop.permute.xlu2 %239 }
  0x93   : > { %v198_v59 = vsel %vm195_vm1, %v192_v47, %v188_v48  ;;  %v196_v0 = vsel %vm195_vm1, %v188_v48, %v192_v47 }
  0x94   : > { %v203_v62 = vsel %vm201_vm2, %v198_v59, 0.0  ;;  %v206_v5 = vadd.f32 %v196_v0, %v180_v41 }
  0x95   : > { %v207_v3 = vadd.f32 %v203_v62, %v181_v38 }
  0x99   : > { %v194_v50 = vpop.permute.xlu1 %193 }
  0x9a   : > { %v190_v51 = vpop.permute.xlu0 %189  ;;  %v261_v10 = vpop.permute.xlu2 %260 }
  0x9b   : > { %v199_v6 = vsel %vm195_vm1, %v194_v50, %v190_v51  ;;  %v197_v19 = vsel %vm195_vm1, %v190_v51, %v194_v50 }
  0x9c   : > { %v205_v12 = vsel %vm201_vm2, %v199_v6, 0.0  ;;  %v208_v28 = vadd.f32 %v197_v19, %v477_v45 }
  0x9d   : > { %v209_v25 = vadd.f32 %v205_v12, %v473_v44 }
  0xa1   : > { %v217_v55 = vpop.permute.xlu1 %216 }
  0xa2   : > { %v215_v56 = vpop.permute.xlu0 %214  ;;  %v222_v15 = vsel %vm218_vm3, %v217_v55, %v213_v49  ;;  %v220_v23 = vsel %vm218_vm3, %v213_v49, %v217_v55 }
  0xa3   : > { %v221_v63 = vsel %vm218_vm3, %v215_v56, %v211_v46  ;;  %v219_v2 = vsel %vm218_vm3, %v211_v46, %v215_v56  ;;  %v227_v26 = vsel %vm223_vm5, %v222_v15, 0.0  ;;  %v232_v31 = vadd.f32 %v220_v23, %v209_v25 }
  0xa4   : > { %v225_v4 = vsel %vm223_vm5, %v221_v63, 0.0  ;;  %v230_v8 = vadd.f32 %v219_v2, %v207_v3  ;;  %v231_v35 = vadd.f32 %v227_v26, %v208_v28 }
  0xa5   : > { %v229_v11 = vadd.f32 %v225_v4, %v206_v5 }
  0xa9   : > { %v238_v60 = vpop.permute.xlu1 %237 }
  0xaa   : > { %v236_v61 = vpop.permute.xlu0 %235  ;;  %v244_v1 = vsel %vm241_vm4, %v238_v60, %v234_v53  ;;  %v242_v9 = vsel %vm241_vm4, %v234_v53, %v238_v60 }
  0xab   : > { %v249_v7 = vsel %vm247_vm6, %v244_v1, 0.0  ;;  %v252_v16 = vadd.f32 %v242_v9, %v229_v11  ;;  %v245_v20 = vsel %vm241_vm4, %v240_v58, %v236_v61  ;;  %v243_v32 = vsel %vm241_vm4, %v236_v61, %v240_v58 }
  0xac   : > { %v253_v13 = vadd.f32 %v249_v7, %v230_v8  ;;  %v251_v29 = vsel %vm247_vm6, %v245_v20, 0.0  ;;  %v254_v41 = vadd.f32 %v243_v32, %v231_v35 }
  0xad   : > { %v255_v38 = vadd.f32 %v251_v29, %v232_v31 }
  0xb1   : > { %v259_v34 = vpop.permute.xlu1 %258 }
  0xb2   : > { %v257_v14 = vpop.permute.xlu0 %256 }
  0xb3   : > { %v265_v17 = vsel %vm264_vm7, %v257_v14, %v261_v10  ;;  %v267_v18 = vsel %vm264_vm7, %v261_v10, %v257_v14 }
  0xb4   : > { %v271_v21 = vsel %vm269_vm8, %v267_v18, 0.0  ;;  %v276_v22 = vadd.f32 %v265_v17, %v253_v13 }
  0xb5   : > { %v275_v24 = vadd.f32 %v271_v21, %v252_v16 }
  0xb6   : > { %v280_v27 = vmul.f32 2e-05, %v276_v22 }
  0xb7   : > { %v279_v30 = vmul.f32 2e-05, %v275_v24 }
  0xb8   : > { %v284_v33 = vadd.f32 1.0, %v280_v27 }
  0xb9   : > { %v283_v37 = vadd.f32 1.0, %v279_v30 }
  0xba   : > { %403 = vlog2.f32 %v284_v33  ;;  %v263_v40 = vpop.permute.xlu0 %262 }
  0xbb   : > { %405 = vlog2.f32 %v283_v37  ;;  %v266_v44 = vsel %vm264_vm7, %v259_v34, %v263_v40  ;;  %v268_v45 = vsel %vm264_vm7, %v263_v40, %v259_v34 }
  0xbc   : > { %v273_v46 = vsel %vm269_vm8, %v268_v45, 0.0  ;;  %v278_v47 = vadd.f32 %v266_v44, %v255_v38 }
  0xbd   : > { %v277_v48 = vadd.f32 %v273_v46, %v254_v41 }
  0xbe   : > { %v282_v49 = vmul.f32 2e-05, %v278_v47 }
  0xbf   : > { %v281_v50 = vmul.f32 2e-05, %v277_v48 }
  0xc0   : > { %v404_v51 = vpop.eup %403  ;;  %v286_v52 = vadd.f32 1.0, %v282_v49 }
  0xc1   : > { %v406_v53 = vpop.eup %405  ;;  %v290_v55 = vmul.f32 0.6931472, %v404_v51  ;;  %v285_v56 = vadd.f32 1.0, %v281_v50 }
  0xc2   : > { %v288_v57 = vmul.f32 0.6931472, %v406_v53  ;;  %407 = vlog2.f32 %v286_v52 }
  0xc3   : > { %v296_v58 = vmul.f32 -0.75, %v290_v55  ;;  %409 = vlog2.f32 %v285_v56 }
  0xc4   : > { %v295_v59 = vmul.f32 -0.75, %v288_v57 }
  0xc5   : > { %v301_v60 = vmul.f32 1.442695, %v296_v58 }
  0xc6   : > { %v299_v61 = vmul.f32 1.442695, %v295_v59 }
  0xc7   : > { %411 = vpow2.f32 %v301_v60 }
  0xc8   : > { %v408_v54 = vpop.eup %407  ;;  %413 = vpow2.f32 %v299_v61 }
  0xc9   : > { %v410_v62 = vpop.eup %409  ;;  %v294_v63 = vmul.f32 0.6931472, %v408_v54 }
  0xca   : > { %v292_v0 = vmul.f32 0.6931472, %v410_v62 }
  0xcb   : > { %v298_v1 = vmul.f32 -0.75, %v294_v63 }
  0xcc   : > { %v297_v2 = vmul.f32 -0.75, %v292_v0 }
  0xcd   : > { %v412_v3 = vpop.eup %411  ;;  %v305_v4 = vmul.f32 1.442695, %v298_v1 }
  0xce   : > { %v414_v5 = vpop.eup %413  ;;  %v308_v6 = vmul.f32 %v412_v3, %v456_v36  ;;  %v303_v7 = vmul.f32 1.442695, %v297_v2 }
  0xcf   : > { %v307_v8 = vmul.f32 %v414_v5, %v461_v39  ;;  %415 = vpow2.f32 %v305_v4 }
  0xd0   : > { %v315_v9 = vrot.slane %v308_v6, 6  ;;  %417 = vpow2.f32 %v303_v7 }
  0xd2   : > { %v318_v10 = vsel %vm317_vm9, %v307_v8, %v315_v9 }
  0xd3   : > { %322 = vst [vmem:[%s116_s19] sm:$0xf] %v318_v10 }
  0xd5   : > { %v416_v11 = vpop.eup %415 }
  0xd6   : > { %v418_v12 = vpop.eup %417  ;;  %v310_v13 = vmul.f32 %v416_v11, %v466_v42 }
  0xd7   : > { %v309_v14 = vmul.f32 %v418_v12, %v469_v43 }
  0xd8   : > { %v316_v36 = vrot.slane %v310_v13, 6 }
  0xda   : > { %v319_v15 = vsel %vm317_vm9, %v309_v14, %v316_v36 }
  0xdb   : > { %323 = vst [vmem:[%s116_s19 + $0x4] sm:$0xf] %v319_v15 }
  0xdc PF: > { %s11_s6 = sadd.s32 1, %s425_s6  }
  0xdd   : > { %p8_p4 = scmp.ge.s32.totalorder %s11_s6, 4  }
  0xdf   :  { %10 = sbr.rel (!%p8_p4) target bundleno = 1 (0x1), region = 54 }

// kernel: forward.7
= control target key start
LH: loop header
LB: loop body
LE: loop exit
PB: predicated region body
PF: predicated region fallthrough
CT: control target
= control target key end

     0   :  { %s2496_s12 = smov 0   ;;  %s2498_s13 = smov 0   ;;  %s2791_s0 = inlined_call_operand.vmem [shape: bf16[2,72,1280], index: 0, kind: input, shape index: {}]   ;;  %s2792_s1 = inlined_call_operand.vmem [shape: bf16[2,1280,128], index: 1, kind: input, shape index: {}]   ;;  %s2793_s2 = inlined_call_operand.vmem [shape: f32[2,1,128], index: 2, kind: input, shape index: {}]   ;;  %s2794_s3 = inlined_call_operand.vmem [shape: f32[2,72,128], index: 3, kind: output, shape index: {}]  }
   0x1   :  { %s2500_s14 = smov 0  }
   0x2 LB: > { %s39_s15 = sadd.s32 1, %s2470_s13  ;;  %p1802_p0 = scmp.ge.s32.totalorder %s2474_s14, 1  ;;  %s2474_s14 = sphi %s2500_s14, %s13_s14   ;;  %s2470_s13 = sphi %s2498_s13, %s2796_s13   ;;  %s2466_s12 = sphi %s2496_s12, %s2795_s12  }
   0x3   : > { %p41_p1 = scmp.ge.s32.totalorder %s39_s15, 2  ;;  %p217_p2 = scmp.lt.s32.totalorder %s2474_s14, 3 }
   0x5   : > { %s2798_s15 = smov (%p41_p1, %s39_s15), 0  ;;  %p218_p3 = pnand %p1802_p0, %p217_p2 }
   0x6   : > { %p277_p4 = scmp.lt.s32.totalorder (!%p218_p3), %s2466_s12, 1 }
   0x7   : > { %221 = sbr.rel (%p218_p3) target bundleno = 385 (0x181), region = 32 }
   0xc   : > { %s2800_s12 = smov (!%p277_p4, %s2466_s12), 1 }
   0xd   : > { %s2425_s16 = smul.u32 640, %s2800_s12  ;;  %s309_s26 = scalar_lea.vmem %s2793_s2, %s2800_s12 }
   0xe   : > { %s2424_s20 = smul.u32 360, %s2800_s12 }
   0xf   : > { %s2520_s19 = scalar_lea.vmem %s2792_s1, %s2425_s16  ;;  %s2426_s29 = smul.u32 72, %s2800_s12 }
  0x10   : > { %v2335_v0 = vld [vmem:[%s2520_s19 + $0x38] sm:$0xff]  ;;  %v2334_v2 = vld [vmem:[%s2520_s19 + $0x30] sm:$0xff]  ;;  %v2333_v4 = vld [vmem:[%s2520_s19 + $0x28] sm:$0xff]  ;;  %s2540_s23 = scalar_lea.vmem %s2791_s0, %s2424_s20 }
  0x11   : > { %v2343_v1 = vld [vmem:[%s2520_s19 + $0x78] sm:$0xff]  ;;  %2408 = vmatpush.bf16.msra.mxu2 %v2335_v0  ;;  %v2342_v3 = vld [vmem:[%s2520_s19 + $0x70] sm:$0xff]  ;;  %1265 = vmatpush.bf16.msra.mxu0 %v2335_v0  ;;  %v2341_v5 = vld [vmem:[%s2520_s19 + $0x68] sm:$0xff]  ;;  %s2756_s5 = scalar_lea.vmem %s2794_s3, %s2426_s29 }
  0x12   : > { %2416 = vmatpush.bf16.msra.mxu3 %v2343_v1  ;;  %1298 = vmatpush.bf16.msra.mxu1 %v2343_v1  ;;  %v2332_v6 = vld [vmem:[%s2520_s19 + $0x20] sm:$0xff]  ;;  %v2331_v8 = vld [vmem:[%s2520_s19 + $0x18] sm:$0xff]  ;;  %v2330_v10 = vld [vmem:[%s2520_s19 + $0x10] sm:$0xff] }
  0x13   : > { %v2340_v7 = vld [vmem:[%s2520_s19 + $0x60] sm:$0xff]  ;;  %v2339_v9 = vld [vmem:[%s2520_s19 + $0x58] sm:$0xff]  ;;  %v2338_v11 = vld [vmem:[%s2520_s19 + $0x50] sm:$0xff] }
  0x14   : > { %v2329_v12 = vld [vmem:[%s2520_s19 + $0x8] sm:$0xff]  ;;  %v2328_v14 = vld [vmem:[%s2520_s19] sm:$0xff]  ;;  %v2351_v20 = vld [vmem:[%s2520_s19 + $0xb8] sm:$0xff] }
  0x15   : > { %2409 = vmatpush.bf16.msra.mxu2 %v2334_v2  ;;  %1266 = vmatpush.bf16.msra.mxu0 %v2334_v2  ;;  %v2337_v13 = vld [vmem:[%s2520_s19 + $0x48] sm:$0xff]  ;;  %v2336_v15 = vld [vmem:[%s2520_s19 + $0x40] sm:$0xff]  ;;  %v2359_v21 = vld [vmem:[%s2520_s19 + $0xf8] sm:$0xff] }
  0x16   : > { %2417 = vmatpush.bf16.msra.mxu3 %v2342_v3  ;;  %1299 = vmatpush.bf16.msra.mxu1 %v2342_v3  ;;  %v1888_v16 = vld [vmem:[%s2540_s23 + $0xa0] sm:$0xf]  ;;  %v2313_v17 = vld [vmem:[%s2540_s23 + $0xc4] sm:$0xf0]  ;;  %v2308_v18 = vld [vmem:[%s2540_s23 + $0xa4] sm:$0xf] }
  0x17   : > { %v1890_v19 = vld [vmem:[%s2540_s23 + $0xc8] sm:$0xf0]  ;;  %v1808_v22 = vld [vmem:[%s2540_s23] sm:$0xf]  ;;  %v1889_v23 = vor.u32 %v2313_v17, %v1888_v16  ;;  %v2293_v25 = vld [vmem:[%s2540_s23 + $0x24] sm:$0xf0] }
  0x18   : > { %v1893_v24 = vor.u32 %v2308_v18, %v1890_v19  ;;  %v2288_v26 = vld [vmem:[%s2540_s23 + $0x4] sm:$0xf]  ;;  %v1810_v27 = vld [vmem:[%s2540_s23 + $0x28] sm:$0xf0]  ;;  %v2367_v28 = vld [vmem:[%s2520_s19 + $0x138] sm:$0xff]  ;;  %v1809_v32 = vor.u32 %v2293_v25, %v1808_v22 }
  0x19   : > { %2410 = vmatpush.bf16.msra.mxu2 %v2333_v4  ;;  %1267 = vmatpush.bf16.msra.mxu0 %v2333_v4  ;;  %v2375_v29 = vld [vmem:[%s2520_s19 + $0x178] sm:$0xff]  ;;  %v2350_v30 = vld [vmem:[%s2520_s19 + $0xb0] sm:$0xff]  ;;  %v1813_v33 = vor.u32 %v2288_v26, %v1810_v27  ;;  %v2349_v36 = vld [vmem:[%s2520_s19 + $0xa8] sm:$0xff] }
  0x1a   : > { %2418 = vmatpush.bf16.msra.mxu3 %v2341_v5  ;;  %1300 = vmatpush.bf16.msra.mxu1 %v2341_v5  ;;  %v2358_v31 = vld [vmem:[%s2520_s19 + $0xf0] sm:$0xff]  ;;  %v2357_v37 = vld [vmem:[%s2520_s19 + $0xe8] sm:$0xff]  ;;  %v2348_v40 = vld [vmem:[%s2520_s19 + $0xa0] sm:$0xff] }
  0x1b   : > { %v2366_v34 = vld [vmem:[%s2520_s19 + $0x130] sm:$0xff]  ;;  %v2365_v38 = vld [vmem:[%s2520_s19 + $0x128] sm:$0xff]  ;;  %v2356_v41 = vld [vmem:[%s2520_s19 + $0xe0] sm:$0xff] }
  0x1c   : > { %v2374_v35 = vld [vmem:[%s2520_s19 + $0x170] sm:$0xff]  ;;  %v2373_v39 = vld [vmem:[%s2520_s19 + $0x168] sm:$0xff]  ;;  %v2323_v43 = vld [vmem:[%s2540_s23 + $0x114] sm:$0xf0] }
  0x1d   : > { %2411 = vmatpush.bf16.msra.mxu2 %v2332_v6  ;;  %1268 = vmatpush.bf16.msra.mxu0 %v2332_v6  ;;  %v1928_v42 = vld [vmem:[%s2540_s23 + $0xf0] sm:$0xf]  ;;  %v2318_v44 = vld [vmem:[%s2540_s23 + $0xf4] sm:$0xf]  ;;  %v1930_v45 = vld [vmem:[%s2540_s23 + $0x118] sm:$0xf0] }
  0x1e   : > { %2419 = vmatpush.bf16.msra.mxu3 %v2340_v7  ;;  %1301 = vmatpush.bf16.msra.mxu1 %v2340_v7  ;;  %v2364_v46 = vld [vmem:[%s2520_s19 + $0x120] sm:$0xff]  ;;  %v2347_v48 = vld [vmem:[%s2520_s19 + $0x98] sm:$0xff]  ;;  %v1848_v50 = vld [vmem:[%s2540_s23 + $0x50] sm:$0xf]  ;;  %v1929_v51 = vor.u32 %v2323_v43, %v1928_v42  ;;  %v1933_v52 = vor.u32 %v2318_v44, %v1930_v45 }
  0x1f   : > { %v2372_v47 = vld [vmem:[%s2520_s19 + $0x160] sm:$0xff]  ;;  %v2355_v49 = vld [vmem:[%s2520_s19 + $0xd8] sm:$0xff]  ;;  %v2298_v54 = vld [vmem:[%s2540_s23 + $0x54] sm:$0xf] }
  0x20   : > { %v2303_v53 = vld [vmem:[%s2540_s23 + $0x74] sm:$0xf0]  ;;  %v1850_v55 = vld [vmem:[%s2540_s23 + $0x78] sm:$0xf0]  ;;  %v2346_v58 = vld [vmem:[%s2520_s19 + $0x90] sm:$0xff] }
  0x21   : > { %2412 = vmatpush.bf16.msra.mxu2 %v2331_v8  ;;  %1269 = vmatpush.bf16.msra.mxu0 %v2331_v8  ;;  %v2363_v56 = vld [vmem:[%s2520_s19 + $0x118] sm:$0xff]  ;;  %v2354_v59 = vld [vmem:[%s2520_s19 + $0xd0] sm:$0xff]  ;;  %v1849_v60 = vor.u32 %v2303_v53, %v1848_v50  ;;  %v1853_v61 = vor.u32 %v2298_v54, %v1850_v55  ;;  %v2345_v0 = vld [vmem:[%s2520_s19 + $0x88] sm:$0xff] }
  0x22   : > { %2420 = vmatpush.bf16.msra.mxu3 %v2339_v9  ;;  %1302 = vmatpush.bf16.msra.mxu1 %v2339_v9  ;;  %v2371_v57 = vld [vmem:[%s2520_s19 + $0x158] sm:$0xff]  ;;  %v2362_v62 = vld [vmem:[%s2520_s19 + $0x110] sm:$0xff]  ;;  %v2353_v1 = vld [vmem:[%s2520_s19 + $0xc8] sm:$0xff] }
  0x23   : > { %v2370_v63 = vld [vmem:[%s2520_s19 + $0x150] sm:$0xff]  ;;  %v385_v2 = vld [vmem:[%s2540_s23 + $0x140] sm:$0xff]  ;;  %v2361_v3 = vld [vmem:[%s2520_s19 + $0x108] sm:$0xff] }
  0x24   : > { %v2369_v4 = vld [vmem:[%s2520_s19 + $0x148] sm:$0xff]  ;;  %v2344_v5 = vld [vmem:[%s2520_s19 + $0x80] sm:$0xff]  ;;  %v2383_v7 = vld [vmem:[%s2520_s19 + $0x1b8] sm:$0xff]  ;;  %v675_v9 = vunpack.c.l.b16 %v385_v2 }
  0x25   : > { %2413 = vmatpush.bf16.msra.mxu2 %v2330_v10  ;;  %1270 = vmatpush.bf16.msra.mxu0 %v2330_v10  ;;  %v2352_v6 = vld [vmem:[%s2520_s19 + $0xc0] sm:$0xff]  ;;  %v2391_v8 = vld [vmem:[%s2520_s19 + $0x1f8] sm:$0xff]  ;;  %v676_v10 = vunpack.c.h.b16 %v385_v2  ;;  %v2382_v16 = vld [vmem:[%s2520_s19 + $0x1b0] sm:$0xff] }
  0x26   : > { %2421 = vmatpush.bf16.msra.mxu3 %v2338_v11  ;;  %1303 = vmatpush.bf16.msra.mxu1 %v2338_v11  ;;  %v2360_v11 = vld [vmem:[%s2520_s19 + $0x100] sm:$0xff]  ;;  %v2390_v17 = vld [vmem:[%s2520_s19 + $0x1f0] sm:$0xff]  ;;  %v725_v18 = vpack.c.b16 %v675_v9, %v675_v9  ;;  %v1826_v22 = vld [vmem:[%s2540_s23 + $0x38] sm:$0xf0] }
  0x27   : > { %v726_v19 = vpack.c.b16 %v676_v10, %v676_v10  ;;  %v2381_v25 = vld [vmem:[%s2520_s19 + $0x1a8] sm:$0xff]  ;;  %v2398_v26 = vld [vmem:[%s2520_s19 + $0x230] sm:$0xff]  ;;  %v2388_v44 = vld [vmem:[%s2520_s19 + $0x1e0] sm:$0xff] }
  0x28   : > { %v2406_v27 = vld [vmem:[%s2520_s19 + $0x270] sm:$0xff]  ;;  %v2379_v45 = vld [vmem:[%s2520_s19 + $0x198] sm:$0xff]  ;;  %v2304_v50 = vld [vmem:[%s2540_s23 + $0x7c] sm:$0xf0] }
  0x29   : > { %2414 = vmatpush.bf16.msra.mxu2 %v2329_v12  ;;  %1271 = vmatpush.bf16.msra.mxu0 %v2329_v12  ;;  %v2368_v12 = vld [vmem:[%s2520_s19 + $0x140] sm:$0xff]  ;;  %v1904_v53 = vld [vmem:[%s2540_s23 + $0xb0] sm:$0xf] }
  0x2a   : > { %2422 = vmatpush.bf16.msra.mxu3 %v2337_v13  ;;  %1304 = vmatpush.bf16.msra.mxu1 %v2337_v13  ;;  %v2399_v13 = vld [vmem:[%s2520_s19 + $0x238] sm:$0xff]  ;;  %v2394_v2 = vld [vmem:[%s2520_s19 + $0x210] sm:$0xff]  ;;  %v1944_v9 = vld [vmem:[%s2540_s23 + $0x100] sm:$0xf] }
  0x2d   : > { %2415 = vmatpush.bf16.msra.mxu2 %v2328_v14  ;;  %1272 = vmatpush.bf16.msra.mxu0 %v2328_v14  ;;  %v2407_v14 = vld [vmem:[%s2520_s19 + $0x278] sm:$0xff] }
  0x2e   : > { %2423 = vmatpush.bf16.msra.mxu3 %v2336_v15  ;;  %1305 = vmatpush.bf16.msra.mxu1 %v2336_v15  ;;  %v1824_v15 = vld [vmem:[%s2540_s23 + $0x10] sm:$0xf] }
  0x30   : > { %1283 = vmatmul.bf16.vlgmr.msra.gmra.mxu2 %v1889_v23  ;;  %1273 = vmatmul.bf16.vlgmr.msra.gmra.mxu0 %v1809_v32  ;;  %v1816_v32 = vld [vmem:[%s2540_s23 + $0x8] sm:$0xf] }
  0x31   : > { %1331 = vmatpush.bf16.msrb.mxu2 %v2351_v20  ;;  %1316 = vmatmul.bf16.vlgmr.msra.gmra.mxu3 %v1893_v24  ;;  %v2295_v20 = vld [vmem:[%s2540_s23 + $0x34] sm:$0xf0] }
  0x32   : > { %1364 = vmatpush.bf16.msrb.mxu3 %v2359_v21  ;;  %1397 = vmatpush.bf16.msrb.mxu0 %v2367_v28  ;;  %v2290_v21 = vld [vmem:[%s2540_s23 + $0x14] sm:$0xf]  ;;  %v1825_v23 = vor.u32 %v2295_v20, %v1824_v15  ;;  %v2389_v28 = vld [vmem:[%s2520_s19 + $0x1e8] sm:$0xff]  ;;  %v2384_v20 = vld [vmem:[%s2520_s19 + $0x1c0] sm:$0xff] }
  0x33   : > { %1430 = vmatpush.bf16.msrb.mxu1 %v2375_v29  ;;  %v1829_v24 = vor.u32 %v2290_v21, %v1826_v22  ;;  %v2380_v29 = vld [vmem:[%s2520_s19 + $0x1a0] sm:$0xff]  ;;  %v1936_v22 = vld [vmem:[%s2540_s23 + $0xf8] sm:$0xf] }
  0x34   : > { %1306 = vmatmul.bf16.vlgmr.msra.gmra.mxu1 %v1813_v33  ;;  %v2294_v33 = vld [vmem:[%s2540_s23 + $0x2c] sm:$0xf0]  ;;  %v2392_v21 = vld [vmem:[%s2520_s19 + $0x200] sm:$0xff] }
  0x35   : > { %1332 = vmatpush.bf16.msrb.mxu2 %v2350_v30  ;;  %v2397_v30 = vld [vmem:[%s2520_s19 + $0x228] sm:$0xff] }
  0x36   : > { %1365 = vmatpush.bf16.msrb.mxu3 %v2358_v31  ;;  %1398 = vmatpush.bf16.msrb.mxu0 %v2366_v34  ;;  %v2405_v31 = vld [vmem:[%s2520_s19 + $0x268] sm:$0xff] }
  0x37   : > { %1431 = vmatpush.bf16.msrb.mxu1 %v2374_v35  ;;  %v2289_v34 = vld [vmem:[%s2540_s23 + $0xc] sm:$0xf]  ;;  %v1818_v35 = vld [vmem:[%s2540_s23 + $0x30] sm:$0xf0] }
  0x39   : > { %1333 = vmatpush.bf16.msrb.mxu2 %v2349_v36  ;;  %v1864_v36 = vld [vmem:[%s2540_s23 + $0x60] sm:$0xf] }
  0x3a   : > { %1366 = vmatpush.bf16.msrb.mxu3 %v2357_v37  ;;  %1399 = vmatpush.bf16.msrb.mxu0 %v2365_v38  ;;  %v1817_v37 = vor.u32 %v2294_v33, %v1816_v32  ;;  %v1821_v38 = vor.u32 %v2289_v34, %v1818_v35  ;;  %v386_v34 = vld [vmem:[%s2540_s23 + $0x148] sm:$0xff] }
  0x3b   : > { %1432 = vmatpush.bf16.msrb.mxu1 %v2373_v39  ;;  %v2305_v39 = vld [vmem:[%s2540_s23 + $0x84] sm:$0xf0]  ;;  %v677_v35 = vunpack.c.l.b16 %v386_v34 }
  0x3c   : > { %v1865_v42 = vor.u32 %v2305_v39, %v1864_v36  ;;  %v678_v36 = vunpack.c.h.b16 %v386_v34 }
  0x3d   : > { %1334 = vmatpush.bf16.msrb.mxu2 %v2348_v40  ;;  %v2300_v40 = vld [vmem:[%s2540_s23 + $0x64] sm:$0xf] }
  0x3e   : > { %1367 = vmatpush.bf16.msrb.mxu3 %v2356_v41  ;;  %1400 = vmatpush.bf16.msrb.mxu0 %v2364_v46  ;;  %v1866_v41 = vld [vmem:[%s2540_s23 + $0x88] sm:$0xf0]  ;;  %v2396_v46 = vld [vmem:[%s2520_s19 + $0x220] sm:$0xff]  ;;  %v728_v39 = vpack.c.b16 %v678_v36, %v678_v36  ;;  %v2327_v36 = vld [vmem:[%s2540_s23 + $0x134] sm:$0xf0] }
  0x3f   : > { %1433 = vmatpush.bf16.msrb.mxu1 %v2372_v47  ;;  %v1869_v43 = vor.u32 %v2300_v40, %v1866_v41  ;;  %v2404_v47 = vld [vmem:[%s2520_s19 + $0x260] sm:$0xff]  ;;  %v2297_v40 = vld [vmem:[%s2540_s23 + $0x44] sm:$0xf0] }
  0x40   : > { %1288 = vmatmul.bf16.gmra.mxu2 %v1929_v51  ;;  %1278 = vmatmul.bf16.gmra.mxu0 %v1849_v60  ;;  %v2299_v51 = vld [vmem:[%s2540_s23 + $0x5c] sm:$0xf]  ;;  %v2292_v41 = vld [vmem:[%s2540_s23 + $0x24] sm:$0xf] }
  0x41   : > { %1335 = vmatpush.bf16.msrb.mxu2 %v2347_v48  ;;  %1321 = vmatmul.bf16.gmra.mxu3 %v1933_v52  ;;  %v2387_v48 = vld [vmem:[%s2520_s19 + $0x1d8] sm:$0xff]  ;;  %v1858_v52 = vld [vmem:[%s2540_s23 + $0x80] sm:$0xf0] }
  0x42   : > { %1368 = vmatpush.bf16.msrb.mxu3 %v2355_v49  ;;  %1401 = vmatpush.bf16.msrb.mxu0 %v2363_v56  ;;  %v1856_v49 = vld [vmem:[%s2540_s23 + $0x58] sm:$0xf]  ;;  %v1861_v55 = vor.u32 %v2299_v51, %v1858_v52 }
  0x43   : > { %1434 = vmatpush.bf16.msrb.mxu1 %v2371_v57  ;;  %v1857_v54 = vor.u32 %v2304_v50, %v1856_v49  ;;  %v2315_v56 = vld [vmem:[%s2540_s23 + $0xd4] sm:$0xf0]  ;;  %v2310_v57 = vld [vmem:[%s2540_s23 + $0xb4] sm:$0xf]  ;;  %v1880_v49 = vld [vmem:[%s2540_s23 + $0x70] sm:$0xf] }
  0x44   : > { %1311 = vmatmul.bf16.gmra.mxu1 %v1853_v61  ;;  %v2378_v61 = vld [vmem:[%s2520_s19 + $0x190] sm:$0xff]  ;;  %v2307_v52 = vld [vmem:[%s2540_s23 + $0x94] sm:$0xf0] }
  0x45   : > { %1336 = vmatpush.bf16.msrb.mxu2 %v2346_v58  ;;  %v1906_v58 = vld [vmem:[%s2540_s23 + $0xd8] sm:$0xf0] }
  0x46   : > { %1369 = vmatpush.bf16.msrb.mxu3 %v2354_v59  ;;  %1402 = vmatpush.bf16.msrb.mxu0 %v2362_v62  ;;  %v1905_v59 = vor.u32 %v2315_v56, %v1904_v53  ;;  %v1909_v60 = vor.u32 %v2310_v57, %v1906_v58  ;;  %v2395_v62 = vld [vmem:[%s2520_s19 + $0x218] sm:$0xff]  ;;  %v2302_v53 = vld [vmem:[%s2540_s23 + $0x74] sm:$0xf] }
  0x47   : > { %1435 = vmatpush.bf16.msrb.mxu1 %v2370_v63  ;;  %v2403_v63 = vld [vmem:[%s2520_s19 + $0x258] sm:$0xff] }
  0x49   : > { %1337 = vmatpush.bf16.msrb.mxu2 %v2345_v0  ;;  %v2386_v0 = vld [vmem:[%s2520_s19 + $0x1d0] sm:$0xff] }
  0x4a   : > { %1370 = vmatpush.bf16.msrb.mxu3 %v2353_v1  ;;  %1403 = vmatpush.bf16.msrb.mxu0 %v2361_v3  ;;  %v2377_v1 = vld [vmem:[%s2520_s19 + $0x188] sm:$0xff]  ;;  %v2402_v3 = vld [vmem:[%s2520_s19 + $0x250] sm:$0xff] }
  0x4b   : > { %1436 = vmatpush.bf16.msrb.mxu1 %v2369_v4  ;;  %v2385_v4 = vld [vmem:[%s2520_s19 + $0x1c8] sm:$0xff] }
  0x4d   : > { %1338 = vmatpush.bf16.msrb.mxu2 %v2344_v5  ;;  %v1896_v5 = vld [vmem:[%s2540_s23 + $0xa8] sm:$0xf] }
  0x4e   : > { %1371 = vmatpush.bf16.msrb.mxu3 %v2352_v6  ;;  %1404 = vmatpush.bf16.msrb.mxu0 %v2360_v11  ;;  %v2314_v6 = vld [vmem:[%s2540_s23 + $0xcc] sm:$0xf0] }
  0x4f   : > { %1437 = vmatpush.bf16.msrb.mxu1 %v2368_v12  ;;  %v1897_v10 = vor.u32 %v2314_v6, %v1896_v5  ;;  %v2325_v12 = vld [vmem:[%s2540_s23 + $0x124] sm:$0xf0] }
  0x50   : > { %1293 = vmatmul.bf16.gmra.mxu2 %v725_v18  ;;  %v1945_v15 = vor.u32 %v2325_v12, %v1944_v9  ;;  %v2393_v18 = vld [vmem:[%s2520_s19 + $0x208] sm:$0xff] }
  0x51   : > { %1463 = vmatpush.bf16.msra.mxu2 %v2383_v7  ;;  %1326 = vmatmul.bf16.gmra.mxu3 %v726_v19  ;;  %v2309_v7 = vld [vmem:[%s2540_s23 + $0xac] sm:$0xf]  ;;  %v2317_v12 = vld [vmem:[%s2540_s23 + $0xe4] sm:$0xf0] }
  0x52   : > { %1496 = vmatpush.bf16.msra.mxu3 %v2391_v8  ;;  %1529 = vmatpush.bf16.msra.mxu0 %v2399_v13  ;;  %v1898_v8 = vld [vmem:[%s2540_s23 + $0xd0] sm:$0xf0]  ;;  %v2320_v13 = vld [vmem:[%s2540_s23 + $0x104] sm:$0xf]  ;;  %v2401_v19 = vld [vmem:[%s2520_s19 + $0x248] sm:$0xff] }
  0x53   : > { %1562 = vmatpush.bf16.msra.mxu1 %v2407_v14  ;;  %1405 = vmatmul.bf16.vlgmr.msrb.gmra.mxu0 %v1825_v23  ;;  %v1901_v11 = vor.u32 %v2309_v7, %v1898_v8  ;;  %v1946_v14 = vld [vmem:[%s2540_s23 + $0x128] sm:$0xf0]  ;;  %v387_v23 = vld [vmem:[%s2540_s23 + $0x150] sm:$0xff]  ;;  %v1920_v8 = vld [vmem:[%s2540_s23 + $0xc0] sm:$0xf] }
  0x54   : > { %1438 = vmatmul.bf16.vlgmr.msrb.gmra.mxu1 %v1829_v24  ;;  %v2324_v24 = vld [vmem:[%s2540_s23 + $0x11c] sm:$0xf0] }
  0x55   : > { %1464 = vmatpush.bf16.msra.mxu2 %v2382_v16  ;;  %v1949_v16 = vor.u32 %v2320_v13, %v1946_v14  ;;  %v2312_v13 = vld [vmem:[%s2540_s23 + $0xc4] sm:$0xf]  ;;  %v1922_v14 = vld [vmem:[%s2540_s23 + $0xe8] sm:$0xf0] }
  0x56   : > { %1497 = vmatpush.bf16.msra.mxu3 %v2390_v17  ;;  %1530 = vmatpush.bf16.msra.mxu0 %v2398_v26  ;;  %v2376_v17 = vld [vmem:[%s2520_s19 + $0x180] sm:$0xff] }
  0x57   : > { %1563 = vmatpush.bf16.msra.mxu1 %v2406_v27  ;;  %v1938_v26 = vld [vmem:[%s2540_s23 + $0x120] sm:$0xf0]  ;;  %v679_v27 = vunpack.c.l.b16 %v387_v23 }
  0x59   : > { %1465 = vmatpush.bf16.msra.mxu2 %v2381_v25  ;;  %v2319_v25 = vld [vmem:[%s2540_s23 + $0xfc] sm:$0xf]  ;;  %v729_v32 = vpack.c.b16 %v679_v27, %v679_v27 }
  0x5a   : > { %1498 = vmatpush.bf16.msra.mxu3 %v2389_v28  ;;  %1531 = vmatpush.bf16.msra.mxu0 %v2397_v30  ;;  %v680_v28 = vunpack.c.h.b16 %v387_v23  ;;  %v1941_v30 = vor.u32 %v2319_v25, %v1938_v26  ;;  %v1912_v23 = vld [vmem:[%s2540_s23 + $0xb8] sm:$0xf]  ;;  %v2316_v26 = vld [vmem:[%s2540_s23 + $0xdc] sm:$0xf0]  ;;  %v2311_v27 = vld [vmem:[%s2540_s23 + $0xbc] sm:$0xf] }
  0x5b   : > { %1564 = vmatpush.bf16.msra.mxu1 %v2405_v31  ;;  %v2400_v31 = vld [vmem:[%s2520_s19 + $0x240] sm:$0xff]  ;;  %v1913_v34 = vor.u32 %v2316_v26, %v1912_v23 }
  0x5c   : > { %v730_v33 = vpack.c.b16 %v680_v28, %v680_v28  ;;  %v1914_v28 = vld [vmem:[%s2540_s23 + $0xe0] sm:$0xf0] }
  0x5d   : > { %1466 = vmatpush.bf16.msra.mxu2 %v2380_v29  ;;  %v1937_v29 = vor.u32 %v2324_v24, %v1936_v22 }
  0x5e   : > { %1499 = vmatpush.bf16.msra.mxu3 %v2388_v44  ;;  %1532 = vmatpush.bf16.msra.mxu0 %v2396_v46  ;;  %v2296_v46 = vld [vmem:[%s2540_s23 + $0x3c] sm:$0xf0] }
  0x5f   : > { %1565 = vmatpush.bf16.msra.mxu1 %v2404_v47  ;;  %v2291_v47 = vld [vmem:[%s2540_s23 + $0x1c] sm:$0xf] }
  0x60   : > { %1339 = vmatmul.bf16.vlgmr.msrb.gmra.mxu2 %v1817_v37  ;;  %v1840_v37 = vld [vmem:[%s2540_s23 + $0x20] sm:$0xf] }
  0x61   : > { %1372 = vmatmul.bf16.vlgmr.msrb.gmra.mxu3 %v1821_v38  ;;  %1467 = vmatpush.bf16.msra.mxu2 %v2379_v45  ;;  %v727_v38 = vpack.c.b16 %v677_v35, %v677_v35  ;;  %v1832_v45 = vld [vmem:[%s2540_s23 + $0x18] sm:$0xf]  ;;  %v1917_v35 = vor.u32 %v2311_v27, %v1914_v28 }
  0x62   : > { %1500 = vmatpush.bf16.msra.mxu3 %v2387_v48  ;;  %1533 = vmatpush.bf16.msra.mxu0 %v2395_v62  ;;  %v1834_v48 = vld [vmem:[%s2540_s23 + $0x40] sm:$0xf0]  ;;  %v1833_v50 = vor.u32 %v2296_v46, %v1832_v45  ;;  %v1952_v46 = vld [vmem:[%s2540_s23 + $0x108] sm:$0xf] }
  0x63   : > { %1410 = vmatmul.bf16.gmra.mxu0 %v1865_v42  ;;  %1566 = vmatpush.bf16.msra.mxu1 %v2403_v63  ;;  %v1842_v42 = vld [vmem:[%s2540_s23 + $0x48] sm:$0xf0]  ;;  %v1837_v51 = vor.u32 %v2291_v47, %v1834_v48  ;;  %v1872_v63 = vld [vmem:[%s2540_s23 + $0x68] sm:$0xf] }
  0x64   : > { %1443 = vmatmul.bf16.gmra.mxu1 %v1869_v43  ;;  %v1841_v43 = vor.u32 %v2297_v40, %v1840_v37  ;;  %v1845_v44 = vor.u32 %v2292_v41, %v1842_v42  ;;  %v2322_v37 = vld [vmem:[%s2540_s23 + $0x114] sm:$0xf] }
  0x65   : > { %1468 = vmatpush.bf16.msra.mxu2 %v2378_v61 }
  0x66   : > { %1501 = vmatpush.bf16.msra.mxu3 %v2386_v0  ;;  %1534 = vmatpush.bf16.msra.mxu0 %v2394_v2  ;;  %v2306_v2 = vld [vmem:[%s2540_s23 + $0x8c] sm:$0xf0] }
  0x67   : > { %1567 = vmatpush.bf16.msra.mxu1 %v2402_v3  ;;  %v2301_v3 = vld [vmem:[%s2540_s23 + $0x6c] sm:$0xf] }
  0x69   : > { %1469 = vmatpush.bf16.msra.mxu2 %v2377_v1 }
  0x6a   : > { %1502 = vmatpush.bf16.msra.mxu3 %v2385_v4  ;;  %1535 = vmatpush.bf16.msra.mxu0 %v2393_v18  ;;  %v1874_v4 = vld [vmem:[%s2540_s23 + $0x90] sm:$0xf0] }
  0x6b   : > { %1568 = vmatpush.bf16.msra.mxu1 %v2401_v19 }
  0x6d   : > { %1470 = vmatpush.bf16.msra.mxu2 %v2376_v17 }
  0x6e   : > { %1503 = vmatpush.bf16.msra.mxu3 %v2384_v20  ;;  %1536 = vmatpush.bf16.msra.mxu0 %v2392_v21 }
  0x6f   : > { %1569 = vmatpush.bf16.msra.mxu1 %v2400_v31 }
  0x70   : > { %1344 = vmatmul.bf16.gmra.mxu2 %v1857_v54  ;;  %v1882_v54 = vld [vmem:[%s2540_s23 + $0x98] sm:$0xf0] }
  0x71   : > { %1377 = vmatmul.bf16.gmra.mxu3 %v1861_v55  ;;  %v1881_v55 = vor.u32 %v2307_v52, %v1880_v49  ;;  %v1885_v56 = vor.u32 %v2302_v53, %v1882_v54  ;;  %v389_v49 = vld [vmem:[%s2540_s23 + $0x160] sm:$0xff]  ;;  %v1954_v52 = vld [vmem:[%s2540_s23 + $0x130] sm:$0xf0] }
  0x73   : > { %1415 = vmatmul.bf16.gmra.mxu0 %v1905_v59 }
  0x74   : > { %1448 = vmatmul.bf16.gmra.mxu1 %v1909_v60 }
  0x80   : > { %1349 = vmatmul.bf16.gmra.mxu2 %v1897_v10  ;;  %v1873_v10 = vor.u32 %v2306_v2, %v1872_v63 }
  0x81   : > { %1382 = vmatmul.bf16.gmra.mxu3 %v1901_v11  ;;  %v1877_v11 = vor.u32 %v2301_v3, %v1874_v4  ;;  %v388_v4 = vld [vmem:[%s2540_s23 + $0x158] sm:$0xff] }
  0x83   : > { %1420 = vmatmul.bf16.gmra.mxu0 %v1945_v15  ;;  %v1921_v15 = vor.u32 %v2317_v12, %v1920_v8  ;;  %v681_v8 = vunpack.c.l.b16 %v388_v4 }
  0x84   : > { %1453 = vmatmul.bf16.gmra.mxu1 %v1949_v16  ;;  %v1925_v16 = vor.u32 %v2312_v13, %v1922_v14 }
  0x90   : > { %1354 = vmatmul.bf16.gmra.mxu2 %v1937_v29 }
  0x91   : > { %1387 = vmatmul.bf16.gmra.mxu3 %v1941_v30 }
  0x93   : > { %1425 = vmatmul.bf16.gmra.mxu0 %v729_v32  ;;  %v1960_v32 = vld [vmem:[%s2540_s23 + $0x110] sm:$0xf] }
  0x94   : > { %1458 = vmatmul.bf16.gmra.mxu1 %v730_v33 }
  0xa0   : > { %1359 = vmatmul.bf16.gmra.mxu2 %v727_v38  ;;  %v1962_v38 = vld [vmem:[%s2540_s23 + $0x138] sm:$0xf0] }
  0xa1   : > { %1392 = vmatmul.bf16.gmra.mxu3 %v728_v39  ;;  %v1961_v39 = vor.u32 %v2327_v36, %v1960_v32  ;;  %v1965_v40 = vor.u32 %v2322_v37, %v1962_v38 }
  0xa3   : > { %1537 = vmatmul.bf16.vlgmr.msra.gmra.mxu0 %v1841_v43 }
  0xa4   : > { %1570 = vmatmul.bf16.vlgmr.msra.gmra.mxu1 %v1845_v44 }
  0xad   : > { %v1274_v57 = vpop.f32.mrf.mxu0 }
  0xb0   : > { %1471 = vmatmul.bf16.vlgmr.msra.gmra.mxu2 %v1833_v50  ;;  %v2326_v50 = vld [vmem:[%s2540_s23 + $0x12c] sm:$0xf0] }
  0xb1   : > { %1504 = vmatmul.bf16.vlgmr.msra.gmra.mxu3 %v1837_v51  ;;  %v1307_v58 = vpop.f32.mrf.mxu1  ;;  %v2321_v51 = vld [vmem:[%s2540_s23 + $0x10c] sm:$0xf] }
  0xb2   : > { %v2671_v59 = vadd.f32 %v1307_v58, %v1274_v57  ;;  %v1953_v57 = vor.u32 %v2326_v50, %v1952_v46  ;;  %v1957_v58 = vor.u32 %v2321_v51, %v1954_v52 }
  0xb3   : > { %v1284_v60 = vpop.f32.mrf.mxu2  ;;  %1542 = vmatmul.bf16.gmra.mxu0 %v1881_v55  ;;  %v683_v55 = vunpack.c.l.b16 %v389_v49 }
  0xb4   : > { %v1317_v61 = vpop.f32.mrf.mxu3  ;;  %1575 = vmatmul.bf16.gmra.mxu1 %v1885_v56  ;;  %v684_v56 = vunpack.c.h.b16 %v389_v49 }
  0xb5   : > { %v2673_v62 = vadd.f32 %v1317_v61, %v1284_v60  ;;  %v1276_v0 = vpop.f32.mrf.mxu0  ;;  %v733_v60 = vpack.c.b16 %v683_v55, %v683_v55 }
  0xb6   : > { %v734_v61 = vpack.c.b16 %v684_v56, %v684_v56 }
  0xb9   : > { %v1309_v1 = vpop.f32.mrf.mxu1 }
  0xba   : > { %v2683_v5 = vadd.f32 %v1309_v1, %v1276_v0 }
  0xbb   : > { %v1286_v6 = vpop.f32.mrf.mxu2 }
  0xbc   : > { %v1319_v7 = vpop.f32.mrf.mxu3 }
  0xbd   : > { %v2686_v9 = vadd.f32 %v1319_v7, %v1286_v6  ;;  %v1279_v17 = vpop.f32.mrf.mxu0 }
  0xc0   : > { %1476 = vmatmul.bf16.gmra.mxu2 %v1873_v10  ;;  %v682_v10 = vunpack.c.h.b16 %v388_v4 }
  0xc1   : > { %1509 = vmatmul.bf16.gmra.mxu3 %v1877_v11  ;;  %v1312_v18 = vpop.f32.mrf.mxu1 }
  0xc2   : > { %v2691_v19 = vadd.f32 %v1312_v18, %v1279_v17  ;;  %v731_v17 = vpack.c.b16 %v681_v8, %v681_v8  ;;  %v732_v18 = vpack.c.b16 %v682_v10, %v682_v10 }
  0xc3   : > { %v1289_v20 = vpop.f32.mrf.mxu2  ;;  %1547 = vmatmul.bf16.gmra.mxu0 %v1921_v15 }
  0xc4   : > { %v1322_v21 = vpop.f32.mrf.mxu3  ;;  %1580 = vmatmul.bf16.gmra.mxu1 %v1925_v16 }
  0xc5   : > { %v2693_v22 = vadd.f32 %v1322_v21, %v1289_v20  ;;  %v1281_v24 = vpop.f32.mrf.mxu0 }
  0xc9   : > { %v1314_v25 = vpop.f32.mrf.mxu1 }
  0xca   : > { %v2699_v29 = vadd.f32 %v1314_v25, %v1281_v24 }
  0xcb   : > { %v1291_v30 = vpop.f32.mrf.mxu2 }
  0xcc   : > { %v1324_v31 = vpop.f32.mrf.mxu3 }
  0xcd   : > { %v2702_v33 = vadd.f32 %v1324_v31, %v1291_v30 }
  0xd0   : > { %1481 = vmatmul.bf16.gmra.mxu2 %v1913_v34  ;;  %v1406_v41 = vpop.f32.mrf.mxu0 }
  0xd1   : > { %1514 = vmatmul.bf16.gmra.mxu3 %v1917_v35  ;;  %v1439_v42 = vpop.f32.mrf.mxu1 }
  0xd3   : > { %v1294_v43 = vpop.f32.mrf.mxu2  ;;  %1552 = vmatmul.bf16.gmra.mxu0 %v1961_v39 }
  0xd4   : > { %v1327_v44 = vpop.f32.mrf.mxu3  ;;  %1585 = vmatmul.bf16.gmra.mxu1 %v1965_v40 }
  0xd5   : > { %v2707_v45 = vadd.f32 %v1327_v44, %v1294_v43 }
  0xd8   : > { %v1408_v47 = vpop.f32.mrf.mxu0 }
  0xd9   : > { %v1441_v48 = vpop.f32.mrf.mxu1 }
  0xdb   : > { %v1296_v53 = vpop.f32.mrf.mxu2 }
  0xdc   : > { %v1329_v54 = vpop.f32.mrf.mxu3 }
  0xe0   : > { %1486 = vmatmul.bf16.gmra.mxu2 %v1953_v57  ;;  %v1411_v63 = vpop.f32.mrf.mxu0 }
  0xe1   : > { %1519 = vmatmul.bf16.gmra.mxu3 %v1957_v58  ;;  %v1444_v0 = vpop.f32.mrf.mxu1 }
  0xe3   : > { %v1340_v1 = vpop.f32.mrf.mxu2  ;;  %1557 = vmatmul.bf16.gmra.mxu0 %v733_v60 }
  0xe4   : > { %v1373_v2 = vpop.f32.mrf.mxu3  ;;  %1590 = vmatmul.bf16.gmra.mxu1 %v734_v61  ;;  %v1341_v3 = vadd.f32 %v1340_v1, %v2671_v59 }
  0xe6   : > { %v1374_v6 = vadd.f32 %v1373_v2, %v1341_v3 }
  0xe8   : > { %v1407_v7 = vadd.f32 %v1406_v41, %v1374_v6  ;;  %v1413_v11 = vpop.f32.mrf.mxu0 }
  0xe9   : > { %v1446_v12 = vpop.f32.mrf.mxu1 }
  0xea   : > { %v2716_v13 = vadd.f32 %v1439_v42, %v1407_v7 }
  0xeb   : > { %v1342_v14 = vpop.f32.mrf.mxu2 }
  0xec   : > { %v1375_v15 = vpop.f32.mrf.mxu3  ;;  %v1343_v16 = vadd.f32 %v1342_v14, %v2683_v5 }
  0xee   : > { %v1376_v20 = vadd.f32 %v1375_v15, %v1343_v16 }
  0xf0   : > { %v1409_v21 = vadd.f32 %v1408_v47, %v1376_v20  ;;  %1491 = vmatmul.bf16.gmra.mxu2 %v731_v17  ;;  %v1416_v59 = vpop.f32.mrf.mxu0 }
  0xf1   : > { %1524 = vmatmul.bf16.gmra.mxu3 %v732_v18  ;;  %v1449_v23 = vpop.f32.mrf.mxu1 }
  0xf2   : > { %v2719_v24 = vadd.f32 %v1441_v48, %v1409_v21 }
  0xf3   : > { %v1345_v25 = vpop.f32.mrf.mxu2 }
  0xf4   : > { %v1378_v26 = vpop.f32.mrf.mxu3  ;;  %v1346_v27 = vadd.f32 %v1345_v25, %v2691_v19 }
  0xf6   : > { %v1379_v28 = vadd.f32 %v1378_v26, %v1346_v27 }
  0xf8   : > { %v1412_v30 = vadd.f32 %v1411_v63, %v1379_v28  ;;  %v1418_v31 = vpop.f32.mrf.mxu0 }
  0xf9   : > { %v1451_v32 = vpop.f32.mrf.mxu1 }
  0xfa   : > { %v2722_v34 = vadd.f32 %v1444_v0, %v1412_v30 }
  0xfb   : > { %v1347_v5 = vpop.f32.mrf.mxu2 }
  0xfc   : > { %v1380_v35 = vpop.f32.mrf.mxu3  ;;  %v1348_v36 = vadd.f32 %v1347_v5, %v2699_v29 }
  0xfe   : > { %v1381_v37 = vadd.f32 %v1380_v35, %v1348_v36 }
 0x100   : > { %v1414_v38 = vadd.f32 %v1413_v11, %v1381_v37  ;;  %v1421_v39 = vpop.f32.mrf.mxu0 }
 0x101   : > { %v1454_v40 = vpop.f32.mrf.mxu1 }
 0x102   : > { %v2725_v41 = vadd.f32 %v1446_v12, %v1414_v38 }
 0x103   : > { %v1350_v42 = vpop.f32.mrf.mxu2 }
 0x104   : > { %v1383_v43 = vpop.f32.mrf.mxu3  ;;  %v1351_v19 = vadd.f32 %v1350_v42, %v2673_v62 }
 0x106   : > { %v1384_v44 = vadd.f32 %v1383_v43, %v1351_v19 }
 0x108   : > { %v1417_v46 = vadd.f32 %v1416_v59, %v1384_v44  ;;  %v1423_v47 = vpop.f32.mrf.mxu0 }
 0x109   : > { %v1456_v48 = vpop.f32.mrf.mxu1 }
 0x10a   : > { %v2728_v49 = vadd.f32 %v1449_v23, %v1417_v46 }
 0x10b   : > { %v1352_v50 = vpop.f32.mrf.mxu2 }
 0x10c   : > { %v1385_v51 = vpop.f32.mrf.mxu3  ;;  %v1353_v29 = vadd.f32 %v1352_v50, %v2686_v9 }
 0x10e   : > { %v1386_v52 = vadd.f32 %v1385_v51, %v1353_v29 }
 0x110   : > { %v1419_v53 = vadd.f32 %v1418_v31, %v1386_v52  ;;  %v1426_v54 = vpop.f32.mrf.mxu0 }
 0x111   : > { %v1459_v55 = vpop.f32.mrf.mxu1 }
 0x112   : > { %v2731_v56 = vadd.f32 %v1451_v32, %v1419_v53 }
 0x113   : > { %v1355_v57 = vpop.f32.mrf.mxu2 }
 0x114   : > { %v1388_v58 = vpop.f32.mrf.mxu3  ;;  %v1356_v62 = vadd.f32 %v1355_v57, %v2693_v22 }
 0x116   : > { %v1389_v60 = vadd.f32 %v1388_v58, %v1356_v62 }
 0x118   : > { %v1422_v61 = vadd.f32 %v1421_v39, %v1389_v60  ;;  %v1428_v63 = vpop.f32.mrf.mxu0 }
 0x119   : > { %v1461_v0 = vpop.f32.mrf.mxu1 }
 0x11a   : > { %v2734_v1 = vadd.f32 %v1454_v40, %v1422_v61 }
 0x11b   : > { %v1357_v2 = vpop.f32.mrf.mxu2 }
 0x11c   : > { %v1390_v3 = vpop.f32.mrf.mxu3  ;;  %v1358_v9 = vadd.f32 %v1357_v2, %v2702_v33 }
 0x11e   : > { %v1391_v4 = vadd.f32 %v1390_v3, %v1358_v9 }
 0x120   : > { %v1424_v6 = vadd.f32 %v1423_v47, %v1391_v4  ;;  %v1538_v7 = vpop.f32.mrf.mxu0 }
 0x121   : > { %v1571_v8 = vpop.f32.mrf.mxu1 }
 0x122   : > { %v2737_v10 = vadd.f32 %v1456_v48, %v1424_v6 }
 0x123   : > { %v1360_v11 = vpop.f32.mrf.mxu2 }
 0x124   : > { %v1393_v12 = vpop.f32.mrf.mxu3  ;;  %v1361_v22 = vadd.f32 %v1360_v11, %v2707_v45  ;;  %v2748_v45 = vld [vmem:[%s309_s26] ss:$0 sm:$0xff] }
 0x126   : > { %v1394_v14 = vadd.f32 %v1393_v12, %v1361_v22 }
 0x128   : > { %v1427_v15 = vadd.f32 %v1426_v54, %v1394_v14  ;;  %v1540_v16 = vpop.f32.mrf.mxu0 }
 0x129   : > { %v1573_v17 = vpop.f32.mrf.mxu1 }
 0x12a   : > { %v2740_v18 = vadd.f32 %v1459_v55, %v1427_v15 }
 0x12b   : > { %v1362_v20 = vpop.f32.mrf.mxu2 }
 0x12c   : > { %v1395_v33 = vpop.f32.mrf.mxu3 }
 0x130   : > { %v1543_v21 = vpop.f32.mrf.mxu0 }
 0x131   : > { %v1576_v59 = vpop.f32.mrf.mxu1 }
 0x133   : > { %v1472_v23 = vpop.f32.mrf.mxu2 }
 0x134   : > { %v1505_v25 = vpop.f32.mrf.mxu3  ;;  %v1473_v26 = vadd.f32 %v1472_v23, %v2716_v13 }
 0x136   : > { %v1506_v27 = vadd.f32 %v1505_v25, %v1473_v26 }
 0x138   : > { %v1539_v28 = vadd.f32 %v1538_v7, %v1506_v27  ;;  %v1545_v30 = vpop.f32.mrf.mxu0 }
 0x139   : > { %v1578_v31 = vpop.f32.mrf.mxu1 }
 0x13a   : > { %v1572_v32 = vadd.f32 %v1571_v8, %v1539_v28 }
 0x13b   : > { %v1474_v5 = vpop.f32.mrf.mxu2 }
 0x13c   : > { %v1507_v35 = vpop.f32.mrf.mxu3  ;;  %v1629_v36 = vadd.f32 %v2748_v45, %v1572_v32  ;;  %v1475_v37 = vadd.f32 %v1474_v5, %v2719_v24 }
 0x13e   : > { %v1638_v13 = vmax.f32 %v1629_v36, 0.0  ;;  %v1508_v38 = vadd.f32 %v1507_v35, %v1475_v37 }
 0x140   : > { %1647 = vst [vmem:[%s2756_s5] sm:$0xff] %v1638_v13  ;;  %v1541_v39 = vadd.f32 %v1540_v16, %v1508_v38  ;;  %v1548_v40 = vpop.f32.mrf.mxu0 }
 0x141   : > { %v1581_v42 = vpop.f32.mrf.mxu1 }
 0x142   : > { %v1574_v43 = vadd.f32 %v1573_v17, %v1541_v39 }
 0x143   : > { %v1477_v19 = vpop.f32.mrf.mxu2 }
 0x144   : > { %v1510_v44 = vpop.f32.mrf.mxu3  ;;  %v1630_v46 = vadd.f32 %v2748_v45, %v1574_v43  ;;  %v1478_v24 = vadd.f32 %v1477_v19, %v2722_v34 }
 0x146   : > { %v1639_v47 = vmax.f32 %v1630_v46, 0.0  ;;  %v1511_v48 = vadd.f32 %v1510_v44, %v1478_v24 }
 0x148   : > { %1648 = vst [vmem:[%s2756_s5 + $0x8] sm:$0xff] %v1639_v47  ;;  %v1544_v50 = vadd.f32 %v1543_v21, %v1511_v48  ;;  %v1550_v51 = vpop.f32.mrf.mxu0 }
 0x149   : > { %v1583_v29 = vpop.f32.mrf.mxu1 }
 0x14a   : > { %v1577_v52 = vadd.f32 %v1576_v59, %v1544_v50 }
 0x14b   : > { %v1479_v53 = vpop.f32.mrf.mxu2 }
 0x14c   : > { %v1512_v54 = vpop.f32.mrf.mxu3  ;;  %v1631_v55 = vadd.f32 %v2748_v45, %v1577_v52  ;;  %v1480_v57 = vadd.f32 %v1479_v53, %v2725_v41 }
 0x14e   : > { %v1640_v58 = vmax.f32 %v1631_v55, 0.0  ;;  %v1513_v62 = vadd.f32 %v1512_v54, %v1480_v57 }
 0x150   : > { %1649 = vst [vmem:[%s2756_s5 + $0x10] sm:$0xff] %v1640_v58  ;;  %v1546_v60 = vadd.f32 %v1545_v30, %v1513_v62  ;;  %v1553_v61 = vpop.f32.mrf.mxu0 }
 0x151   : > { %v1586_v34 = vpop.f32.mrf.mxu1 }
 0x152   : > { %v1579_v63 = vadd.f32 %v1578_v31, %v1546_v60 }
 0x153   : > { %v1482_v0 = vpop.f32.mrf.mxu2 }
 0x154   : > { %v1515_v2 = vpop.f32.mrf.mxu3  ;;  %v1632_v3 = vadd.f32 %v2748_v45, %v1579_v63  ;;  %v1483_v9 = vadd.f32 %v1482_v0, %v2728_v49 }
 0x156   : > { %v1641_v4 = vmax.f32 %v1632_v3, 0.0  ;;  %v1516_v6 = vadd.f32 %v1515_v2, %v1483_v9 }
 0x158   : > { %1650 = vst [vmem:[%s2756_s5 + $0x18] sm:$0xff] %v1641_v4  ;;  %v1549_v7 = vadd.f32 %v1548_v40, %v1516_v6  ;;  %v1555_v8 = vpop.f32.mrf.mxu0 }
 0x159   : > { %v1588_v41 = vpop.f32.mrf.mxu1 }
 0x15a   : > { %v1582_v11 = vadd.f32 %v1581_v42, %v1549_v7 }
 0x15b   : > { %v1484_v12 = vpop.f32.mrf.mxu2 }
 0x15c   : > { %v1517_v22 = vpop.f32.mrf.mxu3  ;;  %v1633_v14 = vadd.f32 %v2748_v45, %v1582_v11  ;;  %v1485_v15 = vadd.f32 %v1484_v12, %v2731_v56 }
 0x15e   : > { %v1642_v16 = vmax.f32 %v1633_v14, 0.0  ;;  %v1518_v17 = vadd.f32 %v1517_v22, %v1485_v15 }
 0x160   : > { %1651 = vst [vmem:[%s2756_s5 + $0x20] sm:$0xff] %v1642_v16  ;;  %v1551_v20 = vadd.f32 %v1550_v51, %v1518_v17  ;;  %v1558_v33 = vpop.f32.mrf.mxu0 }
 0x161   : > { %v1591_v49 = vpop.f32.mrf.mxu1 }
 0x162   : > { %v1584_v21 = vadd.f32 %v1583_v29, %v1551_v20 }
 0x163   : > { %v1487_v59 = vpop.f32.mrf.mxu2 }
 0x164   : > { %v1520_v23 = vpop.f32.mrf.mxu3  ;;  %v1634_v25 = vadd.f32 %v2748_v45, %v1584_v21  ;;  %v1488_v26 = vadd.f32 %v1487_v59, %v2734_v1 }
 0x166   : > { %v1643_v27 = vmax.f32 %v1634_v25, 0.0  ;;  %v1521_v28 = vadd.f32 %v1520_v23, %v1488_v26 }
 0x168   : > { %1652 = vst [vmem:[%s2756_s5 + $0x28] sm:$0xff] %v1643_v27  ;;  %v1554_v30 = vadd.f32 %v1553_v61, %v1521_v28  ;;  %v1560_v31 = vpop.f32.mrf.mxu0 }
 0x169   : > { %v1593_v56 = vpop.f32.mrf.mxu1 }
 0x16a   : > { %v1587_v32 = vadd.f32 %v1586_v34, %v1554_v30 }
 0x16b   : > { %v1489_v5 = vpop.f32.mrf.mxu2 }
 0x16c   : > { %v1522_v35 = vpop.f32.mrf.mxu3  ;;  %v1635_v36 = vadd.f32 %v2748_v45, %v1587_v32  ;;  %v1490_v37 = vadd.f32 %v1489_v5, %v2737_v10 }
 0x16e   : > { %v1644_v13 = vmax.f32 %v1635_v36, 0.0  ;;  %v1523_v38 = vadd.f32 %v1522_v35, %v1490_v37 }
 0x170   : > { %1653 = vst [vmem:[%s2756_s5 + $0x30] sm:$0xff] %v1644_v13  ;;  %v1556_v39 = vadd.f32 %v1555_v8, %v1523_v38 }
 0x172   : > { %v1589_v1 = vadd.f32 %v1588_v41, %v1556_v39 }
 0x173   : > { %v1492_v40 = vpop.f32.mrf.mxu2 }
 0x174   : > { %v1525_v42 = vpop.f32.mrf.mxu3  ;;  %v1636_v43 = vadd.f32 %v2748_v45, %v1589_v1  ;;  %v1493_v19 = vadd.f32 %v1492_v40, %v2740_v18 }
 0x176   : > { %v1645_v44 = vmax.f32 %v1636_v43, 0.0  ;;  %v1526_v46 = vadd.f32 %v1525_v42, %v1493_v19 }
 0x178   : > { %1654 = vst [vmem:[%s2756_s5 + $0x38] sm:$0xff] %v1645_v44  ;;  %v1559_v24 = vadd.f32 %v1558_v33, %v1526_v46 }
 0x17a   : > { %v1592_v47 = vadd.f32 %v1591_v49, %v1559_v24 }
 0x17b   : > { %v1494_v48 = vpop.f32.mrf.mxu2 }
 0x17c   : > { %v1527_v50 = vpop.f32.mrf.mxu3  ;;  %v1637_v10 = vadd.f32 %v2748_v45, %v1592_v47 }
 0x17e   : > { %v1646_v51 = vmax.f32 %v1637_v10, 0.0 }
 0x180   : > { %1655 = vst [vmem:[%s2756_s5 + $0x40] sm:$0xff] %v1646_v51 }
 0x181 PF: > { %s13_s14 = sadd.s32 1, %s2474_s14   ;;  %s2795_s12 = smov %s2470_s13 }
 0x182   : > { %p10_p5 = scmp.ge.s32.totalorder %s13_s14, 4   ;;  %s2796_s13 = smov %s2798_s15 }
 0x184   :  { %12 = sbr.rel (!%p10_p5) target bundleno = 2 (0x2), region = 76 }

// kernel: forward.9
= control target key start
LH: loop header
LB: loop body
LE: loop exit
PB: predicated region body
PF: predicated region fallthrough
CT: control target
= control target key end

     0   :  { %s9585_s1 = inlined_call_operand.vmem [shape: bf16[2304,384], index: 1, kind: input, shape index: {}]   ;;  %s9586_s0 = inlined_call_operand.vmem [shape: bf16[8,2304], index: 0, kind: input, shape index: {}]   ;;  %s9587_s2 = inlined_call_operand.vmem [shape: f32[1,384], index: 2, kind: input, shape index: {}]   ;;  %s9588_s3 = inlined_call_operand.vmem [shape: bf16[384,128], index: 3, kind: input, shape index: {}]   ;;  %s9589_s4 = inlined_call_operand.vmem [shape: f32[1,128], index: 4, kind: input, shape index: {}]   ;;  %s9590_s5 = inlined_call_operand.vmem [shape: bf16[128,128], index: 5, kind: input, shape index: {}]   ;;  %s9591_s6 = inlined_call_operand.vmem [shape: f32[1,128], index: 6, kind: input, shape index: {}]   ;;  %s9592_s7 = inlined_call_operand.vmem [shape: bf16[128,128], index: 7, kind: input, shape index: {}]   ;;  %s9593_s8 = inlined_call_operand.vmem [shape: f32[1,128], index: 8, kind: input, shape index: {}]   ;;  %s9594_s9 = inlined_call_operand.vmem [shape: bf16[128,128], index: 9, kind: input, shape index: {}]   ;;  %s9595_s10 = inlined_call_operand.vmem [shape: f32[1,128], index: 10, kind: input, shape index: {}]   ;;  %s9596_s11 = inlined_call_operand.vmem [shape: f32[8,128], index: 11, kind: output, shape index: {}]  }
   0x1   :  { %v4283_v0 = vld [vmem:[%s9585_s1 + $0xa8] sm:$0xf]  ;;  %v6139_v1 = vld [vmem:[%s9585_s1 + $0xb0] sm:$0xf0]  ;;  %v4271_v11 = vld [vmem:[%s9585_s1 + $0x90] sm:$0xf] }
   0x2   :  { %v4379_v2 = vld [vmem:[%s9585_s1 + $0x168] sm:$0xf]  ;;  %v4284_v3 = vor.u32 %v6139_v1, %v4283_v0  ;;  %v6163_v4 = vld [vmem:[%s9585_s1 + $0x170] sm:$0xf0]  ;;  %v6136_v13 = vld [vmem:[%s9585_s1 + $0x98] sm:$0xf0] }
   0x3   :  { %v4475_v5 = vld [vmem:[%s9585_s1 + $0x228] sm:$0xf]  ;;  %v6187_v6 = vld [vmem:[%s9585_s1 + $0x230] sm:$0xf0]  ;;  %v4380_v7 = vor.u32 %v6163_v4, %v4379_v2  ;;  %v4367_v14 = vld [vmem:[%s9585_s1 + $0x150] sm:$0xf]  ;;  %v4272_v16 = vor.u32 %v6136_v13, %v4271_v11 }
   0x4   :  { %v4476_v8 = vor.u32 %v6187_v6, %v4475_v5  ;;  %v4571_v9 = vld [vmem:[%s9585_s1 + $0x2e8] sm:$0xf]  ;;  %v6211_v10 = vld [vmem:[%s9585_s1 + $0x2f0] sm:$0xf0]  ;;  %2998 = vmatpush.bf16.msra.mxu0 %v4284_v3  ;;  %v6160_v15 = vld [vmem:[%s9585_s1 + $0x158] sm:$0xf0] }
   0x5   :  { %v4572_v12 = vor.u32 %v6211_v10, %v4571_v9  ;;  %3011 = vmatpush.bf16.msra.mxu1 %v4380_v7  ;;  %v4368_v17 = vor.u32 %v6160_v15, %v4367_v14  ;;  %v4463_v18 = vld [vmem:[%s9585_s1 + $0x210] sm:$0xf]  ;;  %v6184_v19 = vld [vmem:[%s9585_s1 + $0x218] sm:$0xf0]  ;;  %v4259_v23 = vld [vmem:[%s9585_s1 + $0x78] sm:$0xf] }
   0x6   :  { %3024 = vmatpush.bf16.msra.mxu2 %v4476_v8  ;;  %v4559_v20 = vld [vmem:[%s9585_s1 + $0x2d0] sm:$0xf]  ;;  %v4464_v21 = vor.u32 %v6184_v19, %v4463_v18  ;;  %v6208_v22 = vld [vmem:[%s9585_s1 + $0x2d8] sm:$0xf0]  ;;  %v6133_v24 = vld [vmem:[%s9585_s1 + $0x80] sm:$0xf0] }
   0x7   :  { %3037 = vmatpush.bf16.msra.mxu3 %v4572_v12  ;;  %v4560_v25 = vor.u32 %v6208_v22, %v4559_v20  ;;  %v4355_v26 = vld [vmem:[%s9585_s1 + $0x138] sm:$0xf]  ;;  %v6157_v27 = vld [vmem:[%s9585_s1 + $0x140] sm:$0xf0]  ;;  %v4260_v29 = vor.u32 %v6133_v24, %v4259_v23  ;;  %v4247_v35 = vld [vmem:[%s9585_s1 + $0x60] sm:$0xf] }
   0x8   :  { %v4451_v28 = vld [vmem:[%s9585_s1 + $0x1f8] sm:$0xf]  ;;  %2999 = vmatpush.bf16.msra.mxu0 %v4272_v16  ;;  %v6181_v30 = vld [vmem:[%s9585_s1 + $0x200] sm:$0xf0]  ;;  %v4356_v33 = vor.u32 %v6157_v27, %v4355_v26  ;;  %v6130_v36 = vld [vmem:[%s9585_s1 + $0x68] sm:$0xf0] }
   0x9   :  { %v4547_v31 = vld [vmem:[%s9585_s1 + $0x2b8] sm:$0xf]  ;;  %v6205_v32 = vld [vmem:[%s9585_s1 + $0x2c0] sm:$0xf0]  ;;  %3012 = vmatpush.bf16.msra.mxu1 %v4368_v17  ;;  %v4452_v34 = vor.u32 %v6181_v30, %v4451_v28  ;;  %v4343_v37 = vld [vmem:[%s9585_s1 + $0x120] sm:$0xf]  ;;  %v4248_v44 = vor.u32 %v6130_v36, %v4247_v35 }
   0xa   :  { %3025 = vmatpush.bf16.msra.mxu2 %v4464_v21  ;;  %v4548_v38 = vor.u32 %v6205_v32, %v4547_v31  ;;  %v6154_v39 = vld [vmem:[%s9585_s1 + $0x128] sm:$0xf0]  ;;  %v4439_v40 = vld [vmem:[%s9585_s1 + $0x1e0] sm:$0xf]  ;;  %v4235_v47 = vld [vmem:[%s9585_s1 + $0x48] sm:$0xf] }
   0xb   :  { %3038 = vmatpush.bf16.msra.mxu3 %v4560_v25  ;;  %v6178_v41 = vld [vmem:[%s9585_s1 + $0x1e8] sm:$0xf0]  ;;  %v4535_v42 = vld [vmem:[%s9585_s1 + $0x2a0] sm:$0xf]  ;;  %v4344_v45 = vor.u32 %v6154_v39, %v4343_v37  ;;  %v6127_v48 = vld [vmem:[%s9585_s1 + $0x50] sm:$0xf0] }
   0xc   :  { %v6202_v43 = vld [vmem:[%s9585_s1 + $0x2a8] sm:$0xf0]  ;;  %3000 = vmatpush.bf16.msra.mxu0 %v4260_v29  ;;  %v4440_v46 = vor.u32 %v6178_v41, %v4439_v40  ;;  %v4331_v49 = vld [vmem:[%s9585_s1 + $0x108] sm:$0xf]  ;;  %v6151_v51 = vld [vmem:[%s9585_s1 + $0x110] sm:$0xf0]  ;;  %v4236_v56 = vor.u32 %v6127_v48, %v4235_v47 }
   0xd   :  { %3013 = vmatpush.bf16.msra.mxu1 %v4356_v33  ;;  %v4536_v50 = vor.u32 %v6202_v43, %v4535_v42  ;;  %v4427_v52 = vld [vmem:[%s9585_s1 + $0x1c8] sm:$0xf]  ;;  %v6175_v53 = vld [vmem:[%s9585_s1 + $0x1d0] sm:$0xf0]  ;;  %v4332_v57 = vor.u32 %v6151_v51, %v4331_v49  ;;  %v4223_v59 = vld [vmem:[%s9585_s1 + $0x30] sm:$0xf] }
   0xe   :  { %3026 = vmatpush.bf16.msra.mxu2 %v4452_v34  ;;  %v4523_v54 = vld [vmem:[%s9585_s1 + $0x288] sm:$0xf]  ;;  %v6199_v55 = vld [vmem:[%s9585_s1 + $0x290] sm:$0xf0]  ;;  %v4428_v58 = vor.u32 %v6175_v53, %v4427_v52  ;;  %v6124_v60 = vld [vmem:[%s9585_s1 + $0x38] sm:$0xf0] }
   0xf   :  { %3039 = vmatpush.bf16.msra.mxu3 %v4548_v38  ;;  %v4319_v61 = vld [vmem:[%s9585_s1 + $0xf0] sm:$0xf]  ;;  %v4524_v62 = vor.u32 %v6199_v55, %v4523_v54  ;;  %v6148_v63 = vld [vmem:[%s9585_s1 + $0xf8] sm:$0xf0]  ;;  %v4224_v4 = vor.u32 %v6124_v60, %v4223_v59  ;;  %v4211_v7 = vld [vmem:[%s9585_s1 + $0x18] sm:$0xf] }
  0x10   :  { %3001 = vmatpush.bf16.msra.mxu0 %v4248_v44  ;;  %v4415_v0 = vld [vmem:[%s9585_s1 + $0x1b0] sm:$0xf]  ;;  %v6172_v1 = vld [vmem:[%s9585_s1 + $0x1b8] sm:$0xf0]  ;;  %v4320_v5 = vor.u32 %v6148_v63, %v4319_v61  ;;  %v6121_v8 = vld [vmem:[%s9585_s1 + $0x20] sm:$0xf0] }
  0x11   :  { %3014 = vmatpush.bf16.msra.mxu1 %v4344_v45  ;;  %v4511_v2 = vld [vmem:[%s9585_s1 + $0x270] sm:$0xf]  ;;  %v6196_v3 = vld [vmem:[%s9585_s1 + $0x278] sm:$0xf0]  ;;  %v4416_v6 = vor.u32 %v6172_v1, %v4415_v0  ;;  %v4307_v9 = vld [vmem:[%s9585_s1 + $0xd8] sm:$0xf]  ;;  %v4212_v16 = vor.u32 %v6121_v8, %v4211_v7 }
  0x12   :  { %3027 = vmatpush.bf16.msra.mxu2 %v4440_v46  ;;  %v4512_v10 = vor.u32 %v6196_v3, %v4511_v2  ;;  %v6145_v11 = vld [vmem:[%s9585_s1 + $0xe0] sm:$0xf0]  ;;  %v4403_v12 = vld [vmem:[%s9585_s1 + $0x198] sm:$0xf]  ;;  %v4199_v17 = vld [vmem:[%s9585_s1] sm:$0xf] }
  0x13   :  { %3040 = vmatpush.bf16.msra.mxu3 %v4536_v50  ;;  %v6169_v13 = vld [vmem:[%s9585_s1 + $0x1a0] sm:$0xf0]  ;;  %v4499_v14 = vld [vmem:[%s9585_s1 + $0x258] sm:$0xf]  ;;  %v6118_v18 = vld [vmem:[%s9585_s1 + $0x8] sm:$0xf0]  ;;  %v4308_v19 = vor.u32 %v6145_v11, %v4307_v9 }
  0x14   :  { %3002 = vmatpush.bf16.msra.mxu0 %v4236_v56  ;;  %v6193_v15 = vld [vmem:[%s9585_s1 + $0x260] sm:$0xf0]  ;;  %v4404_v20 = vor.u32 %v6169_v13, %v4403_v12  ;;  %v4295_v21 = vld [vmem:[%s9585_s1 + $0xc0] sm:$0xf]  ;;  %v6142_v22 = vld [vmem:[%s9585_s1 + $0xc8] sm:$0xf0]  ;;  %v4200_v31 = vor.u32 %v6118_v18, %v4199_v17 }
  0x15   :  { %3015 = vmatpush.bf16.msra.mxu1 %v4332_v57  ;;  %v4391_v23 = vld [vmem:[%s9585_s1 + $0x180] sm:$0xf]  ;;  %v4500_v24 = vor.u32 %v6193_v15, %v4499_v14  ;;  %v6166_v25 = vld [vmem:[%s9585_s1 + $0x188] sm:$0xf0]  ;;  %v4667_v28 = vld [vmem:[%s9585_s1 + $0x3a8] sm:$0xf]  ;;  %v4296_v35 = vor.u32 %v6142_v22, %v4295_v21 }
  0x16   :  { %3028 = vmatpush.bf16.msra.mxu2 %v4428_v58  ;;  %v4487_v26 = vld [vmem:[%s9585_s1 + $0x240] sm:$0xf]  ;;  %v6190_v27 = vld [vmem:[%s9585_s1 + $0x248] sm:$0xf0]  ;;  %v6235_v29 = vld [vmem:[%s9585_s1 + $0x3b0] sm:$0xf0]  ;;  %v4392_v36 = vor.u32 %v6166_v25, %v4391_v23 }
  0x17   :  { %3041 = vmatpush.bf16.msra.mxu3 %v4524_v62  ;;  %v4763_v30 = vld [vmem:[%s9585_s1 + $0x468] sm:$0xf]  ;;  %v6259_v32 = vld [vmem:[%s9585_s1 + $0x470] sm:$0xf0]  ;;  %v4488_v39 = vor.u32 %v6190_v27, %v4487_v26  ;;  %v4668_v40 = vor.u32 %v6235_v29, %v4667_v28  ;;  %v4655_v43 = vld [vmem:[%s9585_s1 + $0x390] sm:$0xf] }
  0x18   :  { %3003 = vmatpush.bf16.msra.mxu0 %v4224_v4  ;;  %v4859_v33 = vld [vmem:[%s9585_s1 + $0x528] sm:$0xf]  ;;  %v6283_v34 = vld [vmem:[%s9585_s1 + $0x530] sm:$0xf0]  ;;  %v4764_v41 = vor.u32 %v6259_v32, %v4763_v30  ;;  %v6232_v44 = vld [vmem:[%s9585_s1 + $0x398] sm:$0xf0] }
  0x19   :  { %3016 = vmatpush.bf16.msra.mxu1 %v4320_v5  ;;  %v4955_v37 = vld [vmem:[%s9585_s1 + $0x5e8] sm:$0xf]  ;;  %v6307_v38 = vld [vmem:[%s9585_s1 + $0x5f0] sm:$0xf0]  ;;  %v4860_v42 = vor.u32 %v6283_v34, %v4859_v33  ;;  %v4751_v45 = vld [vmem:[%s9585_s1 + $0x450] sm:$0xf]  ;;  %v4656_v52 = vor.u32 %v6232_v44, %v4655_v43 }
  0x1a   :  { %3029 = vmatpush.bf16.msra.mxu2 %v4416_v6  ;;  %v4956_v46 = vor.u32 %v6307_v38, %v4955_v37  ;;  %v6256_v47 = vld [vmem:[%s9585_s1 + $0x458] sm:$0xf0]  ;;  %v4847_v48 = vld [vmem:[%s9585_s1 + $0x510] sm:$0xf]  ;;  %v4643_v53 = vld [vmem:[%s9585_s1 + $0x378] sm:$0xf] }
  0x1b   :  { %3042 = vmatpush.bf16.msra.mxu3 %v4512_v10  ;;  %v6280_v49 = vld [vmem:[%s9585_s1 + $0x518] sm:$0xf0]  ;;  %v4943_v50 = vld [vmem:[%s9585_s1 + $0x5d0] sm:$0xf]  ;;  %v4752_v54 = vor.u32 %v6256_v47, %v4751_v45  ;;  %v6229_v56 = vld [vmem:[%s9585_s1 + $0x380] sm:$0xf0] }
  0x1c   :  { %3004 = vmatpush.bf16.msra.mxu0 %v4212_v16  ;;  %v6304_v51 = vld [vmem:[%s9585_s1 + $0x5d8] sm:$0xf0]  ;;  %v4848_v55 = vor.u32 %v6280_v49, %v4847_v48  ;;  %v4739_v57 = vld [vmem:[%s9585_s1 + $0x438] sm:$0xf]  ;;  %v39_v58 = vld [vmem:[%s9586_s0 + $0x8] sm:$0xff]  ;;  %v4644_v3 = vor.u32 %v6229_v56, %v4643_v53 }
  0x1d   :  { %3017 = vmatpush.bf16.msra.mxu1 %v4308_v19  ;;  %v4944_v59 = vor.u32 %v6304_v51, %v4943_v50  ;;  %v6253_v60 = vld [vmem:[%s9585_s1 + $0x440] sm:$0xf0]  ;;  %v4835_v61 = vld [vmem:[%s9585_s1 + $0x4f8] sm:$0xf]  ;;  %v642_v63 = vunpack.c.l.b16 %v39_v58  ;;  %v643_v0 = vunpack.c.h.b16 %v39_v58  ;;  %v4631_v9 = vld [vmem:[%s9585_s1 + $0x360] sm:$0xf] }
  0x1e   :  { %3030 = vmatpush.bf16.msra.mxu2 %v4404_v20  ;;  %v6277_v62 = vld [vmem:[%s9585_s1 + $0x500] sm:$0xf0]  ;;  %v4931_v1 = vld [vmem:[%s9585_s1 + $0x5b8] sm:$0xf]  ;;  %v4740_v7 = vor.u32 %v6253_v60, %v4739_v57  ;;  %v6226_v10 = vld [vmem:[%s9585_s1 + $0x368] sm:$0xf0] }
  0x1f   :  { %3043 = vmatpush.bf16.msra.mxu3 %v4500_v24  ;;  %v6301_v2 = vld [vmem:[%s9585_s1 + $0x5c0] sm:$0xf0]  ;;  %v6930_v4 = vpack.c.b16 %v642_v63, %v642_v63  ;;  %v6935_v6 = vpack.c.b16 %v643_v0, %v643_v0  ;;  %v4836_v8 = vor.u32 %v6277_v62, %v4835_v61  ;;  %v4727_v11 = vld [vmem:[%s9585_s1 + $0x420] sm:$0xf]  ;;  %v6250_v15 = vld [vmem:[%s9585_s1 + $0x428] sm:$0xf0]  ;;  %v4632_v22 = vor.u32 %v6226_v10, %v4631_v9 }
  0x20   :  { %3005 = vmatpush.bf16.msra.mxu0 %v4200_v31  ;;  %v38_v5 = vld [vmem:[%s9586_s0] sm:$0xff]  ;;  %v4932_v14 = vor.u32 %v6301_v2, %v4931_v1  ;;  %v6274_v17 = vld [vmem:[%s9585_s1 + $0x4e8] sm:$0xf0]  ;;  %v4728_v23 = vor.u32 %v6250_v15, %v4727_v11  ;;  %v4619_v25 = vld [vmem:[%s9585_s1 + $0x348] sm:$0xf] }
  0x21   :  { %3018 = vmatpush.bf16.msra.mxu1 %v4296_v35  ;;  %v640_v12 = vunpack.c.l.b16 %v38_v5  ;;  %v641_v13 = vunpack.c.h.b16 %v38_v5  ;;  %v4823_v16 = vld [vmem:[%s9585_s1 + $0x4e0] sm:$0xf]  ;;  %v6298_v19 = vld [vmem:[%s9585_s1 + $0x5a8] sm:$0xf0]  ;;  %v6223_v26 = vld [vmem:[%s9585_s1 + $0x350] sm:$0xf0] }
  0x22   :  { %3031 = vmatpush.bf16.msra.mxu2 %v4392_v36  ;;  %v4919_v18 = vld [vmem:[%s9585_s1 + $0x5a0] sm:$0xf]  ;;  %v4824_v24 = vor.u32 %v6274_v17, %v4823_v16  ;;  %v4715_v27 = vld [vmem:[%s9585_s1 + $0x408] sm:$0xf]  ;;  %v6247_v29 = vld [vmem:[%s9585_s1 + $0x410] sm:$0xf0]  ;;  %v4620_v34 = vor.u32 %v6223_v26, %v4619_v25 }
  0x23   :  { %3044 = vmatpush.bf16.msra.mxu3 %v4488_v39  ;;  %v6962_v20 = vpack.c.b16 %v640_v12, %v640_v12  ;;  %v6965_v21 = vpack.c.b16 %v641_v13, %v641_v13  ;;  %v4920_v28 = vor.u32 %v6298_v19, %v4919_v18  ;;  %v4811_v30 = vld [vmem:[%s9585_s1 + $0x4c8] sm:$0xf]  ;;  %v6271_v31 = vld [vmem:[%s9585_s1 + $0x4d0] sm:$0xf0]  ;;  %v4716_v35 = vor.u32 %v6247_v29, %v4715_v27  ;;  %v4607_v37 = vld [vmem:[%s9585_s1 + $0x330] sm:$0xf] }
  0x24   :  { %3050 = vmatpush.bf16.msrb.mxu0 %v4668_v40  ;;  %v4907_v32 = vld [vmem:[%s9585_s1 + $0x588] sm:$0xf]  ;;  %v6295_v33 = vld [vmem:[%s9585_s1 + $0x590] sm:$0xf0]  ;;  %v4812_v36 = vor.u32 %v6271_v31, %v4811_v30  ;;  %v6220_v38 = vld [vmem:[%s9585_s1 + $0x338] sm:$0xf0] }
  0x25   :  { %3063 = vmatpush.bf16.msrb.mxu1 %v4764_v41  ;;  %3032 = vmatmul.bf16.vlgmr.msra.gmra.mxu2 %v6930_v4  ;;  %v4703_v39 = vld [vmem:[%s9585_s1 + $0x3f0] sm:$0xf]  ;;  %v4908_v40 = vor.u32 %v6295_v33, %v4907_v32  ;;  %v6244_v41 = vld [vmem:[%s9585_s1 + $0x3f8] sm:$0xf0]  ;;  %v4595_v49 = vld [vmem:[%s9585_s1 + $0x318] sm:$0xf] }
  0x26   :  { %3076 = vmatpush.bf16.msrb.mxu2 %v4860_v42  ;;  %3045 = vmatmul.bf16.vlgmr.msra.gmra.mxu3 %v6935_v6  ;;  %v4799_v42 = vld [vmem:[%s9585_s1 + $0x4b0] sm:$0xf]  ;;  %v6268_v43 = vld [vmem:[%s9585_s1 + $0x4b8] sm:$0xf0]  ;;  %v4704_v47 = vor.u32 %v6244_v41, %v4703_v39  ;;  %v6217_v50 = vld [vmem:[%s9585_s1 + $0x320] sm:$0xf0] }
  0x27   :  { %3089 = vmatpush.bf16.msrb.mxu3 %v4956_v46  ;;  %3006 = vmatmul.bf16.vlgmr.msra.gmra.mxu0 %v6962_v20  ;;  %v4895_v44 = vld [vmem:[%s9585_s1 + $0x570] sm:$0xf]  ;;  %v6292_v45 = vld [vmem:[%s9585_s1 + $0x578] sm:$0xf0]  ;;  %v4608_v46 = vor.u32 %v6220_v38, %v4607_v37  ;;  %v4800_v48 = vor.u32 %v6268_v43, %v4799_v42  ;;  %v4691_v51 = vld [vmem:[%s9585_s1 + $0x3d8] sm:$0xf] }
  0x28   :  { %3051 = vmatpush.bf16.msrb.mxu0 %v4656_v52  ;;  %3019 = vmatmul.bf16.vlgmr.msra.gmra.mxu1 %v6965_v21  ;;  %v4896_v52 = vor.u32 %v6292_v45, %v4895_v44  ;;  %v6241_v53 = vld [vmem:[%s9585_s1 + $0x3e0] sm:$0xf0]  ;;  %v4883_v56 = vld [vmem:[%s9585_s1 + $0x558] sm:$0xf]  ;;  %v4583_v58 = vld [vmem:[%s9585_s1 + $0x300] sm:$0xf] }
  0x29   :  { %3064 = vmatpush.bf16.msrb.mxu1 %v4752_v54  ;;  %v4787_v54 = vld [vmem:[%s9585_s1 + $0x498] sm:$0xf]  ;;  %v6289_v57 = vld [vmem:[%s9585_s1 + $0x560] sm:$0xf0]  ;;  %v6214_v60 = vld [vmem:[%s9585_s1 + $0x308] sm:$0xf0]  ;;  %v4692_v63 = vor.u32 %v6241_v53, %v4691_v51 }
  0x2a   :  { %3077 = vmatpush.bf16.msrb.mxu2 %v4848_v55  ;;  %v6265_v55 = vld [vmem:[%s9585_s1 + $0x4a0] sm:$0xf0]  ;;  %v4679_v61 = vld [vmem:[%s9585_s1 + $0x3c0] sm:$0xf]  ;;  %v6238_v62 = vld [vmem:[%s9585_s1 + $0x3c8] sm:$0xf0]  ;;  %v4884_v5 = vor.u32 %v6289_v57, %v4883_v56  ;;  %v4584_v13 = vor.u32 %v6214_v60, %v4583_v58 }
  0x2b   :  { %3090 = vmatpush.bf16.msrb.mxu3 %v4944_v59  ;;  %v4596_v59 = vor.u32 %v6217_v50, %v4595_v49  ;;  %v4788_v0 = vor.u32 %v6265_v55, %v4787_v54  ;;  %v4775_v1 = vld [vmem:[%s9585_s1 + $0x480] sm:$0xf]  ;;  %v6262_v2 = vld [vmem:[%s9585_s1 + $0x488] sm:$0xf0]  ;;  %v40_v9 = vld [vmem:[%s9586_s0 + $0x10] sm:$0xff]  ;;  %v4680_v18 = vor.u32 %v6238_v62, %v4679_v61 }
  0x2c   :  { %3052 = vmatpush.bf16.msrb.mxu0 %v4644_v3  ;;  %v41_v3 = vld [vmem:[%s9586_s0 + $0x18] sm:$0xff]  ;;  %v5051_v10 = vld [vmem:[%s9585_s1 + $0x6a8] sm:$0xf]  ;;  %v6331_v11 = vld [vmem:[%s9585_s1 + $0x6b0] sm:$0xf0]  ;;  %v4776_v19 = vor.u32 %v6262_v2, %v4775_v1 }
  0x2d   :  { %3065 = vmatpush.bf16.msrb.mxu1 %v4740_v7  ;;  %v4871_v7 = vld [vmem:[%s9585_s1 + $0x540] sm:$0xf]  ;;  %v5147_v12 = vld [vmem:[%s9585_s1 + $0x768] sm:$0xf]  ;;  %v6379_v16 = vld [vmem:[%s9585_s1 + $0x830] sm:$0xf0]  ;;  %v646_v17 = vunpack.c.l.b16 %v41_v3  ;;  %v647_v25 = vunpack.c.h.b16 %v41_v3  ;;  %v5052_v27 = vor.u32 %v6331_v11, %v5051_v10 }
  0x2e   :  { %3078 = vmatpush.bf16.msrb.mxu2 %v4836_v8  ;;  %v6286_v8 = vld [vmem:[%s9585_s1 + $0x548] sm:$0xf0]  ;;  %v5243_v15 = vld [vmem:[%s9585_s1 + $0x828] sm:$0xf]  ;;  %v5039_v31 = vld [vmem:[%s9585_s1 + $0x690] sm:$0xf] }
  0x2f   :  { %3091 = vmatpush.bf16.msrb.mxu3 %v4932_v14  ;;  %v6355_v14 = vld [vmem:[%s9585_s1 + $0x770] sm:$0xf0]  ;;  %v4872_v26 = vor.u32 %v6286_v8, %v4871_v7  ;;  %v5244_v30 = vor.u32 %v6379_v16, %v5243_v15  ;;  %v6328_v32 = vld [vmem:[%s9585_s1 + $0x698] sm:$0xf0]  ;;  %v5135_v33 = vld [vmem:[%s9585_s1 + $0x750] sm:$0xf]  ;;  %v7113_v38 = vpack.c.b16 %v646_v17, %v646_v17  ;;  %v7123_v42 = vpack.c.b16 %v647_v25, %v647_v25 }
  0x30   :  { %3053 = vmatpush.bf16.msrb.mxu0 %v4632_v22  ;;  %v5339_v22 = vld [vmem:[%s9585_s1 + $0x8e8] sm:$0xf]  ;;  %v5148_v29 = vor.u32 %v6355_v14, %v5147_v12  ;;  %v6376_v37 = vld [vmem:[%s9585_s1 + $0x818] sm:$0xf0]  ;;  %v5327_v39 = vld [vmem:[%s9585_s1 + $0x8d0] sm:$0xf]  ;;  %v5040_v43 = vor.u32 %v6328_v32, %v5039_v31 }
  0x31   :  { %3066 = vmatpush.bf16.msrb.mxu1 %v4728_v23  ;;  %v6403_v23 = vld [vmem:[%s9585_s1 + $0x8f0] sm:$0xf0]  ;;  %v5123_v49 = vld [vmem:[%s9585_s1 + $0x738] sm:$0xf]  ;;  %v6349_v51 = vld [vmem:[%s9585_s1 + $0x740] sm:$0xf0] }
  0x32   :  { %3079 = vmatpush.bf16.msrb.mxu2 %v4824_v24  ;;  %v644_v24 = vunpack.c.l.b16 %v40_v9  ;;  %v6373_v53 = vld [vmem:[%s9585_s1 + $0x800] sm:$0xf0]  ;;  %v5315_v54 = vld [vmem:[%s9585_s1 + $0x8b8] sm:$0xf]  ;;  %v5124_v57 = vor.u32 %v6349_v51, %v5123_v49  ;;  %v6322_v60 = vld [vmem:[%s9585_s1 + $0x668] sm:$0xf0] }
  0x33   :  { %3092 = vmatpush.bf16.msrb.mxu3 %v4920_v28  ;;  %v645_v28 = vunpack.c.h.b16 %v40_v9  ;;  %v6397_v55 = vld [vmem:[%s9585_s1 + $0x8c0] sm:$0xf0]  ;;  %v5111_v61 = vld [vmem:[%s9585_s1 + $0x720] sm:$0xf]  ;;  %v6370_v1 = vld [vmem:[%s9585_s1 + $0x7e8] sm:$0xf0] }
  0x34   :  { %3054 = vmatpush.bf16.msrb.mxu0 %v4620_v34  ;;  %v5340_v34 = vor.u32 %v6403_v23, %v5339_v22  ;;  %v7121_v41 = vpack.c.b16 %v644_v24, %v644_v24  ;;  %v5316_v62 = vor.u32 %v6397_v55, %v5315_v54  ;;  %v5303_v2 = vld [vmem:[%s9585_s1 + $0x8a0] sm:$0xf]  ;;  %v6394_v3 = vld [vmem:[%s9585_s1 + $0x8a8] sm:$0xf0]  ;;  %v5003_v9 = vld [vmem:[%s9585_s1 + $0x648] sm:$0xf] }
  0x35   :  { %3067 = vmatpush.bf16.msrb.mxu1 %v4716_v35  ;;  %v6352_v35 = vld [vmem:[%s9585_s1 + $0x758] sm:$0xf0]  ;;  %v7125_v44 = vpack.c.b16 %v645_v28, %v645_v28  ;;  %v6319_v10 = vld [vmem:[%s9585_s1 + $0x650] sm:$0xf0]  ;;  %v5099_v11 = vld [vmem:[%s9585_s1 + $0x708] sm:$0xf]  ;;  %v5304_v12 = vor.u32 %v6394_v3, %v5303_v2 }
  0x36   :  { %3080 = vmatpush.bf16.msrb.mxu2 %v4812_v36  ;;  %v5231_v36 = vld [vmem:[%s9585_s1 + $0x810] sm:$0xf]  ;;  %v5136_v45 = vor.u32 %v6352_v35, %v5135_v33  ;;  %v5195_v14 = vld [vmem:[%s9585_s1 + $0x7c8] sm:$0xf]  ;;  %v6367_v15 = vld [vmem:[%s9585_s1 + $0x7d0] sm:$0xf0] }
  0x37   :  { %3093 = vmatpush.bf16.msrb.mxu3 %v4908_v40  ;;  %v6400_v40 = vld [vmem:[%s9585_s1 + $0x8d8] sm:$0xf0]  ;;  %v5291_v16 = vld [vmem:[%s9585_s1 + $0x888] sm:$0xf]  ;;  %v6391_v17 = vld [vmem:[%s9585_s1 + $0x890] sm:$0xf0]  ;;  %v5196_v22 = vor.u32 %v6367_v15, %v5195_v14 }
  0x38   :  { %3055 = vmatpush.bf16.msrb.mxu0 %v4608_v46  ;;  %v5232_v46 = vor.u32 %v6376_v37, %v5231_v36  ;;  %v5328_v50 = vor.u32 %v6400_v40, %v5327_v39  ;;  %v4991_v23 = vld [vmem:[%s9585_s1 + $0x630] sm:$0xf]  ;;  %v6316_v24 = vld [vmem:[%s9585_s1 + $0x638] sm:$0xf0]  ;;  %v4979_v35 = vld [vmem:[%s9585_s1 + $0x618] sm:$0xf] }
  0x39   :  { %3068 = vmatpush.bf16.msrb.mxu1 %v4704_v47  ;;  %v5027_v47 = vld [vmem:[%s9585_s1 + $0x678] sm:$0xf]  ;;  %v5087_v25 = vld [vmem:[%s9585_s1 + $0x6f0] sm:$0xf]  ;;  %v6388_v31 = vld [vmem:[%s9585_s1 + $0x878] sm:$0xf0]  ;;  %v4992_v32 = vor.u32 %v6316_v24, %v4991_v23 }
  0x3a   :  { %3081 = vmatpush.bf16.msrb.mxu2 %v4800_v48  ;;  %v6325_v48 = vld [vmem:[%s9585_s1 + $0x680] sm:$0xf0]  ;;  %v5183_v28 = vld [vmem:[%s9585_s1 + $0x7b0] sm:$0xf]  ;;  %v5075_v37 = vld [vmem:[%s9585_s1 + $0x6d8] sm:$0xf] }
  0x3b   :  { %3094 = vmatpush.bf16.msrb.mxu3 %v4896_v52  ;;  %v5219_v52 = vld [vmem:[%s9585_s1 + $0x7f8] sm:$0xf]  ;;  %v5028_v56 = vor.u32 %v6325_v48, %v5027_v47  ;;  %v6313_v36 = vld [vmem:[%s9585_s1 + $0x620] sm:$0xf0]  ;;  %v4967_v48 = vld [vmem:[%s9585_s1 + $0x600] sm:$0xf] }
  0x3c   :  { %3056 = vmatpush.bf16.msrb.mxu0 %v4596_v59  ;;  %v5220_v58 = vor.u32 %v6373_v53, %v5219_v52  ;;  %v5015_v59 = vld [vmem:[%s9585_s1 + $0x660] sm:$0xf]  ;;  %v6337_v40 = vld [vmem:[%s9585_s1 + $0x6e0] sm:$0xf0]  ;;  %v4980_v49 = vor.u32 %v6313_v36, %v4979_v35  ;;  %v6334_v52 = vld [vmem:[%s9585_s1 + $0x6c8] sm:$0xf0] }
  0x3d   :  { %3069 = vmatpush.bf16.msrb.mxu1 %v4692_v63  ;;  %v6346_v63 = vld [vmem:[%s9585_s1 + $0x728] sm:$0xf0]  ;;  %v6385_v47 = vld [vmem:[%s9585_s1 + $0x860] sm:$0xf0]  ;;  %v5063_v51 = vld [vmem:[%s9585_s1 + $0x6c0] sm:$0xf]  ;;  %v5076_v53 = vor.u32 %v6337_v40, %v5075_v37 }
  0x3e   :  { %3082 = vmatpush.bf16.msrb.mxu2 %v4788_v0  ;;  %v5207_v0 = vld [vmem:[%s9585_s1 + $0x7e0] sm:$0xf]  ;;  %v5112_v7 = vor.u32 %v6346_v63, %v5111_v61  ;;  %v43_v61 = vld [vmem:[%s9586_s0 + $0x28] sm:$0xff]  ;;  %v6427_v63 = vld [vmem:[%s9585_s1 + $0x9b0] sm:$0xf0] }
  0x3f   :  { %3095 = vmatpush.bf16.msrb.mxu3 %v4884_v5  ;;  %v5016_v5 = vor.u32 %v6322_v60, %v5015_v59  ;;  %v5208_v8 = vor.u32 %v6370_v1, %v5207_v0  ;;  %v5159_v55 = vld [vmem:[%s9585_s1 + $0x780] sm:$0xf]  ;;  %v6382_v60 = vld [vmem:[%s9585_s1 + $0x848] sm:$0xf0]  ;;  %v5531_v0 = vld [vmem:[%s9585_s1 + $0xa68] sm:$0xf] }
  0x40   :  { %3057 = vmatpush.bf16.msrb.mxu0 %v4584_v13  ;;  %v6343_v13 = vld [vmem:[%s9585_s1 + $0x710] sm:$0xf0]  ;;  %v5255_v59 = vld [vmem:[%s9585_s1 + $0x840] sm:$0xf]  ;;  %v5627_v3 = vld [vmem:[%s9585_s1 + $0xb28] sm:$0xf] }
  0x41   :  { %3070 = vmatpush.bf16.msrb.mxu1 %v4680_v18  ;;  %v5004_v18 = vor.u32 %v6319_v10, %v5003_v9  ;;  %v6451_v2 = vld [vmem:[%s9585_s1 + $0xa70] sm:$0xf0]  ;;  %v5723_v10 = vld [vmem:[%s9585_s1 + $0xbe8] sm:$0xf]  ;;  %v5256_v14 = vor.u32 %v6382_v60, %v5255_v59  ;;  %v5519_v23 = vld [vmem:[%s9585_s1 + $0xa50] sm:$0xf] }
  0x42   :  { %3083 = vmatpush.bf16.msrb.mxu2 %v4776_v19  ;;  %v5100_v19 = vor.u32 %v6343_v13, %v5099_v11  ;;  %v6499_v11 = vld [vmem:[%s9585_s1 + $0xbf0] sm:$0xf0]  ;;  %v5411_v37 = vld [vmem:[%s9585_s1 + $0x978] sm:$0xf]  ;;  %v6466_v59 = vld [vmem:[%s9585_s1 + $0xae8] sm:$0xf0] }
  0x43   :  { %3096 = vmatpush.bf16.msrb.mxu3 %v4872_v26  ;;  %3058 = vmatmul.bf16.vlgmr.msrb.gmra.mxu0 %v7121_v41  ;;  %v5292_v26 = vor.u32 %v6391_v17, %v5291_v16  ;;  %v651_v16 = vunpack.c.h.b16 %v43_v61  ;;  %v5532_v17 = vor.u32 %v6451_v2, %v5531_v0  ;;  %v5724_v24 = vor.u32 %v6499_v11, %v5723_v10  ;;  %v5507_v40 = vld [vmem:[%s9585_s1 + $0xa38] sm:$0xf]  ;;  %v5687_v60 = vld [vmem:[%s9585_s1 + $0xba0] sm:$0xf]  ;;  %v6415_v2 = vld [vmem:[%s9585_s1 + $0x950] sm:$0xf0] }
  0x44   :  { %3102 = vmatpush.bf16.msra.mxu0 %v5052_v27  ;;  %3071 = vmatmul.bf16.vlgmr.msrb.gmra.mxu1 %v7125_v44  ;;  %v6340_v27 = vld [vmem:[%s9585_s1 + $0x6f8] sm:$0xf0]  ;;  %v5675_v10 = vld [vmem:[%s9585_s1 + $0xb88] sm:$0xf]  ;;  %v6487_v11 = vld [vmem:[%s9585_s1 + $0xb90] sm:$0xf0] }
  0x45   :  { %3115 = vmatpush.bf16.msra.mxu1 %v5148_v29  ;;  %3084 = vmatmul.bf16.vlgmr.msrb.gmra.mxu2 %v7113_v38  ;;  %v6364_v29 = vld [vmem:[%s9585_s1 + $0x7b8] sm:$0xf0]  ;;  %v5088_v33 = vor.u32 %v6340_v27, %v5087_v25  ;;  %v5615_v27 = vld [vmem:[%s9585_s1 + $0xb10] sm:$0xf] }
  0x46   :  { %3128 = vmatpush.bf16.msra.mxu2 %v5244_v30  ;;  %3097 = vmatmul.bf16.vlgmr.msrb.gmra.mxu3 %v7123_v42  ;;  %v5279_v30 = vld [vmem:[%s9585_s1 + $0x870] sm:$0xf] }
  0x47   :  { %3141 = vmatpush.bf16.msra.mxu3 %v5340_v34  ;;  %v5184_v34 = vor.u32 %v6364_v29, %v5183_v28  ;;  %v5280_v39 = vor.u32 %v6388_v31, %v5279_v30  ;;  %v6472_v28 = vld [vmem:[%s9585_s1 + $0xb18] sm:$0xf0]  ;;  %v5711_v31 = vld [vmem:[%s9585_s1 + $0xbd0] sm:$0xf] }
  0x48   :  { %3103 = vmatpush.bf16.msra.mxu0 %v5040_v43  ;;  %v5171_v43 = vld [vmem:[%s9585_s1 + $0x798] sm:$0xf]  ;;  %v5616_v36 = vor.u32 %v6472_v28, %v5615_v27 }
  0x49   :  { %3116 = vmatpush.bf16.msra.mxu1 %v5136_v45  ;;  %v6361_v45 = vld [vmem:[%s9585_s1 + $0x7a0] sm:$0xf0] }
  0x4a   :  { %3129 = vmatpush.bf16.msra.mxu2 %v5232_v46  ;;  %v5267_v46 = vld [vmem:[%s9585_s1 + $0x858] sm:$0xf]  ;;  %v5172_v54 = vor.u32 %v6361_v45, %v5171_v43  ;;  %v6445_v45 = vld [vmem:[%s9585_s1 + $0xa40] sm:$0xf0] }
  0x4b   :  { %3142 = vmatpush.bf16.msra.mxu3 %v5328_v50  ;;  %v6310_v50 = vld [vmem:[%s9585_s1 + $0x608] sm:$0xf0] }
  0x4c   :  { %3104 = vmatpush.bf16.msra.mxu0 %v5028_v56  ;;  %v6358_v56 = vld [vmem:[%s9585_s1 + $0x788] sm:$0xf0]  ;;  %v4968_v1 = vor.u32 %v6310_v50, %v4967_v48  ;;  %v5699_v48 = vld [vmem:[%s9585_s1 + $0xbb8] sm:$0xf] }
  0x4d   :  { %3117 = vmatpush.bf16.msra.mxu1 %v5124_v57  ;;  %v42_v57 = vld [vmem:[%s9586_s0 + $0x20] sm:$0xff]  ;;  %v5160_v9 = vor.u32 %v6358_v56, %v5159_v55 }
  0x4e   :  { %3130 = vmatpush.bf16.msra.mxu2 %v5220_v58  ;;  %v5268_v58 = vor.u32 %v6385_v47, %v5267_v46  ;;  %v649_v13 = vunpack.c.h.b16 %v42_v57  ;;  %v5603_v46 = vld [vmem:[%s9585_s1 + $0xaf8] sm:$0xf]  ;;  %v6469_v47 = vld [vmem:[%s9585_s1 + $0xb00] sm:$0xf0]  ;;  %v5495_v55 = vld [vmem:[%s9585_s1 + $0xa20] sm:$0xf] }
  0x4f   :  { %3143 = vmatpush.bf16.msra.mxu3 %v5316_v62  ;;  %v5435_v62 = vld [vmem:[%s9585_s1 + $0x9a8] sm:$0xf] }
  0x50   :  { %3105 = vmatpush.bf16.msra.mxu0 %v5016_v5  ;;  %v6475_v5 = vld [vmem:[%s9585_s1 + $0xb30] sm:$0xf0]  ;;  %v5436_v15 = vor.u32 %v6427_v63, %v5435_v62  ;;  %v7327_v30 = vpack.c.b16 %v649_v13, %v649_v13 }
  0x51   :  { %3118 = vmatpush.bf16.msra.mxu1 %v5112_v7  ;;  %v648_v7 = vunpack.c.l.b16 %v42_v57  ;;  %v6442_v57 = vld [vmem:[%s9585_s1 + $0xa28] sm:$0xf0] }
  0x52   :  { %3131 = vmatpush.bf16.msra.mxu2 %v5208_v8  ;;  %v5064_v8 = vor.u32 %v6334_v52, %v5063_v51  ;;  %v5508_v51 = vor.u32 %v6445_v45, %v5507_v40  ;;  %v5604_v52 = vor.u32 %v6469_v47, %v5603_v46  ;;  %v5496_v63 = vor.u32 %v6442_v57, %v5495_v55  ;;  %v6457_v40 = vld [vmem:[%s9585_s1 + $0xaa0] sm:$0xf0]  ;;  %v5351_v46 = vld [vmem:[%s9585_s1 + $0x900] sm:$0xf]  ;;  %v44_v55 = vld [vmem:[%s9586_s0 + $0x30] sm:$0xff] }
  0x53   :  { %3144 = vmatpush.bf16.msra.mxu3 %v5304_v12  ;;  %v650_v12 = vunpack.c.l.b16 %v43_v61  ;;  %v7314_v25 = vpack.c.b16 %v648_v7, %v648_v7  ;;  %v6490_v61 = vld [vmem:[%s9585_s1 + $0xba8] sm:$0xf0]  ;;  %v6439_v7 = vld [vmem:[%s9585_s1 + $0xa10] sm:$0xf0]  ;;  %v6481_v45 = vld [vmem:[%s9585_s1 + $0xb60] sm:$0xf0] }
  0x54   :  { %3106 = vmatpush.bf16.msra.mxu0 %v5004_v18  ;;  %v5628_v18 = vor.u32 %v6475_v5, %v5627_v3  ;;  %v5483_v3 = vld [vmem:[%s9585_s1 + $0xa08] sm:$0xf]  ;;  %v5688_v5 = vor.u32 %v6490_v61, %v5687_v60  ;;  %v5639_v57 = vld [vmem:[%s9585_s1 + $0xb40] sm:$0xf]  ;;  %v6523_v61 = vld [vmem:[%s9585_s1 + $0xcb0] sm:$0xf0] }
  0x55   :  { %3119 = vmatpush.bf16.msra.mxu1 %v5100_v19  ;;  %v5423_v19 = vld [vmem:[%s9585_s1 + $0x990] sm:$0xf]  ;;  %v7325_v29 = vpack.c.b16 %v650_v12, %v650_v12  ;;  %v5484_v13 = vor.u32 %v6439_v7, %v5483_v3  ;;  %v5819_v60 = vld [vmem:[%s9585_s1 + $0xca8] sm:$0xf]  ;;  %v652_v3 = vunpack.c.l.b16 %v44_v55 }
  0x56   :  { %3132 = vmatpush.bf16.msra.mxu2 %v5196_v22  ;;  %v6424_v22 = vld [vmem:[%s9585_s1 + $0x998] sm:$0xf0] }
  0x57   :  { %3145 = vmatpush.bf16.msra.mxu3 %v5292_v26  ;;  %v6448_v26 = vld [vmem:[%s9585_s1 + $0xa58] sm:$0xf0] }
  0x58   :  { %3107 = vmatpush.bf16.msra.mxu0 %v4992_v32  ;;  %v6496_v32 = vld [vmem:[%s9585_s1 + $0xbd8] sm:$0xf0]  ;;  %v5520_v35 = vor.u32 %v6448_v26, %v5519_v23 }
  0x59   :  { %3120 = vmatpush.bf16.msra.mxu1 %v5088_v33  ;;  %v7335_v33 = vpack.c.b16 %v651_v16, %v651_v16  ;;  %v5712_v43 = vor.u32 %v6496_v32, %v5711_v31  ;;  %v6412_v16 = vld [vmem:[%s9585_s1 + $0x938] sm:$0xf0]  ;;  %v5363_v32 = vld [vmem:[%s9585_s1 + $0x918] sm:$0xf] }
  0x5a   :  { %3133 = vmatpush.bf16.msra.mxu2 %v5184_v34  ;;  %v5424_v34 = vor.u32 %v6424_v22, %v5423_v19  ;;  %v6436_v19 = vld [vmem:[%s9585_s1 + $0x9f8] sm:$0xf0]  ;;  %v5567_v22 = vld [vmem:[%s9585_s1 + $0xab0] sm:$0xf] }
  0x5b   :  { %3146 = vmatpush.bf16.msra.mxu3 %v5280_v39  ;;  %v6421_v39 = vld [vmem:[%s9585_s1 + $0x980] sm:$0xf0]  ;;  %v6460_v23 = vld [vmem:[%s9585_s1 + $0xab8] sm:$0xf0] }
  0x5c   :  { %3108 = vmatpush.bf16.msra.mxu0 %v4980_v49  ;;  %v6493_v49 = vld [vmem:[%s9585_s1 + $0xbc0] sm:$0xf0]  ;;  %v5412_v50 = vor.u32 %v6421_v39, %v5411_v37  ;;  %v6484_v26 = vld [vmem:[%s9585_s1 + $0xb78] sm:$0xf0]  ;;  %v5568_v31 = vor.u32 %v6460_v23, %v5567_v22  ;;  %v5555_v39 = vld [vmem:[%s9585_s1 + $0xa98] sm:$0xf]  ;;  %v7524_v23 = vpack.c.b16 %v652_v3, %v652_v3 }
  0x5d   :  { %3121 = vmatpush.bf16.msra.mxu1 %v5076_v53  ;;  %v5399_v53 = vld [vmem:[%s9585_s1 + $0x960] sm:$0xf]  ;;  %v5700_v56 = vor.u32 %v6493_v49, %v5699_v48  ;;  %v6433_v37 = vld [vmem:[%s9585_s1 + $0x9e0] sm:$0xf0]  ;;  %v6406_v48 = vld [vmem:[%s9585_s1 + $0x908] sm:$0xf0] }
  0x5e   :  { %3134 = vmatpush.bf16.msra.mxu2 %v5172_v54  ;;  %v6418_v54 = vld [vmem:[%s9585_s1 + $0x968] sm:$0xf0]  ;;  %v5447_v49 = vld [vmem:[%s9585_s1 + $0x9c0] sm:$0xf]  ;;  %v5771_v3 = vld [vmem:[%s9585_s1 + $0xc48] sm:$0xf] }
  0x5f   :  { %3147 = vmatpush.bf16.msra.mxu3 %v5268_v58  ;;  %v5591_v58 = vld [vmem:[%s9585_s1 + $0xae0] sm:$0xf]  ;;  %v5400_v62 = vor.u32 %v6418_v54, %v5399_v53  ;;  %v6454_v54 = vld [vmem:[%s9585_s1 + $0xa88] sm:$0xf0] }
  0x60   :  { %3109 = vmatpush.bf16.msra.mxu0 %v4968_v1  ;;  %v5592_v0 = vor.u32 %v6466_v59, %v5591_v58  ;;  %v5387_v1 = vld [vmem:[%s9585_s1 + $0x948] sm:$0xf]  ;;  %v5543_v53 = vld [vmem:[%s9585_s1 + $0xa80] sm:$0xf]  ;;  %v6478_v58 = vld [vmem:[%s9585_s1 + $0xb48] sm:$0xf0] }
  0x61   :  { %3122 = vmatpush.bf16.msra.mxu1 %v5064_v8  ;;  %v5579_v8 = vld [vmem:[%s9585_s1 + $0xac8] sm:$0xf]  ;;  %v5388_v12 = vor.u32 %v6415_v2, %v5387_v1  ;;  %v45_v59 = vld [vmem:[%s9586_s0 + $0x38] sm:$0xff]  ;;  %v6138_v1 = vld [vmem:[%s9585_s1 + $0xac] sm:$0xf]  ;;  %v5544_v7 = vor.u32 %v6454_v54, %v5543_v53 }
  0x62   :  { %3135 = vmatpush.bf16.msra.mxu2 %v5160_v9  ;;  %v6463_v9 = vld [vmem:[%s9585_s1 + $0xad0] sm:$0xf0]  ;;  %v4285_v2 = vld [vmem:[%s9585_s1 + $0xb4] sm:$0xf0] }
  0x63   :  { %3148 = vmatpush.bf16.msra.mxu3 %v5256_v14  ;;  %3110 = vmatmul.bf16.vlgmr.msra.gmra.mxu0 %v7314_v25  ;;  %v5580_v14 = vor.u32 %v6463_v9, %v5579_v8  ;;  %v6162_v8 = vld [vmem:[%s9585_s1 + $0x16c] sm:$0xf]  ;;  %v4381_v9 = vld [vmem:[%s9585_s1 + $0x174] sm:$0xf0] }
  0x64   :  { %3154 = vmatpush.bf16.msrb.mxu0 %v5436_v15  ;;  %3123 = vmatmul.bf16.vlgmr.msra.gmra.mxu1 %v7327_v30  ;;  %v5375_v15 = vld [vmem:[%s9585_s1 + $0x930] sm:$0xf]  ;;  %v4384_v22 = vor.u32 %v6162_v8, %v4381_v9  ;;  %v6535_v9 = vld [vmem:[%s9585_s1 + $0xd10] sm:$0xf0] }
  0x65   :  { %3167 = vmatpush.bf16.msrb.mxu1 %v5532_v17  ;;  %3136 = vmatmul.bf16.vlgmr.msra.gmra.mxu2 %v7325_v29  ;;  %v5471_v17 = vld [vmem:[%s9585_s1 + $0x9f0] sm:$0xf]  ;;  %v5376_v27 = vor.u32 %v6412_v16, %v5375_v15  ;;  %v4288_v16 = vor.u32 %v6138_v1, %v4285_v2 }
  0x66   :  { %3180 = vmatpush.bf16.msrb.mxu2 %v5628_v18  ;;  %3149 = vmatmul.bf16.vlgmr.msra.gmra.mxu3 %v7335_v33  ;;  %v5676_v18 = vor.u32 %v6487_v11, %v5675_v10  ;;  %v5472_v28 = vor.u32 %v6436_v19, %v5471_v17  ;;  %v654_v10 = vunpack.c.l.b16 %v45_v59  ;;  %v653_v11 = vunpack.c.h.b16 %v44_v55  ;;  %v5807_v17 = vld [vmem:[%s9585_s1 + $0xc90] sm:$0xf]  ;;  %v5783_v55 = vld [vmem:[%s9585_s1 + $0xc60] sm:$0xf] }
  0x67   :  { %3193 = vmatpush.bf16.msrb.mxu3 %v5724_v24  ;;  %v5663_v24 = vld [vmem:[%s9585_s1 + $0xb70] sm:$0xf] }
  0x68   :  { %3155 = vmatpush.bf16.msrb.mxu0 %v5424_v34  ;;  %v6409_v34 = vld [vmem:[%s9585_s1 + $0x920] sm:$0xf0]  ;;  %v5903_v19 = vld [vmem:[%s9585_s1 + $0xd50] sm:$0xf] }
  0x69   :  { %3168 = vmatpush.bf16.msrb.mxu1 %v5520_v35  ;;  %v5459_v35 = vld [vmem:[%s9585_s1 + $0x9d8] sm:$0xf]  ;;  %v5364_v47 = vor.u32 %v6409_v34, %v5363_v32  ;;  %v6159_v32 = vld [vmem:[%s9585_s1 + $0x154] sm:$0xf]  ;;  %v4369_v34 = vld [vmem:[%s9585_s1 + $0x15c] sm:$0xf0] }
  0x6a   :  { %3181 = vmatpush.bf16.msrb.mxu2 %v5616_v36  ;;  %v5664_v36 = vor.u32 %v6484_v26, %v5663_v24  ;;  %v6544_v24 = vld [vmem:[%s9585_s1 + $0xd58] sm:$0xf0]  ;;  %v6135_v26 = vld [vmem:[%s9585_s1 + $0x94] sm:$0xf] }
  0x6b   :  { %3194 = vmatpush.bf16.msrb.mxu3 %v5712_v43  ;;  %v5651_v43 = vld [vmem:[%s9585_s1 + $0xb58] sm:$0xf] }
  0x6c   :  { %3156 = vmatpush.bf16.msrb.mxu0 %v5412_v50  ;;  %v6430_v50 = vld [vmem:[%s9585_s1 + $0x9c8] sm:$0xf0] }
  0x6d   :  { %3169 = vmatpush.bf16.msrb.mxu1 %v5508_v51  ;;  %v5460_v51 = vor.u32 %v6433_v37, %v5459_v35  ;;  %v5904_v37 = vor.u32 %v6544_v24, %v5903_v19  ;;  %v5855_v19 = vld [vmem:[%s9585_s1 + $0xcf0] sm:$0xf]  ;;  %v6532_v24 = vld [vmem:[%s9585_s1 + $0xcf8] sm:$0xf0] }
  0x6e   :  { %3182 = vmatpush.bf16.msrb.mxu2 %v5604_v52  ;;  %v5556_v52 = vor.u32 %v6457_v40, %v5555_v39  ;;  %v5795_v40 = vld [vmem:[%s9585_s1 + $0xc78] sm:$0xf] }
  0x6f   :  { %3195 = vmatpush.bf16.msrb.mxu3 %v5700_v56  ;;  %v5652_v56 = vor.u32 %v6481_v45, %v5651_v43  ;;  %v6517_v43 = vld [vmem:[%s9585_s1 + $0xc80] sm:$0xf0]  ;;  %v5891_v45 = vld [vmem:[%s9585_s1 + $0xd38] sm:$0xf] }
  0x70   :  { %3157 = vmatpush.bf16.msrb.mxu0 %v5400_v62  ;;  %v5915_v62 = vld [vmem:[%s9585_s1 + $0xd68] sm:$0xf] }
  0x71   :  { %3170 = vmatpush.bf16.msrb.mxu1 %v5496_v63  ;;  %v5352_v63 = vor.u32 %v6406_v48, %v5351_v46  ;;  %v4372_v46 = vor.u32 %v6159_v32, %v4369_v34  ;;  %v6132_v48 = vld [vmem:[%s9585_s1 + $0x7c] sm:$0xf]  ;;  %v6147_v32 = vld [vmem:[%s9585_s1 + $0xf4] sm:$0xf]  ;;  %v4321_v34 = vld [vmem:[%s9585_s1 + $0xfc] sm:$0xf0] }
  0x72   :  { %3183 = vmatpush.bf16.msrb.mxu2 %v5592_v0  ;;  %v6547_v0 = vld [vmem:[%s9585_s1 + $0xd70] sm:$0xf0] }
  0x73   :  { %3196 = vmatpush.bf16.msrb.mxu3 %v5688_v5  ;;  %v5448_v5 = vor.u32 %v6430_v50, %v5447_v49  ;;  %v5916_v15 = vor.u32 %v6547_v0, %v5915_v62  ;;  %v4261_v49 = vld [vmem:[%s9585_s1 + $0x84] sm:$0xf0]  ;;  %v6156_v50 = vld [vmem:[%s9585_s1 + $0x13c] sm:$0xf]  ;;  %v6153_v62 = vld [vmem:[%s9585_s1 + $0x124] sm:$0xf] }
  0x74   :  { %3158 = vmatpush.bf16.msrb.mxu0 %v5388_v12  ;;  %v5640_v12 = vor.u32 %v6478_v58, %v5639_v57  ;;  %v4264_v54 = vor.u32 %v6132_v48, %v4261_v49  ;;  %v5879_v57 = vld [vmem:[%s9585_s1 + $0xd20] sm:$0xf]  ;;  %v6120_v48 = vld [vmem:[%s9585_s1 + $0x1c] sm:$0xf]  ;;  %v4213_v49 = vld [vmem:[%s9585_s1 + $0x24] sm:$0xf0] }
  0x75   :  { %3171 = vmatpush.bf16.msrb.mxu1 %v5484_v13  ;;  %v5820_v13 = vor.u32 %v6523_v61, %v5819_v60  ;;  %v6129_v60 = vld [vmem:[%s9585_s1 + $0x64] sm:$0xf]  ;;  %v4249_v61 = vld [vmem:[%s9585_s1 + $0x6c] sm:$0xf0] }
  0x76   :  { %3184 = vmatpush.bf16.msrb.mxu2 %v5580_v14  ;;  %v655_v14 = vunpack.c.h.b16 %v45_v59  ;;  %v6538_v59 = vld [vmem:[%s9585_s1 + $0xd28] sm:$0xf0]  ;;  %v4252_v2 = vor.u32 %v6129_v60, %v4249_v61  ;;  %v46_v60 = vld [vmem:[%s9586_s0 + $0x40] sm:$0xff] }
  0x77   :  { %3197 = vmatpush.bf16.msrb.mxu3 %v5676_v18  ;;  %v6520_v18 = vld [vmem:[%s9585_s1 + $0xc98] sm:$0xf0]  ;;  %v5880_v1 = vor.u32 %v6538_v59, %v5879_v57  ;;  %v4216_v57 = vor.u32 %v6120_v48, %v4213_v49  ;;  %v6117_v59 = vld [vmem:[%s9585_s1 + $0x4] sm:$0xf]  ;;  %v4453_v49 = vld [vmem:[%s9585_s1 + $0x204] sm:$0xf0] }
  0x78   :  { %3159 = vmatpush.bf16.msrb.mxu0 %v5376_v27  ;;  %v4273_v27 = vld [vmem:[%s9585_s1 + $0x9c] sm:$0xf0]  ;;  %v7545_v35 = vpack.c.b16 %v655_v14, %v655_v14  ;;  %v6180_v48 = vld [vmem:[%s9585_s1 + $0x1fc] sm:$0xf] }
  0x79   :  { %3172 = vmatpush.bf16.msrb.mxu1 %v5472_v28  ;;  %v7535_v28 = vpack.c.b16 %v654_v10, %v654_v10  ;;  %v4276_v39 = vor.u32 %v6135_v26, %v4273_v27  ;;  %v6126_v10 = vld [vmem:[%s9585_s1 + $0x4c] sm:$0xf]  ;;  %v6123_v26 = vld [vmem:[%s9585_s1 + $0x34] sm:$0xf]  ;;  %v4225_v27 = vld [vmem:[%s9585_s1 + $0x3c] sm:$0xf0] }
  0x7a   :  { %3185 = vmatpush.bf16.msrb.mxu2 %v5568_v31  ;;  %v7537_v31 = vpack.c.b16 %v653_v11, %v653_v11  ;;  %v4237_v11 = vld [vmem:[%s9585_s1 + $0x54] sm:$0xf0] }
  0x7b   :  { %3198 = vmatpush.bf16.msrb.mxu3 %v5664_v36  ;;  %v5808_v36 = vor.u32 %v6520_v18, %v5807_v17  ;;  %v5759_v17 = vld [vmem:[%s9585_s1 + $0xc30] sm:$0xf]  ;;  %v6508_v18 = vld [vmem:[%s9585_s1 + $0xc38] sm:$0xf0] }
  0x7c   :  { %3160 = vmatpush.bf16.msrb.mxu0 %v5364_v47  ;;  %v6541_v47 = vld [vmem:[%s9585_s1 + $0xd40] sm:$0xf0] }
  0x7d   :  { %3173 = vmatpush.bf16.msrb.mxu1 %v5460_v51  ;;  %v4357_v51 = vld [vmem:[%s9585_s1 + $0x144] sm:$0xf0]  ;;  %v5892_v53 = vor.u32 %v6541_v47, %v5891_v45  ;;  %v5843_v45 = vld [vmem:[%s9585_s1 + $0xcd8] sm:$0xf]  ;;  %v6529_v47 = vld [vmem:[%s9585_s1 + $0xce0] sm:$0xf0] }
  0x7e   :  { %3186 = vmatpush.bf16.msrb.mxu2 %v5556_v52  ;;  %v5796_v52 = vor.u32 %v6517_v43, %v5795_v40  ;;  %v4360_v58 = vor.u32 %v6156_v50, %v4357_v51  ;;  %v5747_v40 = vld [vmem:[%s9585_s1 + $0xc18] sm:$0xf]  ;;  %v6505_v43 = vld [vmem:[%s9585_s1 + $0xc20] sm:$0xf0]  ;;  %v6144_v50 = vld [vmem:[%s9585_s1 + $0xdc] sm:$0xf] }
  0x7f   :  { %3199 = vmatpush.bf16.msrb.mxu3 %v5652_v56  ;;  %v6514_v56 = vld [vmem:[%s9585_s1 + $0xc68] sm:$0xf0]  ;;  %v4309_v51 = vld [vmem:[%s9585_s1 + $0xe4] sm:$0xf0] }
  0x80   :  { %3161 = vmatpush.bf16.msrb.mxu0 %v5352_v63  ;;  %v4345_v63 = vld [vmem:[%s9585_s1 + $0x12c] sm:$0xf0]  ;;  %v5784_v0 = vor.u32 %v6514_v56, %v5783_v55  ;;  %v5831_v55 = vld [vmem:[%s9585_s1 + $0xcc0] sm:$0xf]  ;;  %v5844_v56 = vor.u32 %v6529_v47, %v5843_v45  ;;  %v4312_v61 = vor.u32 %v6144_v50, %v4309_v51  ;;  %v6204_v50 = vld [vmem:[%s9585_s1 + $0x2bc] sm:$0xf] }
  0x81   :  { %3174 = vmatpush.bf16.msrb.mxu1 %v5448_v5  ;;  %v6511_v5 = vld [vmem:[%s9585_s1 + $0xc50] sm:$0xf0]  ;;  %v4348_v8 = vor.u32 %v6153_v62, %v4345_v63  ;;  %v4201_v62 = vld [vmem:[%s9585_s1 + $0xc] sm:$0xf0]  ;;  %v6141_v63 = vld [vmem:[%s9585_s1 + $0xc4] sm:$0xf] }
  0x82   :  { %3187 = vmatpush.bf16.msrb.mxu2 %v5544_v7  ;;  %v5867_v7 = vld [vmem:[%s9585_s1 + $0xd08] sm:$0xf]  ;;  %v5772_v14 = vor.u32 %v6511_v5, %v5771_v3  ;;  %v6210_v3 = vld [vmem:[%s9585_s1 + $0x2ec] sm:$0xf] }
  0x83   :  { %3200 = vmatpush.bf16.msrb.mxu3 %v5640_v12  ;;  %3162 = vmatmul.bf16.vlgmr.msrb.gmra.mxu0 %v7524_v23  ;;  %v6150_v12 = vld [vmem:[%s9585_s1 + $0x10c] sm:$0xf] }
  0x84   :  { %3206 = vmatpush.bf16.msra.mxu0 %v5820_v13  ;;  %3175 = vmatmul.bf16.vlgmr.msrb.gmra.mxu1 %v7537_v31  ;;  %v4333_v13 = vld [vmem:[%s9585_s1 + $0x114] sm:$0xf0] }
  0x85   :  { %3219 = vmatpush.bf16.msra.mxu1 %v5916_v15  ;;  %3188 = vmatmul.bf16.vlgmr.msrb.gmra.mxu2 %v7535_v28  ;;  %v5868_v15 = vor.u32 %v6535_v9, %v5867_v7  ;;  %v4573_v7 = vld [vmem:[%s9585_s1 + $0x2f4] sm:$0xf0] }
  0x86   :  { %3232 = vmatpush.bf16.msra.mxu2 %v4288_v16  ;;  %3201 = vmatmul.bf16.vlgmr.msrb.gmra.mxu3 %v7545_v35  ;;  %v4240_v16 = vor.u32 %v6126_v10, %v4237_v11  ;;  %v4669_v9 = vld [vmem:[%s9585_s1 + $0x3b4] sm:$0xf0]  ;;  %v656_v10 = vunpack.c.l.b16 %v46_v60 }
  0x87   :  { %3245 = vmatpush.bf16.msra.mxu3 %v4384_v22  ;;  %v4336_v22 = vor.u32 %v6150_v12, %v4333_v13  ;;  %v4204_v12 = vor.u32 %v6117_v59, %v4201_v62  ;;  %v6258_v13 = vld [vmem:[%s9585_s1 + $0x46c] sm:$0xf]  ;;  %v6201_v62 = vld [vmem:[%s9585_s1 + $0x2a4] sm:$0xf] }
  0x88   :  { %3207 = vmatpush.bf16.msra.mxu0 %v5808_v36  ;;  %v5760_v36 = vor.u32 %v6508_v18, %v5759_v17  ;;  %v4576_v18 = vor.u32 %v6210_v3, %v4573_v7  ;;  %v6249_v3 = vld [vmem:[%s9585_s1 + $0x424] sm:$0xf] }
  0x89   :  { %3220 = vmatpush.bf16.msra.mxu1 %v5904_v37  ;;  %v5856_v37 = vor.u32 %v6532_v24, %v5855_v19  ;;  %v4465_v24 = vld [vmem:[%s9585_s1 + $0x21c] sm:$0xf0] }
  0x8a   :  { %3233 = vmatpush.bf16.msra.mxu2 %v4276_v39  ;;  %v4228_v39 = vor.u32 %v6123_v26, %v4225_v27  ;;  %v6207_v26 = vld [vmem:[%s9585_s1 + $0x2d4] sm:$0xf] }
  0x8b   :  { %3246 = vmatpush.bf16.msra.mxu3 %v4372_v46  ;;  %v4324_v46 = vor.u32 %v6147_v32, %v4321_v34  ;;  %v7731_v32 = vpack.c.b16 %v656_v10, %v656_v10  ;;  %v4561_v34 = vld [vmem:[%s9585_s1 + $0x2dc] sm:$0xf0] }
  0x8c   :  { %3208 = vmatpush.bf16.msra.mxu0 %v5796_v52  ;;  %v5748_v52 = vor.u32 %v6505_v43, %v5747_v40  ;;  %v6255_v40 = vld [vmem:[%s9585_s1 + $0x454] sm:$0xf]  ;;  %v4753_v43 = vld [vmem:[%s9585_s1 + $0x45c] sm:$0xf0] }
  0x8d   :  { %3221 = vmatpush.bf16.msra.mxu1 %v5892_v53  ;;  %v5735_v53 = vld [vmem:[%s9585_s1 + $0xc00] sm:$0xf]  ;;  %v4756_v51 = vor.u32 %v6255_v40, %v4753_v43 }
  0x8e   :  { %3234 = vmatpush.bf16.msra.mxu2 %v4264_v54  ;;  %v6502_v54 = vld [vmem:[%s9585_s1 + $0xc08] sm:$0xf0]  ;;  %v4513_v43 = vld [vmem:[%s9585_s1 + $0x27c] sm:$0xf0] }
  0x8f   :  { %3247 = vmatpush.bf16.msra.mxu3 %v4360_v58  ;;  %v6526_v58 = vld [vmem:[%s9585_s1 + $0xcc8] sm:$0xf0]  ;;  %v5736_v5 = vor.u32 %v6502_v54, %v5735_v53  ;;  %v6228_v53 = vld [vmem:[%s9585_s1 + $0x37c] sm:$0xf]  ;;  %v4645_v54 = vld [vmem:[%s9585_s1 + $0x384] sm:$0xf0] }
  0x90   :  { %3209 = vmatpush.bf16.msra.mxu0 %v5784_v0  ;;  %v4297_v0 = vld [vmem:[%s9585_s1 + $0xcc] sm:$0xf0]  ;;  %v5832_v11 = vor.u32 %v6526_v58, %v5831_v55  ;;  %v6252_v55 = vld [vmem:[%s9585_s1 + $0x43c] sm:$0xf]  ;;  %v4648_v59 = vor.u32 %v6228_v53, %v4645_v54 }
  0x91   :  { %3222 = vmatpush.bf16.msra.mxu1 %v5880_v1  ;;  %v6186_v1 = vld [vmem:[%s9585_s1 + $0x22c] sm:$0xf] }
  0x92   :  { %3235 = vmatpush.bf16.msra.mxu2 %v4252_v2  ;;  %v4477_v2 = vld [vmem:[%s9585_s1 + $0x234] sm:$0xf0] }
  0x93   :  { %3248 = vmatpush.bf16.msra.mxu3 %v4348_v8  ;;  %v6234_v8 = vld [vmem:[%s9585_s1 + $0x3ac] sm:$0xf]  ;;  %v4480_v17 = vor.u32 %v6186_v1, %v4477_v2  ;;  %v6225_v1 = vld [vmem:[%s9585_s1 + $0x364] sm:$0xf]  ;;  %v4633_v2 = vld [vmem:[%s9585_s1 + $0x36c] sm:$0xf0] }
  0x94   :  { %3210 = vmatpush.bf16.msra.mxu0 %v5772_v14  ;;  %v4765_v14 = vld [vmem:[%s9585_s1 + $0x474] sm:$0xf0]  ;;  %v4672_v19 = vor.u32 %v6234_v8, %v4669_v9  ;;  %v6174_v8 = vld [vmem:[%s9585_s1 + $0x1cc] sm:$0xf]  ;;  %v4636_v10 = vor.u32 %v6225_v1, %v4633_v2  ;;  %v6240_v1 = vld [vmem:[%s9585_s1 + $0x3dc] sm:$0xf] }
  0x95   :  { %3223 = vmatpush.bf16.msra.mxu1 %v5868_v15  ;;  %v657_v15 = vunpack.c.h.b16 %v46_v60  ;;  %v4768_v27 = vor.u32 %v6258_v13, %v4765_v14  ;;  %v6177_v60 = vld [vmem:[%s9585_s1 + $0x1e4] sm:$0xf]  ;;  %v623_v13 = vld [vmem:[%s9587_s2] sm:$0x7]  ;;  %v4693_v2 = vld [vmem:[%s9585_s1 + $0x3e4] sm:$0xf0] }
  0x96   :  { %3236 = vmatpush.bf16.msra.mxu2 %v4240_v16  ;;  %v4300_v16 = vor.u32 %v6141_v63, %v4297_v0  ;;  %v4537_v0 = vld [vmem:[%s9585_s1 + $0x2ac] sm:$0xf0] }
  0x97   :  { %3249 = vmatpush.bf16.msra.mxu3 %v4336_v22  ;;  %v6183_v22 = vld [vmem:[%s9585_s1 + $0x214] sm:$0xf]  ;;  %v4540_v9 = vor.u32 %v6201_v62, %v4537_v0  ;;  %v4597_v62 = vld [vmem:[%s9585_s1 + $0x324] sm:$0xf0] }
  0x98   :  { %3211 = vmatpush.bf16.msra.mxu0 %v5760_v36  ;;  %v6231_v36 = vld [vmem:[%s9585_s1 + $0x394] sm:$0xf]  ;;  %v4468_v45 = vor.u32 %v6183_v22, %v4465_v24  ;;  %v625_v24 = vperm.slane %v623_v13, 0  ;;  %v6213_v13 = vld [vmem:[%s9585_s1 + $0x304] sm:$0xf] }
  0x99   :  { %3224 = vmatpush.bf16.msra.mxu1 %v5856_v37  ;;  %v4657_v37 = vld [vmem:[%s9585_s1 + $0x39c] sm:$0xf0] }
  0x9a   :  { %3237 = vmatpush.bf16.msra.mxu2 %v4228_v39  ;;  %v7742_v39 = vpack.c.b16 %v657_v15, %v657_v15  ;;  %v4660_v47 = vor.u32 %v6231_v36, %v4657_v37  ;;  %v4525_v15 = vld [vmem:[%s9585_s1 + $0x294] sm:$0xf0]  ;;  %v4417_v36 = vld [vmem:[%s9585_s1 + $0x1bc] sm:$0xf0]  ;;  %v6195_v37 = vld [vmem:[%s9585_s1 + $0x274] sm:$0xf] }
  0x9b   :  { %3250 = vmatpush.bf16.msra.mxu3 %v4324_v46  ;;  %v4564_v46 = vor.u32 %v6207_v26, %v4561_v34  ;;  %v6171_v34 = vld [vmem:[%s9585_s1 + $0x1b4] sm:$0xf]  ;;  %v4516_v53 = vor.u32 %v6195_v37, %v4513_v43  ;;  %v5053_v37 = vld [vmem:[%s9585_s1 + $0x6b4] sm:$0xf0] }
  0x9c   :  { %3212 = vmatpush.bf16.msra.mxu0 %v5748_v52  ;;  %v4549_v52 = vld [vmem:[%s9585_s1 + $0x2c4] sm:$0xf0] }
  0x9d   :  { %3225 = vmatpush.bf16.msra.mxu1 %v5844_v56  ;;  %v4741_v56 = vld [vmem:[%s9585_s1 + $0x444] sm:$0xf0]  ;;  %v4552_v58 = vor.u32 %v6204_v50, %v4549_v52  ;;  %v4420_v50 = vor.u32 %v6171_v34, %v4417_v36  ;;  %v4957_v34 = vld [vmem:[%s9585_s1 + $0x5f4] sm:$0xf0]  ;;  %v6330_v36 = vld [vmem:[%s9585_s1 + $0x6ac] sm:$0xf] }
  0x9e   :  { %3238 = vmatpush.bf16.msra.mxu2 %v4216_v57  ;;  %v4456_v57 = vor.u32 %v6180_v48, %v4453_v49  ;;  %v4744_v63 = vor.u32 %v6252_v55, %v4741_v56  ;;  %v4705_v48 = vld [vmem:[%s9585_s1 + $0x3fc] sm:$0xf0]  ;;  %v6168_v55 = vld [vmem:[%s9585_s1 + $0x19c] sm:$0xf]  ;;  %v4405_v56 = vld [vmem:[%s9585_s1 + $0x1a4] sm:$0xf0] }
  0x9f   :  { %3251 = vmatpush.bf16.msra.mxu3 %v4312_v61  ;;  %v4441_v61 = vld [vmem:[%s9585_s1 + $0x1ec] sm:$0xf0] }
  0xa0   :  { %3213 = vmatpush.bf16.msra.mxu0 %v5736_v5  ;;  %v4729_v5 = vld [vmem:[%s9585_s1 + $0x42c] sm:$0xf0]  ;;  %v4444_v7 = vor.u32 %v6177_v60, %v4441_v61  ;;  %v4501_v60 = vld [vmem:[%s9585_s1 + $0x264] sm:$0xf0]  ;;  %v6216_v61 = vld [vmem:[%s9585_s1 + $0x31c] sm:$0xf] }
  0xa1   :  { %3226 = vmatpush.bf16.msra.mxu1 %v5832_v11  ;;  %v4429_v11 = vld [vmem:[%s9585_s1 + $0x1d4] sm:$0xf0]  ;;  %v4732_v14 = vor.u32 %v6249_v3, %v4729_v5  ;;  %v4408_v3 = vor.u32 %v6168_v55, %v4405_v56  ;;  %v6165_v5 = vld [vmem:[%s9585_s1 + $0x184] sm:$0xf]  ;;  %v4849_v55 = vld [vmem:[%s9585_s1 + $0x51c] sm:$0xf0] }
  0xa2   :  { %3239 = vmatpush.bf16.msra.mxu2 %v4204_v12  ;;  %v6198_v12 = vld [vmem:[%s9585_s1 + $0x28c] sm:$0xf]  ;;  %v4432_v22 = vor.u32 %v6174_v8, %v4429_v11  ;;  %v6189_v11 = vld [vmem:[%s9585_s1 + $0x244] sm:$0xf]  ;;  %v6303_v56 = vld [vmem:[%s9585_s1 + $0x5d4] sm:$0xf] }
  0xa3   :  { %3252 = vmatpush.bf16.msra.mxu3 %v4300_v16  ;;  %3214 = vmatmul.bf16.vlgmr.msra.gmra.mxu0 %v7731_v32  ;;  %v6222_v16 = vld [vmem:[%s9585_s1 + $0x34c] sm:$0xf]  ;;  %v4528_v26 = vor.u32 %v6198_v12, %v4525_v15  ;;  %v4489_v12 = vld [vmem:[%s9585_s1 + $0x24c] sm:$0xf0] }
  0xa4   :  { %3258 = vmatpush.bf16.msrb.mxu0 %v4480_v17  ;;  %3227 = vmatmul.bf16.vlgmr.msra.gmra.mxu1 %v7742_v39  ;;  %v4621_v17 = vld [vmem:[%s9585_s1 + $0x354] sm:$0xf0]  ;;  %v3007_v49 = vpop.f32.mrf.mxu0  ;;  %v4585_v15 = vld [vmem:[%s9585_s1 + $0x30c] sm:$0xf0]  ;;  %v4492_v43 = vor.u32 %v6189_v11, %v4489_v12  ;;  %v6348_v11 = vld [vmem:[%s9585_s1 + $0x73c] sm:$0xf] }
  0xa5   :  { %3271 = vmatpush.bf16.msrb.mxu1 %v4576_v18  ;;  %3240 = vmatmul.bf16.vlgmr.msra.gmra.mxu2 %v6962_v20  ;;  %v6246_v18 = vld [vmem:[%s9585_s1 + $0x40c] sm:$0xf]  ;;  %v3020_v52 = vpop.f32.mrf.mxu1  ;;  %v5125_v12 = vld [vmem:[%s9585_s1 + $0x744] sm:$0xf0] }
  0xa6   :  { %3284 = vmatpush.bf16.msrb.mxu2 %v4672_v19  ;;  %3253 = vmatmul.bf16.vlgmr.msra.gmra.mxu3 %v6965_v21  ;;  %v4717_v19 = vld [vmem:[%s9585_s1 + $0x414] sm:$0xf0] }
  0xa7   :  { %3297 = vmatpush.bf16.msrb.mxu3 %v4768_v27  ;;  %v4624_v27 = vor.u32 %v6222_v16, %v4621_v17  ;;  %v4720_v40 = vor.u32 %v6246_v18, %v4717_v19  ;;  %v6237_v16 = vld [vmem:[%s9585_s1 + $0x3c4] sm:$0xf]  ;;  %v4681_v17 = vld [vmem:[%s9585_s1 + $0x3cc] sm:$0xf0]  ;;  %v6282_v19 = vld [vmem:[%s9585_s1 + $0x52c] sm:$0xf] }
  0xa8   :  { %3259 = vmatpush.bf16.msrb.mxu0 %v4468_v45  ;;  %v6219_v45 = vld [vmem:[%s9585_s1 + $0x334] sm:$0xf] }
  0xa9   :  { %3272 = vmatpush.bf16.msrb.mxu1 %v4564_v46  ;;  %v4609_v46 = vld [vmem:[%s9585_s1 + $0x33c] sm:$0xf0]  ;;  %v3046_v0 = vpop.f32.mrf.mxu3 }
  0xaa   :  { %3285 = vmatpush.bf16.msrb.mxu2 %v4660_v47  ;;  %v6243_v47 = vld [vmem:[%s9585_s1 + $0x3f4] sm:$0xf]  ;;  %v4612_v54 = vor.u32 %v6219_v45, %v4609_v46  ;;  %v4588_v45 = vor.u32 %v6213_v13, %v4585_v15  ;;  %v6354_v46 = vld [vmem:[%s9585_s1 + $0x76c] sm:$0xf] }
  0xab   :  { %3298 = vmatpush.bf16.msrb.mxu3 %v4756_v51  ;;  %v3008_v51 = vadd.f32 %v3007_v49, %v625_v24  ;;  %v6306_v24 = vld [vmem:[%s9585_s1 + $0x5ec] sm:$0xf]  ;;  %v4684_v49 = vor.u32 %v6237_v16, %v4681_v17  ;;  %v6273_v16 = vld [vmem:[%s9585_s1 + $0x4e4] sm:$0xf]  ;;  %v4825_v17 = vld [vmem:[%s9585_s1 + $0x4ec] sm:$0xf0] }
  0xac   :  { %3260 = vmatpush.bf16.msrb.mxu0 %v4456_v57  ;;  %v6192_v57 = vld [vmem:[%s9585_s1 + $0x25c] sm:$0xf] }
  0xad   :  { %3273 = vmatpush.bf16.msrb.mxu1 %v4552_v58  ;;  %v3033_v58 = vpop.f32.mrf.mxu2 }
  0xae   :  { %3286 = vmatpush.bf16.msrb.mxu2 %v4648_v59  ;;  %v4708_v59 = vor.u32 %v6243_v47, %v4705_v48  ;;  %v5149_v47 = vld [vmem:[%s9585_s1 + $0x774] sm:$0xf0] }
  0xaf   :  { %3299 = vmatpush.bf16.msrb.mxu3 %v4744_v63  ;;  %v3021_v63 = vadd.f32 %v3020_v52, %v3008_v51  ;;  %v4960_v52 = vor.u32 %v6306_v24, %v4957_v34  ;;  %v4921_v24 = vld [vmem:[%s9585_s1 + $0x5ac] sm:$0xf0]  ;;  %v6345_v34 = vld [vmem:[%s9585_s1 + $0x724] sm:$0xf] }
  0xb0   :  { %3261 = vmatpush.bf16.msrb.mxu0 %v4444_v7  ;;  %v4393_v7 = vld [vmem:[%s9585_s1 + $0x18c] sm:$0xf0] }
  0xb1   :  { %3274 = vmatpush.bf16.msrb.mxu1 %v4540_v9  ;;  %v3034_v8 = vadd.f32 %v3033_v58, %v3021_v63  ;;  %v4504_v9 = vor.u32 %v6192_v57, %v4501_v60  ;;  %v3048_v51 = vpop.f32.mrf.mxu3  ;;  %v5152_v57 = vor.u32 %v6354_v46, %v5149_v47  ;;  %v4945_v58 = vld [vmem:[%s9585_s1 + $0x5dc] sm:$0xf0]  ;;  %v6270_v46 = vld [vmem:[%s9585_s1 + $0x4cc] sm:$0xf]  ;;  %v4813_v47 = vld [vmem:[%s9585_s1 + $0x4d4] sm:$0xf0] }
  0xb2   :  { %3287 = vmatpush.bf16.msrb.mxu2 %v4636_v10  ;;  %v4600_v10 = vor.u32 %v6216_v61, %v4597_v62  ;;  %v5041_v60 = vld [vmem:[%s9585_s1 + $0x69c] sm:$0xf0]  ;;  %v6351_v61 = vld [vmem:[%s9585_s1 + $0x754] sm:$0xf] }
  0xb3   :  { %3300 = vmatpush.bf16.msrb.mxu3 %v4732_v14  ;;  %v4696_v14 = vor.u32 %v6240_v1, %v4693_v2  ;;  %v7901_v18 = vadd.f32 %v3046_v0, %v3034_v8  ;;  %v5137_v62 = vld [vmem:[%s9585_s1 + $0x75c] sm:$0xf0]  ;;  %v4948_v0 = vor.u32 %v6303_v56, %v4945_v58  ;;  %v6276_v2 = vld [vmem:[%s9585_s1 + $0x4fc] sm:$0xf]  ;;  %v4933_v8 = vld [vmem:[%s9585_s1 + $0x5c4] sm:$0xf0] }
  0xb4   :  { %3262 = vmatpush.bf16.msrb.mxu0 %v4432_v22  ;;  %v4861_v22 = vld [vmem:[%s9585_s1 + $0x534] sm:$0xf0] }
  0xb5   :  { %3275 = vmatpush.bf16.msrb.mxu1 %v4528_v26  ;;  %v3009_v26 = vpop.f32.mrf.mxu0  ;;  %v3035_v48 = vpop.f32.mrf.mxu2 }
  0xb6   :  { %3288 = vmatpush.bf16.msrb.mxu2 %v4624_v27  ;;  %v4396_v27 = vor.u32 %v6165_v5, %v4393_v7  ;;  %v6300_v5 = vld [vmem:[%s9585_s1 + $0x5bc] sm:$0xf]  ;;  %v5140_v7 = vor.u32 %v6351_v61, %v5137_v62  ;;  %v6321_v26 = vld [vmem:[%s9585_s1 + $0x664] sm:$0xf]  ;;  %v6294_v48 = vld [vmem:[%s9585_s1 + $0x58c] sm:$0xf] }
  0xb7   :  { %3301 = vmatpush.bf16.msrb.mxu3 %v4720_v40  ;;  %v3022_v40 = vpop.f32.mrf.mxu1  ;;  %v4801_v61 = vld [vmem:[%s9585_s1 + $0x4bc] sm:$0xf0]  ;;  %v6291_v62 = vld [vmem:[%s9585_s1 + $0x574] sm:$0xf] }
  0xb8   :  { %3263 = vmatpush.bf16.msrb.mxu0 %v4420_v50  ;;  %v4864_v50 = vor.u32 %v6282_v19, %v4861_v22  ;;  %v6297_v19 = vld [vmem:[%s9585_s1 + $0x5a4] sm:$0xf]  ;;  %v5128_v22 = vor.u32 %v6348_v11, %v5125_v12 }
  0xb9   :  { %3276 = vmatpush.bf16.msrb.mxu1 %v4516_v53  ;;  %v5056_v53 = vor.u32 %v6330_v36, %v5053_v37  ;;  %v5113_v36 = vld [vmem:[%s9585_s1 + $0x72c] sm:$0xf0]  ;;  %v4828_v37 = vor.u32 %v6273_v16, %v4825_v17  ;;  %v4789_v16 = vld [vmem:[%s9585_s1 + $0x4a4] sm:$0xf0]  ;;  %v6288_v17 = vld [vmem:[%s9585_s1 + $0x55c] sm:$0xf] }
  0xba   :  { %3289 = vmatpush.bf16.msrb.mxu2 %v4612_v54  ;;  %v6279_v54 = vld [vmem:[%s9585_s1 + $0x514] sm:$0xf]  ;;  %v5116_v51 = vor.u32 %v6345_v34, %v5113_v36  ;;  %v6336_v34 = vld [vmem:[%s9585_s1 + $0x6dc] sm:$0xf]  ;;  %v5077_v36 = vld [vmem:[%s9585_s1 + $0x6e4] sm:$0xf0] }
  0xbb   :  { %3302 = vmatpush.bf16.msrb.mxu3 %v4708_v59  ;;  %v6327_v59 = vld [vmem:[%s9585_s1 + $0x694] sm:$0xf]  ;;  %v4852_v63 = vor.u32 %v6279_v54, %v4849_v55  ;;  %v5005_v54 = vld [vmem:[%s9585_s1 + $0x654] sm:$0xf0]  ;;  %v6342_v55 = vld [vmem:[%s9585_s1 + $0x70c] sm:$0xf] }
  0xbc   :  { %3264 = vmatpush.bf16.msrb.mxu0 %v4408_v3  ;;  %v5044_v1 = vor.u32 %v6327_v59, %v5041_v60  ;;  %v4837_v3 = vld [vmem:[%s9585_s1 + $0x504] sm:$0xf0]  ;;  %v6267_v60 = vld [vmem:[%s9585_s1 + $0x4b4] sm:$0xf] }
  0xbd   :  { %3277 = vmatpush.bf16.msrb.mxu1 %v4504_v9  ;;  %v6324_v9 = vld [vmem:[%s9585_s1 + $0x67c] sm:$0xf]  ;;  %v4840_v13 = vor.u32 %v6276_v2, %v4837_v3  ;;  %v6315_v2 = vld [vmem:[%s9585_s1 + $0x634] sm:$0xf]  ;;  %v4993_v3 = vld [vmem:[%s9585_s1 + $0x63c] sm:$0xf0] }
  0xbe   :  { %3290 = vmatpush.bf16.msrb.mxu2 %v4600_v10  ;;  %v5029_v10 = vld [vmem:[%s9585_s1 + $0x684] sm:$0xf0] }
  0xbf   :  { %3303 = vmatpush.bf16.msrb.mxu3 %v4696_v14  ;;  %v4936_v14 = vor.u32 %v6300_v5, %v4933_v8  ;;  %v5032_v15 = vor.u32 %v6324_v9, %v5029_v10  ;;  %v6339_v8 = vld [vmem:[%s9585_s1 + $0x6f4] sm:$0xf]  ;;  %v5089_v9 = vld [vmem:[%s9585_s1 + $0x6fc] sm:$0xf0]  ;;  %v4804_v10 = vor.u32 %v6267_v60, %v4801_v61  ;;  %v6426_v60 = vld [vmem:[%s9585_s1 + $0x9ac] sm:$0xf] }
  0xc0   :  { %3265 = vmatpush.bf16.msrb.mxu0 %v4396_v27  ;;  %v5017_v27 = vld [vmem:[%s9585_s1 + $0x66c] sm:$0xf0]  ;;  %v3059_v40 = vpop.f32.mrf.mxu0  ;;  %v5437_v61 = vld [vmem:[%s9585_s1 + $0x9b4] sm:$0xf0] }
  0xc1   :  { %3278 = vmatpush.bf16.msrb.mxu1 %v4492_v43  ;;  %v4924_v43 = vor.u32 %v6297_v19, %v4921_v24  ;;  %v4885_v24 = vld [vmem:[%s9585_s1 + $0x564] sm:$0xf0] }
  0xc2   :  { %3291 = vmatpush.bf16.msrb.mxu2 %v4588_v45  ;;  %v5020_v45 = vor.u32 %v6321_v26, %v5017_v27  ;;  %v6312_v26 = vld [vmem:[%s9585_s1 + $0x61c] sm:$0xf]  ;;  %v4981_v27 = vld [vmem:[%s9585_s1 + $0x624] sm:$0xf0] }
  0xc3   :  { %3304 = vmatpush.bf16.msrb.mxu3 %v4684_v49  ;;  %3266 = vmatmul.bf16.vlgmr.msrb.gmra.mxu0 %v6930_v4  ;;  %v3060_v49 = vadd.f32 %v3059_v40, %v7901_v18  ;;  %v5101_v18 = vld [vmem:[%s9585_s1 + $0x714] sm:$0xf0]  ;;  %v6261_v40 = vld [vmem:[%s9585_s1 + $0x484] sm:$0xf] }
  0xc4   :  { %3310 = vmatpush.bf16.msra.mxu0 %v4864_v50  ;;  %3279 = vmatmul.bf16.vlgmr.msrb.gmra.mxu1 %v6935_v6  ;;  %v3072_v50 = vpop.f32.mrf.mxu1 }
  0xc5   :  { %3323 = vmatpush.bf16.msra.mxu1 %v4960_v52  ;;  %3292 = vmatmul.bf16.vlgmr.msrb.gmra.mxu2 %v7121_v41  ;;  %v4909_v52 = vld [vmem:[%s9585_s1 + $0x594] sm:$0xf0]  ;;  %v3073_v56 = vadd.f32 %v3072_v50, %v3060_v49  ;;  %v6309_v49 = vld [vmem:[%s9585_s1 + $0x604] sm:$0xf] }
  0xc6   :  { %3336 = vmatpush.bf16.msra.mxu2 %v5056_v53  ;;  %3305 = vmatmul.bf16.vlgmr.msrb.gmra.mxu3 %v7125_v44  ;;  %v6318_v53 = vld [vmem:[%s9585_s1 + $0x64c] sm:$0xf]  ;;  %v4912_v58 = vor.u32 %v6294_v48, %v4909_v52  ;;  %v4873_v48 = vld [vmem:[%s9585_s1 + $0x54c] sm:$0xf0] }
  0xc7   :  { %3349 = vmatpush.bf16.msra.mxu3 %v5152_v57  ;;  %v4816_v57 = vor.u32 %v6270_v46, %v4813_v47  ;;  %v5008_v59 = vor.u32 %v6318_v53, %v5005_v54  ;;  %v4984_v46 = vor.u32 %v6312_v26, %v4981_v27  ;;  %v6285_v47 = vld [vmem:[%s9585_s1 + $0x544] sm:$0xf]  ;;  %v4969_v52 = vld [vmem:[%s9585_s1 + $0x60c] sm:$0xf0]  ;;  %v6372_v26 = vld [vmem:[%s9585_s1 + $0x7fc] sm:$0xf] }
  0xc8   :  { %3311 = vmatpush.bf16.msra.mxu0 %v4852_v63  ;;  %v3085_v63 = vpop.f32.mrf.mxu2  ;;  %v3061_v12 = vpop.f32.mrf.mxu0  ;;  %v6333_v53 = vld [vmem:[%s9585_s1 + $0x6c4] sm:$0xf]  ;;  %v5065_v54 = vld [vmem:[%s9585_s1 + $0x6cc] sm:$0xf0]  ;;  %v5221_v27 = vld [vmem:[%s9585_s1 + $0x804] sm:$0xf0] }
  0xc9   :  { %3324 = vmatpush.bf16.msra.mxu1 %v4948_v0  ;;  %v5104_v0 = vor.u32 %v6342_v55, %v5101_v18  ;;  %v3086_v5 = vadd.f32 %v3085_v63, %v3073_v56  ;;  %v6378_v18 = vld [vmem:[%s9585_s1 + $0x82c] sm:$0xf]  ;;  %v5245_v56 = vld [vmem:[%s9585_s1 + $0x834] sm:$0xf0]  ;;  %v4972_v63 = vor.u32 %v6309_v49, %v4969_v52  ;;  %v6393_v52 = vld [vmem:[%s9585_s1 + $0x8a4] sm:$0xf] }
  0xca   :  { %3337 = vmatpush.bf16.msra.mxu2 %v5044_v1  ;;  %v4897_v1 = vld [vmem:[%s9585_s1 + $0x57c] sm:$0xf0] }
  0xcb   :  { %3350 = vmatpush.bf16.msra.mxu3 %v5140_v7  ;;  %v3098_v7 = vpop.f32.mrf.mxu3 }
  0xcc   :  { %3312 = vmatpush.bf16.msra.mxu0 %v4840_v13  ;;  %v8052_v11 = vadd.f32 %v3098_v7, %v3086_v5  ;;  %v4900_v13 = vor.u32 %v6291_v62, %v4897_v1  ;;  %v3074_v19 = vpop.f32.mrf.mxu1  ;;  %v4876_v62 = vor.u32 %v6285_v47, %v4873_v48  ;;  %v5533_v1 = vld [vmem:[%s9585_s1 + $0xa74] sm:$0xf0]  ;;  %v5440_v7 = vor.u32 %v6426_v60, %v5437_v61 }
  0xcd   :  { %3325 = vmatpush.bf16.msra.mxu1 %v4936_v14  ;;  %v4996_v14 = vor.u32 %v6315_v2, %v4993_v3  ;;  %v5068_v2 = vor.u32 %v6333_v53, %v5065_v54  ;;  %v5248_v3 = vor.u32 %v6378_v18, %v5245_v56  ;;  %v5224_v47 = vor.u32 %v6372_v26, %v5221_v27  ;;  %v5305_v54 = vld [vmem:[%s9585_s1 + $0x8ac] sm:$0xf0]  ;;  %v6411_v26 = vld [vmem:[%s9585_s1 + $0x934] sm:$0xf]  ;;  %v5377_v27 = vld [vmem:[%s9585_s1 + $0x93c] sm:$0xf0] }
  0xce   :  { %3338 = vmatpush.bf16.msra.mxu2 %v5032_v15  ;;  %v6264_v15 = vld [vmem:[%s9585_s1 + $0x49c] sm:$0xf]  ;;  %v5401_v18 = vld [vmem:[%s9585_s1 + $0x96c] sm:$0xf0] }
  0xcf   :  { %3351 = vmatpush.bf16.msra.mxu3 %v5128_v22  ;;  %v5092_v22 = vor.u32 %v6339_v8, %v5089_v9  ;;  %v6375_v8 = vld [vmem:[%s9585_s1 + $0x814] sm:$0xf]  ;;  %v5233_v9 = vld [vmem:[%s9585_s1 + $0x81c] sm:$0xf0] }
  0xd0   :  { %3313 = vmatpush.bf16.msra.mxu0 %v4828_v37  ;;  %v4792_v37 = vor.u32 %v6264_v15, %v4789_v16  ;;  %v3087_v50 = vpop.f32.mrf.mxu2  ;;  %v5425_v15 = vld [vmem:[%s9585_s1 + $0x99c] sm:$0xf0]  ;;  %v6447_v16 = vld [vmem:[%s9585_s1 + $0xa54] sm:$0xf]  ;;  %v5236_v19 = vor.u32 %v6375_v8, %v5233_v9  ;;  %v5389_v8 = vld [vmem:[%s9585_s1 + $0x954] sm:$0xf0] }
  0xd1   :  { %3326 = vmatpush.bf16.msra.mxu1 %v4924_v43  ;;  %v4777_v43 = vld [vmem:[%s9585_s1 + $0x48c] sm:$0xf0]  ;;  %v6369_v50 = vld [vmem:[%s9585_s1 + $0x7e4] sm:$0xf]  ;;  %v6438_v9 = vld [vmem:[%s9585_s1 + $0xa0c] sm:$0xf] }
  0xd2   :  { %3339 = vmatpush.bf16.msra.mxu2 %v5020_v45  ;;  %v4888_v45 = vor.u32 %v6288_v17, %v4885_v24  ;;  %v5521_v17 = vld [vmem:[%s9585_s1 + $0xa5c] sm:$0xf0] }
  0xd3   :  { %3352 = vmatpush.bf16.msra.mxu3 %v5116_v51  ;;  %v5080_v51 = vor.u32 %v6336_v34, %v5077_v36  ;;  %v3100_v55 = vpop.f32.mrf.mxu3  ;;  %v6396_v34 = vld [vmem:[%s9585_s1 + $0x8bc] sm:$0xf]  ;;  %v5524_v36 = vor.u32 %v6447_v16, %v5521_v17  ;;  %v5185_v16 = vld [vmem:[%s9585_s1 + $0x7bc] sm:$0xf0]  ;;  %v6387_v17 = vld [vmem:[%s9585_s1 + $0x874] sm:$0xf] }
  0xd4   :  { %3314 = vmatpush.bf16.msra.mxu0 %v4816_v57  ;;  %v6402_v57 = vld [vmem:[%s9585_s1 + $0x8ec] sm:$0xf]  ;;  %v6417_v55 = vld [vmem:[%s9585_s1 + $0x964] sm:$0xf] }
  0xd5   :  { %3327 = vmatpush.bf16.msra.mxu1 %v4912_v58  ;;  %v4780_v58 = vor.u32 %v6261_v40, %v4777_v43  ;;  %v6420_v40 = vld [vmem:[%s9585_s1 + $0x97c] sm:$0xf]  ;;  %v5413_v43 = vld [vmem:[%s9585_s1 + $0x984] sm:$0xf0] }
  0xd6   :  { %3340 = vmatpush.bf16.msra.mxu2 %v5008_v59  ;;  %v5341_v59 = vld [vmem:[%s9585_s1 + $0x8f4] sm:$0xf0]  ;;  %v5416_v49 = vor.u32 %v6420_v40, %v5413_v43  ;;  %v5473_v40 = vld [vmem:[%s9585_s1 + $0x9fc] sm:$0xf0] }
  0xd7   :  { %3353 = vmatpush.bf16.msra.mxu3 %v5104_v0  ;;  %v6450_v0 = vld [vmem:[%s9585_s1 + $0xa6c] sm:$0xf]  ;;  %v5344_v5 = vor.u32 %v6402_v57, %v5341_v59  ;;  %v6441_v57 = vld [vmem:[%s9585_s1 + $0xa24] sm:$0xf] }
  0xd8   :  { %3315 = vmatpush.bf16.msra.mxu0 %v4804_v10  ;;  %v6399_v10 = vld [vmem:[%s9585_s1 + $0x8d4] sm:$0xf]  ;;  %v5536_v12 = vor.u32 %v6450_v0, %v5533_v1  ;;  %v6366_v0 = vld [vmem:[%s9585_s1 + $0x7cc] sm:$0xf]  ;;  %v5197_v1 = vld [vmem:[%s9585_s1 + $0x7d4] sm:$0xf0] }
  0xd9   :  { %3328 = vmatpush.bf16.msra.mxu1 %v4900_v13  ;;  %v5329_v13 = vld [vmem:[%s9585_s1 + $0x8dc] sm:$0xf0] }
  0xda   :  { %3341 = vmatpush.bf16.msra.mxu2 %v4996_v14  ;;  %v6423_v14 = vld [vmem:[%s9585_s1 + $0x994] sm:$0xf] }
  0xdb   :  { %3354 = vmatpush.bf16.msra.mxu3 %v5092_v22  ;;  %v5332_v22 = vor.u32 %v6399_v10, %v5329_v13  ;;  %v5428_v24 = vor.u32 %v6423_v14, %v5425_v15  ;;  %v5485_v10 = vld [vmem:[%s9585_s1 + $0xa14] sm:$0xf0]  ;;  %v6363_v15 = vld [vmem:[%s9585_s1 + $0x7b4] sm:$0xf] }
  0xdc   :  { %3316 = vmatpush.bf16.msra.mxu0 %v4792_v37  ;;  %v5317_v37 = vld [vmem:[%s9585_s1 + $0x8c4] sm:$0xf0] }
  0xdd   :  { %3329 = vmatpush.bf16.msra.mxu1 %v4888_v45  ;;  %v6444_v45 = vld [vmem:[%s9585_s1 + $0xa3c] sm:$0xf]  ;;  %v5320_v48 = vor.u32 %v6396_v34, %v5317_v37  ;;  %v6435_v37 = vld [vmem:[%s9585_s1 + $0x9f4] sm:$0xf] }
  0xde   :  { %3342 = vmatpush.bf16.msra.mxu2 %v4984_v46  ;;  %v5509_v46 = vld [vmem:[%s9585_s1 + $0xa44] sm:$0xf0] }
  0xdf   :  { %3355 = vmatpush.bf16.msra.mxu3 %v5080_v51  ;;  %v5209_v51 = vld [vmem:[%s9585_s1 + $0x7ec] sm:$0xf0]  ;;  %v5512_v53 = vor.u32 %v6444_v45, %v5509_v46  ;;  %v5188_v45 = vor.u32 %v6363_v15, %v5185_v16  ;;  %v6522_v15 = vld [vmem:[%s9585_s1 + $0xcac] sm:$0xf]  ;;  %v5821_v16 = vld [vmem:[%s9585_s1 + $0xcb4] sm:$0xf0] }
  0xe0   :  { %3317 = vmatpush.bf16.msra.mxu0 %v4780_v58  ;;  %v3111_v56 = vpop.f32.mrf.mxu0  ;;  %v5497_v58 = vld [vmem:[%s9585_s1 + $0xa2c] sm:$0xf0]  ;;  %v5212_v60 = vor.u32 %v6369_v50, %v5209_v51  ;;  %v6360_v50 = vld [vmem:[%s9585_s1 + $0x79c] sm:$0xf]  ;;  %v5173_v51 = vld [vmem:[%s9585_s1 + $0x7a4] sm:$0xf0] }
  0xe1   :  { %3330 = vmatpush.bf16.msra.mxu1 %v4876_v62  ;;  %v3112_v59 = vadd.f32 %v3111_v56, %v8052_v11  ;;  %v3124_v61 = vpop.f32.mrf.mxu1  ;;  %v5308_v62 = vor.u32 %v6393_v52, %v5305_v54  ;;  %v5500_v11 = vor.u32 %v6441_v57, %v5497_v58  ;;  %v6384_v52 = vld [vmem:[%s9585_s1 + $0x85c] sm:$0xf]  ;;  %v5269_v54 = vld [vmem:[%s9585_s1 + $0x864] sm:$0xf0]  ;;  %v5176_v58 = vor.u32 %v6360_v50, %v5173_v51  ;;  %v6543_v50 = vld [vmem:[%s9585_s1 + $0xd54] sm:$0xf] }
  0xe2   :  { %3343 = vmatpush.bf16.msra.mxu2 %v4972_v63  ;;  %v5404_v63 = vor.u32 %v6417_v55, %v5401_v18  ;;  %v6408_v55 = vld [vmem:[%s9585_s1 + $0x91c] sm:$0xf]  ;;  %v5365_v18 = vld [vmem:[%s9585_s1 + $0x924] sm:$0xf0]  ;;  %v5905_v51 = vld [vmem:[%s9585_s1 + $0xd5c] sm:$0xf0] }
  0xe3   :  { %3356 = vmatpush.bf16.msra.mxu3 %v5068_v2  ;;  %3318 = vmatmul.bf16.vlgmr.msra.gmra.mxu0 %v7113_v38  ;;  %v6390_v2 = vld [vmem:[%s9585_s1 + $0x88c] sm:$0xf]  ;;  %v6432_v56 = vld [vmem:[%s9585_s1 + $0x9dc] sm:$0xf]  ;;  %v5461_v57 = vld [vmem:[%s9585_s1 + $0x9e4] sm:$0xf0] }
  0xe4   :  { %3362 = vmatpush.bf16.msrb.mxu0 %v5248_v3  ;;  %3331 = vmatmul.bf16.vlgmr.msra.gmra.mxu1 %v7123_v42  ;;  %v3125_v3 = vadd.f32 %v3124_v61, %v3112_v59  ;;  %v6357_v59 = vld [vmem:[%s9585_s1 + $0x784] sm:$0xf]  ;;  %v5272_v61 = vor.u32 %v6384_v52, %v5269_v54 }
  0xe5   :  { %3375 = vmatpush.bf16.msrb.mxu1 %v5344_v5  ;;  %3344 = vmatmul.bf16.vlgmr.msra.gmra.mxu2 %v7314_v25  ;;  %v5293_v5 = vld [vmem:[%s9585_s1 + $0x894] sm:$0xf0] }
  0xe6   :  { %3388 = vmatpush.bf16.msrb.mxu2 %v5440_v7  ;;  %3357 = vmatmul.bf16.vlgmr.msra.gmra.mxu3 %v7327_v30  ;;  %v6414_v7 = vld [vmem:[%s9585_s1 + $0x94c] sm:$0xf]  ;;  %v5296_v13 = vor.u32 %v6390_v2, %v5293_v5  ;;  %v5464_v2 = vor.u32 %v6432_v56, %v5461_v57  ;;  %v5449_v5 = vld [vmem:[%s9585_s1 + $0x9cc] sm:$0xf0]  ;;  %v6492_v56 = vld [vmem:[%s9585_s1 + $0xbbc] sm:$0xf]  ;;  %v5908_v57 = vor.u32 %v6543_v50, %v5905_v51 }
  0xe7   :  { %3401 = vmatpush.bf16.msrb.mxu3 %v5536_v12  ;;  %v5200_v12 = vor.u32 %v6366_v0, %v5197_v1  ;;  %v5392_v14 = vor.u32 %v6414_v7, %v5389_v8  ;;  %v5257_v0 = vld [vmem:[%s9585_s1 + $0x84c] sm:$0xf0]  ;;  %v6405_v1 = vld [vmem:[%s9585_s1 + $0x904] sm:$0xf]  ;;  %v6474_v8 = vld [vmem:[%s9585_s1 + $0xb2c] sm:$0xf] }
  0xe8   :  { %3363 = vmatpush.bf16.msrb.mxu0 %v5236_v19  ;;  %v5488_v19 = vor.u32 %v6438_v9, %v5485_v10  ;;  %v3113_v43 = vpop.f32.mrf.mxu0  ;;  %v5629_v9 = vld [vmem:[%s9585_s1 + $0xb34] sm:$0xf0]  ;;  %v6498_v10 = vld [vmem:[%s9585_s1 + $0xbec] sm:$0xf]  ;;  %v5569_v50 = vld [vmem:[%s9585_s1 + $0xabc] sm:$0xf0] }
  0xe9   :  { %3376 = vmatpush.bf16.msrb.mxu1 %v5332_v22  ;;  %v3137_v22 = vpop.f32.mrf.mxu2  ;;  %v3126_v46 = vpop.f32.mrf.mxu1  ;;  %v6495_v43 = vld [vmem:[%s9585_s1 + $0xbd4] sm:$0xf] }
  0xea   :  { %3389 = vmatpush.bf16.msrb.mxu2 %v5428_v24  ;;  %v5281_v24 = vld [vmem:[%s9585_s1 + $0x87c] sm:$0xf0]  ;;  %v3138_v34 = vadd.f32 %v3137_v22, %v3125_v3  ;;  %v6429_v3 = vld [vmem:[%s9585_s1 + $0x9c4] sm:$0xf]  ;;  %v6546_v22 = vld [vmem:[%s9585_s1 + $0xd6c] sm:$0xf] }
  0xeb   :  { %3402 = vmatpush.bf16.msrb.mxu3 %v5524_v36  ;;  %v3150_v36 = vpop.f32.mrf.mxu3  ;;  %v5713_v46 = vld [vmem:[%s9585_s1 + $0xbdc] sm:$0xf0]  ;;  %v6483_v51 = vld [vmem:[%s9585_s1 + $0xb74] sm:$0xf] }
  0xec   :  { %3364 = vmatpush.bf16.msrb.mxu0 %v5224_v47  ;;  %v8251_v47 = vadd.f32 %v3150_v36, %v3138_v34  ;;  %v5824_v36 = vor.u32 %v6522_v15, %v5821_v16 }
  0xed   :  { %3377 = vmatpush.bf16.msrb.mxu1 %v5320_v48  ;;  %v5284_v48 = vor.u32 %v6387_v17, %v5281_v24  ;;  %v5917_v24 = vld [vmem:[%s9585_s1 + $0xd74] sm:$0xf0] }
  0xee   :  { %3390 = vmatpush.bf16.msrb.mxu2 %v5416_v49  ;;  %v5380_v49 = vor.u32 %v6411_v26, %v5377_v27  ;;  %v5452_v26 = vor.u32 %v6429_v3, %v5449_v5  ;;  %v5632_v27 = vor.u32 %v6474_v8, %v5629_v9  ;;  %v6489_v3 = vld [vmem:[%s9585_s1 + $0xba4] sm:$0xf]  ;;  %v5785_v9 = vld [vmem:[%s9585_s1 + $0xc6c] sm:$0xf0] }
  0xef   :  { %3403 = vmatpush.bf16.msrb.mxu3 %v5512_v53  ;;  %v5476_v53 = vor.u32 %v6435_v37, %v5473_v40  ;;  %v6471_v37 = vld [vmem:[%s9585_s1 + $0xb14] sm:$0xf]  ;;  %v5617_v40 = vld [vmem:[%s9585_s1 + $0xb1c] sm:$0xf0]  ;;  %v6513_v8 = vld [vmem:[%s9585_s1 + $0xc64] sm:$0xf] }
  0xf0   :  { %3365 = vmatpush.bf16.msrb.mxu0 %v5212_v60  ;;  %v5161_v60 = vld [vmem:[%s9585_s1 + $0x78c] sm:$0xf0]  ;;  %v5620_v52 = vor.u32 %v6471_v37, %v5617_v40  ;;  %v5773_v37 = vld [vmem:[%s9585_s1 + $0xc54] sm:$0xf0]  ;;  %v6534_v40 = vld [vmem:[%s9585_s1 + $0xd0c] sm:$0xf] }
  0xf1   :  { %3378 = vmatpush.bf16.msrb.mxu1 %v5308_v62  ;;  %v5368_v62 = vor.u32 %v6408_v55, %v5365_v18  ;;  %v3139_v7 = vpop.f32.mrf.mxu2  ;;  %v6468_v55 = vld [vmem:[%s9585_s1 + $0xafc] sm:$0xf]  ;;  %v5605_v18 = vld [vmem:[%s9585_s1 + $0xb04] sm:$0xf0] }
  0xf2   :  { %3391 = vmatpush.bf16.msrb.mxu2 %v5404_v63  ;;  %v6381_v63 = vld [vmem:[%s9585_s1 + $0x844] sm:$0xf]  ;;  %v5689_v7 = vld [vmem:[%s9585_s1 + $0xbac] sm:$0xf0] }
  0xf3   :  { %3404 = vmatpush.bf16.msrb.mxu3 %v5500_v11  ;;  %v5353_v11 = vld [vmem:[%s9585_s1 + $0x90c] sm:$0xf0]  ;;  %v5260_v17 = vor.u32 %v6381_v63, %v5257_v0  ;;  %v5608_v63 = vor.u32 %v6468_v55, %v5605_v18  ;;  %v6507_v55 = vld [vmem:[%s9585_s1 + $0xc34] sm:$0xf]  ;;  %v5761_v18 = vld [vmem:[%s9585_s1 + $0xc3c] sm:$0xf0] }
  0xf4   :  { %3366 = vmatpush.bf16.msrb.mxu0 %v5200_v12  ;;  %v3152_v12 = vpop.f32.mrf.mxu3 }
  0xf5   :  { %3379 = vmatpush.bf16.msrb.mxu1 %v5296_v13  ;;  %v5164_v13 = vor.u32 %v6357_v59, %v5161_v60  ;;  %v6516_v59 = vld [vmem:[%s9585_s1 + $0xc7c] sm:$0xf]  ;;  %v5797_v60 = vld [vmem:[%s9585_s1 + $0xc84] sm:$0xf0]  ;;  %v6537_v12 = vld [vmem:[%s9585_s1 + $0xd24] sm:$0xf] }
  0xf6   :  { %3392 = vmatpush.bf16.msrb.mxu2 %v5392_v14  ;;  %v5725_v14 = vld [vmem:[%s9585_s1 + $0xbf4] sm:$0xf0] }
  0xf7   :  { %3405 = vmatpush.bf16.msrb.mxu3 %v5488_v19  ;;  %v5356_v19 = vor.u32 %v6405_v1, %v5353_v11  ;;  %v5728_v34 = vor.u32 %v6498_v10, %v5725_v14  ;;  %v5800_v1 = vor.u32 %v6516_v59, %v5797_v60  ;;  %v5593_v11 = vld [vmem:[%s9585_s1 + $0xaec] sm:$0xf0]  ;;  %v5857_v59 = vld [vmem:[%s9585_s1 + $0xcfc] sm:$0xf0] }
  0xf8   :  { %3367 = vmatpush.bf16.msrb.mxu0 %v5188_v45  ;;  %v5920_v45 = vor.u32 %v6546_v22, %v5917_v24  ;;  %v6462_v22 = vld [vmem:[%s9585_s1 + $0xacc] sm:$0xf]  ;;  %v5581_v24 = vld [vmem:[%s9585_s1 + $0xad4] sm:$0xf0] }
  0xf9   :  { %3380 = vmatpush.bf16.msrb.mxu1 %v5284_v48  ;;  %v6519_v48 = vld [vmem:[%s9585_s1 + $0xc94] sm:$0xf] }
  0xfa   :  { %3393 = vmatpush.bf16.msrb.mxu2 %v5380_v49  ;;  %v5809_v49 = vld [vmem:[%s9585_s1 + $0xc9c] sm:$0xf0] }
  0xfb   :  { %3406 = vmatpush.bf16.msrb.mxu3 %v5476_v53  ;;  %v5716_v53 = vor.u32 %v6495_v43, %v5713_v46  ;;  %v5812_v54 = vor.u32 %v6519_v48, %v5809_v49  ;;  %v5869_v43 = vld [vmem:[%s9585_s1 + $0xd14] sm:$0xf0]  ;;  %v6459_v49 = vld [vmem:[%s9585_s1 + $0xab4] sm:$0xf] }
  0xfc   :  { %3368 = vmatpush.bf16.msrb.mxu0 %v5176_v58  ;;  %v5701_v58 = vld [vmem:[%s9585_s1 + $0xbc4] sm:$0xf0] }
  0xfd   :  { %3381 = vmatpush.bf16.msrb.mxu1 %v5272_v61  ;;  %v6540_v61 = vld [vmem:[%s9585_s1 + $0xd3c] sm:$0xf]  ;;  %v5704_v0 = vor.u32 %v6492_v56, %v5701_v58  ;;  %v6531_v58 = vld [vmem:[%s9585_s1 + $0xcf4] sm:$0xf] }
  0xfe   :  { %3394 = vmatpush.bf16.msrb.mxu2 %v5368_v62  ;;  %v5893_v62 = vld [vmem:[%s9585_s1 + $0xd44] sm:$0xf0] }
  0xff   :  { %3407 = vmatpush.bf16.msrb.mxu3 %v5464_v2  ;;  %v6465_v2 = vld [vmem:[%s9585_s1 + $0xae4] sm:$0xf]  ;;  %v5896_v5 = vor.u32 %v6540_v61, %v5893_v62  ;;  %v5572_v61 = vor.u32 %v6459_v49, %v5569_v50  ;;  %v4483_v49 = vld [vmem:[%s9585_s1 + $0x230] sm:$0xf]  ;;  %v6188_v50 = vld [vmem:[%s9585_s1 + $0x238] sm:$0xf0] }
 0x100   :  { %3369 = vmatpush.bf16.msrb.mxu0 %v5164_v13  ;;  %v3163_v10 = vpop.f32.mrf.mxu0  ;;  %v5881_v13 = vld [vmem:[%s9585_s1 + $0xd2c] sm:$0xf0]  ;;  %v5596_v15 = vor.u32 %v6465_v2, %v5593_v11  ;;  %v6456_v2 = vld [vmem:[%s9585_s1 + $0xa9c] sm:$0xf]  ;;  %v5557_v11 = vld [vmem:[%s9585_s1 + $0xaa4] sm:$0xf0] }
 0x101   :  { %3382 = vmatpush.bf16.msrb.mxu1 %v5260_v17  ;;  %v3164_v14 = vadd.f32 %v3163_v10, %v8251_v47  ;;  %v3176_v16 = vpop.f32.mrf.mxu1  ;;  %v5692_v17 = vor.u32 %v6489_v3, %v5689_v7  ;;  %v5884_v47 = vor.u32 %v6537_v12, %v5881_v13  ;;  %v6480_v3 = vld [vmem:[%s9585_s1 + $0xb5c] sm:$0xf]  ;;  %v5653_v7 = vld [vmem:[%s9585_s1 + $0xb64] sm:$0xf0]  ;;  %v5560_v13 = vor.u32 %v6456_v2, %v5557_v11  ;;  %v4567_v2 = vld [vmem:[%s9585_s1 + $0x2d8] sm:$0xf] }
 0x102   :  { %3395 = vmatpush.bf16.msrb.mxu2 %v5356_v19  ;;  %v5788_v19 = vor.u32 %v6513_v8, %v5785_v9  ;;  %v6504_v8 = vld [vmem:[%s9585_s1 + $0xc1c] sm:$0xf]  ;;  %v5749_v9 = vld [vmem:[%s9585_s1 + $0xc24] sm:$0xf0]  ;;  %v6209_v11 = vld [vmem:[%s9585_s1 + $0x2e0] sm:$0xf0] }
 0x103   :  { %3408 = vmatpush.bf16.msrb.mxu3 %v5452_v26  ;;  %3370 = vmatmul.bf16.vlgmr.msrb.gmra.mxu0 %v7325_v29  ;;  %v6486_v26 = vld [vmem:[%s9585_s1 + $0xb8c] sm:$0xf]  ;;  %v6528_v10 = vld [vmem:[%s9585_s1 + $0xcdc] sm:$0xf]  ;;  %v5845_v12 = vld [vmem:[%s9585_s1 + $0xce4] sm:$0xf0] }
 0x104   :  { %3414 = vmatpush.bf16.msra.mxu0 %v5632_v27  ;;  %3383 = vmatmul.bf16.vlgmr.msrb.gmra.mxu1 %v7335_v33  ;;  %v3177_v27 = vadd.f32 %v3176_v16, %v3164_v14  ;;  %v6453_v14 = vld [vmem:[%s9585_s1 + $0xa84] sm:$0xf]  ;;  %v5656_v16 = vor.u32 %v6480_v3, %v5653_v7 }
 0x105   :  { %3427 = vmatpush.bf16.msra.mxu1 %v5728_v34  ;;  %3396 = vmatmul.bf16.vlgmr.msrb.gmra.mxu2 %v7524_v23  ;;  %v5677_v34 = vld [vmem:[%s9585_s1 + $0xb94] sm:$0xf0] }
 0x106   :  { %3440 = vmatpush.bf16.msra.mxu2 %v5824_v36  ;;  %3409 = vmatmul.bf16.vlgmr.msrb.gmra.mxu3 %v7537_v31  ;;  %v6510_v36 = vld [vmem:[%s9585_s1 + $0xc4c] sm:$0xf]  ;;  %v5680_v46 = vor.u32 %v6486_v26, %v5677_v34  ;;  %v5848_v26 = vor.u32 %v6528_v10, %v5845_v12  ;;  %v5833_v34 = vld [vmem:[%s9585_s1 + $0xccc] sm:$0xf0]  ;;  %v4363_v10 = vld [vmem:[%s9585_s1 + $0x140] sm:$0xf]  ;;  %v4568_v12 = vor.u32 %v6209_v11, %v4567_v2 }
 0x107   :  { %3453 = vmatpush.bf16.msra.mxu3 %v5920_v45  ;;  %v5584_v45 = vor.u32 %v6462_v22, %v5581_v24  ;;  %v5776_v48 = vor.u32 %v6510_v36, %v5773_v37  ;;  %v5641_v22 = vld [vmem:[%s9585_s1 + $0xb4c] sm:$0xf0]  ;;  %v6501_v24 = vld [vmem:[%s9585_s1 + $0xc04] sm:$0xf]  ;;  %v4327_v11 = vld [vmem:[%s9585_s1 + $0xf8] sm:$0xf] }
 0x108   :  { %3415 = vmatpush.bf16.msra.mxu0 %v5620_v52  ;;  %v5872_v52 = vor.u32 %v6534_v40, %v5869_v43  ;;  %v3165_v60 = vpop.f32.mrf.mxu0  ;;  %v4291_v37 = vld [vmem:[%s9585_s1 + $0xb0] sm:$0xf]  ;;  %v6140_v40 = vld [vmem:[%s9585_s1 + $0xb8] sm:$0xf0]  ;;  %v6125_v2 = vld [vmem:[%s9585_s1 + $0x40] sm:$0xf0] }
 0x109   :  { %3428 = vmatpush.bf16.msra.mxu1 %v5716_v53  ;;  %v3189_v53 = vpop.f32.mrf.mxu2  ;;  %v3178_v62 = vpop.f32.mrf.mxu1  ;;  %v4387_v43 = vld [vmem:[%s9585_s1 + $0x170] sm:$0xf]  ;;  %v4375_v60 = vld [vmem:[%s9585_s1 + $0x158] sm:$0xf] }
 0x10a   :  { %3441 = vmatpush.bf16.msra.mxu2 %v5812_v54  ;;  %v5665_v54 = vld [vmem:[%s9585_s1 + $0xb7c] sm:$0xf0]  ;;  %v3190_v56 = vadd.f32 %v3189_v53, %v3177_v27  ;;  %v6525_v27 = vld [vmem:[%s9585_s1 + $0xcc4] sm:$0xf]  ;;  %v4579_v53 = vld [vmem:[%s9585_s1 + $0x2f0] sm:$0xf] }
 0x10b   :  { %3454 = vmatpush.bf16.msra.mxu3 %v5908_v57  ;;  %v3202_v57 = vpop.f32.mrf.mxu3  ;;  %v6161_v62 = vld [vmem:[%s9585_s1 + $0x160] sm:$0xf0] }
 0x10c   :  { %3416 = vmatpush.bf16.msra.mxu0 %v5608_v63  ;;  %v8450_v63 = vadd.f32 %v3202_v57, %v3190_v56  ;;  %v4484_v57 = vor.u32 %v6188_v50, %v4483_v49 }
 0x10d   :  { %3429 = vmatpush.bf16.msra.mxu1 %v5704_v0  ;;  %v5668_v0 = vor.u32 %v6483_v51, %v5665_v54  ;;  %v6212_v54 = vld [vmem:[%s9585_s1 + $0x2f8] sm:$0xf0] }
 0x10e   :  { %3442 = vmatpush.bf16.msra.mxu2 %v5800_v1  ;;  %v5764_v1 = vor.u32 %v6507_v55, %v5761_v18  ;;  %v5836_v55 = vor.u32 %v6525_v27, %v5833_v34  ;;  %v4292_v18 = vor.u32 %v6140_v40, %v4291_v37  ;;  %v4351_v27 = vld [vmem:[%s9585_s1 + $0x128] sm:$0xf]  ;;  %v6179_v40 = vld [vmem:[%s9585_s1 + $0x1f0] sm:$0xf0] }
 0x10f   :  { %3455 = vmatpush.bf16.msra.mxu3 %v5896_v5  ;;  %v5860_v5 = vor.u32 %v6531_v58, %v5857_v59  ;;  %v4279_v58 = vld [vmem:[%s9585_s1 + $0x98] sm:$0xf]  ;;  %v6137_v59 = vld [vmem:[%s9585_s1 + $0xa0] sm:$0xf0]  ;;  %v4447_v37 = vld [vmem:[%s9585_s1 + $0x1e8] sm:$0xf] }
 0x110   :  { %3417 = vmatpush.bf16.msra.mxu0 %v5596_v15  ;;  %v5545_v15 = vld [vmem:[%s9585_s1 + $0xa8c] sm:$0xf0]  ;;  %v4280_v3 = vor.u32 %v6137_v59, %v4279_v58  ;;  %v6176_v58 = vld [vmem:[%s9585_s1 + $0x1d8] sm:$0xf0] }
 0x111   :  { %3430 = vmatpush.bf16.msra.mxu1 %v5692_v17  ;;  %v5752_v17 = vor.u32 %v6504_v8, %v5749_v9  ;;  %v3191_v36 = vpop.f32.mrf.mxu2  ;;  %v4267_v8 = vld [vmem:[%s9585_s1 + $0x80] sm:$0xf]  ;;  %v6134_v9 = vld [vmem:[%s9585_s1 + $0x88] sm:$0xf0]  ;;  %v4531_v59 = vld [vmem:[%s9585_s1 + $0x290] sm:$0xf] }
 0x112   :  { %3443 = vmatpush.bf16.msra.mxu2 %v5788_v19  ;;  %v6477_v19 = vld [vmem:[%s9585_s1 + $0xb44] sm:$0xf]  ;;  %v6155_v36 = vld [vmem:[%s9585_s1 + $0x130] sm:$0xf0] }
 0x113   :  { %3456 = vmatpush.bf16.msra.mxu3 %v5884_v47  ;;  %v5737_v47 = vld [vmem:[%s9585_s1 + $0xc0c] sm:$0xf0]  ;;  %v5644_v51 = vor.u32 %v6477_v19, %v5641_v22  ;;  %v4268_v19 = vor.u32 %v6134_v9, %v4267_v8  ;;  %v6173_v8 = vld [vmem:[%s9585_s1 + $0x1c0] sm:$0xf0]  ;;  %v4519_v9 = vld [vmem:[%s9585_s1 + $0x278] sm:$0xf] }
 0x114   :  { %3418 = vmatpush.bf16.msra.mxu0 %v5584_v45  ;;  %v3204_v45 = vpop.f32.mrf.mxu3 }
 0x115   :  { %3431 = vmatpush.bf16.msra.mxu1 %v5680_v46  ;;  %v5548_v46 = vor.u32 %v6453_v14, %v5545_v15  ;;  %v4459_v14 = vld [vmem:[%s9585_s1 + $0x200] sm:$0xf]  ;;  %v6182_v15 = vld [vmem:[%s9585_s1 + $0x208] sm:$0xf0]  ;;  %v4543_v45 = vld [vmem:[%s9585_s1 + $0x2a8] sm:$0xf] }
 0x116   :  { %3444 = vmatpush.bf16.msra.mxu2 %v5776_v48  ;;  %v6164_v48 = vld [vmem:[%s9585_s1 + $0x178] sm:$0xf0] }
 0x117   :  { %3457 = vmatpush.bf16.msra.mxu3 %v5872_v52  ;;  %v5740_v52 = vor.u32 %v6501_v24, %v5737_v47  ;;  %v4388_v56 = vor.u32 %v6164_v48, %v4387_v43  ;;  %v4460_v24 = vor.u32 %v6182_v15, %v4459_v14  ;;  %v6131_v47 = vld [vmem:[%s9585_s1 + $0x70] sm:$0xf0]  ;;  %v6601_v15 = vld [vmem:[%s9587_s2] sm:$0x7] }
 0x118   :  { %3419 = vmatpush.bf16.msra.mxu0 %v5572_v61  ;;  %v4580_v61 = vor.u32 %v6212_v54, %v4579_v53  ;;  %v4243_v53 = vld [vmem:[%s9585_s1 + $0x50] sm:$0xf]  ;;  %v6128_v54 = vld [vmem:[%s9585_s1 + $0x58] sm:$0xf0] }
 0x119   :  { %3432 = vmatpush.bf16.msra.mxu1 %v5668_v0  ;;  %v4471_v0 = vld [vmem:[%s9585_s1 + $0x218] sm:$0xf] }
 0x11a   :  { %3445 = vmatpush.bf16.msra.mxu2 %v5764_v1  ;;  %v6185_v1 = vld [vmem:[%s9585_s1 + $0x220] sm:$0xf0] }
 0x11b   :  { %3458 = vmatpush.bf16.msra.mxu3 %v5860_v5  ;;  %v4376_v5 = vor.u32 %v6161_v62, %v4375_v60  ;;  %v4472_v7 = vor.u32 %v6185_v1, %v4471_v0  ;;  %v6200_v60 = vld [vmem:[%s9585_s1 + $0x298] sm:$0xf0]  ;;  %v4231_v1 = vld [vmem:[%s9585_s1 + $0x38] sm:$0xf] }
 0x11c   :  { %3420 = vmatpush.bf16.msra.mxu0 %v5560_v13  ;;  %v6158_v13 = vld [vmem:[%s9585_s1 + $0x148] sm:$0xf0] }
 0x11d   :  { %3433 = vmatpush.bf16.msra.mxu1 %v5656_v16  ;;  %v4555_v16 = vld [vmem:[%s9585_s1 + $0x2c0] sm:$0xf]  ;;  %v4364_v22 = vor.u32 %v6158_v13, %v4363_v10  ;;  %v6197_v10 = vld [vmem:[%s9585_s1 + $0x280] sm:$0xf0]  ;;  %v4232_v13 = vor.u32 %v6125_v2, %v4231_v1  ;;  %v6260_v1 = vld [vmem:[%s9585_s1 + $0x478] sm:$0xf0] }
 0x11e   :  { %3446 = vmatpush.bf16.msra.mxu2 %v5752_v17  ;;  %v6206_v17 = vld [vmem:[%s9585_s1 + $0x2c8] sm:$0xf0]  ;;  %v4867_v2 = vld [vmem:[%s9585_s1 + $0x530] sm:$0xf] }
 0x11f   :  { %3459 = vmatpush.bf16.msra.mxu3 %v5848_v26  ;;  %v4255_v26 = vld [vmem:[%s9585_s1 + $0x68] sm:$0xf]  ;;  %v4556_v34 = vor.u32 %v6206_v17, %v4555_v16  ;;  %v626_v16 = vperm.slane %v6601_v15, 1 }
 0x120   :  { %3421 = vmatpush.bf16.msra.mxu0 %v5548_v46  ;;  %v3215_v43 = vpop.f32.mrf.mxu0  ;;  %v6203_v46 = vld [vmem:[%s9585_s1 + $0x2b0] sm:$0xf0]  ;;  %v4256_v49 = vor.u32 %v6131_v47, %v4255_v26  ;;  %v6122_v26 = vld [vmem:[%s9585_s1 + $0x28] sm:$0xf0]  ;;  %v4315_v47 = vld [vmem:[%s9585_s1 + $0xe0] sm:$0xf] }
 0x121   :  { %3434 = vmatpush.bf16.msra.mxu1 %v5644_v51  ;;  %v3216_v48 = vadd.f32 %v3215_v43, %v8450_v63  ;;  %v3228_v50 = vpop.f32.mrf.mxu1  ;;  %v4352_v51 = vor.u32 %v6155_v36, %v4351_v27  ;;  %v4544_v63 = vor.u32 %v6203_v46, %v4543_v45  ;;  %v6146_v36 = vld [vmem:[%s9585_s1 + $0xe8] sm:$0xf0]  ;;  %v4507_v45 = vld [vmem:[%s9585_s1 + $0x260] sm:$0xf] }
 0x122   :  { %3447 = vmatpush.bf16.msra.mxu2 %v5740_v52  ;;  %v4448_v52 = vor.u32 %v6179_v40, %v4447_v37  ;;  %v4411_v37 = vld [vmem:[%s9585_s1 + $0x1a0] sm:$0xf]  ;;  %v6170_v40 = vld [vmem:[%s9585_s1 + $0x1a8] sm:$0xf0] }
 0x123   :  { %3460 = vmatpush.bf16.msra.mxu3 %v5836_v55  ;;  %3422 = vmatmul.bf16.vlgmr.msra.gmra.mxu0 %v7535_v28  ;;  %v4339_v55 = vld [vmem:[%s9585_s1 + $0x110] sm:$0xf]  ;;  %v6194_v46 = vld [vmem:[%s9585_s1 + $0x268] sm:$0xf0] }
 0x124   :  { %3466 = vmatpush.bf16.msrb.mxu0 %v4292_v18  ;;  %3435 = vmatmul.bf16.vlgmr.msra.gmra.mxu1 %v7545_v35  ;;  %v8610_v18 = vadd.f32 %v3228_v50, %v3216_v48  ;;  %v6119_v50 = vld [vmem:[%s9585_s1 + $0x10] sm:$0xf0] }
 0x125   :  { %3479 = vmatpush.bf16.msrb.mxu1 %v4388_v56  ;;  %3448 = vmatmul.bf16.vlgmr.msra.gmra.mxu2 %v7731_v32  ;;  %v6152_v56 = vld [vmem:[%s9585_s1 + $0x118] sm:$0xf0] }
 0x126   :  { %3492 = vmatpush.bf16.msrb.mxu2 %v4484_v57  ;;  %3461 = vmatmul.bf16.vlgmr.msra.gmra.mxu3 %v7742_v39  ;;  %v4435_v57 = vld [vmem:[%s9585_s1 + $0x1d0] sm:$0xf]  ;;  %v4340_v62 = vor.u32 %v6152_v56, %v4339_v55  ;;  %v6143_v55 = vld [vmem:[%s9585_s1 + $0xd0] sm:$0xf0]  ;;  %v4508_v56 = vor.u32 %v6194_v46, %v4507_v45  ;;  %v6230_v45 = vld [vmem:[%s9585_s1 + $0x388] sm:$0xf0] }
 0x127   :  { %3505 = vmatpush.bf16.msrb.mxu3 %v4580_v61  ;;  %v4244_v61 = vor.u32 %v6128_v54, %v4243_v53  ;;  %v4436_v0 = vor.u32 %v6176_v58, %v4435_v57  ;;  %v4412_v53 = vor.u32 %v6170_v40, %v4411_v37  ;;  %v4303_v54 = vld [vmem:[%s9585_s1 + $0xc8] sm:$0xf]  ;;  %v6167_v57 = vld [vmem:[%s9585_s1 + $0x190] sm:$0xf0]  ;;  %v4747_v46 = vld [vmem:[%s9585_s1 + $0x440] sm:$0xf] }
 0x128   :  { %3467 = vmatpush.bf16.msrb.mxu0 %v4280_v3  ;;  %v4532_v3 = vor.u32 %v6200_v60, %v4531_v59  ;;  %v3241_v17 = vpop.f32.mrf.mxu2  ;;  %v4495_v58 = vld [vmem:[%s9585_s1 + $0x248] sm:$0xf]  ;;  %v6191_v59 = vld [vmem:[%s9585_s1 + $0x250] sm:$0xf0]  ;;  %v4675_v60 = vld [vmem:[%s9585_s1 + $0x3b0] sm:$0xf] }
 0x129   :  { %3480 = vmatpush.bf16.msrb.mxu1 %v4376_v5  ;;  %v6149_v5 = vld [vmem:[%s9585_s1 + $0x100] sm:$0xf0]  ;;  %v3230_v14 = vpop.f32.mrf.mxu1  ;;  %v3254_v27 = vpop.f32.mrf.mxu3  ;;  %v3242_v43 = vadd.f32 %v3241_v17, %v626_v16  ;;  %v4663_v16 = vld [vmem:[%s9585_s1 + $0x398] sm:$0xf] }
 0x12a   :  { %3493 = vmatpush.bf16.msrb.mxu2 %v4472_v7  ;;  %v4423_v7 = vld [vmem:[%s9585_s1 + $0x1b8] sm:$0xf]  ;;  %v6233_v17 = vld [vmem:[%s9585_s1 + $0x3a0] sm:$0xf0] }
 0x12b   :  { %3506 = vmatpush.bf16.msrb.mxu3 %v4568_v12  ;;  %v3217_v12 = vpop.f32.mrf.mxu0 }
 0x12c   :  { %3468 = vmatpush.bf16.msrb.mxu0 %v4268_v19  ;;  %v4328_v19 = vor.u32 %v6149_v5, %v4327_v11  ;;  %v6284_v11 = vld [vmem:[%s9585_s1 + $0x538] sm:$0xf0]  ;;  %v4304_v5 = vor.u32 %v6143_v55, %v4303_v54  ;;  %v4496_v12 = vor.u32 %v6191_v59, %v4495_v58  ;;  %v6302_v54 = vld [vmem:[%s9585_s1 + $0x5c8] sm:$0xf0]  ;;  %v4831_v58 = vld [vmem:[%s9585_s1 + $0x4e8] sm:$0xf] }
 0x12d   :  { %3481 = vmatpush.bf16.msrb.mxu1 %v4364_v22  ;;  %v4424_v22 = vor.u32 %v6173_v8, %v4423_v7  ;;  %v4963_v8 = vld [vmem:[%s9585_s1 + $0x5f0] sm:$0xf]  ;;  %v4868_v15 = vor.u32 %v6284_v11, %v4867_v2  ;;  %v6275_v59 = vld [vmem:[%s9585_s1 + $0x4f0] sm:$0xf0] }
 0x12e   :  { %3494 = vmatpush.bf16.msrb.mxu2 %v4460_v24  ;;  %v4219_v24 = vld [vmem:[%s9585_s1 + $0x20] sm:$0xf]  ;;  %v4832_v2 = vor.u32 %v6275_v59, %v4831_v58  ;;  %v4627_v11 = vld [vmem:[%s9585_s1 + $0x350] sm:$0xf]  ;;  %v6290_v58 = vld [vmem:[%s9585_s1 + $0x568] sm:$0xf0] }
 0x12f   :  { %3507 = vmatpush.bf16.msrb.mxu3 %v4556_v34  ;;  %v4520_v34 = vor.u32 %v6197_v10, %v4519_v9  ;;  %v4220_v48 = vor.u32 %v6122_v26, %v4219_v24  ;;  %v6308_v9 = vld [vmem:[%s9585_s1 + $0x5f8] sm:$0xf0]  ;;  %v6257_v24 = vld [vmem:[%s9585_s1 + $0x460] sm:$0xf0]  ;;  %v4855_v26 = vld [vmem:[%s9585_s1 + $0x518] sm:$0xf] }
 0x130   :  { %3469 = vmatpush.bf16.msrb.mxu0 %v4256_v49  ;;  %v4207_v49 = vld [vmem:[%s9585_s1 + $0x8] sm:$0xf] }
 0x131   :  { %3482 = vmatpush.bf16.msrb.mxu1 %v4352_v51  ;;  %v8684_v51 = vadd.f32 %v3254_v27, %v3242_v43  ;;  %v3256_v10 = vpop.f32.mrf.mxu3  ;;  %v4951_v27 = vld [vmem:[%s9585_s1 + $0x5d8] sm:$0xf]  ;;  %v4651_v43 = vld [vmem:[%s9585_s1 + $0x380] sm:$0xf] }
 0x132   :  { %3495 = vmatpush.bf16.msrb.mxu2 %v4448_v52  ;;  %v4316_v52 = vor.u32 %v6146_v36, %v4315_v47  ;;  %v6281_v47 = vld [vmem:[%s9585_s1 + $0x520] sm:$0xf0]  ;;  %v4664_v36 = vor.u32 %v6233_v17, %v4663_v16  ;;  %v4652_v55 = vor.u32 %v6230_v45, %v4651_v43  ;;  %v6248_v10 = vld [vmem:[%s9585_s1 + $0x418] sm:$0xf0]  ;;  %v4903_v45 = vld [vmem:[%s9585_s1 + $0x578] sm:$0xf] }
 0x133   :  { %3508 = vmatpush.bf16.msrb.mxu3 %v4544_v63  ;;  %v4399_v63 = vld [vmem:[%s9585_s1 + $0x188] sm:$0xf]  ;;  %v4856_v40 = vor.u32 %v6281_v47, %v4855_v26  ;;  %v4711_v26 = vld [vmem:[%s9585_s1 + $0x3f8] sm:$0xf] }
 0x134   :  { %3470 = vmatpush.bf16.msrb.mxu0 %v4244_v61  ;;  %v6236_v61 = vld [vmem:[%s9585_s1 + $0x3b8] sm:$0xf0]  ;;  %v4400_v7 = vor.u32 %v6167_v57, %v4399_v63  ;;  %v6227_v57 = vld [vmem:[%s9585_s1 + $0x370] sm:$0xf0] }
 0x135   :  { %3483 = vmatpush.bf16.msrb.mxu1 %v4340_v62  ;;  %v4771_v62 = vld [vmem:[%s9585_s1 + $0x470] sm:$0xf] }
 0x136   :  { %3496 = vmatpush.bf16.msrb.mxu2 %v4436_v0  ;;  %v4208_v0 = vor.u32 %v6119_v50, %v4207_v49  ;;  %v4772_v14 = vor.u32 %v6260_v1, %v4771_v62  ;;  %v6254_v49 = vld [vmem:[%s9585_s1 + $0x448] sm:$0xf0]  ;;  %v4843_v50 = vld [vmem:[%s9585_s1 + $0x500] sm:$0xf] }
 0x137   :  { %3509 = vmatpush.bf16.msrb.mxu3 %v4532_v3  ;;  %v3243_v3 = vpop.f32.mrf.mxu2  ;;  %v4748_v63 = vor.u32 %v6254_v49, %v4747_v46  ;;  %v6293_v46 = vld [vmem:[%s9585_s1 + $0x580] sm:$0xf0] }
 0x138   :  { %3471 = vmatpush.bf16.msrb.mxu0 %v4232_v13  ;;  %v4676_v13 = vor.u32 %v6236_v61, %v4675_v60  ;;  %v4927_v60 = vld [vmem:[%s9585_s1 + $0x5a8] sm:$0xf]  ;;  %v6299_v61 = vld [vmem:[%s9585_s1 + $0x5b0] sm:$0xf0]  ;;  %v6224_v3 = vld [vmem:[%s9585_s1 + $0x358] sm:$0xf0] }
 0x139   :  { %3484 = vmatpush.bf16.msrb.mxu1 %v4328_v19  ;;  %v4759_v19 = vld [vmem:[%s9585_s1 + $0x458] sm:$0xf]  ;;  %v4628_v16 = vor.u32 %v6224_v3, %v4627_v11  ;;  %v4783_v11 = vld [vmem:[%s9585_s1 + $0x488] sm:$0xf] }
 0x13a   :  { %3497 = vmatpush.bf16.msrb.mxu2 %v4424_v22  ;;  %v4964_v22 = vor.u32 %v6308_v9, %v4963_v8  ;;  %v4760_v37 = vor.u32 %v6257_v24, %v4759_v19  ;;  %v4928_v9 = vor.u32 %v6299_v61, %v4927_v60  ;;  %v6221_v24 = vld [vmem:[%s9585_s1 + $0x340] sm:$0xf0]  ;;  %v4591_v60 = vld [vmem:[%s9585_s1 + $0x308] sm:$0xf]  ;;  %v6215_v61 = vld [vmem:[%s9585_s1 + $0x310] sm:$0xf0] }
 0x13b   :  { %3510 = vmatpush.bf16.msrb.mxu3 %v4520_v34  ;;  %v6305_v34 = vld [vmem:[%s9585_s1 + $0x5e0] sm:$0xf0] }
 0x13c   :  { %3472 = vmatpush.bf16.msrb.mxu0 %v4220_v48  ;;  %v4952_v48 = vor.u32 %v6305_v34, %v4951_v27  ;;  %v6245_v34 = vld [vmem:[%s9585_s1 + $0x400] sm:$0xf0] }
 0x13d   :  { %3485 = vmatpush.bf16.msrb.mxu1 %v4316_v52  ;;  %v6278_v52 = vld [vmem:[%s9585_s1 + $0x508] sm:$0xf0] }
 0x13e   :  { %3498 = vmatpush.bf16.msrb.mxu2 %v4412_v53  ;;  %v4939_v53 = vld [vmem:[%s9585_s1 + $0x5c0] sm:$0xf] }
 0x13f   :  { %3511 = vmatpush.bf16.msrb.mxu3 %v4508_v56  ;;  %v4639_v56 = vld [vmem:[%s9585_s1 + $0x368] sm:$0xf] }
 0x140   :  { %3473 = vmatpush.bf16.msrb.mxu0 %v4208_v0  ;;  %v4640_v62 = vor.u32 %v6227_v57, %v4639_v56  ;;  %v3267_v0 = vpop.f32.mrf.mxu0  ;;  %v4904_v56 = vor.u32 %v6293_v46, %v4903_v45  ;;  %v6242_v57 = vld [vmem:[%s9585_s1 + $0x3e8] sm:$0xf0]  ;;  %v6353_v46 = vld [vmem:[%s9585_s1 + $0x760] sm:$0xf0] }
 0x141   :  { %3486 = vmatpush.bf16.msrb.mxu1 %v4304_v5  ;;  %v4723_v5 = vld [vmem:[%s9585_s1 + $0x410] sm:$0xf]  ;;  %v3280_v8 = vpop.f32.mrf.mxu1 }
 0x142   :  { %3499 = vmatpush.bf16.msrb.mxu2 %v4400_v7  ;;  %v3268_v7 = vadd.f32 %v3267_v0, %v8684_v51  ;;  %v6296_v51 = vld [vmem:[%s9585_s1 + $0x598] sm:$0xf0]  ;;  %v4724_v17 = vor.u32 %v6248_v10, %v4723_v5 }
 0x143   :  { %3512 = vmatpush.bf16.msrb.mxu3 %v4496_v12  ;;  %3474 = vmatmul.bf16.vlgmr.msrb.gmra.mxu0 %v6962_v20  ;;  %v4940_v20 = vor.u32 %v6302_v54, %v4939_v53  ;;  %v4819_v12 = vld [vmem:[%s9585_s1 + $0x4d0] sm:$0xf]  ;;  %v4603_v54 = vld [vmem:[%s9585_s1 + $0x320] sm:$0xf] }
 0x144   :  { %3518 = vmatpush.bf16.msra.mxu0 %v4676_v13  ;;  %3487 = vmatmul.bf16.vlgmr.msrb.gmra.mxu1 %v6965_v21  ;;  %v6251_v21 = vld [vmem:[%s9585_s1 + $0x430] sm:$0xf0]  ;;  %v6272_v13 = vld [vmem:[%s9585_s1 + $0x4d8] sm:$0xf0] }
 0x145   :  { %3531 = vmatpush.bf16.msra.mxu1 %v4772_v14  ;;  %3500 = vmatmul.bf16.vlgmr.msrb.gmra.mxu2 %v6930_v4  ;;  %v4844_v4 = vor.u32 %v6278_v52, %v4843_v50  ;;  %v4915_v14 = vld [vmem:[%s9585_s1 + $0x590] sm:$0xf]  ;;  %v4820_v19 = vor.u32 %v6272_v13, %v4819_v12  ;;  %v4712_v52 = vor.u32 %v6245_v34, %v4711_v26  ;;  %v6332_v13 = vld [vmem:[%s9585_s1 + $0x6b8] sm:$0xf0] }
 0x146   :  { %3544 = vmatpush.bf16.msra.mxu2 %v4868_v15  ;;  %3513 = vmatmul.bf16.vlgmr.msrb.gmra.mxu3 %v6935_v6  ;;  %v4735_v6 = vld [vmem:[%s9585_s1 + $0x428] sm:$0xf]  ;;  %v3281_v15 = vadd.f32 %v3280_v8, %v3268_v7  ;;  %v4916_v27 = vor.u32 %v6296_v51, %v4915_v14  ;;  %v6263_v7 = vld [vmem:[%s9585_s1 + $0x490] sm:$0xf0]  ;;  %v5059_v12 = vld [vmem:[%s9585_s1 + $0x6b0] sm:$0xf]  ;;  %v4592_v51 = vor.u32 %v6215_v61, %v4591_v60 }
 0x147   :  { %3557 = vmatpush.bf16.msra.mxu3 %v4964_v22  ;;  %v4736_v1 = vor.u32 %v6251_v21, %v4735_v6  ;;  %v4615_v22 = vld [vmem:[%s9585_s1 + $0x338] sm:$0xf]  ;;  %v4795_v6 = vld [vmem:[%s9585_s1 + $0x4a0] sm:$0xf]  ;;  %v4879_v8 = vld [vmem:[%s9585_s1 + $0x548] sm:$0xf] }
 0x148   :  { %3519 = vmatpush.bf16.msra.mxu0 %v4664_v36  ;;  %v3293_v47 = vpop.f32.mrf.mxu2  ;;  %v4807_v36 = vld [vmem:[%s9585_s1 + $0x4b8] sm:$0xf]  ;;  %v3269_v50 = vpop.f32.mrf.mxu0  ;;  %v4891_v21 = vld [vmem:[%s9585_s1 + $0x560] sm:$0xf]  ;;  %v5155_v14 = vld [vmem:[%s9585_s1 + $0x770] sm:$0xf] }
 0x149   :  { %3532 = vmatpush.bf16.msra.mxu1 %v4760_v37  ;;  %v6269_v37 = vld [vmem:[%s9585_s1 + $0x4c0] sm:$0xf0]  ;;  %v3306_v43 = vpop.f32.mrf.mxu3  ;;  %v4892_v5 = vor.u32 %v6290_v58, %v4891_v21  ;;  %v6404_v26 = vld [vmem:[%s9585_s1 + $0x8f8] sm:$0xf0]  ;;  %v5227_v21 = vld [vmem:[%s9585_s1 + $0x800] sm:$0xf] }
 0x14a   :  { %3545 = vmatpush.bf16.msra.mxu2 %v4856_v40  ;;  %v3294_v40 = vadd.f32 %v3293_v47, %v3281_v15  ;;  %v4808_v53 = vor.u32 %v6269_v37, %v4807_v36  ;;  %v6356_v15 = vld [vmem:[%s9585_s1 + $0x778] sm:$0xf0]  ;;  %v5047_v37 = vld [vmem:[%s9585_s1 + $0x698] sm:$0xf]  ;;  %v6377_v50 = vld [vmem:[%s9585_s1 + $0x820] sm:$0xf0] }
 0x14b   :  { %3558 = vmatpush.bf16.msra.mxu3 %v4952_v48  ;;  %v4616_v48 = vor.u32 %v6221_v24, %v4615_v22  ;;  %v4784_v22 = vor.u32 %v6263_v7, %v4783_v11  ;;  %v5347_v24 = vld [vmem:[%s9585_s1 + $0x8f0] sm:$0xf]  ;;  %v5156_v34 = vor.u32 %v6356_v15, %v5155_v14  ;;  %v6374_v58 = vld [vmem:[%s9585_s1 + $0x808] sm:$0xf0]  ;;  %v6371_v11 = vld [vmem:[%s9585_s1 + $0x7f0] sm:$0xf0] }
 0x14c   :  { %3520 = vmatpush.bf16.msra.mxu0 %v4652_v55  ;;  %v8853_v49 = vadd.f32 %v3306_v43, %v3294_v40  ;;  %v6218_v55 = vld [vmem:[%s9585_s1 + $0x328] sm:$0xf0]  ;;  %v6329_v40 = vld [vmem:[%s9585_s1 + $0x6a0] sm:$0xf0]  ;;  %v5143_v43 = vld [vmem:[%s9585_s1 + $0x758] sm:$0xf]  ;;  %v5348_v45 = vor.u32 %v6404_v26, %v5347_v24 }
 0x14d   :  { %3533 = vmatpush.bf16.msra.mxu1 %v4748_v63  ;;  %v4699_v63 = vld [vmem:[%s9585_s1 + $0x3e0] sm:$0xf]  ;;  %v4604_v59 = vor.u32 %v6218_v55, %v4603_v54  ;;  %v5048_v54 = vor.u32 %v6329_v40, %v5047_v37  ;;  %v5144_v55 = vor.u32 %v6353_v46, %v5143_v43  ;;  %v5107_v14 = vld [vmem:[%s9585_s1 + $0x710] sm:$0xf]  ;;  %v6392_v24 = vld [vmem:[%s9585_s1 + $0x898] sm:$0xf0] }
 0x14e   :  { %3546 = vmatpush.bf16.msra.mxu2 %v4844_v4  ;;  %v3282_v4 = vpop.f32.mrf.mxu1  ;;  %v5095_v37 = vld [vmem:[%s9585_s1 + $0x6f8] sm:$0xf] }
 0x14f   :  { %3559 = vmatpush.bf16.msra.mxu3 %v4940_v20  ;;  %v6266_v20 = vld [vmem:[%s9585_s1 + $0x4a8] sm:$0xf0]  ;;  %v5035_v4 = vld [vmem:[%s9585_s1 + $0x680] sm:$0xf]  ;;  %v5191_v46 = vld [vmem:[%s9585_s1 + $0x7b8] sm:$0xf] }
 0x150   :  { %3521 = vmatpush.bf16.msra.mxu0 %v4640_v62  ;;  %v4700_v62 = vor.u32 %v6242_v57, %v4699_v63  ;;  %v4796_v0 = vor.u32 %v6266_v20, %v4795_v6  ;;  %v3295_v3 = vpop.f32.mrf.mxu2  ;;  %v5131_v57 = vld [vmem:[%s9585_s1 + $0x740] sm:$0xf]  ;;  %v6350_v20 = vld [vmem:[%s9585_s1 + $0x748] sm:$0xf0] }
 0x151   :  { %3534 = vmatpush.bf16.msra.mxu1 %v4736_v1  ;;  %v4687_v1 = vld [vmem:[%s9585_s1 + $0x3c8] sm:$0xf]  ;;  %v3308_v10 = vpop.f32.mrf.mxu3  ;;  %v5132_v61 = vor.u32 %v6350_v20, %v5131_v57  ;;  %v6314_v57 = vld [vmem:[%s9585_s1 + $0x628] sm:$0xf0] }
 0x152   :  { %3547 = vmatpush.bf16.msra.mxu2 %v4832_v2  ;;  %v6239_v2 = vld [vmem:[%s9585_s1 + $0x3d0] sm:$0xf0]  ;;  %v5311_v3 = vld [vmem:[%s9585_s1 + $0x8a8] sm:$0xf] }
 0x153   :  { %3560 = vmatpush.bf16.msra.mxu3 %v4928_v9  ;;  %v6287_v9 = vld [vmem:[%s9585_s1 + $0x550] sm:$0xf0] }
 0x154   :  { %3522 = vmatpush.bf16.msra.mxu0 %v4628_v16  ;;  %v5251_v16 = vld [vmem:[%s9585_s1 + $0x830] sm:$0xf]  ;;  %v4880_v47 = vor.u32 %v6287_v9, %v4879_v8 }
 0x155   :  { %3535 = vmatpush.bf16.msra.mxu1 %v4724_v17  ;;  %v6380_v17 = vld [vmem:[%s9585_s1 + $0x838] sm:$0xf0] }
 0x156   :  { %3548 = vmatpush.bf16.msra.mxu2 %v4820_v19  ;;  %v4688_v19 = vor.u32 %v6239_v2, %v4687_v1  ;;  %v5252_v36 = vor.u32 %v6380_v17, %v5251_v16  ;;  %v5215_v2 = vld [vmem:[%s9585_s1 + $0x7e8] sm:$0xf]  ;;  %v6344_v16 = vld [vmem:[%s9585_s1 + $0x718] sm:$0xf0]  ;;  %v5203_v17 = vld [vmem:[%s9585_s1 + $0x7d0] sm:$0xf] }
 0x157   :  { %3561 = vmatpush.bf16.msra.mxu3 %v4916_v27  ;;  %v5060_v27 = vor.u32 %v6332_v13, %v5059_v12  ;;  %v5216_v10 = vor.u32 %v6371_v11, %v5215_v2  ;;  %v5011_v12 = vld [vmem:[%s9585_s1 + $0x650] sm:$0xf]  ;;  %v6320_v13 = vld [vmem:[%s9585_s1 + $0x658] sm:$0xf0]  ;;  %v6335_v2 = vld [vmem:[%s9585_s1 + $0x6d0] sm:$0xf0] }
 0x158   :  { %3523 = vmatpush.bf16.msra.mxu0 %v4616_v48  ;;  %v5239_v48 = vld [vmem:[%s9585_s1 + $0x818] sm:$0xf]  ;;  %v5012_v26 = vor.u32 %v6320_v13, %v5011_v12  ;;  %v5167_v11 = vld [vmem:[%s9585_s1 + $0x788] sm:$0xf]  ;;  %v5443_v13 = vld [vmem:[%s9585_s1 + $0x9b0] sm:$0xf] }
 0x159   :  { %3536 = vmatpush.bf16.msra.mxu1 %v4712_v52  ;;  %v5335_v52 = vld [vmem:[%s9585_s1 + $0x8d8] sm:$0xf]  ;;  %v5240_v63 = vor.u32 %v6377_v50, %v5239_v48  ;;  %v6365_v48 = vld [vmem:[%s9585_s1 + $0x7c0] sm:$0xf0] }
 0x15a   :  { %3549 = vmatpush.bf16.msra.mxu2 %v4808_v53  ;;  %v6401_v53 = vld [vmem:[%s9585_s1 + $0x8e0] sm:$0xf0] }
 0x15b   :  { %3562 = vmatpush.bf16.msra.mxu3 %v4904_v56  ;;  %v6326_v56 = vld [vmem:[%s9585_s1 + $0x688] sm:$0xf0]  ;;  %v5336_v6 = vor.u32 %v6401_v53, %v5335_v52  ;;  %v5287_v52 = vld [vmem:[%s9585_s1 + $0x878] sm:$0xf]  ;;  %v6389_v53 = vld [vmem:[%s9585_s1 + $0x880] sm:$0xf0] }
 0x15c   :  { %3524 = vmatpush.bf16.msra.mxu0 %v4604_v59  ;;  %v6398_v59 = vld [vmem:[%s9585_s1 + $0x8c8] sm:$0xf0]  ;;  %v5036_v60 = vor.u32 %v6326_v56, %v5035_v4  ;;  %v5192_v4 = vor.u32 %v6365_v48, %v5191_v46  ;;  %v4987_v56 = vld [vmem:[%s9585_s1 + $0x620] sm:$0xf]  ;;  %v6425_v46 = vld [vmem:[%s9585_s1 + $0x9a0] sm:$0xf0] }
 0x15d   :  { %3537 = vmatpush.bf16.msra.mxu1 %v4700_v62  ;;  %v5228_v62 = vor.u32 %v6374_v58, %v5227_v21  ;;  %v5288_v21 = vor.u32 %v6389_v53, %v5287_v52  ;;  %v6338_v58 = vld [vmem:[%s9585_s1 + $0x6e8] sm:$0xf0]  ;;  %v5527_v48 = vld [vmem:[%s9585_s1 + $0xa58] sm:$0xf]  ;;  %v6449_v53 = vld [vmem:[%s9585_s1 + $0xa60] sm:$0xf0] }
 0x15e   :  { %3550 = vmatpush.bf16.msra.mxu2 %v4796_v0  ;;  %v5119_v0 = vld [vmem:[%s9585_s1 + $0x728] sm:$0xf] }
 0x15f   :  { %3563 = vmatpush.bf16.msra.mxu3 %v4892_v5  ;;  %v6395_v5 = vld [vmem:[%s9585_s1 + $0x8b0] sm:$0xf0] }
 0x160   :  { %3525 = vmatpush.bf16.msra.mxu0 %v4592_v51  ;;  %v9003_v8 = vpop.f32.mrf.mxu0  ;;  %v5312_v15 = vor.u32 %v6395_v5, %v5311_v3 }
 0x161   :  { %3538 = vmatpush.bf16.msra.mxu1 %v4688_v19  ;;  %v9014_v51 = vpop.f32.mrf.mxu1  ;;  %v6368_v19 = vld [vmem:[%s9585_s1 + $0x7d8] sm:$0xf0] }
 0x162   :  { %3551 = vmatpush.bf16.msra.mxu2 %v4784_v22  ;;  %v5299_v22 = vld [vmem:[%s9585_s1 + $0x890] sm:$0xf] }
 0x163   :  { %3564 = vmatpush.bf16.msra.mxu3 %v4880_v47  ;;  %3526 = vmatmul.bf16.vlgmr.msra.gmra.mxu0 %v7121_v41  ;;  %v5023_v41 = vld [vmem:[%s9585_s1 + $0x668] sm:$0xf]  ;;  %v5108_v47 = vor.u32 %v6344_v16, %v5107_v14  ;;  %v5300_v43 = vor.u32 %v6392_v24, %v5299_v22  ;;  %v6428_v14 = vld [vmem:[%s9585_s1 + $0x9b8] sm:$0xf0] }
 0x164   :  { %3570 = vmatpush.bf16.msrb.mxu0 %v5060_v27  ;;  %3539 = vmatmul.bf16.vlgmr.msra.gmra.mxu1 %v7125_v44  ;;  %v6347_v44 = vld [vmem:[%s9585_s1 + $0x730] sm:$0xf0]  ;;  %v5204_v27 = vor.u32 %v6368_v19, %v5203_v17  ;;  %v6452_v17 = vld [vmem:[%s9585_s1 + $0xa78] sm:$0xf0]  ;;  %v5635_v19 = vld [vmem:[%s9585_s1 + $0xb30] sm:$0xf] }
 0x165   :  { %3583 = vmatpush.bf16.msrb.mxu1 %v5156_v34  ;;  %3552 = vmatmul.bf16.vlgmr.msra.gmra.mxu2 %v7113_v38  ;;  %v5323_v38 = vld [vmem:[%s9585_s1 + $0x8c0] sm:$0xf]  ;;  %v5120_v9 = vor.u32 %v6347_v44, %v5119_v0  ;;  %v4999_v34 = vld [vmem:[%s9585_s1 + $0x638] sm:$0xf]  ;;  %v5071_v44 = vld [vmem:[%s9585_s1 + $0x6c8] sm:$0xf] }
 0x166   :  { %3596 = vmatpush.bf16.msrb.mxu2 %v5252_v36  ;;  %3565 = vmatmul.bf16.vlgmr.msra.gmra.mxu3 %v7123_v42  ;;  %v6323_v42 = vld [vmem:[%s9585_s1 + $0x670] sm:$0xf0]  ;;  %v5324_v1 = vor.u32 %v6398_v59, %v5323_v38  ;;  %v6317_v36 = vld [vmem:[%s9585_s1 + $0x640] sm:$0xf0]  ;;  %v5179_v38 = vld [vmem:[%s9585_s1 + $0x7a0] sm:$0xf]  ;;  %v5072_v24 = vor.u32 %v6335_v2, %v5071_v44 }
 0x167   :  { %3609 = vmatpush.bf16.msrb.mxu3 %v5348_v45  ;;  %v5024_v7 = vor.u32 %v6323_v42, %v5023_v41  ;;  %v6341_v45 = vld [vmem:[%s9585_s1 + $0x700] sm:$0xf0]  ;;  %v6362_v59 = vld [vmem:[%s9585_s1 + $0x7a8] sm:$0xf0]  ;;  %v4975_v41 = vld [vmem:[%s9585_s1 + $0x608] sm:$0xf] }
 0x168   :  { %3571 = vmatpush.bf16.msrb.mxu0 %v5048_v54  ;;  %v9040_v40 = vpop.f32.mrf.mxu2  ;;  %v5000_v54 = vor.u32 %v6317_v36, %v4999_v34  ;;  %v6311_v42 = vld [vmem:[%s9585_s1 + $0x610] sm:$0xf0]  ;;  %v6476_v22 = vld [vmem:[%s9585_s1 + $0xb38] sm:$0xf0]  ;;  %v5444_v36 = vor.u32 %v6428_v14, %v5443_v13  ;;  %v5599_v2 = vld [vmem:[%s9585_s1 + $0xae8] sm:$0xf] }
 0x169   :  { %3584 = vmatpush.bf16.msrb.mxu1 %v5144_v55  ;;  %v9051_v50 = vpop.f32.mrf.mxu3  ;;  %v3321_v55 = vpop.f32.mrf.mxu0  ;;  %v4976_v16 = vor.u32 %v6311_v42, %v4975_v41  ;;  %v6443_v44 = vld [vmem:[%s9585_s1 + $0xa30] sm:$0xf0]  ;;  %v5395_v14 = vld [vmem:[%s9585_s1 + $0x950] sm:$0xf] }
 0x16a   :  { %3597 = vmatpush.bf16.msrb.mxu2 %v5240_v63  ;;  %v5096_v63 = vor.u32 %v6341_v45, %v5095_v37  ;;  %v3334_v20 = vpop.f32.mrf.mxu1  ;;  %v5431_v45 = vld [vmem:[%s9585_s1 + $0x998] sm:$0xf]  ;;  %v6473_v55 = vld [vmem:[%s9585_s1 + $0xb20] sm:$0xf0] }
 0x16b   :  { %3610 = vmatpush.bf16.msrb.mxu3 %v5336_v6  ;;  %v5083_v6 = vld [vmem:[%s9585_s1 + $0x6e0] sm:$0xf] }
 0x16c   :  { %3572 = vmatpush.bf16.msrb.mxu0 %v5036_v60  ;;  %v5275_v60 = vld [vmem:[%s9585_s1 + $0x860] sm:$0xf]  ;;  %v5084_v0 = vor.u32 %v6338_v58, %v5083_v6 }
 0x16d   :  { %3585 = vmatpush.bf16.msrb.mxu1 %v5132_v61  ;;  %v6386_v61 = vld [vmem:[%s9585_s1 + $0x868] sm:$0xf0]  ;;  %v5419_v20 = vld [vmem:[%s9585_s1 + $0x980] sm:$0xf] }
 0x16e   :  { %3598 = vmatpush.bf16.msrb.mxu2 %v5228_v62  ;;  %v4988_v62 = vor.u32 %v6314_v57, %v4987_v56  ;;  %v5276_v5 = vor.u32 %v6386_v61, %v5275_v60  ;;  %v5432_v56 = vor.u32 %v6425_v46, %v5431_v45  ;;  %v5528_v57 = vor.u32 %v6449_v53, %v5527_v48  ;;  %v5515_v58 = vld [vmem:[%s9585_s1 + $0xa40] sm:$0xf]  ;;  %v6470_v61 = vld [vmem:[%s9585_s1 + $0xb08] sm:$0xf0]  ;;  %v5479_v45 = vld [vmem:[%s9585_s1 + $0x9f8] sm:$0xf] }
 0x16f   :  { %3611 = vmatpush.bf16.msrb.mxu3 %v5324_v1  ;;  %v5180_v1 = vor.u32 %v6362_v59, %v5179_v38  ;;  %v6446_v59 = vld [vmem:[%s9585_s1 + $0xa48] sm:$0xf0]  ;;  %v5611_v60 = vld [vmem:[%s9585_s1 + $0xb00] sm:$0xf]  ;;  %v5575_v53 = vld [vmem:[%s9585_s1 + $0xab8] sm:$0xf] }
 0x170   :  { %3573 = vmatpush.bf16.msrb.mxu0 %v5024_v7  ;;  %v3347_v3 = vpop.f32.mrf.mxu2  ;;  %v6359_v7 = vld [vmem:[%s9585_s1 + $0x790] sm:$0xf0]  ;;  %v5516_v42 = vor.u32 %v6446_v59, %v5515_v58  ;;  %v6410_v59 = vld [vmem:[%s9585_s1 + $0x928] sm:$0xf0] }
 0x171   :  { %3586 = vmatpush.bf16.msrb.mxu1 %v5120_v9  ;;  %v5263_v9 = vld [vmem:[%s9585_s1 + $0x848] sm:$0xf]  ;;  %v3360_v12 = vpop.f32.mrf.mxu3 }
 0x172   :  { %3599 = vmatpush.bf16.msrb.mxu2 %v5216_v10  ;;  %v6383_v10 = vld [vmem:[%s9585_s1 + $0x850] sm:$0xf0] }
 0x173   :  { %3612 = vmatpush.bf16.msrb.mxu3 %v5312_v15  ;;  %v5539_v15 = vld [vmem:[%s9585_s1 + $0xa70] sm:$0xf]  ;;  %v5264_v34 = vor.u32 %v6383_v10, %v5263_v9 }
 0x174   :  { %3574 = vmatpush.bf16.msrb.mxu0 %v5012_v26  ;;  %v5168_v26 = vor.u32 %v6359_v7, %v5167_v11  ;;  %v5540_v37 = vor.u32 %v6452_v17, %v5539_v15  ;;  %v6467_v11 = vld [vmem:[%s9585_s1 + $0xaf0] sm:$0xf0]  ;;  %v6416_v15 = vld [vmem:[%s9585_s1 + $0x958] sm:$0xf0] }
 0x175   :  { %3587 = vmatpush.bf16.msrb.mxu1 %v5108_v47  ;;  %v5731_v47 = vld [vmem:[%s9585_s1 + $0xbf0] sm:$0xf]  ;;  %v6491_v7 = vld [vmem:[%s9585_s1 + $0xbb0] sm:$0xf0]  ;;  %v5600_v13 = vor.u32 %v6467_v11, %v5599_v2 }
 0x176   :  { %3600 = vmatpush.bf16.msrb.mxu2 %v5204_v27  ;;  %v6500_v27 = vld [vmem:[%s9585_s1 + $0xbf8] sm:$0xf0]  ;;  %v6431_v2 = vld [vmem:[%s9585_s1 + $0x9d0] sm:$0xf0] }
 0x177   :  { %3613 = vmatpush.bf16.msrb.mxu3 %v5300_v43  ;;  %v5636_v43 = vor.u32 %v6476_v22, %v5635_v19  ;;  %v5732_v52 = vor.u32 %v6500_v27, %v5731_v47  ;;  %v6440_v19 = vld [vmem:[%s9585_s1 + $0xa18] sm:$0xf0]  ;;  %v5587_v22 = vld [vmem:[%s9585_s1 + $0xad0] sm:$0xf]  ;;  %v5396_v27 = vor.u32 %v6416_v15, %v5395_v14 }
 0x178   :  { %3575 = vmatpush.bf16.msrb.mxu0 %v5000_v54  ;;  %v5623_v54 = vld [vmem:[%s9585_s1 + $0xb18] sm:$0xf]  ;;  %v6488_v47 = vld [vmem:[%s9585_s1 + $0xb98] sm:$0xf0] }
 0x179   :  { %3588 = vmatpush.bf16.msrb.mxu1 %v5096_v63  ;;  %v5719_v63 = vld [vmem:[%s9585_s1 + $0xbd8] sm:$0xf]  ;;  %v5624_v6 = vor.u32 %v6473_v55, %v5623_v54  ;;  %v6461_v54 = vld [vmem:[%s9585_s1 + $0xac0] sm:$0xf0]  ;;  %v6524_v14 = vld [vmem:[%s9585_s1 + $0xcb8] sm:$0xf0] }
 0x17a   :  { %3601 = vmatpush.bf16.msrb.mxu2 %v5192_v4  ;;  %v6497_v4 = vld [vmem:[%s9585_s1 + $0xbe0] sm:$0xf0]  ;;  %v5576_v58 = vor.u32 %v6461_v54, %v5575_v53 }
 0x17b   :  { %3614 = vmatpush.bf16.msrb.mxu3 %v5288_v21  ;;  %v6422_v21 = vld [vmem:[%s9585_s1 + $0x988] sm:$0xf0]  ;;  %v5720_v38 = vor.u32 %v6497_v4, %v5719_v63  ;;  %v5671_v63 = vld [vmem:[%s9585_s1 + $0xb78] sm:$0xf]  ;;  %v6485_v4 = vld [vmem:[%s9585_s1 + $0xb80] sm:$0xf0] }
 0x17c   :  { %3576 = vmatpush.bf16.msrb.mxu0 %v4988_v62  ;;  %v6494_v62 = vld [vmem:[%s9585_s1 + $0xbc8] sm:$0xf0]  ;;  %v5420_v41 = vor.u32 %v6422_v21, %v5419_v20  ;;  %v3320_v20 = vadd.f32 %v9003_v8, %v8853_v49  ;;  %v5563_v8 = vld [vmem:[%s9585_s1 + $0xaa0] sm:$0xf] }
 0x17d   :  { %3589 = vmatpush.bf16.msrb.mxu1 %v5084_v0  ;;  %v5612_v0 = vor.u32 %v6470_v61, %v5611_v60  ;;  %v5467_v60 = vld [vmem:[%s9585_s1 + $0x9e0] sm:$0xf]  ;;  %v5672_v61 = vor.u32 %v6485_v4, %v5671_v63  ;;  %v6434_v49 = vld [vmem:[%s9585_s1 + $0x9e8] sm:$0xf0]  ;;  %v6555_v4 = vld [vmem:[%s9588_s3 + $0x30] sm:$0xff] }
 0x17e   :  { %3602 = vmatpush.bf16.msrb.mxu2 %v5180_v1  ;;  %v5503_v1 = vld [vmem:[%s9585_s1 + $0xa28] sm:$0xf] }
 0x17f   :  { %3615 = vmatpush.bf16.msrb.mxu3 %v5276_v5  ;;  %v5695_v5 = vld [vmem:[%s9585_s1 + $0xba8] sm:$0xf]  ;;  %v5504_v12 = vor.u32 %v6443_v44, %v5503_v1 }
 0x180   :  { %3577 = vmatpush.bf16.msrb.mxu0 %v4976_v16  ;;  %v9201_v3 = vpop.f32.mrf.mxu0  ;;  %v5491_v16 = vld [vmem:[%s9585_s1 + $0xa10] sm:$0xf]  ;;  %v5696_v17 = vor.u32 %v6491_v7, %v5695_v5  ;;  %v5455_v44 = vld [vmem:[%s9585_s1 + $0x9c8] sm:$0xf]  ;;  %v6455_v5 = vld [vmem:[%s9585_s1 + $0xa90] sm:$0xf0] }
 0x181   :  { %3590 = vmatpush.bf16.msrb.mxu1 %v5072_v24  ;;  %v9209_v10 = vpop.f32.mrf.mxu1  ;;  %v6464_v24 = vld [vmem:[%s9585_s1 + $0xad8] sm:$0xf0]  ;;  %v5647_v7 = vld [vmem:[%s9585_s1 + $0xb48] sm:$0xf] }
 0x182   :  { %3603 = vmatpush.bf16.msrb.mxu2 %v5168_v26  ;;  %v5683_v26 = vld [vmem:[%s9585_s1 + $0xb90] sm:$0xf] }
 0x183   :  { %3616 = vmatpush.bf16.msrb.mxu3 %v5264_v34  ;;  %3578 = vmatmul.bf16.vlgmr.msrb.gmra.mxu0 %v7314_v25  ;;  %v5707_v25 = vld [vmem:[%s9585_s1 + $0xbc0] sm:$0xf]  ;;  %v5492_v34 = vor.u32 %v6440_v19, %v5491_v16  ;;  %v5684_v46 = vor.u32 %v6488_v47, %v5683_v26  ;;  %v6548_v19 = vld [vmem:[%s9585_s1 + $0xd78] sm:$0xf0] }
 0x184   :  { %3622 = vmatpush.bf16.msra.mxu0 %v5444_v36  ;;  %3591 = vmatmul.bf16.vlgmr.msrb.gmra.mxu1 %v7327_v30  ;;  %v6419_v30 = vld [vmem:[%s9585_s1 + $0x970] sm:$0xf0]  ;;  %v5588_v36 = vor.u32 %v6464_v24, %v5587_v22  ;;  %v5456_v24 = vor.u32 %v6431_v2, %v5455_v44  ;;  %v6552_v44 = vld [vmem:[%s9588_s3 + $0x18] sm:$0xff] }
 0x185   :  { %3635 = vmatpush.bf16.msra.mxu1 %v5540_v37  ;;  %3604 = vmatmul.bf16.vlgmr.msrb.gmra.mxu2 %v7325_v29  ;;  %v5407_v29 = vld [vmem:[%s9585_s1 + $0x968] sm:$0xf]  ;;  %v5383_v37 = vld [vmem:[%s9585_s1 + $0x938] sm:$0xf] }
 0x186   :  { %3648 = vmatpush.bf16.msra.mxu2 %v5636_v43  ;;  %3617 = vmatmul.bf16.vlgmr.msrb.gmra.mxu3 %v7335_v33  ;;  %v5708_v33 = vor.u32 %v6494_v62, %v5707_v25  ;;  %v5408_v9 = vor.u32 %v6419_v30, %v5407_v29  ;;  %v6413_v43 = vld [vmem:[%s9585_s1 + $0x940] sm:$0xf0]  ;;  %v6458_v25 = vld [vmem:[%s9585_s1 + $0xaa8] sm:$0xf0]  ;;  %v5659_v62 = vld [vmem:[%s9585_s1 + $0xb60] sm:$0xf]  ;;  %v3333_v29 = vadd.f32 %v9014_v51, %v3320_v20 }
 0x187   :  { %3661 = vmatpush.bf16.msra.mxu3 %v5732_v52  ;;  %v6437_v52 = vld [vmem:[%s9585_s1 + $0xa00] sm:$0xf0]  ;;  %v5468_v30 = vor.u32 %v6434_v49, %v5467_v60  ;;  %v5564_v1 = vor.u32 %v6458_v25, %v5563_v8  ;;  %v5551_v51 = vld [vmem:[%s9585_s1 + $0xa88] sm:$0xf]  ;;  %v5767_v2 = vld [vmem:[%s9585_s1 + $0xc38] sm:$0xf] }
 0x188   :  { %3623 = vmatpush.bf16.msra.mxu0 %v5432_v56  ;;  %v9244_v48 = vpop.f32.mrf.mxu2  ;;  %v3373_v56 = vpop.f32.mrf.mxu0  ;;  %v5480_v21 = vor.u32 %v6437_v52, %v5479_v45  ;;  %v3346_v22 = vadd.f32 %v9040_v40, %v3333_v29  ;;  %v5552_v26 = vor.u32 %v6455_v5, %v5551_v51  ;;  %v6521_v40 = vld [vmem:[%s9585_s1 + $0xca0] sm:$0xf0]  ;;  %v5911_v45 = vld [vmem:[%s9585_s1 + $0xd58] sm:$0xf] }
 0x189   :  { %3636 = vmatpush.bf16.msra.mxu1 %v5528_v57  ;;  %v9255_v55 = vpop.f32.mrf.mxu3  ;;  %v5384_v57 = vor.u32 %v6413_v43, %v5383_v37  ;;  %v5815_v37 = vld [vmem:[%s9585_s1 + $0xc98] sm:$0xf]  ;;  %v5803_v56 = vld [vmem:[%s9585_s1 + $0xc80] sm:$0xf] }
 0x18a   :  { %3649 = vmatpush.bf16.msra.mxu2 %v5624_v6  ;;  %v3386_v6 = vpop.f32.mrf.mxu1  ;;  %v6564_v43 = vld [vmem:[%s9588_s3 + $0x78] sm:$0xff]  ;;  %v3359_v52 = vadd.f32 %v9051_v50, %v3346_v22  ;;  %v5816_v53 = vor.u32 %v6521_v40, %v5815_v37  ;;  %v6518_v50 = vld [vmem:[%s9585_s1 + $0xc88] sm:$0xf0]  ;;  %v6553_v25 = vld [vmem:[%s9588_s3 + $0x20] sm:$0xff] }
 0x18b   :  { %3662 = vmatpush.bf16.msra.mxu3 %v5720_v38  ;;  %v5371_v38 = vld [vmem:[%s9585_s1 + $0x920] sm:$0xf]  ;;  %v6542_v6 = vld [vmem:[%s9585_s1 + $0xd48] sm:$0xf0]  ;;  %v5863_v5 = vld [vmem:[%s9585_s1 + $0xcf8] sm:$0xf] }
 0x18c   :  { %3624 = vmatpush.bf16.msra.mxu0 %v5420_v41  ;;  %v6482_v41 = vld [vmem:[%s9585_s1 + $0xb68] sm:$0xf0]  ;;  %v3372_v54 = vadd.f32 %v9201_v3, %v3359_v52  ;;  %v6563_v3 = vld [vmem:[%s9588_s3 + $0x70] sm:$0xff]  ;;  %v5743_v40 = vld [vmem:[%s9585_s1 + $0xc08] sm:$0xf] }
 0x18d   :  { %3637 = vmatpush.bf16.msra.mxu1 %v5516_v42  ;;  %v5372_v42 = vor.u32 %v6410_v59, %v5371_v38  ;;  %v5660_v11 = vor.u32 %v6482_v41, %v5659_v62  ;;  %v5791_v38 = vld [vmem:[%s9585_s1 + $0xc68] sm:$0xf]  ;;  %v5779_v62 = vld [vmem:[%s9585_s1 + $0xc50] sm:$0xf]  ;;  %v6512_v41 = vld [vmem:[%s9585_s1 + $0xc58] sm:$0xf0] }
 0x18e   :  { %3650 = vmatpush.bf16.msra.mxu2 %v5612_v0  ;;  %v5359_v0 = vld [vmem:[%s9585_s1 + $0x908] sm:$0xf]  ;;  %v3385_v20 = vadd.f32 %v9209_v10, %v3372_v54  ;;  %v6539_v10 = vld [vmem:[%s9585_s1 + $0xd30] sm:$0xf0]  ;;  %v6506_v22 = vld [vmem:[%s9585_s1 + $0xc28] sm:$0xf0] }
 0x18f   :  { %3663 = vmatpush.bf16.msra.mxu3 %v5708_v33  ;;  %v6407_v33 = vld [vmem:[%s9585_s1 + $0x910] sm:$0xf0]  ;;  %v6550_v37 = vld [vmem:[%s9588_s3 + $0x8] sm:$0xff] }
 0x190   :  { %3625 = vmatpush.bf16.msra.mxu0 %v5408_v9  ;;  %v3399_v9 = vpop.f32.mrf.mxu2  ;;  %v5360_v16 = vor.u32 %v6407_v33, %v5359_v0  ;;  %v3398_v59 = vadd.f32 %v9244_v48, %v3385_v20  ;;  %v6561_v48 = vld [vmem:[%s9588_s3 + $0x60] sm:$0xff]  ;;  %v6536_v0 = vld [vmem:[%s9585_s1 + $0xd18] sm:$0xf0]  ;;  %v6527_v52 = vld [vmem:[%s9585_s1 + $0xcd0] sm:$0xf0] }
 0x191   :  { %3638 = vmatpush.bf16.msra.mxu1 %v5504_v12  ;;  %v6479_v12 = vld [vmem:[%s9585_s1 + $0xb50] sm:$0xf0]  ;;  %v3412_v15 = vpop.f32.mrf.mxu3 }
 0x192   :  { %3651 = vmatpush.bf16.msra.mxu2 %v5600_v13  ;;  %v5827_v13 = vld [vmem:[%s9585_s1 + $0xcb0] sm:$0xf]  ;;  %v5648_v47 = vor.u32 %v6479_v12, %v5647_v7  ;;  %v3411_v29 = vadd.f32 %v9255_v55, %v3398_v59  ;;  %v6560_v55 = vld [vmem:[%s9588_s3 + $0x58] sm:$0xff]  ;;  %v6533_v7 = vld [vmem:[%s9585_s1 + $0xd00] sm:$0xf0] }
 0x193   :  { %3664 = vmatpush.bf16.msra.mxu3 %v5696_v17  ;;  %v5923_v17 = vld [vmem:[%s9585_s1 + $0xd70] sm:$0xf] }
 0x194   :  { %3626 = vmatpush.bf16.msra.mxu0 %v5396_v27  ;;  %v5828_v27 = vor.u32 %v6524_v14, %v5827_v13 }
 0x195   :  { %3639 = vmatpush.bf16.msra.mxu1 %v5492_v34  ;;  %v5924_v34 = vor.u32 %v6548_v19, %v5923_v17  ;;  %v6551_v17 = vld [vmem:[%s9588_s3 + $0x10] sm:$0xff]  ;;  %v5755_v19 = vld [vmem:[%s9585_s1 + $0xc20] sm:$0xf] }
 0x196   :  { %3652 = vmatpush.bf16.msra.mxu2 %v5588_v36  ;;  %v6556_v36 = vld [vmem:[%s9588_s3 + $0x38] sm:$0xff] }
 0x197   :  { %3665 = vmatpush.bf16.msra.mxu3 %v5684_v46  ;;  %v6545_v46 = vld [vmem:[%s9585_s1 + $0xd60] sm:$0xf0] }
 0x198   :  { %3627 = vmatpush.bf16.msra.mxu0 %v5384_v57  ;;  %v5912_v63 = vor.u32 %v6545_v46, %v5911_v45  ;;  %v5899_v57 = vld [vmem:[%s9585_s1 + $0xd40] sm:$0xf]  ;;  %v6558_v45 = vld [vmem:[%s9588_s3 + $0x48] sm:$0xff] }
 0x199   :  { %3640 = vmatpush.bf16.msra.mxu1 %v5480_v21  ;;  %v5900_v21 = vor.u32 %v6542_v6, %v5899_v57  ;;  %v5839_v46 = vld [vmem:[%s9585_s1 + $0xcc8] sm:$0xf]  ;;  %v6557_v57 = vld [vmem:[%s9588_s3 + $0x40] sm:$0xff] }
 0x19a   :  { %3653 = vmatpush.bf16.msra.mxu2 %v5576_v58  ;;  %v6554_v58 = vld [vmem:[%s9588_s3 + $0x28] sm:$0xff] }
 0x19b   :  { %3666 = vmatpush.bf16.msra.mxu3 %v5672_v61 }
 0x19c   :  { %3628 = vmatpush.bf16.msra.mxu0 %v5372_v42  ;;  %v5875_v42 = vld [vmem:[%s9585_s1 + $0xd10] sm:$0xf] }
 0x19d   :  { %3641 = vmatpush.bf16.msra.mxu1 %v5468_v30  ;;  %v5780_v30 = vor.u32 %v6512_v41, %v5779_v62  ;;  %v5876_v33 = vor.u32 %v6536_v0, %v5875_v42 }
 0x19e   :  { %3654 = vmatpush.bf16.msra.mxu2 %v5564_v1 }
 0x19f   :  { %3667 = vmatpush.bf16.msra.mxu3 %v5660_v11  ;;  %v6509_v11 = vld [vmem:[%s9585_s1 + $0xc40] sm:$0xf0] }
 0x1a0   :  { %3629 = vmatpush.bf16.msra.mxu0 %v5360_v16  ;;  %v3423_v60 = vpop.f32.mrf.mxu0  ;;  %v5768_v13 = vor.u32 %v6509_v11, %v5767_v2  ;;  %v5864_v16 = vor.u32 %v6533_v7, %v5863_v5 }
 0x1a1   :  { %3642 = vmatpush.bf16.msra.mxu1 %v5456_v24  ;;  %v3436_v49 = vpop.f32.mrf.mxu1  ;;  %v3424_v1 = vadd.f32 %v3423_v60, %v3411_v29  ;;  %v6559_v24 = vld [vmem:[%s9588_s3 + $0x50] sm:$0xff] }
 0x1a2   :  { %3655 = vmatpush.bf16.msra.mxu2 %v5552_v26  ;;  %v5851_v26 = vld [vmem:[%s9585_s1 + $0xce0] sm:$0xf] }
 0x1a3   :  { %3668 = vmatpush.bf16.msra.mxu3 %v5648_v47  ;;  %3630 = vmatmul.bf16.vlgmr.msra.gmra.mxu0 %v7524_v23  ;;  %v5804_v23 = vor.u32 %v6518_v50, %v5803_v56  ;;  %v3437_v15 = vadd.f32 %v3436_v49, %v3424_v1  ;;  %v6530_v47 = vld [vmem:[%s9585_s1 + $0xce8] sm:$0xf0]  ;;  %v5840_v56 = vor.u32 %v6527_v52, %v5839_v46  ;;  %v6549_v50 = vld [vmem:[%s9588_s3] sm:$0xff]  ;;  %v6580_v46 = vld [vmem:[%s9590_s5 + $0x38] sm:$0xff] }
 0x1a4   :  { %3674 = vmatpush.bf16.msrb.mxu0 %v5828_v27  ;;  %3643 = vmatmul.bf16.vlgmr.msra.gmra.mxu1 %v7537_v31  ;;  %v6562_v31 = vld [vmem:[%s9588_s3 + $0x68] sm:$0xff] }
 0x1a5   :  { %3687 = vmatpush.bf16.msrb.mxu1 %v5924_v34  ;;  %3656 = vmatmul.bf16.vlgmr.msra.gmra.mxu2 %v7535_v28  ;;  %v6515_v28 = vld [vmem:[%s9585_s1 + $0xc70] sm:$0xf0]  ;;  %v5756_v34 = vor.u32 %v6506_v22, %v5755_v19  ;;  %v6566_v22 = vld [vmem:[%s9588_s3 + $0x88] sm:$0xff] }
 0x1a6   :  { %3902 = vmatpush.bf16.msrb.mxu2 %v6556_v36  ;;  %3669 = vmatmul.bf16.vlgmr.msra.gmra.mxu3 %v7545_v35  ;;  %v5887_v35 = vld [vmem:[%s9585_s1 + $0xd28] sm:$0xf]  ;;  %v5792_v61 = vor.u32 %v6515_v28, %v5791_v38  ;;  %v5852_v36 = vor.u32 %v6530_v47, %v5851_v26  ;;  %v6567_v19 = vld [vmem:[%s9588_s3 + $0x90] sm:$0xff]  ;;  %v6565_v47 = vld [vmem:[%s9588_s3 + $0x80] sm:$0xff] }
 0x1a7   :  { %3915 = vmatpush.bf16.msrb.mxu3 %v6564_v43  ;;  %v5888_v8 = vor.u32 %v6539_v10, %v5887_v35  ;;  %v6503_v43 = vld [vmem:[%s9585_s1 + $0xc10] sm:$0xf0] }
 0x1a8   :  { %3675 = vmatpush.bf16.msrb.mxu0 %v5816_v53  ;;  %v3449_v51 = vpop.f32.mrf.mxu2  ;;  %v3425_v12 = vpop.f32.mrf.mxu0 }
 0x1a9   :  { %3688 = vmatpush.bf16.msrb.mxu1 %v5912_v63  ;;  %v3462_v9 = vpop.f32.mrf.mxu3  ;;  %v3438_v14 = vpop.f32.mrf.mxu1  ;;  %v3450_v27 = vadd.f32 %v3449_v51, %v3437_v15  ;;  %v6569_v15 = vld [vmem:[%s9588_s3 + $0xa0] sm:$0xff] }
 0x1aa   :  { %3903 = vmatpush.bf16.msrb.mxu2 %v6555_v4  ;;  %v5744_v4 = vor.u32 %v6503_v43, %v5743_v40 }
 0x1ab   :  { %3916 = vmatpush.bf16.msrb.mxu3 %v6563_v3  ;;  %v3463_v54 = vadd.f32 %v3462_v9, %v3450_v27  ;;  %v3700_v3 = vmax.f32 %v8610_v18, 0.0  ;;  %v6602_v18 = vld [vmem:[%s9587_s2] sm:$0x7]  ;;  %v6571_v9 = vld [vmem:[%s9588_s3 + $0xb0] sm:$0xff] }
 0x1ac   :  { %3676 = vmatpush.bf16.msrb.mxu0 %v5804_v23 }
 0x1ad   :  { %3689 = vmatpush.bf16.msrb.mxu1 %v5900_v21  ;;  %v3701_v6 = vmax.f32 %v3463_v54, 0.0  ;;  %v3703_v23 = vpack.c.bf16 %v3700_v3, %v3700_v3  ;;  %v627_v21 = vperm.slane %v6602_v18, 2  ;;  %v6577_v3 = vld [vmem:[%s9590_s5 + $0x20] sm:$0xff] }
 0x1ae   :  { %3904 = vmatpush.bf16.msrb.mxu2 %v6554_v58 }
 0x1af   :  { %3917 = vmatpush.bf16.msrb.mxu3 %v6562_v31  ;;  %v3704_v20 = vpack.c.bf16 %v3701_v6, %v3701_v6  ;;  %v6576_v6 = vld [vmem:[%s9590_s5 + $0x18] sm:$0xff] }
 0x1b0   :  { %3677 = vmatpush.bf16.msrb.mxu0 %v5792_v61  ;;  %v3451_v53 = vpop.f32.mrf.mxu2 }
 0x1b1   :  { %3690 = vmatpush.bf16.msrb.mxu1 %v5888_v8  ;;  %v3464_v63 = vpop.f32.mrf.mxu3  ;;  %v6579_v53 = vld [vmem:[%s9590_s5 + $0x30] sm:$0xff] }
 0x1b2   :  { %3905 = vmatpush.bf16.msrb.mxu2 %v6553_v25 }
 0x1b3   :  { %3918 = vmatpush.bf16.msrb.mxu3 %v6561_v48 }
 0x1b4   :  { %3678 = vmatpush.bf16.msrb.mxu0 %v5780_v30 }
 0x1b5   :  { %3691 = vmatpush.bf16.msrb.mxu1 %v5876_v33 }
 0x1b6   :  { %3906 = vmatpush.bf16.msrb.mxu2 %v6552_v44 }
 0x1b7   :  { %3919 = vmatpush.bf16.msrb.mxu3 %v6560_v55  ;;  %v6572_v55 = vld [vmem:[%s9588_s3 + $0xb8] sm:$0xff] }
 0x1b8   :  { %3679 = vmatpush.bf16.msrb.mxu0 %v5768_v13  ;;  %v6570_v13 = vld [vmem:[%s9588_s3 + $0xa8] sm:$0xff] }
 0x1b9   :  { %3692 = vmatpush.bf16.msrb.mxu1 %v5864_v16 }
 0x1ba   :  { %3907 = vmatpush.bf16.msrb.mxu2 %v6551_v17  ;;  %v6568_v17 = vld [vmem:[%s9588_s3 + $0x98] sm:$0xff] }
 0x1bb   :  { %3920 = vmatpush.bf16.msrb.mxu3 %v6559_v24 }
 0x1bc   :  { %3680 = vmatpush.bf16.msrb.mxu0 %v5756_v34 }
 0x1bd   :  { %3693 = vmatpush.bf16.msrb.mxu1 %v5852_v36 }
 0x1be   :  { %3908 = vmatpush.bf16.msrb.mxu2 %v6550_v37 }
 0x1bf   :  { %3921 = vmatpush.bf16.msrb.mxu3 %v6558_v45 }
 0x1c0   :  { %3681 = vmatpush.bf16.msrb.mxu0 %v5744_v4  ;;  %v3475_v58 = vpop.f32.mrf.mxu0 }
 0x1c1   :  { %3694 = vmatpush.bf16.msrb.mxu1 %v5840_v56  ;;  %v3476_v38 = vadd.f32 %v3475_v58, %v627_v21  ;;  %v3488_v28 = vpop.f32.mrf.mxu1  ;;  %v6578_v56 = vld [vmem:[%s9590_s5 + $0x28] sm:$0xff]  ;;  %v6575_v58 = vld [vmem:[%s9590_s5 + $0x10] sm:$0xff] }
 0x1c2   :  { %3909 = vmatpush.bf16.msrb.mxu2 %v6549_v50 }
 0x1c3   :  { %3922 = vmatpush.bf16.msrb.mxu3 %v6557_v57  ;;  %3682 = vmatmul.bf16.vlgmr.msrb.gmra.mxu0 %v7731_v32  ;;  %v3489_v31 = vadd.f32 %v3488_v28, %v3476_v38  ;;  %v6597_v28 = vld [vmem:[%s9589_s4] ss:$0 sm:$0xff] }
 0x1c4   :  { %3695 = vmatmul.bf16.vlgmr.msrb.gmra.mxu1 %v7742_v39  ;;  %3928 = vmatpush.bf16.msra.mxu0 %v6572_v55  ;;  %v6582_v55 = vld [vmem:[%s9592_s7 + $0x8] sm:$0xff] }
 0x1c5   :  { %3910 = vmatmul.bf16.vlgmr.msrb.gmra.mxu2 %v3703_v23  ;;  %4011 = vmatpush.bf16.msra.mxu1 %v6580_v46 }
 0x1c6   :  { %3923 = vmatmul.bf16.vlgmr.msrb.gmra.mxu3 %v3704_v20 }
 0x1c8   :  { %v3501_v35 = vpop.f32.mrf.mxu2  ;;  %v3477_v61 = vpop.f32.mrf.mxu0  ;;  %3929 = vmatpush.bf16.msra.mxu0 %v6571_v9  ;;  %v6594_v9 = vld [vmem:[%s9594_s9 + $0x28] sm:$0xff] }
 0x1c9   :  { %v3502_v10 = vadd.f32 %v3501_v35, %v3489_v31  ;;  %v3514_v59 = vpop.f32.mrf.mxu3  ;;  %v3490_v49 = vpop.f32.mrf.mxu1  ;;  %4012 = vmatpush.bf16.msra.mxu1 %v6579_v53 }
 0x1cb   :  { %v3515_v60 = vadd.f32 %v3514_v59, %v3502_v10 }
 0x1cc   :  { %3930 = vmatpush.bf16.msra.mxu0 %v6570_v13  ;;  %v6592_v13 = vld [vmem:[%s9594_s9 + $0x18] sm:$0xff] }
 0x1cd   :  { %4013 = vmatpush.bf16.msra.mxu1 %v6578_v56 }
 0x1d0   :  { %v3503_v32 = vpop.f32.mrf.mxu2  ;;  %3931 = vmatpush.bf16.msra.mxu0 %v6569_v15  ;;  %v6598_v15 = vld [vmem:[%s9591_s6] ss:$0 sm:$0xff] }
 0x1d1   :  { %v3516_v8 = vpop.f32.mrf.mxu3  ;;  %4014 = vmatpush.bf16.msra.mxu1 %v6577_v3 }
 0x1d4   :  { %3932 = vmatpush.bf16.msra.mxu0 %v6568_v17 }
 0x1d5   :  { %4015 = vmatpush.bf16.msra.mxu1 %v6576_v6 }
 0x1d8   :  { %3933 = vmatpush.bf16.msra.mxu0 %v6567_v19 }
 0x1d9   :  { %4016 = vmatpush.bf16.msra.mxu1 %v6575_v58 }
 0x1dc   :  { %3934 = vmatpush.bf16.msra.mxu0 %v6566_v22 }
 0x1e0   :  { %v3527_v39 = vpop.f32.mrf.mxu0  ;;  %3935 = vmatpush.bf16.msra.mxu0 %v6565_v47  ;;  %v6589_v47 = vld [vmem:[%s9594_s9] sm:$0xff] }
 0x1e1   :  { %v3528_v25 = vadd.f32 %v3527_v39, %v3515_v60  ;;  %v3540_v62 = vpop.f32.mrf.mxu1 }
 0x1e3   :  { %v3541_v41 = vadd.f32 %v3540_v62, %v3528_v25  ;;  %v6574_v25 = vld [vmem:[%s9590_s5 + $0x8] sm:$0xff]  ;;  %v6573_v62 = vld [vmem:[%s9590_s5] sm:$0xff] }
 0x1e4   :  { %4017 = vmatpush.bf16.msra.mxu1 %v6574_v25 }
 0x1e8   :  { %v3553_v48 = vpop.f32.mrf.mxu2  ;;  %v3529_v30 = vpop.f32.mrf.mxu0  ;;  %4018 = vmatpush.bf16.msra.mxu1 %v6573_v62 }
 0x1e9   :  { %v3554_v42 = vadd.f32 %v3553_v48, %v3541_v41  ;;  %v3566_v0 = vpop.f32.mrf.mxu3  ;;  %v3542_v1 = vpop.f32.mrf.mxu1  ;;  %v6588_v41 = vld [vmem:[%s9592_s7 + $0x38] sm:$0xff]  ;;  %v6587_v48 = vld [vmem:[%s9592_s7 + $0x30] sm:$0xff] }
 0x1ea   :  { %4094 = vmatpush.bf16.msra.mxu2 %v6588_v41  ;;  %v6583_v30 = vld [vmem:[%s9592_s7 + $0x10] sm:$0xff] }
 0x1eb   :  { %v3567_v29 = vadd.f32 %v3566_v0, %v3554_v42  ;;  %v6586_v42 = vld [vmem:[%s9592_s7 + $0x28] sm:$0xff]  ;;  %v6585_v0 = vld [vmem:[%s9592_s7 + $0x20] sm:$0xff] }
 0x1ee   :  { %4095 = vmatpush.bf16.msra.mxu2 %v6587_v48 }
 0x1f0   :  { %v3555_v33 = vpop.f32.mrf.mxu2 }
 0x1f1   :  { %v3568_v44 = vpop.f32.mrf.mxu3 }
 0x1f2   :  { %4096 = vmatpush.bf16.msra.mxu2 %v6586_v42 }
 0x1f6   :  { %4097 = vmatpush.bf16.msra.mxu2 %v6585_v0 }
 0x200   :  { %v3579_v2 = vpop.f32.mrf.mxu0 }
 0x201   :  { %v3592_v11 = vpop.f32.mrf.mxu1  ;;  %v3580_v27 = vadd.f32 %v3579_v2, %v3567_v29  ;;  %v6584_v29 = vld [vmem:[%s9592_s7 + $0x18] sm:$0xff] }
 0x202   :  { %4098 = vmatpush.bf16.msra.mxu2 %v6584_v29 }
 0x203   :  { %v3593_v43 = vadd.f32 %v3592_v11, %v3580_v27  ;;  %v6599_v27 = vld [vmem:[%s9593_s8] ss:$0 sm:$0xff] }
 0x206   :  { %4099 = vmatpush.bf16.msra.mxu2 %v6583_v30 }
 0x208   :  { %v3605_v51 = vpop.f32.mrf.mxu2  ;;  %v3581_v7 = vpop.f32.mrf.mxu0 }
 0x209   :  { %v3618_v5 = vpop.f32.mrf.mxu3  ;;  %v3594_v12 = vpop.f32.mrf.mxu1  ;;  %v3606_v45 = vadd.f32 %v3605_v51, %v3593_v43  ;;  %v6581_v51 = vld [vmem:[%s9592_s7] sm:$0xff]  ;;  %v6595_v7 = vld [vmem:[%s9594_s9 + $0x30] sm:$0xff] }
 0x20a   :  { %4100 = vmatpush.bf16.msra.mxu2 %v6582_v55  ;;  %v6593_v12 = vld [vmem:[%s9594_s9 + $0x20] sm:$0xff] }
 0x20b   :  { %v3619_v54 = vadd.f32 %v3618_v5, %v3606_v45  ;;  %v6596_v5 = vld [vmem:[%s9594_s9 + $0x38] sm:$0xff]  ;;  %v6600_v45 = vld [vmem:[%s9595_s10] ss:$0 sm:$0xff] }
 0x20c   :  { %4177 = vmatpush.bf16.msra.mxu3 %v6596_v5 }
 0x20e   :  { %4101 = vmatpush.bf16.msra.mxu2 %v6581_v51 }
 0x210   :  { %v3607_v14 = vpop.f32.mrf.mxu2  ;;  %4178 = vmatpush.bf16.msra.mxu3 %v6595_v7 }
 0x211   :  { %v3620_v16 = vpop.f32.mrf.mxu3  ;;  %v6591_v14 = vld [vmem:[%s9594_s9 + $0x10] sm:$0xff] }
 0x214   :  { %4179 = vmatpush.bf16.msra.mxu3 %v6594_v9 }
 0x218   :  { %4180 = vmatpush.bf16.msra.mxu3 %v6593_v12 }
 0x21c   :  { %4181 = vmatpush.bf16.msra.mxu3 %v6592_v13 }
 0x220   :  { %v3631_v24 = vpop.f32.mrf.mxu0  ;;  %4182 = vmatpush.bf16.msra.mxu3 %v6591_v14 }
 0x221   :  { %v3644_v26 = vpop.f32.mrf.mxu1  ;;  %v3632_v4 = vadd.f32 %v3631_v24, %v3619_v54 }
 0x223   :  { %v3645_v50 = vadd.f32 %v3644_v26, %v3632_v4  ;;  %v6590_v26 = vld [vmem:[%s9594_s9 + $0x8] sm:$0xff] }
 0x224   :  { %4183 = vmatpush.bf16.msra.mxu3 %v6590_v26 }
 0x228   :  { %v3657_v34 = vpop.f32.mrf.mxu2  ;;  %v3633_v37 = vpop.f32.mrf.mxu0  ;;  %4184 = vmatpush.bf16.msra.mxu3 %v6589_v47 }
 0x229   :  { %v3670_v36 = vpop.f32.mrf.mxu3  ;;  %v3646_v40 = vpop.f32.mrf.mxu1  ;;  %v3658_v57 = vadd.f32 %v3657_v34, %v3645_v50 }
 0x22b   :  { %v3671_v23 = vadd.f32 %v3670_v36, %v3658_v57 }
 0x230   :  { %v3659_v52 = vpop.f32.mrf.mxu2 }
 0x231   :  { %v3672_v63 = vpop.f32.mrf.mxu3 }
 0x240   :  { %v3683_v20 = vpop.f32.mrf.mxu0 }
 0x241   :  { %v3684_v18 = vadd.f32 %v3683_v20, %v3671_v23  ;;  %v3696_v21 = vpop.f32.mrf.mxu1 }
 0x243   :  { %v3697_v38 = vadd.f32 %v3696_v21, %v3684_v18 }
 0x245   :  { %v3702_v31 = vmax.f32 %v3697_v38, 0.0 }
 0x247   :  { %v3705_v35 = vpack.c.bf16 %v3702_v31, %v3702_v31 }
 0x248   :  { %v3911_v10 = vpop.f32.mrf.mxu2  ;;  %v3685_v61 = vpop.f32.mrf.mxu0 }
 0x249   :  { %v3912_v59 = vadd.f32 %v6597_v28, %v3911_v10  ;;  %v3924_v60 = vpop.f32.mrf.mxu3  ;;  %v3698_v49 = vpop.f32.mrf.mxu1  ;;  %3936 = vmatmul.bf16.vlgmr.msra.gmra.mxu0 %v3705_v35 }
 0x24b   :  { %v3925_v32 = vadd.f32 %v3924_v60, %v3912_v59 }
 0x250   :  { %v3913_v8 = vpop.f32.mrf.mxu2 }
 0x251   :  { %v3926_v39 = vpop.f32.mrf.mxu3 }
 0x2c6   :  { %v3937_v1 = vpop.f32.mrf.mxu0 }
 0x2c7   :  { %v3938_v33 = vadd.f32 %v3937_v1, %v3925_v32 }
 0x2c9   :  { %v3941_v44 = vmax.f32 %v3938_v33, 0.0 }
 0x2cb   :  { %v3942_v2 = vpack.c.bf16 %v3941_v44, %v3941_v44 }
 0x2cd   :  { %4019 = vmatmul.bf16.vlgmr.msra.gmra.mxu1 %v3942_v2 }
 0x2ce   :  { %v3939_v11 = vpop.f32.mrf.mxu0 }
 0x34a   :  { %v4020_v16 = vpop.f32.mrf.mxu1 }
 0x34b   :  { %v4021_v17 = vadd.f32 %v6598_v15, %v4020_v16 }
 0x34d   :  { %v4024_v19 = vmax.f32 %v4021_v17, 0.0 }
 0x34f   :  { %v4025_v22 = vpack.c.bf16 %v4024_v19, %v4024_v19 }
 0x351   :  { %4102 = vmatmul.bf16.vlgmr.msra.gmra.mxu2 %v4025_v22 }
 0x352   :  { %v4022_v24 = vpop.f32.mrf.mxu1 }
 0x3d4   :  { %v4103_v34 = vpop.f32.mrf.mxu2 }
 0x3d5   :  { %v4104_v36 = vadd.f32 %v6599_v27, %v4103_v34 }
 0x3d7   :  { %v4107_v37 = vmax.f32 %v4104_v36, 0.0 }
 0x3d9   :  { %v4108_v40 = vpack.c.bf16 %v4107_v37, %v4107_v37 }
 0x3db   :  { %4185 = vmatmul.bf16.vlgmr.msra.gmra.mxu3 %v4108_v40 }
 0x3dc   :  { %v4105_v43 = vpop.f32.mrf.mxu2 }
 0x45e   :  { %v4186_v46 = vpop.f32.mrf.mxu3 }
 0x45f   :  { %v4187_v52 = vadd.f32 %v6600_v45, %v4186_v46 }
 0x461   :  { %v4190_v53 = vmax.f32 %v4187_v52, 0.0 }
 0x463   :  { %v4191_v54 = vmul.f32 %v4190_v53, %v3941_v44 }
 0x465   :  { %4192 = vst [vmem:[%s9596_s11] sm:$0xff] %v4191_v54 }
 0x466   :  { %v4188_v63 = vpop.f32.mrf.mxu3 }

</bundles_post_ra>
